<compile_context>
chip_gen: v7x
topology: tpu7x:2x2x1
jax: 0.10.0
libtpu: 0.0.40
codegen_flags: <defaults>
</compile_context>

<pallas_src>
import functools
import math

import jax
import jax.numpy as jnp
import numpy as np
from jax.experimental import pallas as pl
from jax.experimental.pallas import tpu as pltpu

LANES = 128      # all conv channel dims are zero-padded to this (lane-dense)
CONV_TM = 256    # output-row tile for the conv matmul grid


def _round_up(x, m):
    return (x + m - 1) // m * m


# ----------------------------------------------------------------------------
# Pallas kernels
# ----------------------------------------------------------------------------
def _conv3x3_kernel(x_ref, w_ref, b_ref, o_ref, *, offsets, tm):
    """Fused 3x3 valid conv (+ folded BN) + bias + ReLU for one tile of rows.

    x_ref: (rows_in, LANES) f32  flattened input grid (zero tail pad), resident.
    w_ref: (9, LANES, LANES) bf16 one (Cin_p, Cout_p) slab per 3x3 tap.
    b_ref: (1, LANES)        f32  bias with BN folded in (padded lanes = 0).
    o_ref: (tm, LANES)       f32  rows [i*tm, (i+1)*tm) of the flattened output.
    """
    base = pl.multiple_of(pl.program_id(0) * tm, tm)
    acc = jnp.zeros((tm, LANES), jnp.float32)
    for t, off in enumerate(offsets):                    # 9 taps, fully unrolled
        xs = x_ref[pl.ds(base + off, tm), :].astype(jnp.bfloat16)
        acc += jnp.dot(xs, w_ref[t], preferred_element_type=jnp.float32)
    o_ref[...] = jnp.maximum(acc + b_ref[...], 0.0).astype(o_ref.dtype)


def _fc_stack_kernel(x_ref, w1, b1, w2, b2, w3, b3, w4, b4, w5, b5, o_ref):
    """All five fully-connected layers fused; weights stay resident in VMEM."""
    h = x_ref[...].astype(jnp.float32)
    for w_ref, b_ref in ((w1, b1), (w2, b2), (w3, b3), (w4, b4), (w5, b5)):
        h = jnp.dot(h, w_ref[...], preferred_element_type=jnp.float32) + b_ref[...]
        h = jnp.maximum(h, 0.0)                          # fc5 has ReLU in the spec
    o_ref[...] = h.astype(o_ref.dtype)


# ----------------------------------------------------------------------------
# Wrappers around pallas_call
# ----------------------------------------------------------------------------
def conv3x3_relu(x, w9, b):
    """relu(conv2d(x) * bn_scale + bn_shift) with in-kernel im2col.

    x  : (N, H, W, LANES) f32 NHWC (channels zero-padded to LANES)
    w9 : (9, LANES, LANES) bf16, b: (1, LANES) f32
    returns (N, H-2, W-2, LANES) f32
    """
    N, H, W, Cp = x.shape
    assert Cp == LANES
    Ho, Wo = H - 2, W - 2
    M = N * H * W
    m_pad = _round_up(M, CONV_TM)
    tail = 2 * W + 2                                 # max shifted-slice offset
    x_flat = jnp.pad(x.reshape(M, Cp), ((0, m_pad - M + tail), (0, 0)))
    rows_in = m_pad + tail
    offsets = tuple(di * W + dj for di in range(3) for dj in range(3))
    kernel = functools.partial(_conv3x3_kernel, offsets=offsets, tm=CONV_TM)

    out = pl.pallas_call(
        kernel,
        out_shape=jax.ShapeDtypeStruct((m_pad, LANES), jnp.float32),
        grid=(m_pad // CONV_TM,),
        in_specs=[
            pl.BlockSpec((rows_in, Cp), lambda i: (0, 0)),        # resident input
            pl.BlockSpec((9, LANES, LANES), lambda i: (0, 0, 0)), # resident weights
            pl.BlockSpec((1, LANES), lambda i: (0, 0)),           # resident bias
        ],
        out_specs=pl.BlockSpec((CONV_TM, LANES), lambda i: (i, 0)),
        compiler_params=pltpu.CompilerParams(
            dimension_semantics=("parallel",)),
    )(x_flat, w9, b)

    # Valid conv outputs live at flattened rows n*H*W + i*W + j with i<Ho, j<Wo.
    return out[:M].reshape(N, H, W, LANES)[:, :Ho, :Wo, :]


def fc_stack(x, fcs):
    """Single fused pallas_call for fc1..fc5 (+ folded BN + ReLU)."""
    M = x.shape[0]
    n_out = fcs[-1][0].shape[1]
    flat_args = [x]
    in_specs = [pl.BlockSpec(tuple(x.shape), lambda i: (0, 0))]
    for w, b in fcs:
        flat_args += [w, b]
        in_specs += [pl.BlockSpec(tuple(w.shape), lambda i: (0, 0)),
                     pl.BlockSpec(tuple(b.shape), lambda i: (0, 0))]
    return pl.pallas_call(
        _fc_stack_kernel,
        out_shape=jax.ShapeDtypeStruct((M, n_out), jnp.float32),
        grid=(1,),
        in_specs=in_specs,
        out_specs=pl.BlockSpec((M, n_out), lambda i: (0, 0)),
    )(*flat_args)


def max_pool_2x2(x):
    """F.max_pool2d(x, 2, 2) on NHWC via four strided slices (XLA glue)."""
    return jnp.maximum(
        jnp.maximum(x[:, 0::2, 0::2, :], x[:, 0::2, 1::2, :]),
        jnp.maximum(x[:, 1::2, 0::2, :], x[:, 1::2, 1::2, :]))


# ----------------------------------------------------------------------------
# Parameter construction (PyTorch-default-style uniform init) and prep
# ----------------------------------------------------------------------------
def _uniform(key, shape, fan_in):
    bound = 1.0 / math.sqrt(fan_in)
    return jax.random.uniform(key, shape, jnp.float32, -bound, bound)


def _bn_params(num_features):
    # PyTorch defaults: gamma=1, beta=0, running_mean=0, running_var=1.
    return (jnp.ones((num_features,), jnp.float32),
            jnp.zeros((num_features,), jnp.float32),
            jnp.zeros((num_features,), jnp.float32),
            jnp.ones((num_features,), jnp.float32))


def bn_fold(gamma, beta, mean, var, eps=1e-5):
    scale = gamma / jnp.sqrt(var + eps)
    return scale, beta - mean * scale


def calc_out_size(w, h, k, p, s):
    return (w - k + 2 * p) // s + 1, (h - k + 2 * p) // s + 1


def calc_pool_size(w, h, k, s):
    return (w - k) // s + 1, (h - k) // s + 1


def init_params(key, w_in, h_in):
    ks = jax.random.split(key, 18)
    p = {}
    p["conv1_w"] = _uniform(ks[0], (60, 3, 3, 3), 3 * 9)
    p["conv1_b"] = _uniform(ks[1], (60,), 3 * 9)
    p["conv2_w"] = _uniform(ks[2], (30, 60, 3, 3), 60 * 9)
    p["conv2_b"] = _uniform(ks[3], (30,), 60 * 9)
    p["conv3_w"] = _uniform(ks[4], (10, 30, 3, 3), 30 * 9)
    p["conv3_b"] = _uniform(ks[5], (10,), 30 * 9)
    p["conv4_w"] = _uniform(ks[6], (5, 10, 3, 3), 10 * 9)
    p["conv4_b"] = _uniform(ks[7], (5,), 10 * 9)
    p["bn3"] = _bn_params(10)

    # spatial bookkeeping identical to the PyTorch __init__
    w, h = w_in, h_in
    w, h = calc_out_size(w, h, 3, 0, 1)
    w, h = calc_out_size(w, h, 3, 0, 1)
    w, h = calc_pool_size(w, h, 2, 2)
    w, h = calc_out_size(w, h, 3, 0, 1)
    w, h = calc_out_size(w, h, 3, 0, 1)
    w, h = calc_pool_size(w, h, 2, 2)
    flat = w * h * 5
    p["hw_final"] = (h, w)

    # fc weights stored as (in, out); fc1 rows in PyTorch NCHW flatten order.
    p["fc1_w"] = _uniform(ks[8], (flat, 500), flat)
    p["fc1_b"] = _uniform(ks[9], (500,), flat)
    p["bn_fc1"] = _bn_params(500)
    p["fc2_w"] = _uniform(ks[10], (500, 250), 500)
    p["fc2_b"] = _uniform(ks[11], (250,), 500)
    p["fc3_w"] = _uniform(ks[12], (250, 100), 250)
    p["fc3_b"] = _uniform(ks[13], (100,), 250)
    p["bn_fc3"] = _bn_params(100)
    p["fc4_w"] = _uniform(ks[14], (100, 25), 100)
    p["fc4_b"] = _uniform(ks[15], (25,), 100)
    p["fc5_w"] = _uniform(ks[16], (25, 1), 25)
    p["fc5_b"] = _uniform(ks[17], (1,), 25)
    return p


def _prep_conv(w_oihw, b, scale=None, shift=None):
    """OIHW -> (9, Cin_p=128, Cout_p=128) bf16 with BN folded, padded with zeros."""
    cout, cin, kh, kw = w_oihw.shape
    if scale is None:
        scale = jnp.ones((cout,), jnp.float32)
        shift = jnp.zeros((cout,), jnp.float32)
    wt = jnp.transpose(w_oihw, (2, 3, 1, 0)).reshape(kh * kw, cin, cout) * scale
    bt = b * scale + shift
    wp = jnp.zeros((kh * kw, LANES, LANES), jnp.float32).at[:, :cin, :cout].set(wt)
    bp = jnp.zeros((1, LANES), jnp.float32).at[0, :cout].set(bt)
    return wp.astype(jnp.bfloat16), bp


def _prep_fc(w_in_out, b, scale=None, shift=None):
    n = w_in_out.shape[1]
    if scale is None:
        scale = jnp.ones((n,), jnp.float32)
        shift = jnp.zeros((n,), jnp.float32)
    return w_in_out * scale[None, :], (b * scale + shift).reshape(1, n)


def _nhwc_flatten_perm(c, h, w):
    """perm[nhwc_flat_idx] = pytorch_nchw_flat_idx, so fc1 consumes NHWC order."""
    idx = np.arange(c * h * w).reshape(c, h, w)          # (c, i, j): c*h*w + i*w + j
    return jnp.asarray(idx.transpose(1, 2, 0).reshape(-1))


def prepare_params(p):
    """One-time constant transforms: fold BN, pad to lane-dense layouts,
    cast conv weights to bf16, permute fc1 rows to NHWC flatten order."""
    prep = {}
    prep["conv1"] = _prep_conv(p["conv1_w"], p["conv1_b"])
    prep["conv2"] = _prep_conv(p["conv2_w"], p["conv2_b"])
    s3, t3 = bn_fold(*p["bn3"])
    prep["conv3"] = _prep_conv(p["conv3_w"], p["conv3_b"], s3, t3)
    prep["conv4"] = _prep_conv(p["conv4_w"], p["conv4_b"])

    h_f, w_f = p["hw_final"]
    perm = _nhwc_flatten_perm(5, h_f, w_f)
    fc1_w = p["fc1_w"][perm, :]
    s1, t1 = bn_fold(*p["bn_fc1"])
    s3f, t3f = bn_fold(*p["bn_fc3"])
    prep["fcs"] = [
        _prep_fc(fc1_w, p["fc1_b"], s1, t1),
        _prep_fc(p["fc2_w"], p["fc2_b"]),
        _prep_fc(p["fc3_w"], p["fc3_b"], s3f, t3f),
        _prep_fc(p["fc4_w"], p["fc4_b"]),
        _prep_fc(p["fc5_w"], p["fc5_b"]),
    ]
    return prep


# ----------------------------------------------------------------------------
# Forward pass (mirrors Simple.forward)
# ----------------------------------------------------------------------------
def simple_forward(prep, x_nchw):
    n, c = x_nchw.shape[0], x_nchw.shape[1]
    # NCHW -> NHWC, zero-pad channels to the lane-dense width (one-time prep).
    x = jnp.transpose(x_nchw, (0, 2, 3, 1))
    x = jnp.pad(x, ((0, 0), (0, 0), (0, 0), (0, LANES - c)))
    x = conv3x3_relu(x, *prep["conv1"])          # relu(conv1)
    x = conv3x3_relu(x, *prep["conv2"])          # relu(conv2)
    x = max_pool_2x2(x)
    x = conv3x3_relu(x, *prep["conv3"])          # relu(bn3(conv3)) -- BN folded
    x = conv3x3_relu(x, *prep["conv4"])          # relu(conv4)
    x = max_pool_2x2(x)
    # NHWC flatten of the 5 real channels; fc1 rows were permuted to match.
    x = x[:, :, :, :5].reshape(n, -1)
    return fc_stack(x, prep["fcs"])              # fc1..fc5 fused (BNs folded)


if __name__ == "__main__":
    # Small shapes consistent with the module: Simple(w=36, h=36), batch=2.
    H_IN, W_IN = 36, 36
    key = jax.random.PRNGKey(0)
    k_x, k_p = jax.random.split(key)
    x = jax.random.normal(k_x, (2, 3, H_IN, W_IN), dtype=jnp.float32)  # NCHW
    params = init_params(k_p, W_IN, H_IN)
    prep = prepare_params(params)

    fwd = jax.jit(simple_forward)
    out = jax.block_until_ready(fwd(prep, x))
    assert out.shape == (2, 1), out.shape
    assert bool(jnp.all(jnp.isfinite(out)))
    print("KERNEL_OK")
</pallas_src>

<mosaic_0001>
module attributes {stable_mosaic.version = 11 : i64} {
  func.func @_conv3x3_kernel(%arg0: i32, %arg1: memref<2890x128xf32, #tpu.memory_space<vmem>>, %arg2: memref<9x128x128xbf16, #tpu.memory_space<vmem>>, %arg3: memref<1x128xf32, #tpu.memory_space<vmem>>, %arg4: memref<256x128xf32, #tpu.memory_space<vmem>>) attributes {dimension_semantics = [#tpu.dimension_semantics<parallel>], iteration_bounds = array<i64: 11>, scalar_prefetch = 0 : i64, scratch_operands = 0 : i64, tpu.core_type = #tpu.core_type<tc>, window_params = [{pipeline_mode = #tpu.pipeline_mode<synchronous>, transform_indices = @transform_0, window_bounds = array<i64: 2890, 128>}, {pipeline_mode = #tpu.pipeline_mode<synchronous>, transform_indices = @transform_1, window_bounds = array<i64: 9, 128, 128>}, {pipeline_mode = #tpu.pipeline_mode<synchronous>, transform_indices = @transform_2, window_bounds = array<i64: 1, 128>}, {transform_indices = @transform_3, window_bounds = array<i64: 256, 128>}]} {
    %c256_i32 = arith.constant 256 : i32
    %0 = arith.muli %arg0, %c256_i32 : i32
    %1 = tpu.assume_multiple %0, 256 : i32
    %cst = arith.constant 0.000000e+00 : f32
    %2 = vector.broadcast %cst : f32 to vector<256x128xf32>
    %c0_i32 = arith.constant 0 : i32
    %3 = arith.addi %1, %c0_i32 : i32
    %4 = arith.index_cast %3 : i32 to index
    %c0 = arith.constant 0 : index
    %5 = vector.load %arg1[%4, %c0] : memref<2890x128xf32, #tpu.memory_space<vmem>>, vector<256x128xf32>
    %6 = arith.truncf %5 : vector<256x128xf32> to vector<256x128xbf16>
    %c0_0 = arith.constant 0 : index
    %c0_1 = arith.constant 0 : index
    %c0_2 = arith.constant 0 : index
    %7 = vector.load %arg2[%c0_0, %c0_1, %c0_2] : memref<9x128x128xbf16, #tpu.memory_space<vmem>>, vector<1x128x128xbf16>
    %8 = vector.shape_cast %7 : vector<1x128x128xbf16> to vector<128x128xbf16>
    %cst_3 = arith.constant dense<0.000000e+00> : vector<256x128xf32>
    %9 = tpu.matmul %6, %8, %cst_3 {dimension_numbers = #tpu.dot_dimension_numbers<[1], [0], [0], [1], [0, 0, 1, 1], [], []>} : vector<256x128xbf16>, vector<128x128xbf16>, vector<256x128xf32> -> vector<256x128xf32>
    %10 = arith.addf %2, %9 : vector<256x128xf32>
    %c1_i32 = arith.constant 1 : i32
    %11 = arith.addi %1, %c1_i32 : i32
    %12 = arith.index_cast %11 : i32 to index
    %c0_4 = arith.constant 0 : index
    %13 = vector.load %arg1[%12, %c0_4] : memref<2890x128xf32, #tpu.memory_space<vmem>>, vector<256x128xf32>
    %14 = arith.truncf %13 : vector<256x128xf32> to vector<256x128xbf16>
    %c1 = arith.constant 1 : index
    %c0_5 = arith.constant 0 : index
    %c0_6 = arith.constant 0 : index
    %15 = vector.load %arg2[%c1, %c0_5, %c0_6] : memref<9x128x128xbf16, #tpu.memory_space<vmem>>, vector<1x128x128xbf16>
    %16 = vector.shape_cast %15 : vector<1x128x128xbf16> to vector<128x128xbf16>
    %cst_7 = arith.constant dense<0.000000e+00> : vector<256x128xf32>
    %17 = tpu.matmul %14, %16, %cst_7 {dimension_numbers = #tpu.dot_dimension_numbers<[1], [0], [0], [1], [0, 0, 1, 1], [], []>} : vector<256x128xbf16>, vector<128x128xbf16>, vector<256x128xf32> -> vector<256x128xf32>
    %18 = arith.addf %10, %17 : vector<256x128xf32>
    %c2_i32 = arith.constant 2 : i32
    %19 = arith.addi %1, %c2_i32 : i32
    %20 = arith.index_cast %19 : i32 to index
    %c0_8 = arith.constant 0 : index
    %21 = vector.load %arg1[%20, %c0_8] : memref<2890x128xf32, #tpu.memory_space<vmem>>, vector<256x128xf32>
    %22 = arith.truncf %21 : vector<256x128xf32> to vector<256x128xbf16>
    %c2 = arith.constant 2 : index
    %c0_9 = arith.constant 0 : index
    %c0_10 = arith.constant 0 : index
    %23 = vector.load %arg2[%c2, %c0_9, %c0_10] : memref<9x128x128xbf16, #tpu.memory_space<vmem>>, vector<1x128x128xbf16>
    %24 = vector.shape_cast %23 : vector<1x128x128xbf16> to vector<128x128xbf16>
    %cst_11 = arith.constant dense<0.000000e+00> : vector<256x128xf32>
    %25 = tpu.matmul %22, %24, %cst_11 {dimension_numbers = #tpu.dot_dimension_numbers<[1], [0], [0], [1], [0, 0, 1, 1], [], []>} : vector<256x128xbf16>, vector<128x128xbf16>, vector<256x128xf32> -> vector<256x128xf32>
    %26 = arith.addf %18, %25 : vector<256x128xf32>
    %c36_i32 = arith.constant 36 : i32
    %27 = arith.addi %1, %c36_i32 : i32
    %28 = arith.index_cast %27 : i32 to index
    %c0_12 = arith.constant 0 : index
    %29 = vector.load %arg1[%28, %c0_12] : memref<2890x128xf32, #tpu.memory_space<vmem>>, vector<256x128xf32>
    %30 = arith.truncf %29 : vector<256x128xf32> to vector<256x128xbf16>
    %c3 = arith.constant 3 : index
    %c0_13 = arith.constant 0 : index
    %c0_14 = arith.constant 0 : index
    %31 = vector.load %arg2[%c3, %c0_13, %c0_14] : memref<9x128x128xbf16, #tpu.memory_space<vmem>>, vector<1x128x128xbf16>
    %32 = vector.shape_cast %31 : vector<1x128x128xbf16> to vector<128x128xbf16>
    %cst_15 = arith.constant dense<0.000000e+00> : vector<256x128xf32>
    %33 = tpu.matmul %30, %32, %cst_15 {dimension_numbers = #tpu.dot_dimension_numbers<[1], [0], [0], [1], [0, 0, 1, 1], [], []>} : vector<256x128xbf16>, vector<128x128xbf16>, vector<256x128xf32> -> vector<256x128xf32>
    %34 = arith.addf %26, %33 : vector<256x128xf32>
    %c37_i32 = arith.constant 37 : i32
    %35 = arith.addi %1, %c37_i32 : i32
    %36 = arith.index_cast %35 : i32 to index
    %c0_16 = arith.constant 0 : index
    %37 = vector.load %arg1[%36, %c0_16] : memref<2890x128xf32, #tpu.memory_space<vmem>>, vector<256x128xf32>
    %38 = arith.truncf %37 : vector<256x128xf32> to vector<256x128xbf16>
    %c4 = arith.constant 4 : index
    %c0_17 = arith.constant 0 : index
    %c0_18 = arith.constant 0 : index
    %39 = vector.load %arg2[%c4, %c0_17, %c0_18] : memref<9x128x128xbf16, #tpu.memory_space<vmem>>, vector<1x128x128xbf16>
    %40 = vector.shape_cast %39 : vector<1x128x128xbf16> to vector<128x128xbf16>
    %cst_19 = arith.constant dense<0.000000e+00> : vector<256x128xf32>
    %41 = tpu.matmul %38, %40, %cst_19 {dimension_numbers = #tpu.dot_dimension_numbers<[1], [0], [0], [1], [0, 0, 1, 1], [], []>} : vector<256x128xbf16>, vector<128x128xbf16>, vector<256x128xf32> -> vector<256x128xf32>
    %42 = arith.addf %34, %41 : vector<256x128xf32>
    %c38_i32 = arith.constant 38 : i32
    %43 = arith.addi %1, %c38_i32 : i32
    %44 = arith.index_cast %43 : i32 to index
    %c0_20 = arith.constant 0 : index
    %45 = vector.load %arg1[%44, %c0_20] : memref<2890x128xf32, #tpu.memory_space<vmem>>, vector<256x128xf32>
    %46 = arith.truncf %45 : vector<256x128xf32> to vector<256x128xbf16>
    %c5 = arith.constant 5 : index
    %c0_21 = arith.constant 0 : index
    %c0_22 = arith.constant 0 : index
    %47 = vector.load %arg2[%c5, %c0_21, %c0_22] : memref<9x128x128xbf16, #tpu.memory_space<vmem>>, vector<1x128x128xbf16>
    %48 = vector.shape_cast %47 : vector<1x128x128xbf16> to vector<128x128xbf16>
    %cst_23 = arith.constant dense<0.000000e+00> : vector<256x128xf32>
    %49 = tpu.matmul %46, %48, %cst_23 {dimension_numbers = #tpu.dot_dimension_numbers<[1], [0], [0], [1], [0, 0, 1, 1], [], []>} : vector<256x128xbf16>, vector<128x128xbf16>, vector<256x128xf32> -> vector<256x128xf32>
    %50 = arith.addf %42, %49 : vector<256x128xf32>
    %c72_i32 = arith.constant 72 : i32
    %51 = arith.addi %1, %c72_i32 : i32
    %52 = arith.index_cast %51 : i32 to index
    %c0_24 = arith.constant 0 : index
    %53 = vector.load %arg1[%52, %c0_24] : memref<2890x128xf32, #tpu.memory_space<vmem>>, vector<256x128xf32>
    %54 = arith.truncf %53 : vector<256x128xf32> to vector<256x128xbf16>
    %c6 = arith.constant 6 : index
    %c0_25 = arith.constant 0 : index
    %c0_26 = arith.constant 0 : index
    %55 = vector.load %arg2[%c6, %c0_25, %c0_26] : memref<9x128x128xbf16, #tpu.memory_space<vmem>>, vector<1x128x128xbf16>
    %56 = vector.shape_cast %55 : vector<1x128x128xbf16> to vector<128x128xbf16>
    %cst_27 = arith.constant dense<0.000000e+00> : vector<256x128xf32>
    %57 = tpu.matmul %54, %56, %cst_27 {dimension_numbers = #tpu.dot_dimension_numbers<[1], [0], [0], [1], [0, 0, 1, 1], [], []>} : vector<256x128xbf16>, vector<128x128xbf16>, vector<256x128xf32> -> vector<256x128xf32>
    %58 = arith.addf %50, %57 : vector<256x128xf32>
    %c73_i32 = arith.constant 73 : i32
    %59 = arith.addi %1, %c73_i32 : i32
    %60 = arith.index_cast %59 : i32 to index
    %c0_28 = arith.constant 0 : index
    %61 = vector.load %arg1[%60, %c0_28] : memref<2890x128xf32, #tpu.memory_space<vmem>>, vector<256x128xf32>
    %62 = arith.truncf %61 : vector<256x128xf32> to vector<256x128xbf16>
    %c7 = arith.constant 7 : index
    %c0_29 = arith.constant 0 : index
    %c0_30 = arith.constant 0 : index
    %63 = vector.load %arg2[%c7, %c0_29, %c0_30] : memref<9x128x128xbf16, #tpu.memory_space<vmem>>, vector<1x128x128xbf16>
    %64 = vector.shape_cast %63 : vector<1x128x128xbf16> to vector<128x128xbf16>
    %cst_31 = arith.constant dense<0.000000e+00> : vector<256x128xf32>
    %65 = tpu.matmul %62, %64, %cst_31 {dimension_numbers = #tpu.dot_dimension_numbers<[1], [0], [0], [1], [0, 0, 1, 1], [], []>} : vector<256x128xbf16>, vector<128x128xbf16>, vector<256x128xf32> -> vector<256x128xf32>
    %66 = arith.addf %58, %65 : vector<256x128xf32>
    %c74_i32 = arith.constant 74 : i32
    %67 = arith.addi %1, %c74_i32 : i32
    %68 = arith.index_cast %67 : i32 to index
    %c0_32 = arith.constant 0 : index
    %69 = vector.load %arg1[%68, %c0_32] : memref<2890x128xf32, #tpu.memory_space<vmem>>, vector<256x128xf32>
    %70 = arith.truncf %69 : vector<256x128xf32> to vector<256x128xbf16>
    %c8 = arith.constant 8 : index
    %c0_33 = arith.constant 0 : index
    %c0_34 = arith.constant 0 : index
    %71 = vector.load %arg2[%c8, %c0_33, %c0_34] : memref<9x128x128xbf16, #tpu.memory_space<vmem>>, vector<1x128x128xbf16>
    %72 = vector.shape_cast %71 : vector<1x128x128xbf16> to vector<128x128xbf16>
    %cst_35 = arith.constant dense<0.000000e+00> : vector<256x128xf32>
    %73 = tpu.matmul %70, %72, %cst_35 {dimension_numbers = #tpu.dot_dimension_numbers<[1], [0], [0], [1], [0, 0, 1, 1], [], []>} : vector<256x128xbf16>, vector<128x128xbf16>, vector<256x128xf32> -> vector<256x128xf32>
    %74 = arith.addf %66, %73 : vector<256x128xf32>
    %c0_36 = arith.constant 0 : index
    %c0_37 = arith.constant 0 : index
    %75 = vector.load %arg3[%c0_36, %c0_37] : memref<1x128xf32, #tpu.memory_space<vmem>>, vector<1x128xf32>
    %76 = vector.broadcast %75 : vector<1x128xf32> to vector<256x128xf32>
    %77 = arith.addf %74, %76 : vector<256x128xf32>
    %cst_38 = arith.constant 0.000000e+00 : f32
    %78 = vector.broadcast %cst_38 : f32 to vector<256x128xf32>
    %79 = arith.maximumf %77, %78 : vector<256x128xf32>
    %c0_39 = arith.constant 0 : index
    %c0_40 = arith.constant 0 : index
    %80 = vector.load %arg4[%c0_39, %c0_40] : memref<256x128xf32, #tpu.memory_space<vmem>>, vector<256x128xf32>
    tpu.vector_store %arg4[%c0_39, %c0_40], %79 {strides = array<i32>} : memref<256x128xf32, #tpu.memory_space<vmem>>, vector<256x128xf32>,
    return
  }
  func.func @transform_0(%arg0: i32) -> (i32, i32) {
    %c0_i32 = arith.constant 0 : i32
    %c0_i32_0 = arith.constant 0 : i32
    %c0_i32_1 = arith.constant 0 : i32
    return %c0_i32, %c0_i32_0 : i32, i32
  }
  func.func @transform_1(%arg0: i32) -> (i32, i32, i32) {
    %c0_i32 = arith.constant 0 : i32
    %c0_i32_0 = arith.constant 0 : i32
    %c0_i32_1 = arith.constant 0 : i32
    %c0_i32_2 = arith.constant 0 : i32
    return %c0_i32, %c0_i32_0, %c0_i32_1 : i32, i32, i32
  }
  func.func @transform_2(%arg0: i32) -> (i32, i32) {
    %c0_i32 = arith.constant 0 : i32
    %c0_i32_0 = arith.constant 0 : i32
    %c0_i32_1 = arith.constant 0 : i32
    return %c0_i32, %c0_i32_0 : i32, i32
  }
  func.func @transform_3(%arg0: i32) -> (i32, i32) {
    %c0_i32 = arith.constant 0 : i32
    %c0_i32_0 = arith.constant 0 : i32
    return %arg0, %c0_i32 : i32, i32
  }
}

module attributes {stable_mosaic.version = 11 : i64} {
  func.func @_conv3x3_kernel(%arg0: i32, %arg1: memref<2630x128xf32, #tpu.memory_space<vmem>>, %arg2: memref<9x128x128xbf16, #tpu.memory_space<vmem>>, %arg3: memref<1x128xf32, #tpu.memory_space<vmem>>, %arg4: memref<256x128xf32, #tpu.memory_space<vmem>>) attributes {dimension_semantics = [#tpu.dimension_semantics<parallel>], iteration_bounds = array<i64: 10>, scalar_prefetch = 0 : i64, scratch_operands = 0 : i64, tpu.core_type = #tpu.core_type<tc>, window_params = [{pipeline_mode = #tpu.pipeline_mode<synchronous>, transform_indices = @transform_0, window_bounds = array<i64: 2630, 128>}, {pipeline_mode = #tpu.pipeline_mode<synchronous>, transform_indices = @transform_1, window_bounds = array<i64: 9, 128, 128>}, {pipeline_mode = #tpu.pipeline_mode<synchronous>, transform_indices = @transform_2, window_bounds = array<i64: 1, 128>}, {transform_indices = @transform_3, window_bounds = array<i64: 256, 128>}]} {
    %c256_i32 = arith.constant 256 : i32
    %0 = arith.muli %arg0, %c256_i32 : i32
    %1 = tpu.assume_multiple %0, 256 : i32
    %cst = arith.constant 0.000000e+00 : f32
    %2 = vector.broadcast %cst : f32 to vector<256x128xf32>
    %c0_i32 = arith.constant 0 : i32
    %3 = arith.addi %1, %c0_i32 : i32
    %4 = arith.index_cast %3 : i32 to index
    %c0 = arith.constant 0 : index
    %5 = vector.load %arg1[%4, %c0] : memref<2630x128xf32, #tpu.memory_space<vmem>>, vector<256x128xf32>
    %6 = arith.truncf %5 : vector<256x128xf32> to vector<256x128xbf16>
    %c0_0 = arith.constant 0 : index
    %c0_1 = arith.constant 0 : index
    %c0_2 = arith.constant 0 : index
    %7 = vector.load %arg2[%c0_0, %c0_1, %c0_2] : memref<9x128x128xbf16, #tpu.memory_space<vmem>>, vector<1x128x128xbf16>
    %8 = vector.shape_cast %7 : vector<1x128x128xbf16> to vector<128x128xbf16>
    %cst_3 = arith.constant dense<0.000000e+00> : vector<256x128xf32>
    %9 = tpu.matmul %6, %8, %cst_3 {dimension_numbers = #tpu.dot_dimension_numbers<[1], [0], [0], [1], [0, 0, 1, 1], [], []>} : vector<256x128xbf16>, vector<128x128xbf16>, vector<256x128xf32> -> vector<256x128xf32>
    %10 = arith.addf %2, %9 : vector<256x128xf32>
    %c1_i32 = arith.constant 1 : i32
    %11 = arith.addi %1, %c1_i32 : i32
    %12 = arith.index_cast %11 : i32 to index
    %c0_4 = arith.constant 0 : index
    %13 = vector.load %arg1[%12, %c0_4] : memref<2630x128xf32, #tpu.memory_space<vmem>>, vector<256x128xf32>
    %14 = arith.truncf %13 : vector<256x128xf32> to vector<256x128xbf16>
    %c1 = arith.constant 1 : index
    %c0_5 = arith.constant 0 : index
    %c0_6 = arith.constant 0 : index
    %15 = vector.load %arg2[%c1, %c0_5, %c0_6] : memref<9x128x128xbf16, #tpu.memory_space<vmem>>, vector<1x128x128xbf16>
    %16 = vector.shape_cast %15 : vector<1x128x128xbf16> to vector<128x128xbf16>
    %cst_7 = arith.constant dense<0.000000e+00> : vector<256x128xf32>
    %17 = tpu.matmul %14, %16, %cst_7 {dimension_numbers = #tpu.dot_dimension_numbers<[1], [0], [0], [1], [0, 0, 1, 1], [], []>} : vector<256x128xbf16>, vector<128x128xbf16>, vector<256x128xf32> -> vector<256x128xf32>
    %18 = arith.addf %10, %17 : vector<256x128xf32>
    %c2_i32 = arith.constant 2 : i32
    %19 = arith.addi %1, %c2_i32 : i32
    %20 = arith.index_cast %19 : i32 to index
    %c0_8 = arith.constant 0 : index
    %21 = vector.load %arg1[%20, %c0_8] : memref<2630x128xf32, #tpu.memory_space<vmem>>, vector<256x128xf32>
    %22 = arith.truncf %21 : vector<256x128xf32> to vector<256x128xbf16>
    %c2 = arith.constant 2 : index
    %c0_9 = arith.constant 0 : index
    %c0_10 = arith.constant 0 : index
    %23 = vector.load %arg2[%c2, %c0_9, %c0_10] : memref<9x128x128xbf16, #tpu.memory_space<vmem>>, vector<1x128x128xbf16>
    %24 = vector.shape_cast %23 : vector<1x128x128xbf16> to vector<128x128xbf16>
    %cst_11 = arith.constant dense<0.000000e+00> : vector<256x128xf32>
    %25 = tpu.matmul %22, %24, %cst_11 {dimension_numbers = #tpu.dot_dimension_numbers<[1], [0], [0], [1], [0, 0, 1, 1], [], []>} : vector<256x128xbf16>, vector<128x128xbf16>, vector<256x128xf32> -> vector<256x128xf32>
    %26 = arith.addf %18, %25 : vector<256x128xf32>
    %c34_i32 = arith.constant 34 : i32
    %27 = arith.addi %1, %c34_i32 : i32
    %28 = arith.index_cast %27 : i32 to index
    %c0_12 = arith.constant 0 : index
    %29 = vector.load %arg1[%28, %c0_12] : memref<2630x128xf32, #tpu.memory_space<vmem>>, vector<256x128xf32>
    %30 = arith.truncf %29 : vector<256x128xf32> to vector<256x128xbf16>
    %c3 = arith.constant 3 : index
    %c0_13 = arith.constant 0 : index
    %c0_14 = arith.constant 0 : index
    %31 = vector.load %arg2[%c3, %c0_13, %c0_14] : memref<9x128x128xbf16, #tpu.memory_space<vmem>>, vector<1x128x128xbf16>
    %32 = vector.shape_cast %31 : vector<1x128x128xbf16> to vector<128x128xbf16>
    %cst_15 = arith.constant dense<0.000000e+00> : vector<256x128xf32>
    %33 = tpu.matmul %30, %32, %cst_15 {dimension_numbers = #tpu.dot_dimension_numbers<[1], [0], [0], [1], [0, 0, 1, 1], [], []>} : vector<256x128xbf16>, vector<128x128xbf16>, vector<256x128xf32> -> vector<256x128xf32>
    %34 = arith.addf %26, %33 : vector<256x128xf32>
    %c35_i32 = arith.constant 35 : i32
    %35 = arith.addi %1, %c35_i32 : i32
    %36 = arith.index_cast %35 : i32 to index
    %c0_16 = arith.constant 0 : index
    %37 = vector.load %arg1[%36, %c0_16] : memref<2630x128xf32, #tpu.memory_space<vmem>>, vector<256x128xf32>
    %38 = arith.truncf %37 : vector<256x128xf32> to vector<256x128xbf16>
    %c4 = arith.constant 4 : index
    %c0_17 = arith.constant 0 : index
    %c0_18 = arith.constant 0 : index
    %39 = vector.load %arg2[%c4, %c0_17, %c0_18] : memref<9x128x128xbf16, #tpu.memory_space<vmem>>, vector<1x128x128xbf16>
    %40 = vector.shape_cast %39 : vector<1x128x128xbf16> to vector<128x128xbf16>
    %cst_19 = arith.constant dense<0.000000e+00> : vector<256x128xf32>
    %41 = tpu.matmul %38, %40, %cst_19 {dimension_numbers = #tpu.dot_dimension_numbers<[1], [0], [0], [1], [0, 0, 1, 1], [], []>} : vector<256x128xbf16>, vector<128x128xbf16>, vector<256x128xf32> -> vector<256x128xf32>
    %42 = arith.addf %34, %41 : vector<256x128xf32>
    %c36_i32 = arith.constant 36 : i32
    %43 = arith.addi %1, %c36_i32 : i32
    %44 = arith.index_cast %43 : i32 to index
    %c0_20 = arith.constant 0 : index
    %45 = vector.load %arg1[%44, %c0_20] : memref<2630x128xf32, #tpu.memory_space<vmem>>, vector<256x128xf32>
    %46 = arith.truncf %45 : vector<256x128xf32> to vector<256x128xbf16>
    %c5 = arith.constant 5 : index
    %c0_21 = arith.constant 0 : index
    %c0_22 = arith.constant 0 : index
    %47 = vector.load %arg2[%c5, %c0_21, %c0_22] : memref<9x128x128xbf16, #tpu.memory_space<vmem>>, vector<1x128x128xbf16>
    %48 = vector.shape_cast %47 : vector<1x128x128xbf16> to vector<128x128xbf16>
    %cst_23 = arith.constant dense<0.000000e+00> : vector<256x128xf32>
    %49 = tpu.matmul %46, %48, %cst_23 {dimension_numbers = #tpu.dot_dimension_numbers<[1], [0], [0], [1], [0, 0, 1, 1], [], []>} : vector<256x128xbf16>, vector<128x128xbf16>, vector<256x128xf32> -> vector<256x128xf32>
    %50 = arith.addf %42, %49 : vector<256x128xf32>
    %c68_i32 = arith.constant 68 : i32
    %51 = arith.addi %1, %c68_i32 : i32
    %52 = arith.index_cast %51 : i32 to index
    %c0_24 = arith.constant 0 : index
    %53 = vector.load %arg1[%52, %c0_24] : memref<2630x128xf32, #tpu.memory_space<vmem>>, vector<256x128xf32>
    %54 = arith.truncf %53 : vector<256x128xf32> to vector<256x128xbf16>
    %c6 = arith.constant 6 : index
    %c0_25 = arith.constant 0 : index
    %c0_26 = arith.constant 0 : index
    %55 = vector.load %arg2[%c6, %c0_25, %c0_26] : memref<9x128x128xbf16, #tpu.memory_space<vmem>>, vector<1x128x128xbf16>
    %56 = vector.shape_cast %55 : vector<1x128x128xbf16> to vector<128x128xbf16>
    %cst_27 = arith.constant dense<0.000000e+00> : vector<256x128xf32>
    %57 = tpu.matmul %54, %56, %cst_27 {dimension_numbers = #tpu.dot_dimension_numbers<[1], [0], [0], [1], [0, 0, 1, 1], [], []>} : vector<256x128xbf16>, vector<128x128xbf16>, vector<256x128xf32> -> vector<256x128xf32>
    %58 = arith.addf %50, %57 : vector<256x128xf32>
    %c69_i32 = arith.constant 69 : i32
    %59 = arith.addi %1, %c69_i32 : i32
    %60 = arith.index_cast %59 : i32 to index
    %c0_28 = arith.constant 0 : index
    %61 = vector.load %arg1[%60, %c0_28] : memref<2630x128xf32, #tpu.memory_space<vmem>>, vector<256x128xf32>
    %62 = arith.truncf %61 : vector<256x128xf32> to vector<256x128xbf16>
    %c7 = arith.constant 7 : index
    %c0_29 = arith.constant 0 : index
    %c0_30 = arith.constant 0 : index
    %63 = vector.load %arg2[%c7, %c0_29, %c0_30] : memref<9x128x128xbf16, #tpu.memory_space<vmem>>, vector<1x128x128xbf16>
    %64 = vector.shape_cast %63 : vector<1x128x128xbf16> to vector<128x128xbf16>
    %cst_31 = arith.constant dense<0.000000e+00> : vector<256x128xf32>
    %65 = tpu.matmul %62, %64, %cst_31 {dimension_numbers = #tpu.dot_dimension_numbers<[1], [0], [0], [1], [0, 0, 1, 1], [], []>} : vector<256x128xbf16>, vector<128x128xbf16>, vector<256x128xf32> -> vector<256x128xf32>
    %66 = arith.addf %58, %65 : vector<256x128xf32>
    %c70_i32 = arith.constant 70 : i32
    %67 = arith.addi %1, %c70_i32 : i32
    %68 = arith.index_cast %67 : i32 to index
    %c0_32 = arith.constant 0 : index
    %69 = vector.load %arg1[%68, %c0_32] : memref<2630x128xf32, #tpu.memory_space<vmem>>, vector<256x128xf32>
    %70 = arith.truncf %69 : vector<256x128xf32> to vector<256x128xbf16>
    %c8 = arith.constant 8 : index
    %c0_33 = arith.constant 0 : index
    %c0_34 = arith.constant 0 : index
    %71 = vector.load %arg2[%c8, %c0_33, %c0_34] : memref<9x128x128xbf16, #tpu.memory_space<vmem>>, vector<1x128x128xbf16>
    %72 = vector.shape_cast %71 : vector<1x128x128xbf16> to vector<128x128xbf16>
    %cst_35 = arith.constant dense<0.000000e+00> : vector<256x128xf32>
    %73 = tpu.matmul %70, %72, %cst_35 {dimension_numbers = #tpu.dot_dimension_numbers<[1], [0], [0], [1], [0, 0, 1, 1], [], []>} : vector<256x128xbf16>, vector<128x128xbf16>, vector<256x128xf32> -> vector<256x128xf32>
    %74 = arith.addf %66, %73 : vector<256x128xf32>
    %c0_36 = arith.constant 0 : index
    %c0_37 = arith.constant 0 : index
    %75 = vector.load %arg3[%c0_36, %c0_37] : memref<1x128xf32, #tpu.memory_space<vmem>>, vector<1x128xf32>
    %76 = vector.broadcast %75 : vector<1x128xf32> to vector<256x128xf32>
    %77 = arith.addf %74, %76 : vector<256x128xf32>
    %cst_38 = arith.constant 0.000000e+00 : f32
    %78 = vector.broadcast %cst_38 : f32 to vector<256x128xf32>
    %79 = arith.maximumf %77, %78 : vector<256x128xf32>
    %c0_39 = arith.constant 0 : index
    %c0_40 = arith.constant 0 : index
    %80 = vector.load %arg4[%c0_39, %c0_40] : memref<256x128xf32, #tpu.memory_space<vmem>>, vector<256x128xf32>
    tpu.vector_store %arg4[%c0_39, %c0_40], %79 {strides = array<i32>} : memref<256x128xf32, #tpu.memory_space<vmem>>, vector<256x128xf32>,
    return
  }
  func.func @transform_0(%arg0: i32) -> (i32, i32) {
    %c0_i32 = arith.constant 0 : i32
    %c0_i32_0 = arith.constant 0 : i32
    %c0_i32_1 = arith.constant 0 : i32
    return %c0_i32, %c0_i32_0 : i32, i32
  }
  func.func @transform_1(%arg0: i32) -> (i32, i32, i32) {
    %c0_i32 = arith.constant 0 : i32
    %c0_i32_0 = arith.constant 0 : i32
    %c0_i32_1 = arith.constant 0 : i32
    %c0_i32_2 = arith.constant 0 : i32
    return %c0_i32, %c0_i32_0, %c0_i32_1 : i32, i32, i32
  }
  func.func @transform_2(%arg0: i32) -> (i32, i32) {
    %c0_i32 = arith.constant 0 : i32
    %c0_i32_0 = arith.constant 0 : i32
    %c0_i32_1 = arith.constant 0 : i32
    return %c0_i32, %c0_i32_0 : i32, i32
  }
  func.func @transform_3(%arg0: i32) -> (i32, i32) {
    %c0_i32 = arith.constant 0 : i32
    %c0_i32_0 = arith.constant 0 : i32
    return %arg0, %c0_i32 : i32, i32
  }
}

module attributes {stable_mosaic.version = 11 : i64} {
  func.func @_conv3x3_kernel(%arg0: i32, %arg1: memref<546x128xf32, #tpu.memory_space<vmem>>, %arg2: memref<9x128x128xbf16, #tpu.memory_space<vmem>>, %arg3: memref<1x128xf32, #tpu.memory_space<vmem>>, %arg4: memref<256x128xf32, #tpu.memory_space<vmem>>) attributes {dimension_semantics = [#tpu.dimension_semantics<parallel>], iteration_bounds = array<i64: 2>, scalar_prefetch = 0 : i64, scratch_operands = 0 : i64, tpu.core_type = #tpu.core_type<tc>, window_params = [{pipeline_mode = #tpu.pipeline_mode<synchronous>, transform_indices = @transform_0, window_bounds = array<i64: 546, 128>}, {pipeline_mode = #tpu.pipeline_mode<synchronous>, transform_indices = @transform_1, window_bounds = array<i64: 9, 128, 128>}, {pipeline_mode = #tpu.pipeline_mode<synchronous>, transform_indices = @transform_2, window_bounds = array<i64: 1, 128>}, {transform_indices = @transform_3, window_bounds = array<i64: 256, 128>}]} {
    %c256_i32 = arith.constant 256 : i32
    %0 = arith.muli %arg0, %c256_i32 : i32
    %1 = tpu.assume_multiple %0, 256 : i32
    %cst = arith.constant 0.000000e+00 : f32
    %2 = vector.broadcast %cst : f32 to vector<256x128xf32>
    %c0_i32 = arith.constant 0 : i32
    %3 = arith.addi %1, %c0_i32 : i32
    %4 = arith.index_cast %3 : i32 to index
    %c0 = arith.constant 0 : index
    %5 = vector.load %arg1[%4, %c0] : memref<546x128xf32, #tpu.memory_space<vmem>>, vector<256x128xf32>
    %6 = arith.truncf %5 : vector<256x128xf32> to vector<256x128xbf16>
    %c0_0 = arith.constant 0 : index
    %c0_1 = arith.constant 0 : index
    %c0_2 = arith.constant 0 : index
    %7 = vector.load %arg2[%c0_0, %c0_1, %c0_2] : memref<9x128x128xbf16, #tpu.memory_space<vmem>>, vector<1x128x128xbf16>
    %8 = vector.shape_cast %7 : vector<1x128x128xbf16> to vector<128x128xbf16>
    %cst_3 = arith.constant dense<0.000000e+00> : vector<256x128xf32>
    %9 = tpu.matmul %6, %8, %cst_3 {dimension_numbers = #tpu.dot_dimension_numbers<[1], [0], [0], [1], [0, 0, 1, 1], [], []>} : vector<256x128xbf16>, vector<128x128xbf16>, vector<256x128xf32> -> vector<256x128xf32>
    %10 = arith.addf %2, %9 : vector<256x128xf32>
    %c1_i32 = arith.constant 1 : i32
    %11 = arith.addi %1, %c1_i32 : i32
    %12 = arith.index_cast %11 : i32 to index
    %c0_4 = arith.constant 0 : index
    %13 = vector.load %arg1[%12, %c0_4] : memref<546x128xf32, #tpu.memory_space<vmem>>, vector<256x128xf32>
    %14 = arith.truncf %13 : vector<256x128xf32> to vector<256x128xbf16>
    %c1 = arith.constant 1 : index
    %c0_5 = arith.constant 0 : index
    %c0_6 = arith.constant 0 : index
    %15 = vector.load %arg2[%c1, %c0_5, %c0_6] : memref<9x128x128xbf16, #tpu.memory_space<vmem>>, vector<1x128x128xbf16>
    %16 = vector.shape_cast %15 : vector<1x128x128xbf16> to vector<128x128xbf16>
    %cst_7 = arith.constant dense<0.000000e+00> : vector<256x128xf32>
    %17 = tpu.matmul %14, %16, %cst_7 {dimension_numbers = #tpu.dot_dimension_numbers<[1], [0], [0], [1], [0, 0, 1, 1], [], []>} : vector<256x128xbf16>, vector<128x128xbf16>, vector<256x128xf32> -> vector<256x128xf32>
    %18 = arith.addf %10, %17 : vector<256x128xf32>
    %c2_i32 = arith.constant 2 : i32
    %19 = arith.addi %1, %c2_i32 : i32
    %20 = arith.index_cast %19 : i32 to index
    %c0_8 = arith.constant 0 : index
    %21 = vector.load %arg1[%20, %c0_8] : memref<546x128xf32, #tpu.memory_space<vmem>>, vector<256x128xf32>
    %22 = arith.truncf %21 : vector<256x128xf32> to vector<256x128xbf16>
    %c2 = arith.constant 2 : index
    %c0_9 = arith.constant 0 : index
    %c0_10 = arith.constant 0 : index
    %23 = vector.load %arg2[%c2, %c0_9, %c0_10] : memref<9x128x128xbf16, #tpu.memory_space<vmem>>, vector<1x128x128xbf16>
    %24 = vector.shape_cast %23 : vector<1x128x128xbf16> to vector<128x128xbf16>
    %cst_11 = arith.constant dense<0.000000e+00> : vector<256x128xf32>
    %25 = tpu.matmul %22, %24, %cst_11 {dimension_numbers = #tpu.dot_dimension_numbers<[1], [0], [0], [1], [0, 0, 1, 1], [], []>} : vector<256x128xbf16>, vector<128x128xbf16>, vector<256x128xf32> -> vector<256x128xf32>
    %26 = arith.addf %18, %25 : vector<256x128xf32>
    %c16_i32 = arith.constant 16 : i32
    %27 = arith.addi %1, %c16_i32 : i32
    %28 = arith.index_cast %27 : i32 to index
    %c0_12 = arith.constant 0 : index
    %29 = vector.load %arg1[%28, %c0_12] : memref<546x128xf32, #tpu.memory_space<vmem>>, vector<256x128xf32>
    %30 = arith.truncf %29 : vector<256x128xf32> to vector<256x128xbf16>
    %c3 = arith.constant 3 : index
    %c0_13 = arith.constant 0 : index
    %c0_14 = arith.constant 0 : index
    %31 = vector.load %arg2[%c3, %c0_13, %c0_14] : memref<9x128x128xbf16, #tpu.memory_space<vmem>>, vector<1x128x128xbf16>
    %32 = vector.shape_cast %31 : vector<1x128x128xbf16> to vector<128x128xbf16>
    %cst_15 = arith.constant dense<0.000000e+00> : vector<256x128xf32>
    %33 = tpu.matmul %30, %32, %cst_15 {dimension_numbers = #tpu.dot_dimension_numbers<[1], [0], [0], [1], [0, 0, 1, 1], [], []>} : vector<256x128xbf16>, vector<128x128xbf16>, vector<256x128xf32> -> vector<256x128xf32>
    %34 = arith.addf %26, %33 : vector<256x128xf32>
    %c17_i32 = arith.constant 17 : i32
    %35 = arith.addi %1, %c17_i32 : i32
    %36 = arith.index_cast %35 : i32 to index
    %c0_16 = arith.constant 0 : index
    %37 = vector.load %arg1[%36, %c0_16] : memref<546x128xf32, #tpu.memory_space<vmem>>, vector<256x128xf32>
    %38 = arith.truncf %37 : vector<256x128xf32> to vector<256x128xbf16>
    %c4 = arith.constant 4 : index
    %c0_17 = arith.constant 0 : index
    %c0_18 = arith.constant 0 : index
    %39 = vector.load %arg2[%c4, %c0_17, %c0_18] : memref<9x128x128xbf16, #tpu.memory_space<vmem>>, vector<1x128x128xbf16>
    %40 = vector.shape_cast %39 : vector<1x128x128xbf16> to vector<128x128xbf16>
    %cst_19 = arith.constant dense<0.000000e+00> : vector<256x128xf32>
    %41 = tpu.matmul %38, %40, %cst_19 {dimension_numbers = #tpu.dot_dimension_numbers<[1], [0], [0], [1], [0, 0, 1, 1], [], []>} : vector<256x128xbf16>, vector<128x128xbf16>, vector<256x128xf32> -> vector<256x128xf32>
    %42 = arith.addf %34, %41 : vector<256x128xf32>
    %c18_i32 = arith.constant 18 : i32
    %43 = arith.addi %1, %c18_i32 : i32
    %44 = arith.index_cast %43 : i32 to index
    %c0_20 = arith.constant 0 : index
    %45 = vector.load %arg1[%44, %c0_20] : memref<546x128xf32, #tpu.memory_space<vmem>>, vector<256x128xf32>
    %46 = arith.truncf %45 : vector<256x128xf32> to vector<256x128xbf16>
    %c5 = arith.constant 5 : index
    %c0_21 = arith.constant 0 : index
    %c0_22 = arith.constant 0 : index
    %47 = vector.load %arg2[%c5, %c0_21, %c0_22] : memref<9x128x128xbf16, #tpu.memory_space<vmem>>, vector<1x128x128xbf16>
    %48 = vector.shape_cast %47 : vector<1x128x128xbf16> to vector<128x128xbf16>
    %cst_23 = arith.constant dense<0.000000e+00> : vector<256x128xf32>
    %49 = tpu.matmul %46, %48, %cst_23 {dimension_numbers = #tpu.dot_dimension_numbers<[1], [0], [0], [1], [0, 0, 1, 1], [], []>} : vector<256x128xbf16>, vector<128x128xbf16>, vector<256x128xf32> -> vector<256x128xf32>
    %50 = arith.addf %42, %49 : vector<256x128xf32>
    %c32_i32 = arith.constant 32 : i32
    %51 = arith.addi %1, %c32_i32 : i32
    %52 = arith.index_cast %51 : i32 to index
    %c0_24 = arith.constant 0 : index
    %53 = vector.load %arg1[%52, %c0_24] : memref<546x128xf32, #tpu.memory_space<vmem>>, vector<256x128xf32>
    %54 = arith.truncf %53 : vector<256x128xf32> to vector<256x128xbf16>
    %c6 = arith.constant 6 : index
    %c0_25 = arith.constant 0 : index
    %c0_26 = arith.constant 0 : index
    %55 = vector.load %arg2[%c6, %c0_25, %c0_26] : memref<9x128x128xbf16, #tpu.memory_space<vmem>>, vector<1x128x128xbf16>
    %56 = vector.shape_cast %55 : vector<1x128x128xbf16> to vector<128x128xbf16>
    %cst_27 = arith.constant dense<0.000000e+00> : vector<256x128xf32>
    %57 = tpu.matmul %54, %56, %cst_27 {dimension_numbers = #tpu.dot_dimension_numbers<[1], [0], [0], [1], [0, 0, 1, 1], [], []>} : vector<256x128xbf16>, vector<128x128xbf16>, vector<256x128xf32> -> vector<256x128xf32>
    %58 = arith.addf %50, %57 : vector<256x128xf32>
    %c33_i32 = arith.constant 33 : i32
    %59 = arith.addi %1, %c33_i32 : i32
    %60 = arith.index_cast %59 : i32 to index
    %c0_28 = arith.constant 0 : index
    %61 = vector.load %arg1[%60, %c0_28] : memref<546x128xf32, #tpu.memory_space<vmem>>, vector<256x128xf32>
    %62 = arith.truncf %61 : vector<256x128xf32> to vector<256x128xbf16>
    %c7 = arith.constant 7 : index
    %c0_29 = arith.constant 0 : index
    %c0_30 = arith.constant 0 : index
    %63 = vector.load %arg2[%c7, %c0_29, %c0_30] : memref<9x128x128xbf16, #tpu.memory_space<vmem>>, vector<1x128x128xbf16>
    %64 = vector.shape_cast %63 : vector<1x128x128xbf16> to vector<128x128xbf16>
    %cst_31 = arith.constant dense<0.000000e+00> : vector<256x128xf32>
    %65 = tpu.matmul %62, %64, %cst_31 {dimension_numbers = #tpu.dot_dimension_numbers<[1], [0], [0], [1], [0, 0, 1, 1], [], []>} : vector<256x128xbf16>, vector<128x128xbf16>, vector<256x128xf32> -> vector<256x128xf32>
    %66 = arith.addf %58, %65 : vector<256x128xf32>
    %c34_i32 = arith.constant 34 : i32
    %67 = arith.addi %1, %c34_i32 : i32
    %68 = arith.index_cast %67 : i32 to index
    %c0_32 = arith.constant 0 : index
    %69 = vector.load %arg1[%68, %c0_32] : memref<546x128xf32, #tpu.memory_space<vmem>>, vector<256x128xf32>
    %70 = arith.truncf %69 : vector<256x128xf32> to vector<256x128xbf16>
    %c8 = arith.constant 8 : index
    %c0_33 = arith.constant 0 : index
    %c0_34 = arith.constant 0 : index
    %71 = vector.load %arg2[%c8, %c0_33, %c0_34] : memref<9x128x128xbf16, #tpu.memory_space<vmem>>, vector<1x128x128xbf16>
    %72 = vector.shape_cast %71 : vector<1x128x128xbf16> to vector<128x128xbf16>
    %cst_35 = arith.constant dense<0.000000e+00> : vector<256x128xf32>
    %73 = tpu.matmul %70, %72, %cst_35 {dimension_numbers = #tpu.dot_dimension_numbers<[1], [0], [0], [1], [0, 0, 1, 1], [], []>} : vector<256x128xbf16>, vector<128x128xbf16>, vector<256x128xf32> -> vector<256x128xf32>
    %74 = arith.addf %66, %73 : vector<256x128xf32>
    %c0_36 = arith.constant 0 : index
    %c0_37 = arith.constant 0 : index
    %75 = vector.load %arg3[%c0_36, %c0_37] : memref<1x128xf32, #tpu.memory_space<vmem>>, vector<1x128xf32>
    %76 = vector.broadcast %75 : vector<1x128xf32> to vector<256x128xf32>
    %77 = arith.addf %74, %76 : vector<256x128xf32>
    %cst_38 = arith.constant 0.000000e+00 : f32
    %78 = vector.broadcast %cst_38 : f32 to vector<256x128xf32>
    %79 = arith.maximumf %77, %78 : vector<256x128xf32>
    %c0_39 = arith.constant 0 : index
    %c0_40 = arith.constant 0 : index
    %80 = vector.load %arg4[%c0_39, %c0_40] : memref<256x128xf32, #tpu.memory_space<vmem>>, vector<256x128xf32>
    tpu.vector_store %arg4[%c0_39, %c0_40], %79 {strides = array<i32>} : memref<256x128xf32, #tpu.memory_space<vmem>>, vector<256x128xf32>,
    return
  }
  func.func @transform_0(%arg0: i32) -> (i32, i32) {
    %c0_i32 = arith.constant 0 : i32
    %c0_i32_0 = arith.constant 0 : i32
    %c0_i32_1 = arith.constant 0 : i32
    return %c0_i32, %c0_i32_0 : i32, i32
  }
  func.func @transform_1(%arg0: i32) -> (i32, i32, i32) {
    %c0_i32 = arith.constant 0 : i32
    %c0_i32_0 = arith.constant 0 : i32
    %c0_i32_1 = arith.constant 0 : i32
    %c0_i32_2 = arith.constant 0 : i32
    return %c0_i32, %c0_i32_0, %c0_i32_1 : i32, i32, i32
  }
  func.func @transform_2(%arg0: i32) -> (i32, i32) {
    %c0_i32 = arith.constant 0 : i32
    %c0_i32_0 = arith.constant 0 : i32
    %c0_i32_1 = arith.constant 0 : i32
    return %c0_i32, %c0_i32_0 : i32, i32
  }
  func.func @transform_3(%arg0: i32) -> (i32, i32) {
    %c0_i32 = arith.constant 0 : i32
    %c0_i32_0 = arith.constant 0 : i32
    return %arg0, %c0_i32 : i32, i32
  }
}

module attributes {stable_mosaic.version = 11 : i64} {
  func.func @_conv3x3_kernel(%arg0: i32, %arg1: memref<542x128xf32, #tpu.memory_space<vmem>>, %arg2: memref<9x128x128xbf16, #tpu.memory_space<vmem>>, %arg3: memref<1x128xf32, #tpu.memory_space<vmem>>, %arg4: memref<256x128xf32, #tpu.memory_space<vmem>>) attributes {dimension_semantics = [#tpu.dimension_semantics<parallel>], iteration_bounds = array<i64: 2>, scalar_prefetch = 0 : i64, scratch_operands = 0 : i64, tpu.core_type = #tpu.core_type<tc>, window_params = [{pipeline_mode = #tpu.pipeline_mode<synchronous>, transform_indices = @transform_0, window_bounds = array<i64: 542, 128>}, {pipeline_mode = #tpu.pipeline_mode<synchronous>, transform_indices = @transform_1, window_bounds = array<i64: 9, 128, 128>}, {pipeline_mode = #tpu.pipeline_mode<synchronous>, transform_indices = @transform_2, window_bounds = array<i64: 1, 128>}, {transform_indices = @transform_3, window_bounds = array<i64: 256, 128>}]} {
    %c256_i32 = arith.constant 256 : i32
    %0 = arith.muli %arg0, %c256_i32 : i32
    %1 = tpu.assume_multiple %0, 256 : i32
    %cst = arith.constant 0.000000e+00 : f32
    %2 = vector.broadcast %cst : f32 to vector<256x128xf32>
    %c0_i32 = arith.constant 0 : i32
    %3 = arith.addi %1, %c0_i32 : i32
    %4 = arith.index_cast %3 : i32 to index
    %c0 = arith.constant 0 : index
    %5 = vector.load %arg1[%4, %c0] : memref<542x128xf32, #tpu.memory_space<vmem>>, vector<256x128xf32>
    %6 = arith.truncf %5 : vector<256x128xf32> to vector<256x128xbf16>
    %c0_0 = arith.constant 0 : index
    %c0_1 = arith.constant 0 : index
    %c0_2 = arith.constant 0 : index
    %7 = vector.load %arg2[%c0_0, %c0_1, %c0_2] : memref<9x128x128xbf16, #tpu.memory_space<vmem>>, vector<1x128x128xbf16>
    %8 = vector.shape_cast %7 : vector<1x128x128xbf16> to vector<128x128xbf16>
    %cst_3 = arith.constant dense<0.000000e+00> : vector<256x128xf32>
    %9 = tpu.matmul %6, %8, %cst_3 {dimension_numbers = #tpu.dot_dimension_numbers<[1], [0], [0], [1], [0, 0, 1, 1], [], []>} : vector<256x128xbf16>, vector<128x128xbf16>, vector<256x128xf32> -> vector<256x128xf32>
    %10 = arith.addf %2, %9 : vector<256x128xf32>
    %c1_i32 = arith.constant 1 : i32
    %11 = arith.addi %1, %c1_i32 : i32
    %12 = arith.index_cast %11 : i32 to index
    %c0_4 = arith.constant 0 : index
    %13 = vector.load %arg1[%12, %c0_4] : memref<542x128xf32, #tpu.memory_space<vmem>>, vector<256x128xf32>
    %14 = arith.truncf %13 : vector<256x128xf32> to vector<256x128xbf16>
    %c1 = arith.constant 1 : index
    %c0_5 = arith.constant 0 : index
    %c0_6 = arith.constant 0 : index
    %15 = vector.load %arg2[%c1, %c0_5, %c0_6] : memref<9x128x128xbf16, #tpu.memory_space<vmem>>, vector<1x128x128xbf16>
    %16 = vector.shape_cast %15 : vector<1x128x128xbf16> to vector<128x128xbf16>
    %cst_7 = arith.constant dense<0.000000e+00> : vector<256x128xf32>
    %17 = tpu.matmul %14, %16, %cst_7 {dimension_numbers = #tpu.dot_dimension_numbers<[1], [0], [0], [1], [0, 0, 1, 1], [], []>} : vector<256x128xbf16>, vector<128x128xbf16>, vector<256x128xf32> -> vector<256x128xf32>
    %18 = arith.addf %10, %17 : vector<256x128xf32>
    %c2_i32 = arith.constant 2 : i32
    %19 = arith.addi %1, %c2_i32 : i32
    %20 = arith.index_cast %19 : i32 to index
    %c0_8 = arith.constant 0 : index
    %21 = vector.load %arg1[%20, %c0_8] : memref<542x128xf32, #tpu.memory_space<vmem>>, vector<256x128xf32>
    %22 = arith.truncf %21 : vector<256x128xf32> to vector<256x128xbf16>
    %c2 = arith.constant 2 : index
    %c0_9 = arith.constant 0 : index
    %c0_10 = arith.constant 0 : index
    %23 = vector.load %arg2[%c2, %c0_9, %c0_10] : memref<9x128x128xbf16, #tpu.memory_space<vmem>>, vector<1x128x128xbf16>
    %24 = vector.shape_cast %23 : vector<1x128x128xbf16> to vector<128x128xbf16>
    %cst_11 = arith.constant dense<0.000000e+00> : vector<256x128xf32>
    %25 = tpu.matmul %22, %24, %cst_11 {dimension_numbers = #tpu.dot_dimension_numbers<[1], [0], [0], [1], [0, 0, 1, 1], [], []>} : vector<256x128xbf16>, vector<128x128xbf16>, vector<256x128xf32> -> vector<256x128xf32>
    %26 = arith.addf %18, %25 : vector<256x128xf32>
    %c14_i32 = arith.constant 14 : i32
    %27 = arith.addi %1, %c14_i32 : i32
    %28 = arith.index_cast %27 : i32 to index
    %c0_12 = arith.constant 0 : index
    %29 = vector.load %arg1[%28, %c0_12] : memref<542x128xf32, #tpu.memory_space<vmem>>, vector<256x128xf32>
    %30 = arith.truncf %29 : vector<256x128xf32> to vector<256x128xbf16>
    %c3 = arith.constant 3 : index
    %c0_13 = arith.constant 0 : index
    %c0_14 = arith.constant 0 : index
    %31 = vector.load %arg2[%c3, %c0_13, %c0_14] : memref<9x128x128xbf16, #tpu.memory_space<vmem>>, vector<1x128x128xbf16>
    %32 = vector.shape_cast %31 : vector<1x128x128xbf16> to vector<128x128xbf16>
    %cst_15 = arith.constant dense<0.000000e+00> : vector<256x128xf32>
    %33 = tpu.matmul %30, %32, %cst_15 {dimension_numbers = #tpu.dot_dimension_numbers<[1], [0], [0], [1], [0, 0, 1, 1], [], []>} : vector<256x128xbf16>, vector<128x128xbf16>, vector<256x128xf32> -> vector<256x128xf32>
    %34 = arith.addf %26, %33 : vector<256x128xf32>
    %c15_i32 = arith.constant 15 : i32
    %35 = arith.addi %1, %c15_i32 : i32
    %36 = arith.index_cast %35 : i32 to index
    %c0_16 = arith.constant 0 : index
    %37 = vector.load %arg1[%36, %c0_16] : memref<542x128xf32, #tpu.memory_space<vmem>>, vector<256x128xf32>
    %38 = arith.truncf %37 : vector<256x128xf32> to vector<256x128xbf16>
    %c4 = arith.constant 4 : index
    %c0_17 = arith.constant 0 : index
    %c0_18 = arith.constant 0 : index
    %39 = vector.load %arg2[%c4, %c0_17, %c0_18] : memref<9x128x128xbf16, #tpu.memory_space<vmem>>, vector<1x128x128xbf16>
    %40 = vector.shape_cast %39 : vector<1x128x128xbf16> to vector<128x128xbf16>
    %cst_19 = arith.constant dense<0.000000e+00> : vector<256x128xf32>
    %41 = tpu.matmul %38, %40, %cst_19 {dimension_numbers = #tpu.dot_dimension_numbers<[1], [0], [0], [1], [0, 0, 1, 1], [], []>} : vector<256x128xbf16>, vector<128x128xbf16>, vector<256x128xf32> -> vector<256x128xf32>
    %42 = arith.addf %34, %41 : vector<256x128xf32>
    %c16_i32 = arith.constant 16 : i32
    %43 = arith.addi %1, %c16_i32 : i32
    %44 = arith.index_cast %43 : i32 to index
    %c0_20 = arith.constant 0 : index
    %45 = vector.load %arg1[%44, %c0_20] : memref<542x128xf32, #tpu.memory_space<vmem>>, vector<256x128xf32>
    %46 = arith.truncf %45 : vector<256x128xf32> to vector<256x128xbf16>
    %c5 = arith.constant 5 : index
    %c0_21 = arith.constant 0 : index
    %c0_22 = arith.constant 0 : index
    %47 = vector.load %arg2[%c5, %c0_21, %c0_22] : memref<9x128x128xbf16, #tpu.memory_space<vmem>>, vector<1x128x128xbf16>
    %48 = vector.shape_cast %47 : vector<1x128x128xbf16> to vector<128x128xbf16>
    %cst_23 = arith.constant dense<0.000000e+00> : vector<256x128xf32>
    %49 = tpu.matmul %46, %48, %cst_23 {dimension_numbers = #tpu.dot_dimension_numbers<[1], [0], [0], [1], [0, 0, 1, 1], [], []>} : vector<256x128xbf16>, vector<128x128xbf16>, vector<256x128xf32> -> vector<256x128xf32>
    %50 = arith.addf %42, %49 : vector<256x128xf32>
    %c28_i32 = arith.constant 28 : i32
    %51 = arith.addi %1, %c28_i32 : i32
    %52 = arith.index_cast %51 : i32 to index
    %c0_24 = arith.constant 0 : index
    %53 = vector.load %arg1[%52, %c0_24] : memref<542x128xf32, #tpu.memory_space<vmem>>, vector<256x128xf32>
    %54 = arith.truncf %53 : vector<256x128xf32> to vector<256x128xbf16>
    %c6 = arith.constant 6 : index
    %c0_25 = arith.constant 0 : index
    %c0_26 = arith.constant 0 : index
    %55 = vector.load %arg2[%c6, %c0_25, %c0_26] : memref<9x128x128xbf16, #tpu.memory_space<vmem>>, vector<1x128x128xbf16>
    %56 = vector.shape_cast %55 : vector<1x128x128xbf16> to vector<128x128xbf16>
    %cst_27 = arith.constant dense<0.000000e+00> : vector<256x128xf32>
    %57 = tpu.matmul %54, %56, %cst_27 {dimension_numbers = #tpu.dot_dimension_numbers<[1], [0], [0], [1], [0, 0, 1, 1], [], []>} : vector<256x128xbf16>, vector<128x128xbf16>, vector<256x128xf32> -> vector<256x128xf32>
    %58 = arith.addf %50, %57 : vector<256x128xf32>
    %c29_i32 = arith.constant 29 : i32
    %59 = arith.addi %1, %c29_i32 : i32
    %60 = arith.index_cast %59 : i32 to index
    %c0_28 = arith.constant 0 : index
    %61 = vector.load %arg1[%60, %c0_28] : memref<542x128xf32, #tpu.memory_space<vmem>>, vector<256x128xf32>
    %62 = arith.truncf %61 : vector<256x128xf32> to vector<256x128xbf16>
    %c7 = arith.constant 7 : index
    %c0_29 = arith.constant 0 : index
    %c0_30 = arith.constant 0 : index
    %63 = vector.load %arg2[%c7, %c0_29, %c0_30] : memref<9x128x128xbf16, #tpu.memory_space<vmem>>, vector<1x128x128xbf16>
    %64 = vector.shape_cast %63 : vector<1x128x128xbf16> to vector<128x128xbf16>
    %cst_31 = arith.constant dense<0.000000e+00> : vector<256x128xf32>
    %65 = tpu.matmul %62, %64, %cst_31 {dimension_numbers = #tpu.dot_dimension_numbers<[1], [0], [0], [1], [0, 0, 1, 1], [], []>} : vector<256x128xbf16>, vector<128x128xbf16>, vector<256x128xf32> -> vector<256x128xf32>
    %66 = arith.addf %58, %65 : vector<256x128xf32>
    %c30_i32 = arith.constant 30 : i32
    %67 = arith.addi %1, %c30_i32 : i32
    %68 = arith.index_cast %67 : i32 to index
    %c0_32 = arith.constant 0 : index
    %69 = vector.load %arg1[%68, %c0_32] : memref<542x128xf32, #tpu.memory_space<vmem>>, vector<256x128xf32>
    %70 = arith.truncf %69 : vector<256x128xf32> to vector<256x128xbf16>
    %c8 = arith.constant 8 : index
    %c0_33 = arith.constant 0 : index
    %c0_34 = arith.constant 0 : index
    %71 = vector.load %arg2[%c8, %c0_33, %c0_34] : memref<9x128x128xbf16, #tpu.memory_space<vmem>>, vector<1x128x128xbf16>
    %72 = vector.shape_cast %71 : vector<1x128x128xbf16> to vector<128x128xbf16>
    %cst_35 = arith.constant dense<0.000000e+00> : vector<256x128xf32>
    %73 = tpu.matmul %70, %72, %cst_35 {dimension_numbers = #tpu.dot_dimension_numbers<[1], [0], [0], [1], [0, 0, 1, 1], [], []>} : vector<256x128xbf16>, vector<128x128xbf16>, vector<256x128xf32> -> vector<256x128xf32>
    %74 = arith.addf %66, %73 : vector<256x128xf32>
    %c0_36 = arith.constant 0 : index
    %c0_37 = arith.constant 0 : index
    %75 = vector.load %arg3[%c0_36, %c0_37] : memref<1x128xf32, #tpu.memory_space<vmem>>, vector<1x128xf32>
    %76 = vector.broadcast %75 : vector<1x128xf32> to vector<256x128xf32>
    %77 = arith.addf %74, %76 : vector<256x128xf32>
    %cst_38 = arith.constant 0.000000e+00 : f32
    %78 = vector.broadcast %cst_38 : f32 to vector<256x128xf32>
    %79 = arith.maximumf %77, %78 : vector<256x128xf32>
    %c0_39 = arith.constant 0 : index
    %c0_40 = arith.constant 0 : index
    %80 = vector.load %arg4[%c0_39, %c0_40] : memref<256x128xf32, #tpu.memory_space<vmem>>, vector<256x128xf32>
    tpu.vector_store %arg4[%c0_39, %c0_40], %79 {strides = array<i32>} : memref<256x128xf32, #tpu.memory_space<vmem>>, vector<256x128xf32>,
    return
  }
  func.func @transform_0(%arg0: i32) -> (i32, i32) {
    %c0_i32 = arith.constant 0 : i32
    %c0_i32_0 = arith.constant 0 : i32
    %c0_i32_1 = arith.constant 0 : i32
    return %c0_i32, %c0_i32_0 : i32, i32
  }
  func.func @transform_1(%arg0: i32) -> (i32, i32, i32) {
    %c0_i32 = arith.constant 0 : i32
    %c0_i32_0 = arith.constant 0 : i32
    %c0_i32_1 = arith.constant 0 : i32
    %c0_i32_2 = arith.constant 0 : i32
    return %c0_i32, %c0_i32_0, %c0_i32_1 : i32, i32, i32
  }
  func.func @transform_2(%arg0: i32) -> (i32, i32) {
    %c0_i32 = arith.constant 0 : i32
    %c0_i32_0 = arith.constant 0 : i32
    %c0_i32_1 = arith.constant 0 : i32
    return %c0_i32, %c0_i32_0 : i32, i32
  }
  func.func @transform_3(%arg0: i32) -> (i32, i32) {
    %c0_i32 = arith.constant 0 : i32
    %c0_i32_0 = arith.constant 0 : i32
    return %arg0, %c0_i32 : i32, i32
  }
}

module attributes {stable_mosaic.version = 11 : i64} {
  func.func @_fc_stack_kernel(%arg0: i32, %arg1: memref<2x180xf32, #tpu.memory_space<vmem>>, %arg2: memref<180x500xf32, #tpu.memory_space<vmem>>, %arg3: memref<1x500xf32, #tpu.memory_space<vmem>>, %arg4: memref<500x250xf32, #tpu.memory_space<vmem>>, %arg5: memref<1x250xf32, #tpu.memory_space<vmem>>, %arg6: memref<250x100xf32, #tpu.memory_space<vmem>>, %arg7: memref<1x100xf32, #tpu.memory_space<vmem>>, %arg8: memref<100x25xf32, #tpu.memory_space<vmem>>, %arg9: memref<1x25xf32, #tpu.memory_space<vmem>>, %arg10: memref<25x1xf32, #tpu.memory_space<vmem>>, %arg11: memref<1x1xf32, #tpu.memory_space<vmem>>, %arg12: memref<2x1xf32, #tpu.memory_space<vmem>>) attributes {dimension_semantics = [#tpu.dimension_semantics<arbitrary>], iteration_bounds = array<i64: 1>, scalar_prefetch = 0 : i64, scratch_operands = 0 : i64, tpu.core_type = #tpu.core_type<tc>, window_params = [{pipeline_mode = #tpu.pipeline_mode<synchronous>, transform_indices = @transform_0, window_bounds = array<i64: 2, 180>}, {pipeline_mode = #tpu.pipeline_mode<synchronous>, transform_indices = @transform_1, window_bounds = array<i64: 180, 500>}, {pipeline_mode = #tpu.pipeline_mode<synchronous>, transform_indices = @transform_2, window_bounds = array<i64: 1, 500>}, {pipeline_mode = #tpu.pipeline_mode<synchronous>, transform_indices = @transform_3, window_bounds = array<i64: 500, 250>}, {pipeline_mode = #tpu.pipeline_mode<synchronous>, transform_indices = @transform_4, window_bounds = array<i64: 1, 250>}, {pipeline_mode = #tpu.pipeline_mode<synchronous>, transform_indices = @transform_5, window_bounds = array<i64: 250, 100>}, {pipeline_mode = #tpu.pipeline_mode<synchronous>, transform_indices = @transform_6, window_bounds = array<i64: 1, 100>}, {pipeline_mode = #tpu.pipeline_mode<synchronous>, transform_indices = @transform_7, window_bounds = array<i64: 100, 25>}, {pipeline_mode = #tpu.pipeline_mode<synchronous>, transform_indices = @transform_8, window_bounds = array<i64: 1, 25>}, {pipeline_mode = #tpu.pipeline_mode<synchronous>, transform_indices = @transform_9, window_bounds = array<i64: 25, 1>}, {pipeline_mode = #tpu.pipeline_mode<synchronous>, transform_indices = @transform_10, window_bounds = array<i64: 1, 1>}, {pipeline_mode = #tpu.pipeline_mode<synchronous>, transform_indices = @transform_11, window_bounds = array<i64: 2, 1>}]} {
    %c0 = arith.constant 0 : index
    %c0_0 = arith.constant 0 : index
    %0 = vector.load %arg1[%c0, %c0_0] : memref<2x180xf32, #tpu.memory_space<vmem>>, vector<2x180xf32>
    %c0_1 = arith.constant 0 : index
    %c0_2 = arith.constant 0 : index
    %1 = vector.load %arg2[%c0_1, %c0_2] : memref<180x500xf32, #tpu.memory_space<vmem>>, vector<180x500xf32>
    %cst = arith.constant dense<0.000000e+00> : vector<2x500xf32>
    %2 = tpu.matmul %0, %1, %cst {dimension_numbers = #tpu.dot_dimension_numbers<[1], [0], [0], [1], [0, 0, 1, 1], [], []>} : vector<2x180xf32>, vector<180x500xf32>, vector<2x500xf32> -> vector<2x500xf32>
    %c0_3 = arith.constant 0 : index
    %c0_4 = arith.constant 0 : index
    %3 = vector.load %arg3[%c0_3, %c0_4] : memref<1x500xf32, #tpu.memory_space<vmem>>, vector<1x500xf32>
    %4 = vector.broadcast %3 : vector<1x500xf32> to vector<2x500xf32>
    %5 = arith.addf %2, %4 : vector<2x500xf32>
    %cst_5 = arith.constant 0.000000e+00 : f32
    %6 = vector.broadcast %cst_5 : f32 to vector<2x500xf32>
    %7 = arith.maximumf %5, %6 : vector<2x500xf32>
    %c0_6 = arith.constant 0 : index
    %c0_7 = arith.constant 0 : index
    %8 = vector.load %arg4[%c0_6, %c0_7] : memref<500x250xf32, #tpu.memory_space<vmem>>, vector<500x250xf32>
    %cst_8 = arith.constant dense<0.000000e+00> : vector<2x250xf32>
    %9 = tpu.matmul %7, %8, %cst_8 {dimension_numbers = #tpu.dot_dimension_numbers<[1], [0], [0], [1], [0, 0, 1, 1], [], []>} : vector<2x500xf32>, vector<500x250xf32>, vector<2x250xf32> -> vector<2x250xf32>
    %c0_9 = arith.constant 0 : index
    %c0_10 = arith.constant 0 : index
    %10 = vector.load %arg5[%c0_9, %c0_10] : memref<1x250xf32, #tpu.memory_space<vmem>>, vector<1x250xf32>
    %11 = vector.broadcast %10 : vector<1x250xf32> to vector<2x250xf32>
    %12 = arith.addf %9, %11 : vector<2x250xf32>
    %cst_11 = arith.constant 0.000000e+00 : f32
    %13 = vector.broadcast %cst_11 : f32 to vector<2x250xf32>
    %14 = arith.maximumf %12, %13 : vector<2x250xf32>
    %c0_12 = arith.constant 0 : index
    %c0_13 = arith.constant 0 : index
    %15 = vector.load %arg6[%c0_12, %c0_13] : memref<250x100xf32, #tpu.memory_space<vmem>>, vector<250x100xf32>
    %cst_14 = arith.constant dense<0.000000e+00> : vector<2x100xf32>
    %16 = tpu.matmul %14, %15, %cst_14 {dimension_numbers = #tpu.dot_dimension_numbers<[1], [0], [0], [1], [0, 0, 1, 1], [], []>} : vector<2x250xf32>, vector<250x100xf32>, vector<2x100xf32> -> vector<2x100xf32>
    %c0_15 = arith.constant 0 : index
    %c0_16 = arith.constant 0 : index
    %17 = vector.load %arg7[%c0_15, %c0_16] : memref<1x100xf32, #tpu.memory_space<vmem>>, vector<1x100xf32>
    %18 = vector.broadcast %17 : vector<1x100xf32> to vector<2x100xf32>
    %19 = arith.addf %16, %18 : vector<2x100xf32>
    %cst_17 = arith.constant 0.000000e+00 : f32
    %20 = vector.broadcast %cst_17 : f32 to vector<2x100xf32>
    %21 = arith.maximumf %19, %20 : vector<2x100xf32>
    %c0_18 = arith.constant 0 : index
    %c0_19 = arith.constant 0 : index
    %22 = vector.load %arg8[%c0_18, %c0_19] : memref<100x25xf32, #tpu.memory_space<vmem>>, vector<100x25xf32>
    %cst_20 = arith.constant dense<0.000000e+00> : vector<2x25xf32>
    %23 = tpu.matmul %21, %22, %cst_20 {dimension_numbers = #tpu.dot_dimension_numbers<[1], [0], [0], [1], [0, 0, 1, 1], [], []>} : vector<2x100xf32>, vector<100x25xf32>, vector<2x25xf32> -> vector<2x25xf32>
    %c0_21 = arith.constant 0 : index
    %c0_22 = arith.constant 0 : index
    %24 = vector.load %arg9[%c0_21, %c0_22] : memref<1x25xf32, #tpu.memory_space<vmem>>, vector<1x25xf32>
    %25 = vector.broadcast %24 : vector<1x25xf32> to vector<2x25xf32>
    %26 = arith.addf %23, %25 : vector<2x25xf32>
    %cst_23 = arith.constant 0.000000e+00 : f32
    %27 = vector.broadcast %cst_23 : f32 to vector<2x25xf32>
    %28 = arith.maximumf %26, %27 : vector<2x25xf32>
    %c0_24 = arith.constant 0 : index
    %c0_25 = arith.constant 0 : index
    %29 = vector.load %arg10[%c0_24, %c0_25] : memref<25x1xf32, #tpu.memory_space<vmem>>, vector<25x1xf32>
    %cst_26 = arith.constant dense<0.000000e+00> : vector<2x1xf32>
    %30 = tpu.matmul %28, %29, %cst_26 {dimension_numbers = #tpu.dot_dimension_numbers<[1], [0], [0], [1], [0, 0, 1, 1], [], []>} : vector<2x25xf32>, vector<25x1xf32>, vector<2x1xf32> -> vector<2x1xf32>
    %c0_27 = arith.constant 0 : index
    %c0_28 = arith.constant 0 : index
    %31 = vector.load %arg11[%c0_27, %c0_28] : memref<1x1xf32, #tpu.memory_space<vmem>>, vector<1x1xf32>
    %32 = vector.broadcast %31 : vector<1x1xf32> to vector<2x1xf32>
    %33 = arith.addf %30, %32 : vector<2x1xf32>
    %cst_29 = arith.constant 0.000000e+00 : f32
    %34 = vector.broadcast %cst_29 : f32 to vector<2x1xf32>
    %35 = arith.maximumf %33, %34 : vector<2x1xf32>
    %c0_30 = arith.constant 0 : index
    %c0_31 = arith.constant 0 : index
    %36 = vector.load %arg12[%c0_30, %c0_31] : memref<2x1xf32, #tpu.memory_space<vmem>>, vector<2x1xf32>
    tpu.vector_store %arg12[%c0_30, %c0_31], %35 {strides = array<i32>} : memref<2x1xf32, #tpu.memory_space<vmem>>, vector<2x1xf32>,
    return
  }
  func.func @transform_0(%arg0: i32) -> (i32, i32) {
    %c0_i32 = arith.constant 0 : i32
    %c0_i32_0 = arith.constant 0 : i32
    %c0_i32_1 = arith.constant 0 : i32
    return %c0_i32, %c0_i32_0 : i32, i32
  }
  func.func @transform_1(%arg0: i32) -> (i32, i32) {
    %c0_i32 = arith.constant 0 : i32
    %c0_i32_0 = arith.constant 0 : i32
    %c0_i32_1 = arith.constant 0 : i32
    return %c0_i32, %c0_i32_0 : i32, i32
  }
  func.func @transform_2(%arg0: i32) -> (i32, i32) {
    %c0_i32 = arith.constant 0 : i32
    %c0_i32_0 = arith.constant 0 : i32
    %c0_i32_1 = arith.constant 0 : i32
    return %c0_i32, %c0_i32_0 : i32, i32
  }
  func.func @transform_3(%arg0: i32) -> (i32, i32) {
    %c0_i32 = arith.constant 0 : i32
    %c0_i32_0 = arith.constant 0 : i32
    %c0_i32_1 = arith.constant 0 : i32
    return %c0_i32, %c0_i32_0 : i32, i32
  }
  func.func @transform_4(%arg0: i32) -> (i32, i32) {
    %c0_i32 = arith.constant 0 : i32
    %c0_i32_0 = arith.constant 0 : i32
    %c0_i32_1 = arith.constant 0 : i32
    return %c0_i32, %c0_i32_0 : i32, i32
  }
  func.func @transform_5(%arg0: i32) -> (i32, i32) {
    %c0_i32 = arith.constant 0 : i32
    %c0_i32_0 = arith.constant 0 : i32
    %c0_i32_1 = arith.constant 0 : i32
    return %c0_i32, %c0_i32_0 : i32, i32
  }
  func.func @transform_6(%arg0: i32) -> (i32, i32) {
    %c0_i32 = arith.constant 0 : i32
    %c0_i32_0 = arith.constant 0 : i32
    %c0_i32_1 = arith.constant 0 : i32
    return %c0_i32, %c0_i32_0 : i32, i32
  }
  func.func @transform_7(%arg0: i32) -> (i32, i32) {
    %c0_i32 = arith.constant 0 : i32
    %c0_i32_0 = arith.constant 0 : i32
    %c0_i32_1 = arith.constant 0 : i32
    return %c0_i32, %c0_i32_0 : i32, i32
  }
  func.func @transform_8(%arg0: i32) -> (i32, i32) {
    %c0_i32 = arith.constant 0 : i32
    %c0_i32_0 = arith.constant 0 : i32
    %c0_i32_1 = arith.constant 0 : i32
    return %c0_i32, %c0_i32_0 : i32, i32
  }
  func.func @transform_9(%arg0: i32) -> (i32, i32) {
    %c0_i32 = arith.constant 0 : i32
    %c0_i32_0 = arith.constant 0 : i32
    %c0_i32_1 = arith.constant 0 : i32
    return %c0_i32, %c0_i32_0 : i32, i32
  }
  func.func @transform_10(%arg0: i32) -> (i32, i32) {
    %c0_i32 = arith.constant 0 : i32
    %c0_i32_0 = arith.constant 0 : i32
    %c0_i32_1 = arith.constant 0 : i32
    return %c0_i32, %c0_i32_0 : i32, i32
  }
  func.func @transform_11(%arg0: i32) -> (i32, i32) {
    %c0_i32 = arith.constant 0 : i32
    %c0_i32_0 = arith.constant 0 : i32
    %c0_i32_1 = arith.constant 0 : i32
    return %c0_i32, %c0_i32_0 : i32, i32
  }
}

</mosaic_0001>

<bundles_post_ra>
// kernel: simple_forward.5
= control target key start
LH: loop header
LB: loop body
LE: loop exit
PB: predicated region body
PF: predicated region fallthrough
CT: control target
= control target key end

     0   :  { %s4543_s12 = smov 0   ;;  %s5438_s0 = inlined_call_operand.vmem [shape: f32[2890,128], index: 0, kind: input, shape index: {}]   ;;  %s5439_s1 = inlined_call_operand.vmem [shape: bf16[9,128,128], index: 1, kind: input, shape index: {}]   ;;  %s5440_s2 = inlined_call_operand.vmem [shape: f32[1,128], index: 2, kind: input, shape index: {}]   ;;  %s5441_s3 = inlined_call_operand.vmem [shape: f32[2816,128], index: 3, kind: output, shape index: {}]  }
   0x1 LB: > { %s3033_s13 = sadd.s32 4294967295, %s4521_s12   ;;  %p3036_p0 = scmp.ge.s32.totalorder %s4521_s12, 1  ;;  %s4521_s12 = sphi %s4543_s12, %s13_s12  }
   0x2   : > { %p127_p1 = scmp.lt.s32.totalorder %s4521_s12, 12 }
   0x4   : > { %p128_p2 = pnand %p3036_p0, %p127_p1 }
   0x5   : > { %v4435_v0 = vld [vmem:[%s5439_s1 + $0x40] sm:$0xff] (!%p128_p2)   ;;  %v4437_v2 = vld [vmem:[%s5439_s1 + $0x48] sm:$0xff] (!%p128_p2)   ;;  %v4439_v4 = vld [vmem:[%s5439_s1 + $0x50] sm:$0xff] (!%p128_p2)   ;;  %s3039_s30 = sshll.u32 (!%p128_p2), %s3033_s13, 8  ;;  %s3037_s6 = sshll.u32 (!%p128_p2), %s3033_s13, 5 }
   0x6   : > { %131 = sbr.rel (%p128_p2) target bundleno = 541 (0x21d), region = 32  ;;  %v4436_v1 = vld [vmem:[%s5439_s1 + $0x100] sm:$0xff] (!%p128_p2)   ;;  %3723 = vmatprep.subr.bf16.mxu1 (!%p128_p2), %v4435_v0  ;;  %v4438_v3 = vld [vmem:[%s5439_s1 + $0x108] sm:$0xff] (!%p128_p2)   ;;  %v4440_v5 = vld [vmem:[%s5439_s1 + $0x110] sm:$0xff] (!%p128_p2)   ;;  %s4586_s10 = scalar_lea.vmem (!%p128_p2), %s5438_s0, %s3039_s30 }
   0x7   : > { %3915 = vmatprep.subr.bf16.mxu0 (!%p128_p2), %v4436_v1  ;;  %3724 = vmatpush3.bf16.msra.mxu1 (!%p128_p2), %v4435_v0  ;;  %v4441_v6 = vld [vmem:[%s5439_s1 + $0x58] sm:$0xff] (!%p128_p2)   ;;  %v4443_v8 = vld [vmem:[%s5439_s1 + $0x60] sm:$0xff] (!%p128_p2)   ;;  %v4445_v10 = vld [vmem:[%s5439_s1 + $0x68] sm:$0xff] (!%p128_p2)   ;;  %p147_p3 = scmp.lt.s32.totalorder (!%p128_p2), %s3037_s6, 351 }
   0x8   : > { %3916 = vmatpush3.bf16.msra.mxu0 (!%p128_p2), %v4436_v1  ;;  %3725 = vmatprep.subr.bf16.mxu1 (!%p128_p2), %v4437_v2  ;;  %v4442_v7 = vld [vmem:[%s5439_s1 + $0x118] sm:$0xff] (!%p128_p2)   ;;  %v4444_v9 = vld [vmem:[%s5439_s1 + $0x120] sm:$0xff] (!%p128_p2)   ;;  %v3042_v12 = vld [vmem:[%s4586_s10 + $0x9] sm:$0xff] (!%p128_p2) }
   0x9   : > { %3917 = vmatprep.subr.bf16.mxu0 (!%p128_p2), %v4438_v3  ;;  %v3041_v11 = vld [vmem:[%s4586_s10 + $0x1] sm:$0xff] (!%p128_p2)  ;;  %v3221_v16 = vld [vmem:[%s4586_s10 + $0x2d] sm:$0xff] (!%p128_p2)  ;;  %v4449_v20 = vld [vmem:[%s5439_s1 + $0x78] sm:$0xff] (!%p128_p2)  }
   0xa   : > { %v3220_v13 = vld [vmem:[%s4586_s10 + $0x25] sm:$0xff] (!%p128_p2)  ;;  %v253_v15 = vpack.c.bf16 (!%p128_p2), %v3042_v12, %v3041_v11  ;;  %v4447_v18 = vld [vmem:[%s5439_s1 + $0x70] sm:$0xff] (!%p128_p2)   ;;  %v4450_v21 = vld [vmem:[%s5439_s1 + $0x138] sm:$0xff] (!%p128_p2)  }
   0xb   : > { %3726 = vmatpush3.bf16.msra.mxu1 (!%p128_p2), %v4437_v2  ;;  %v4446_v14 = vld [vmem:[%s5439_s1 + $0x128] sm:$0xff] (!%p128_p2)   ;;  %v1354_v17 = vpack.c.bf16 (!%p128_p2), %v3221_v16, %v3220_v13  ;;  %v4448_v19 = vld [vmem:[%s5439_s1 + $0x130] sm:$0xff] (!%p128_p2)   ;;  %v3044_v23 = vld [vmem:[%s4586_s10 + $0x19] sm:$0xff] (!%p128_p2) }
   0xc   : > { %3918 = vmatpush3.bf16.msra.mxu0 (!%p128_p2), %v4438_v3  ;;  %3727 = vmatprep.subr.bf16.mxu1 (!%p128_p2), %v4439_v4  ;;  %v3043_v22 = vld [vmem:[%s4586_s10 + $0x11] sm:$0xff] (!%p128_p2)  ;;  %v4451_v24 = vld [vmem:[%s5439_s1] sm:$0xff] (!%p128_p2)   ;;  %v3046_v29 = vld [vmem:[%s4586_s10 + $0x29] sm:$0xff] (!%p128_p2) }
   0xd   : > { %3919 = vmatprep.subr.bf16.mxu0 %v4440_v5  ;;  %3739 = vmatprep.mubr.bf16.mxu1 %v253_v15  ;;  %v3222_v25 = vld [vmem:[%s4586_s10 + $0x35] sm:$0xff]  ;;  %v3223_v26 = vld [vmem:[%s4586_s10 + $0x3d] sm:$0xff]  ;;  %v254_v30 = vpack.c.bf16 %v3044_v23, %v3043_v22  ;;  %v3224_v31 = vld [vmem:[%s4586_s10 + $0x45] sm:$0xff]  ;;  %s5463_s6 = smov (!%p147_p3, %s3037_s6), 351 }
   0xe   : > { %3931 = vmatprep.mubr.bf16.mxu0 %v1354_v17  ;;  %v4452_v27 = vld [vmem:[%s5439_s1 + $0x140] sm:$0xff]   ;;  %v3225_v32 = vld [vmem:[%s4586_s10 + $0x4d] sm:$0xff]  ;;  %v1355_v33 = vpack.c.bf16 %v3223_v26, %v3222_v25  ;;  %v3226_v40 = vld [vmem:[%s4586_s10 + $0x55] sm:$0xff]  ;;  %s3038_s8 = sshll.u32 %s5463_s6, 3 }
   0xf   : > { %3728 = vmatpush3.bf16.msra.mxu1 %v4439_v4  ;;  %v3045_v28 = vld [vmem:[%s4586_s10 + $0x21] sm:$0xff]  ;;  %v1356_v36 = vpack.c.bf16 %v3225_v32, %v3224_v31  ;;  %v3047_v37 = vld [vmem:[%s4586_s10 + $0x31] sm:$0xff]  ;;  %v3048_v38 = vld [vmem:[%s4586_s10 + $0x39] sm:$0xff]  ;;  %s5366_s11 = scalar_lea.vmem %s5441_s3, %s3038_s8 }
  0x10   : > { %3920 = vmatpush3.bf16.msra.mxu0 %v4440_v5  ;;  %3729 = vmatprep.subr.bf16.mxu1 %v4441_v6  ;;  %v4453_v34 = vld [vmem:[%s5439_s1 + $0x148] sm:$0xff]   ;;  %v255_v35 = vpack.c.bf16 %v3046_v29, %v3045_v28  ;;  %v3227_v41 = vld [vmem:[%s4586_s10 + $0x5d] sm:$0xff]  ;;  %v4455_v43 = vld [vmem:[%s5439_s1 + $0x150] sm:$0xff]   ;;  %v256_v48 = vpack.c.bf16 %v3048_v38, %v3047_v37 }
  0x11   : > { %3921 = vmatprep.subr.bf16.mxu0 %v4442_v7  ;;  %v4454_v39 = vld [vmem:[%s5439_s1 + $0x8] sm:$0xff]   ;;  %v4457_v46 = vld [vmem:[%s5439_s1 + $0x10] sm:$0xff]   ;;  %v1357_v49 = vpack.c.bf16 %v3227_v41, %v3226_v40  ;;  %v4456_v51 = vld [vmem:[%s5439_s1 + $0x158] sm:$0xff]  }
  0x12   : > { %v3049_v42 = vld [vmem:[%s4586_s10 + $0x41] sm:$0xff]  ;;  %v4639_v44 = vld [vmem:[%s4586_s10 + $0x49] sm:$0xff]  ;;  %v4651_v53 = vld [vmem:[%s4586_s10 + $0x51] sm:$0xff] }
  0x13   : > { %3730 = vmatpush3.bf16.msra.mxu1 %v4441_v6  ;;  %v3228_v45 = vld [vmem:[%s4586_s10 + $0x65] sm:$0xff]  ;;  %v3229_v47 = vld [vmem:[%s4586_s10 + $0x6d] sm:$0xff]  ;;  %v257_v50 = vpack.c.bf16 %v4639_v44, %v3049_v42  ;;  %v4654_v54 = vld [vmem:[%s4586_s10 + $0x59] sm:$0xff] }
  0x14   : > { %3922 = vmatpush3.bf16.msra.mxu0 %v4442_v7  ;;  %3731 = vmatprep.subr.bf16.mxu1 %v4443_v8  ;;  %v1358_v52 = vpack.c.bf16 %v3229_v47, %v3228_v45  ;;  %v4460_v55 = vld [vmem:[%s5439_s1 + $0x18] sm:$0xff]   ;;  %v4458_v58 = vld [vmem:[%s5439_s1 + $0x160] sm:$0xff]   ;;  %v4668_v60 = vld [vmem:[%s4586_s10 + $0x69] sm:$0xff]  ;;  %v258_v63 = vpack.c.bf16 %v4654_v54, %v4651_v53 }
  0x15   : > { %3923 = vmatprep.subr.bf16.mxu0 %v4444_v9  ;;  %v3230_v56 = vld [vmem:[%s4586_s10 + $0x75] sm:$0xff]  ;;  %v3231_v57 = vld [vmem:[%s4586_s10 + $0x7d] sm:$0xff]  ;;  %v3232_v61 = vld [vmem:[%s4586_s10 + $0x85] sm:$0xff] }
  0x16   : > { %v4665_v59 = vld [vmem:[%s4586_s10 + $0x61] sm:$0xff]  ;;  %v3233_v62 = vld [vmem:[%s4586_s10 + $0x8d] sm:$0xff]  ;;  %v1359_v1 = vpack.c.bf16 %v3231_v57, %v3230_v56  ;;  %v4686_v6 = vld [vmem:[%s4586_s10 + $0x79] sm:$0xff] }
  0x17   : > { %3732 = vmatpush3.bf16.msra.mxu1 %v4443_v8  ;;  %v4463_v0 = vld [vmem:[%s5439_s1 + $0x20] sm:$0xff]   ;;  %v259_v2 = vpack.c.bf16 %v4668_v60, %v4665_v59  ;;  %v1360_v3 = vpack.c.bf16 %v3233_v62, %v3232_v61  ;;  %v4459_v4 = vld [vmem:[%s5439_s1 + $0x168] sm:$0xff]   ;;  %v4683_v5 = vld [vmem:[%s4586_s10 + $0x71] sm:$0xff]  ;;  %v2279_v38 = vpack.c.bf16 %v4665_v59, %v4654_v54 }
  0x18   : > { %3924 = vmatpush3.bf16.msra.mxu0 %v4444_v9  ;;  %3733 = vmatprep.subr.bf16.mxu1 %v4445_v10  ;;  %v4465_v7 = vld [vmem:[%s5439_s1 + $0x28] sm:$0xff]   ;;  %v3234_v8 = vld [vmem:[%s4586_s10 + $0x95] sm:$0xff]  ;;  %v3235_v9 = vld [vmem:[%s4586_s10 + $0x9d] sm:$0xff]  ;;  %v260_v15 = vpack.c.bf16 %v4686_v6, %v4683_v5 }
  0x19   : > { %3925 = vmatprep.subr.bf16.mxu0 %v4446_v14  ;;  %v4697_v11 = vld [vmem:[%s4586_s10 + $0x89] sm:$0xff]  ;;  %v1361_v17 = vpack.c.bf16 %v3235_v9, %v3234_v8  ;;  %v4718_v22 = vld [vmem:[%s4586_s10 + $0x99] sm:$0xff]  ;;  %v4731_v28 = vld [vmem:[%s4586_s10 + $0xa1] sm:$0xff] }
  0x1a   : > { %v4461_v12 = vld [vmem:[%s5439_s1 + $0x170] sm:$0xff]   ;;  %v3277_v13 = vld [vmem:[%s4586_s10 + $0x26] sm:$0xff]  ;;  %v4469_v25 = vld [vmem:[%s5439_s1 + $0x38] sm:$0xff]  }
  0x1b   : > { %3734 = vmatpush3.bf16.msra.mxu1 %v4445_v10  ;;  %v4694_v10 = vld [vmem:[%s4586_s10 + $0x81] sm:$0xff]  ;;  %v4467_v16 = vld [vmem:[%s5439_s1 + $0x30] sm:$0xff]   ;;  %v4756_v40 = vld [vmem:[%s4586_s10 + $0xb9] sm:$0xff] }
  0x1c   : > { %3926 = vmatpush3.bf16.msra.mxu0 %v4446_v14  ;;  %3735 = vmatprep.subr.bf16.mxu1 %v4447_v18  ;;  %v3278_v14 = vld [vmem:[%s4586_s10 + $0x2e] sm:$0xff]  ;;  %v3279_v23 = vld [vmem:[%s4586_s10 + $0x36] sm:$0xff]  ;;  %v4464_v26 = vld [vmem:[%s5439_s1 + $0x180] sm:$0xff]   ;;  %v5443_v59 = vpack.c.bf16 %v4694_v10, %v4686_v6 }
  0x1d   : > { %3927 = vmatprep.subr.bf16.mxu0 %v4448_v19  ;;  %v4734_v29 = vld [vmem:[%s4586_s10 + $0xa9] sm:$0xff]  ;;  %v3283_v41 = vld [vmem:[%s4586_s10 + $0x56] sm:$0xff]  ;;  %v3284_v42 = vld [vmem:[%s4586_s10 + $0x5e] sm:$0xff] }
  0x1e   : > { %v3282_v31 = vld [vmem:[%s4586_s10 + $0x4e] sm:$0xff]  ;;  %v4470_v57 = vld [vmem:[%s5439_s1 + $0x198] sm:$0xff]   ;;  %v3361_v47 = vld [vmem:[%s4586_s10 + $0x120] sm:$0xff] }
  0x1f   : > { %3736 = vmatpush3.bf16.msra.mxu1 %v4447_v18  ;;  %v261_v18 = vpack.c.bf16 %v4697_v11, %v4694_v10  ;;  %v4466_v37 = vld [vmem:[%s5439_s1 + $0x188] sm:$0xff]   ;;  %v4779_v56 = vld [vmem:[%s4586_s10 + $0xd1] sm:$0xff]  ;;  %v4787_v61 = vld [vmem:[%s4586_s10 + $0xd9] sm:$0xff] }
  0x20   : > { %3928 = vmatpush3.bf16.msra.mxu0 %v4448_v19  ;;  %3737 = vmatprep.subr.bf16.mxu1 %v4449_v20  ;;  %v1662_v19 = vpack.c.bf16 %v3278_v14, %v3277_v13  ;;  %v4765_v45 = vld [vmem:[%s4586_s10 + $0xc9] sm:$0xff]  ;;  %v3287_v62 = vld [vmem:[%s4586_s10 + $0x76] sm:$0xff]  ;;  %v266_v8 = vpack.c.bf16 %v4787_v61, %v4779_v56 }
  0x21   : > { %3929 = vmatprep.subr.bf16.mxu0 %v4450_v21  ;;  %v4809_v14 = vld [vmem:[%s4586_s10 + $0xf1] sm:$0xff]  ;;  %v4504_v10 = vld [vmem:[%s5439_s1 + $0x228] sm:$0xff]  }
  0x22   : > { %v4502_v54 = vld [vmem:[%s5439_s1 + $0x218] sm:$0xff]  }
  0x23   : > { %3738 = vmatpush3.bf16.msra.mxu1 %v4449_v20  ;;  %v4462_v20 = vld [vmem:[%s5439_s1 + $0x178] sm:$0xff]  }
  0x24   : > { %3930 = vmatpush3.bf16.msra.mxu0 %v4450_v21  ;;  %3771 = vmatprep.subr.bf16.mxu1 %v4451_v24  ;;  %v4715_v21 = vld [vmem:[%s4586_s10 + $0x91] sm:$0xff] }
  0x25   : > { %3963 = vmatprep.subr.bf16.mxu0 %v4452_v27  ;;  %v262_v32 = vpack.c.bf16 %v4718_v22, %v4715_v21 }
  0x26   : > { %3740 = vmatmul.mubr.bf16.vlgmr.msra.gmra.mrb[0].mxu1 %v254_v30  ;;  %v3281_v30 = vld [vmem:[%s4586_s10 + $0x46] sm:$0xff] }
  0x27   : > { %3932 = vmatmul.mubr.bf16.vlgmr.msra.gmra.mrb[0].mxu0 %v1355_v33  ;;  %3772 = vmatpush3.bf16.msra.mxu1 %v4451_v24  ;;  %v3280_v24 = vld [vmem:[%s4586_s10 + $0x3e] sm:$0xff] }
  0x28   : > { %3964 = vmatpush3.bf16.msra.mxu0 %v4452_v27  ;;  %3743 = vmatprep.mubr.bf16.mxu1 %v255_v35  ;;  %v2278_v27 = vpack.c.bf16 %v4651_v53, %v4639_v44  ;;  %v4743_v33 = vld [vmem:[%s5439_s1 + $0x80] sm:$0xff]   ;;  %v263_v35 = vpack.c.bf16 %v4734_v29, %v4731_v28  ;;  %v5442_v44 = vpack.c.bf16 %v4683_v5, %v4668_v60  ;;  %v4500_v53 = vld [vmem:[%s5439_s1 + $0x210] sm:$0xff]  }
  0x29   : > { %3965 = vmatprep.subr.bf16.mxu0 %v4453_v34  ;;  %3935 = vmatprep.mubr.bf16.mxu0 %v1356_v36  ;;  %v1664_v36 = vpack.c.bf16 %v3282_v31, %v3281_v30  ;;  %v4476_v30 = vld [vmem:[%s5439_s1 + $0x1b0] sm:$0xff]   ;;  %v5444_v60 = vpack.c.bf16 %v4715_v21, %v4697_v11  ;;  %v4503_v5 = vld [vmem:[%s5439_s1 + $0x220] sm:$0xff]   ;;  %v5445_v11 = vpack.c.bf16 %v4731_v28, %v4718_v22 }
  0x2a   : > { %3773 = vmatprep.subr.bf16.mxu1 %v4454_v39  ;;  %v5200_v21 = vld [vmem:[%s4586_s10 + $0xfa] sm:$0xff]  ;;  %v4505_v22 = vld [vmem:[%s5439_s1 + $0x230] sm:$0xff]  }
  0x2b   : > { %3774 = vmatpush3.bf16.msra.mxu1 %v4454_v39  ;;  %v4753_v39 = vld [vmem:[%s4586_s10 + $0xb1] sm:$0xff] }
  0x2c   : > { %3966 = vmatpush3.bf16.msra.mxu0 %v4453_v34  ;;  %3775 = vmatprep.subr.bf16.mxu1 %v4457_v46  ;;  %v1663_v34 = vpack.c.bf16 %v3280_v24, %v3279_v23  ;;  %v156_v23 = vld [vmem:[%s4586_s10 + $0x8] sm:$0xff] }
  0x2d   : > { %3967 = vmatprep.subr.bf16.mxu0 %v4455_v43  ;;  %v3293_v24 = vld [vmem:[%s4586_s10 + $0xa6] sm:$0xff] }
  0x2e   : > { %3744 = vmatmul.mubr.bf16.gmra.mrb[4].mxu1 %v256_v48  ;;  %v3286_v48 = vld [vmem:[%s4586_s10 + $0x6e] sm:$0xff] }
  0x2f   : > { %3936 = vmatmul.mubr.bf16.gmra.mrb[4].mxu0 %v1357_v49  ;;  %3747 = vmatprep.mubr.bf16.mxu1 %v257_v50  ;;  %v4468_v49 = vld [vmem:[%s5439_s1 + $0x190] sm:$0xff]   ;;  %v264_v50 = vpack.c.bf16 %v4756_v40, %v4753_v39 }
  0x30   : > { %3968 = vmatpush3.bf16.msra.mxu0 %v4455_v43  ;;  %3939 = vmatprep.mubr.bf16.mxu0 %v1358_v52  ;;  %v4762_v43 = vld [vmem:[%s4586_s10 + $0xc1] sm:$0xff] }
  0x31   : > { %3969 = vmatprep.subr.bf16.mxu0 %v4456_v51  ;;  %3776 = vmatpush3.bf16.msra.mxu1 %v4457_v46  ;;  %v3285_v46 = vld [vmem:[%s4586_s10 + $0x66] sm:$0xff]  ;;  %v265_v52 = vpack.c.bf16 %v4765_v45, %v4762_v43 }
  0x32   : > { %3777 = vmatprep.subr.bf16.mxu1 %v4460_v55 }
  0x34   : > { %3970 = vmatpush3.bf16.msra.mxu0 %v4456_v51  ;;  %v1665_v51 = vpack.c.bf16 %v3284_v42, %v3283_v41  ;;  %v158_v42 = vld [vmem:[%s4586_s10 + $0x18] sm:$0xff]  ;;  %v3107_v41 = vld [vmem:[%s4586_s10 + $0xa] sm:$0xff] }
  0x35   : > { %3971 = vmatprep.subr.bf16.mxu0 %v4458_v58  ;;  %3778 = vmatpush3.bf16.msra.mxu1 %v4460_v55  ;;  %v1666_v55 = vpack.c.bf16 %v3286_v48, %v3285_v46  ;;  %v3295_v46 = vld [vmem:[%s4586_s10 + $0xb6] sm:$0xff]  ;;  %v3296_v48 = vld [vmem:[%s4586_s10 + $0xbe] sm:$0xff] }
  0x36   : > { %3748 = vmatmul.mubr.bf16.gmra.mrb[8].mxu1 %v258_v63  ;;  %3779 = vmatprep.subr.bf16.mxu1 %v4463_v0  ;;  %v3288_v63 = vld [vmem:[%s4586_s10 + $0x7e] sm:$0xff] }
  0x37   : > { %3940 = vmatmul.mubr.bf16.gmra.mrb[8].mxu0 %v1359_v1  ;;  %3751 = vmatprep.mubr.bf16.mxu1 %v259_v2  ;;  %v4797_v2 = vld [vmem:[%s4586_s10 + $0xe9] sm:$0xff]  ;;  %v1667_v9 = vpack.c.bf16 %v3288_v63, %v3287_v62  ;;  %v1671_v63 = vpack.c.bf16 %v3296_v48, %v3295_v46  ;;  %v167_v46 = vld [vmem:[%s4586_s10 + $0x60] sm:$0xff] }
  0x38   : > { %3972 = vmatpush3.bf16.msra.mxu0 %v4458_v58  ;;  %3943 = vmatprep.mubr.bf16.mxu0 %v1360_v3  ;;  %v3289_v3 = vld [vmem:[%s4586_s10 + $0x86] sm:$0xff]  ;;  %v3360_v58 = vld [vmem:[%s4586_s10 + $0x118] sm:$0xff] }
  0x39   : > { %3973 = vmatprep.subr.bf16.mxu0 %v4459_v4  ;;  %3780 = vmatpush3.bf16.msra.mxu1 %v4463_v0  ;;  %v4792_v0 = vld [vmem:[%s4586_s10 + $0xe1] sm:$0xff] }
  0x3a   : > { %3781 = vmatprep.subr.bf16.mxu1 %v4465_v7  ;;  %v4886_v48 = vld [vmem:[%s4586_s10 + $0x68] sm:$0xff] }
  0x3b   : > { %v4489_v1 = vld [vmem:[%s5439_s1 + $0xc8] sm:$0xff]  }
  0x3c   : > { %3974 = vmatpush3.bf16.msra.mxu0 %v4459_v4  ;;  %v3290_v4 = vld [vmem:[%s4586_s10 + $0x8e] sm:$0xff] }
  0x3d   : > { %3975 = vmatprep.subr.bf16.mxu0 %v4461_v12  ;;  %3782 = vmatpush3.bf16.msra.mxu1 %v4465_v7  ;;  %v4472_v7 = vld [vmem:[%s5439_s1 + $0x1a0] sm:$0xff]   ;;  %v1668_v13 = vpack.c.bf16 %v3290_v4, %v3289_v3 }
  0x3e   : > { %3752 = vmatmul.mubr.bf16.gmra.mrb[12].mxu1 %v260_v15  ;;  %3783 = vmatprep.subr.bf16.mxu1 %v4467_v16  ;;  %v4812_v15 = vld [vmem:[%s4586_s10 + $0xf9] sm:$0xff] }
  0x3f   : > { %3944 = vmatmul.mubr.bf16.gmra.mrb[12].mxu0 %v1361_v17  ;;  %3755 = vmatprep.mubr.bf16.mxu1 %v261_v18  ;;  %v3291_v18 = vld [vmem:[%s4586_s10 + $0x96] sm:$0xff]  ;;  %v268_v31 = vpack.c.bf16 %v4812_v15, %v4809_v14 }
  0x40   : > { %3976 = vmatpush3.bf16.msra.mxu0 %v4461_v12  ;;  %3979 = vmatprep.mubr.bf16.mxu0 %v1662_v19  ;;  %v267_v12 = vpack.c.bf16 %v4797_v2, %v4792_v0  ;;  %v3292_v19 = vld [vmem:[%s4586_s10 + $0x9e] sm:$0xff] }
  0x41   : > { %3977 = vmatprep.subr.bf16.mxu0 %v4462_v20  ;;  %3784 = vmatpush3.bf16.msra.mxu1 %v4467_v16  ;;  %v4474_v16 = vld [vmem:[%s5439_s1 + $0x1a8] sm:$0xff]  }
  0x42   : > { %3785 = vmatprep.subr.bf16.mxu1 %v4469_v25 }
  0x44   : > { %3978 = vmatpush3.bf16.msra.mxu0 %v4462_v20  ;;  %v155_v20 = vld [vmem:[%s4586_s10] sm:$0xff] }
  0x45   : > { %4011 = vmatprep.subr.bf16.mxu0 %v4464_v26  ;;  %3786 = vmatpush3.bf16.msra.mxu1 %v4469_v25  ;;  %v4494_v25 = vld [vmem:[%s5439_s1 + $0x1f8] sm:$0xff]  }
  0x46   : > { %3756 = vmatmul.mubr.bf16.gmra.mrb[16].mxu1 %v262_v32  ;;  %3819 = vmatprep.subr.bf16.mxu1 %v4743_v33  ;;  %v1669_v32 = vpack.c.bf16 %v3292_v19, %v3291_v18  ;;  %v163_v18 = vld [vmem:[%s4586_s10 + $0x40] sm:$0xff]  ;;  %v4865_v19 = vld [vmem:[%s4586_s10 + $0x48] sm:$0xff] }
  0x47   : > { %3980 = vmatmul.mubr.bf16.vlgmr.msra.gmra.mrb[0].mxu0 %v1663_v34  ;;  %3759 = vmatprep.mubr.bf16.mxu1 %v263_v35  ;;  %v187_v34 = vpack.c.bf16 %v156_v23, %v155_v20  ;;  %v4475_v20 = vld [vmem:[%s5439_s1 + $0x90] sm:$0xff]   ;;  %v4490_v23 = vld [vmem:[%s5439_s1 + $0x1e8] sm:$0xff]  }
  0x48   : > { %4012 = vmatpush3.bf16.msra.mxu0 %v4464_v26  ;;  %3983 = vmatprep.mubr.bf16.mxu0 %v1664_v36  ;;  %v3294_v26 = vld [vmem:[%s4586_s10 + $0xae] sm:$0xff] }
  0x49   : > { %4013 = vmatprep.subr.bf16.mxu0 %v4466_v37  ;;  %v1670_v35 = vpack.c.bf16 %v3294_v26, %v3293_v24  ;;  %v157_v36 = vld [vmem:[%s4586_s10 + $0x10] sm:$0xff]  ;;  %v3301_v24 = vld [vmem:[%s4586_s10 + $0xe6] sm:$0xff] }
  0x4a   : > { %v188_v62 = vpack.c.bf16 %v158_v42, %v157_v36  ;;  %v4880_v36 = vld [vmem:[%s4586_s10 + $0x58] sm:$0xff] }
  0x4b   : > { %v3304_v42 = vld [vmem:[%s4586_s10 + $0xfe] sm:$0xff] }
  0x4c   : > { %4014 = vmatpush3.bf16.msra.mxu0 %v4466_v37  ;;  %v4478_v37 = vld [vmem:[%s5439_s1 + $0x1b8] sm:$0xff]  }
  0x4d   : > { %4015 = vmatprep.subr.bf16.mxu0 %v4468_v49 }
  0x4e   : > { %3760 = vmatmul.mubr.bf16.gmra.mrb[20].mxu1 %v264_v50  ;;  %v159_v50 = vld [vmem:[%s4586_s10 + $0x20] sm:$0xff] }
  0x4f   : > { %3984 = vmatmul.mubr.bf16.gmra.mrb[4].mxu0 %v1665_v51  ;;  %3763 = vmatprep.mubr.bf16.mxu1 %v265_v52  ;;  %v160_v51 = vld [vmem:[%s4586_s10 + $0x28] sm:$0xff] }
  0x50   : > { %3987 = vmatprep.mubr.bf16.mxu0 %v1666_v55  ;;  %4016 = vmatpush3.bf16.msra.mxu0 %v4468_v49  ;;  %v3297_v52 = vld [vmem:[%s4586_s10 + $0xc6] sm:$0xff]  ;;  %v3298_v55 = vld [vmem:[%s4586_s10 + $0xce] sm:$0xff]  ;;  %v189_v3 = vpack.c.bf16 %v160_v51, %v159_v50 }
  0x51   : > { %4017 = vmatprep.subr.bf16.mxu0 %v4470_v57  ;;  %v1672_v4 = vpack.c.bf16 %v3298_v55, %v3297_v52  ;;  %v3305_v50 = vld [vmem:[%s4586_s10 + $0x106] sm:$0xff]  ;;  %v3306_v51 = vld [vmem:[%s4586_s10 + $0x10e] sm:$0xff] }
  0x52   : > { %v4479_v52 = vld [vmem:[%s5439_s1 + $0xa0] sm:$0xff]  }
  0x53   : > { %v3106_v49 = vld [vmem:[%s4586_s10 + $0x2] sm:$0xff] }
  0x54   : > { %4018 = vmatpush3.bf16.msra.mxu0 %v4470_v57  ;;  %v4850_v57 = vld [vmem:[%s5439_s1 + $0x1c0] sm:$0xff]  }
  0x55   : > { %4019 = vmatprep.subr.bf16.mxu0 %v4472_v7 }
  0x56   : > { %3764 = vmatmul.mubr.bf16.gmra.mrb[24].mxu1 %v266_v8  ;;  %v162_v8 = vld [vmem:[%s4586_s10 + $0x38] sm:$0xff] }
  0x57   : > { %3988 = vmatmul.mubr.bf16.gmra.mrb[8].mxu0 %v1667_v9  ;;  %3767 = vmatprep.mubr.bf16.mxu1 %v267_v12  ;;  %v4473_v9 = vld [vmem:[%s5439_s1 + $0x88] sm:$0xff]   ;;  %v5041_v12 = vld [vmem:[%s4586_s10 + $0xb2] sm:$0xff] }
  0x58   : > { %3991 = vmatprep.mubr.bf16.mxu0 %v1668_v13  ;;  %4020 = vmatpush3.bf16.msra.mxu0 %v4472_v7  ;;  %v161_v7 = vld [vmem:[%s4586_s10 + $0x30] sm:$0xff] }
  0x59   : > { %4021 = vmatprep.subr.bf16.mxu0 %v4474_v16  ;;  %v3299_v13 = vld [vmem:[%s4586_s10 + $0xd6] sm:$0xff]  ;;  %v190_v26 = vpack.c.bf16 %v162_v8, %v161_v7 }
  0x5a   : > { %v169_v7 = vld [vmem:[%s4586_s10 + $0x70] sm:$0xff]  ;;  %v4900_v8 = vld [vmem:[%s4586_s10 + $0x78] sm:$0xff] }
  0x5c   : > { %4022 = vmatpush3.bf16.msra.mxu0 %v4474_v16  ;;  %v3300_v16 = vld [vmem:[%s4586_s10 + $0xde] sm:$0xff] }
  0x5d   : > { %4023 = vmatprep.subr.bf16.mxu0 %v4476_v30 }
  0x5e   : > { %3768 = vmatmul.mubr.bf16.gmra.mrb[28].mxu1 %v268_v31  ;;  %v191_v31 = vpack.c.bf16 %v4865_v19, %v163_v18  ;;  %v4908_v18 = vld [vmem:[%s4586_s10 + $0x88] sm:$0xff] }
  0x5f   : > { %3992 = vmatmul.mubr.bf16.gmra.mrb[12].mxu0 %v1669_v32  ;;  %3787 = vmatprep.mubr.bf16.mxu1 %v187_v34  ;;  %v165_v34 = vld [vmem:[%s4586_s10 + $0x50] sm:$0xff] }
  0x60   : > { %3995 = vmatprep.mubr.bf16.mxu0 %v1670_v35  ;;  %4024 = vmatpush3.bf16.msra.mxu0 %v4476_v30  ;;  %v1673_v30 = vpack.c.bf16 %v3300_v16, %v3299_v13  ;;  %v4477_v35 = vld [vmem:[%s5439_s1 + $0x98] sm:$0xff]   ;;  %v192_v55 = vpack.c.bf16 %v4880_v36, %v165_v34  ;;  %v4905_v16 = vld [vmem:[%s4586_s10 + $0x80] sm:$0xff] }
  0x61   : > { %4025 = vmatprep.subr.bf16.mxu0 %v4478_v37  ;;  %v3308_v13 = vld [vmem:[%s4586_s10 + $0x11e] sm:$0xff] }
  0x64   : > { %4026 = vmatpush3.bf16.msra.mxu0 %v4478_v37  ;;  %v3303_v37 = vld [vmem:[%s4586_s10 + $0xf6] sm:$0xff] }
  0x65   : > { %4059 = vmatprep.subr.bf16.mxu0 %v4850_v57 }
  0x66   : > { %3788 = vmatmul.mubr.bf16.vlgmr.msra.gmra.mrb[0].mxu1 %v188_v62  ;;  %v1675_v62 = vpack.c.bf16 %v3304_v42, %v3303_v37  ;;  %v4925_v37 = vld [vmem:[%s4586_s10 + $0x52] sm:$0xff] }
  0x67   : > { %3996 = vmatmul.mubr.bf16.gmra.mrb[16].mxu0 %v1671_v63  ;;  %3820 = vmatpush3.bf16.msra.mxu1 %v4743_v33  ;;  %v3302_v33 = vld [vmem:[%s4586_s10 + $0xee] sm:$0xff]  ;;  %v193_v63 = vpack.c.bf16 %v4886_v48, %v167_v46  ;;  %v4928_v42 = vld [vmem:[%s4586_s10 + $0x98] sm:$0xff] }
  0x68   : > { %3791 = vmatprep.mubr.bf16.mxu1 %v189_v3  ;;  %3999 = vmatprep.mubr.bf16.mxu0 %v1672_v4  ;;  %v1674_v32 = vpack.c.bf16 %v3302_v33, %v3301_v24  ;;  %v1676_v3 = vpack.c.bf16 %v3306_v51, %v3305_v50  ;;  %v4481_v4 = vld [vmem:[%s5439_s1 + $0xa8] sm:$0xff]   ;;  %v194_v24 = vpack.c.bf16 %v4900_v8, %v169_v7  ;;  %v4941_v51 = vld [vmem:[%s5439_s1 + $0xc0] sm:$0xff]  }
  0x69   : > { %3821 = vmatprep.subr.bf16.mxu1 %v4473_v9  ;;  %v4936_v50 = vld [vmem:[%s4586_s10 + $0xa8] sm:$0xff] }
  0x6b   : > { %3822 = vmatpush3.bf16.msra.mxu1 %v4473_v9  ;;  %v3307_v9 = vld [vmem:[%s4586_s10 + $0x116] sm:$0xff] }
  0x6c   : > { %3823 = vmatprep.subr.bf16.mxu1 %v4475_v20  ;;  %v1677_v33 = vpack.c.bf16 %v3308_v13, %v3307_v9  ;;  %v4482_v9 = vld [vmem:[%s5439_s1 + $0x1c8] sm:$0xff]  }
  0x6d   : > { %v4959_v13 = vld [vmem:[%s4586_s10 + $0x6a] sm:$0xff] }
  0x6e   : > { %3792 = vmatmul.mubr.bf16.gmra.mrb[4].mxu1 %v190_v26  ;;  %v195_v26 = vpack.c.bf16 %v4908_v18, %v4905_v16 }
  0x6f   : > { %4000 = vmatmul.mubr.bf16.gmra.mrb[20].mxu0 %v1673_v30  ;;  %3795 = vmatprep.mubr.bf16.mxu1 %v191_v31  ;;  %v1970_v30 = vpack.c.bf16 %v165_v34, %v4865_v19  ;;  %v4485_v31 = vld [vmem:[%s5439_s1 + $0xb8] sm:$0xff]   ;;  %v4933_v34 = vld [vmem:[%s4586_s10 + $0xa0] sm:$0xff] }
  0x70   : > { %4003 = vmatprep.mubr.bf16.mxu0 %v1674_v32  ;;  %3824 = vmatpush3.bf16.msra.mxu1 %v4475_v20  ;;  %v4483_v20 = vld [vmem:[%s5439_s1 + $0xb0] sm:$0xff]   ;;  %v5030_v19 = vld [vmem:[%s4586_s10 + $0xa2] sm:$0xff] }
  0x71   : > { %3825 = vmatprep.subr.bf16.mxu1 %v4477_v35  ;;  %v173_v32 = vld [vmem:[%s4586_s10 + $0x90] sm:$0xff] }
  0x74   : > { %3826 = vmatpush3.bf16.msra.mxu1 %v4477_v35  ;;  %v4922_v35 = vld [vmem:[%s4586_s10 + $0x4a] sm:$0xff] }
  0x75   : > { %3827 = vmatprep.subr.bf16.mxu1 %v4479_v52 }
  0x76   : > { %3796 = vmatmul.mubr.bf16.gmra.mrb[8].mxu1 %v192_v55  ;;  %v1971_v55 = vpack.c.bf16 %v167_v46, %v4880_v36  ;;  %v4964_v46 = vld [vmem:[%s4586_s10 + $0x72] sm:$0xff]  ;;  %v5012_v36 = vld [vmem:[%s4586_s10 + $0xe0] sm:$0xff] }
  0x77   : > { %4004 = vmatmul.mubr.bf16.gmra.mrb[24].mxu0 %v1675_v62  ;;  %3799 = vmatprep.mubr.bf16.mxu1 %v193_v63  ;;  %v197_v62 = vpack.c.bf16 %v4936_v50, %v4933_v34  ;;  %v1972_v63 = vpack.c.bf16 %v169_v7, %v4886_v48  ;;  %v177_v48 = vld [vmem:[%s4586_s10 + $0xb0] sm:$0xff]  ;;  %v4968_v7 = vld [vmem:[%s4586_s10 + $0xb8] sm:$0xff] }
  0x78   : > { %4007 = vmatprep.mubr.bf16.mxu0 %v1676_v3  ;;  %3828 = vmatpush3.bf16.msra.mxu1 %v4479_v52  ;;  %v196_v52 = vpack.c.bf16 %v4928_v42, %v173_v32  ;;  %v4949_v3 = vld [vmem:[%s4586_s10 + $0x5a] sm:$0xff] }
  0x79   : > { %3829 = vmatprep.subr.bf16.mxu1 %v4481_v4 }
  0x7c   : > { %3830 = vmatpush3.bf16.msra.mxu1 %v4481_v4  ;;  %v4952_v4 = vld [vmem:[%s4586_s10 + $0x62] sm:$0xff] }
  0x7d   : > { %3831 = vmatprep.subr.bf16.mxu1 %v4483_v20 }
  0x7e   : > { %3800 = vmatmul.mubr.bf16.gmra.mrb[12].mxu1 %v194_v24  ;;  %v4974_v24 = vld [vmem:[%s4586_s10 + $0xc0] sm:$0xff] }
  0x7f   : > { %4008 = vmatmul.mubr.bf16.gmra.mrb[28].mxu0 %v1677_v33  ;;  %3803 = vmatprep.mubr.bf16.mxu1 %v195_v26  ;;  %v4977_v33 = vld [vmem:[%s4586_s10 + $0xc8] sm:$0xff]  ;;  %v4484_v26 = vld [vmem:[%s5439_s1 + $0x1d0] sm:$0xff]  }
  0x80   : > { %4027 = vmatprep.mubr.bf16.mxu0 %v1970_v30  ;;  %3832 = vmatpush3.bf16.msra.mxu1 %v4483_v20  ;;  %v198_v30 = vpack.c.bf16 %v4968_v7, %v177_v48  ;;  %v1975_v20 = vpack.c.bf16 %v4933_v34, %v4928_v42  ;;  %v5038_v34 = vld [vmem:[%s4586_s10 + $0xaa] sm:$0xff]  ;;  %v738_v42 = vpack.c.bf16 %v3107_v41, %v3106_v49  ;;  %v5073_v41 = vld [vmem:[%s4586_s10 + $0xd2] sm:$0xff] }
  0x81   : > { %3833 = vmatprep.subr.bf16.mxu1 %v4485_v31  ;;  %v3108_v49 = vld [vmem:[%s4586_s10 + $0x12] sm:$0xff] }
  0x84   : > { %3834 = vmatpush3.bf16.msra.mxu1 %v4485_v31  ;;  %v1973_v31 = vpack.c.bf16 %v4905_v16, %v4900_v8  ;;  %v5000_v16 = vld [vmem:[%s4586_s10 + $0x8a] sm:$0xff]  ;;  %v5027_v8 = vld [vmem:[%s4586_s10 + $0x9a] sm:$0xff] }
  0x85   : > { %3867 = vmatprep.subr.bf16.mxu1 %v4941_v51 }
  0x86   : > { %3804 = vmatmul.mubr.bf16.gmra.mrb[16].mxu1 %v196_v52  ;;  %v1974_v52 = vpack.c.bf16 %v173_v32, %v4908_v18  ;;  %v181_v18 = vld [vmem:[%s4586_s10 + $0xd0] sm:$0xff]  ;;  %v5007_v32 = vld [vmem:[%s4586_s10 + $0xd8] sm:$0xff] }
  0x87   : > { %4028 = vmatmul.mubr.bf16.vlgmr.msra.gmra.mrb[0].mxu0 %v1971_v55  ;;  %3807 = vmatprep.mubr.bf16.mxu1 %v197_v62  ;;  %v4989_v55 = vld [vmem:[%s4586_s10 + $0x7a] sm:$0xff]  ;;  %v4992_v62 = vld [vmem:[%s4586_s10 + $0x82] sm:$0xff] }
  0x88   : > { %4060 = vmatpush3.bf16.msra.mxu0 %v4850_v57  ;;  %4031 = vmatprep.mubr.bf16.mxu0 %v1972_v63  ;;  %v199_v57 = vpack.c.bf16 %v4977_v33, %v4974_v24  ;;  %v4486_v63 = vld [vmem:[%s5439_s1 + $0x1d8] sm:$0xff]  }
  0x89   : > { %4061 = vmatprep.subr.bf16.mxu0 %v4482_v9 }
  0x8c   : > { %4062 = vmatpush3.bf16.msra.mxu0 %v4482_v9  ;;  %v5003_v9 = vld [vmem:[%s4586_s10 + $0x92] sm:$0xff] }
  0x8d   : > { %4063 = vmatprep.subr.bf16.mxu0 %v4484_v26 }
  0x8e   : > { %3808 = vmatmul.mubr.bf16.gmra.mrb[20].mxu1 %v198_v30  ;;  %v5015_v30 = vld [vmem:[%s4586_s10 + $0xe8] sm:$0xff] }
  0x8f   : > { %4032 = vmatmul.mubr.bf16.gmra.mrb[4].mxu0 %v1973_v31  ;;  %3811 = vmatprep.mubr.bf16.mxu1 %v199_v57  ;;  %v4488_v31 = vld [vmem:[%s5439_s1 + $0x1e0] sm:$0xff]   ;;  %v200_v57 = vpack.c.bf16 %v5007_v32, %v181_v18 }
  0x90   : > { %4035 = vmatprep.mubr.bf16.mxu0 %v1974_v52  ;;  %4064 = vmatpush3.bf16.msra.mxu0 %v4484_v26  ;;  %v201_v26 = vpack.c.bf16 %v5015_v30, %v5012_v36  ;;  %v1976_v52 = vpack.c.bf16 %v177_v48, %v4936_v50  ;;  %v185_v50 = vld [vmem:[%s4586_s10 + $0xf0] sm:$0xff]  ;;  %v5045_v48 = vld [vmem:[%s4586_s10 + $0xf8] sm:$0xff] }
  0x91   : > { %4065 = vmatprep.subr.bf16.mxu0 %v4486_v63 }
  0x94   : > { %4066 = vmatpush3.bf16.msra.mxu0 %v4486_v63  ;;  %v5059_v63 = vld [vmem:[%s4586_s10 + $0xba] sm:$0xff] }
  0x95   : > { %4067 = vmatprep.subr.bf16.mxu0 %v4488_v31 }
  0x96   : > { %3812 = vmatmul.mubr.bf16.gmra.mrb[24].mxu1 %v200_v57  ;;  %v202_v57 = vpack.c.bf16 %v5045_v48, %v185_v50 }
  0x97   : > { %4036 = vmatmul.mubr.bf16.gmra.mrb[8].mxu0 %v1975_v20  ;;  %3815 = vmatprep.mubr.bf16.mxu1 %v201_v26  ;;  %v4492_v20 = vld [vmem:[%s5439_s1 + $0x1f0] sm:$0xff]   ;;  %v1977_v26 = vpack.c.bf16 %v4974_v24, %v4968_v7  ;;  %v5093_v24 = vld [vmem:[%s4586_s10 + $0xe2] sm:$0xff] }
  0x98   : > { %4039 = vmatprep.mubr.bf16.mxu0 %v1976_v52  ;;  %4068 = vmatpush3.bf16.msra.mxu0 %v4488_v31  ;;  %v1978_v52 = vpack.c.bf16 %v181_v18, %v4977_v33  ;;  %v5062_v31 = vld [vmem:[%s4586_s10 + $0xc2] sm:$0xff]  ;;  %v5070_v7 = vld [vmem:[%s4586_s10 + $0xca] sm:$0xff] }
  0x99   : > { %4069 = vmatprep.subr.bf16.mxu0 %v4490_v23  ;;  %v3110_v33 = vld [vmem:[%s4586_s10 + $0x22] sm:$0xff]  ;;  %v3111_v18 = vld [vmem:[%s4586_s10 + $0x2a] sm:$0xff] }
  0x9a   : > { %v740_v17 = vpack.c.bf16 %v3111_v18, %v3110_v33  ;;  %v3114_v33 = vld [vmem:[%s4586_s10 + $0x42] sm:$0xff]  ;;  %v4491_v18 = vld [vmem:[%s5439_s1 + $0xd0] sm:$0xff]  }
  0x9c   : > { %4070 = vmatpush3.bf16.msra.mxu0 %v4490_v23  ;;  %v3109_v23 = vld [vmem:[%s4586_s10 + $0x1a] sm:$0xff] }
  0x9d   : > { %4071 = vmatprep.subr.bf16.mxu0 %v4492_v20 }
  0x9e   : > { %3816 = vmatmul.mubr.bf16.gmra.mrb[28].mxu1 %v202_v57  ;;  %v5084_v57 = vld [vmem:[%s5439_s1 + $0x200] sm:$0xff]  }
  0x9f   : > { %4040 = vmatmul.mubr.bf16.gmra.mrb[12].mxu0 %v1977_v26  ;;  %3835 = vmatprep.mubr.bf16.mxu1 %v738_v42  ;;  %v739_v42 = vpack.c.bf16 %v3109_v23, %v3108_v49  ;;  %v1979_v26 = vpack.c.bf16 %v5012_v36, %v5007_v32  ;;  %v5102_v32 = vld [vmem:[%s4586_s10 + $0xea] sm:$0xff]  ;;  %v3357_v23 = vld [vmem:[%s4586_s10 + $0x100] sm:$0xff]  ;;  %v4493_v49 = vld [vmem:[%s5439_s1 + $0xd8] sm:$0xff]  }
  0xa0   : > { %4043 = vmatprep.mubr.bf16.mxu0 %v1978_v52  ;;  %4072 = vmatpush3.bf16.msra.mxu0 %v4492_v20  ;;  %v1980_v52 = vpack.c.bf16 %v185_v50, %v5015_v30  ;;  %v5090_v20 = vld [vmem:[%s4586_s10 + $0xda] sm:$0xff]  ;;  %v3112_v30 = vld [vmem:[%s4586_s10 + $0x32] sm:$0xff]  ;;  %v1981_v36 = vpack.c.bf16 %v3357_v23, %v5045_v48  ;;  %v1983_v23 = vpack.c.bf16 %v3361_v47, %v3360_v58 }
  0xa1   : > { %4073 = vmatprep.subr.bf16.mxu0 %v4494_v25  ;;  %v3113_v50 = vld [vmem:[%s4586_s10 + $0x3a] sm:$0xff]  ;;  %v3363_v48 = vld [vmem:[%s4586_s10 + $0x130] sm:$0xff]  ;;  %v745_v58 = vpack.c.bf16 %v4989_v55, %v4964_v46  ;;  %v752_v6 = vpack.c.bf16 %v5102_v32, %v5093_v24 }
  0xa2   : > { %v4499_v47 = vld [vmem:[%s5439_s1 + $0xf0] sm:$0xff]  }
  0xa4   : > { %4074 = vmatpush3.bf16.msra.mxu0 %v4494_v25  ;;  %v5105_v25 = vld [vmem:[%s4586_s10 + $0xf2] sm:$0xff] }
  0xa5   : > { %4107 = vmatprep.subr.bf16.mxu0 %v5084_v57  ;;  %v753_v28 = vpack.c.bf16 %v5200_v21, %v5105_v25 }
  0xa6   : > { %3836 = vmatmul.mubr.bf16.vlgmr.msra.gmra.mrb[0].mxu1 %v739_v42  ;;  %v3358_v42 = vld [vmem:[%s4586_s10 + $0x108] sm:$0xff] }
  0xa7   : > { %4044 = vmatmul.mubr.bf16.gmra.mrb[16].mxu0 %v1979_v26  ;;  %3868 = vmatpush3.bf16.msra.mxu1 %v4941_v51  ;;  %v3359_v26 = vld [vmem:[%s4586_s10 + $0x110] sm:$0xff]  ;;  %v741_v51 = vpack.c.bf16 %v3113_v50, %v3112_v30  ;;  %v3362_v30 = vld [vmem:[%s4586_s10 + $0x128] sm:$0xff]  ;;  %v743_v50 = vpack.c.bf16 %v4949_v3, %v4925_v37 }
  0xa8   : > { %3839 = vmatprep.mubr.bf16.mxu1 %v740_v17  ;;  %4047 = vmatprep.mubr.bf16.mxu0 %v1980_v52  ;;  %v742_v17 = vpack.c.bf16 %v4922_v35, %v3114_v33  ;;  %v1982_v52 = vpack.c.bf16 %v3359_v26, %v3358_v42  ;;  %v1984_v33 = vpack.c.bf16 %v3363_v48, %v3362_v30  ;;  %v3364_v42 = vld [vmem:[%s4586_s10 + $0x138] sm:$0xff]  ;;  %v3365_v26 = vld [vmem:[%s4586_s10 + $0x140] sm:$0xff]  ;;  %v4498_v48 = vld [vmem:[%s5439_s1 + $0x208] sm:$0xff]  }
  0xa9   : > { %3869 = vmatprep.subr.bf16.mxu1 %v4489_v1  ;;  %v748_v30 = vpack.c.bf16 %v5038_v34, %v5030_v19 }
  0xab   : > { %3870 = vmatpush3.bf16.msra.mxu1 %v4489_v1  ;;  %v4495_v1 = vld [vmem:[%s5439_s1 + $0xe0] sm:$0xff]  }
  0xac   : > { %3871 = vmatprep.subr.bf16.mxu1 %v4491_v18 }
  0xae   : > { %3840 = vmatmul.mubr.bf16.gmra.mrb[4].mxu1 %v741_v51  ;;  %v746_v51 = vpack.c.bf16 %v5000_v16, %v4992_v62 }
  0xaf   : > { %4048 = vmatmul.mubr.bf16.gmra.mrb[20].mxu0 %v1981_v36  ;;  %3843 = vmatprep.mubr.bf16.mxu1 %v742_v17  ;;  %v744_v36 = vpack.c.bf16 %v4959_v13, %v4952_v4  ;;  %v4501_v17 = vld [vmem:[%s5439_s1 + $0xf8] sm:$0xff]  }
  0xb0   : > { %4051 = vmatprep.mubr.bf16.mxu0 %v1982_v52  ;;  %3872 = vmatpush3.bf16.msra.mxu1 %v4491_v18  ;;  %v4497_v18 = vld [vmem:[%s5439_s1 + $0xe8] sm:$0xff]   ;;  %v747_v52 = vpack.c.bf16 %v5027_v8, %v5003_v9 }
  0xb1   : > { %3873 = vmatprep.subr.bf16.mxu1 %v4493_v49 }
  0xb4   : > { %3874 = vmatpush3.bf16.msra.mxu1 %v4493_v49  ;;  %v1985_v49 = vpack.c.bf16 %v3365_v26, %v3364_v42  ;;  %v3166_v42 = vld [vmem:[%s4586_s10 + $0x3c] sm:$0xff]  ;;  %v5448_v26 = vpack.c.bf16 %v4779_v56, %v4765_v45  ;;  %v3169_v45 = vld [vmem:[%s4586_s10 + $0x54] sm:$0xff] }
  0xb5   : > { %3875 = vmatprep.subr.bf16.mxu1 %v4495_v1  ;;  %v3170_v56 = vld [vmem:[%s4586_s10 + $0x5c] sm:$0xff] }
  0xb6   : > { %3844 = vmatmul.mubr.bf16.gmra.mrb[8].mxu1 %v743_v50  ;;  %v750_v50 = vpack.c.bf16 %v5070_v7, %v5062_v31 }
  0xb7   : > { %4052 = vmatmul.mubr.bf16.gmra.mrb[24].mxu0 %v1983_v23  ;;  %3847 = vmatprep.mubr.bf16.mxu1 %v744_v36  ;;  %v3163_v23 = vld [vmem:[%s4586_s10 + $0x24] sm:$0xff]  ;;  %v3164_v36 = vld [vmem:[%s4586_s10 + $0x2c] sm:$0xff] }
  0xb8   : > { %4055 = vmatprep.mubr.bf16.mxu0 %v1984_v33  ;;  %3876 = vmatpush3.bf16.msra.mxu1 %v4495_v1  ;;  %v4507_v1 = vld [vmem:[%s5439_s1 + $0x100] sm:$0xff]   ;;  %v1046_v33 = vpack.c.bf16 %v3164_v36, %v3163_v23 }
  0xb9   : > { %3877 = vmatprep.subr.bf16.mxu1 %v4497_v18  ;;  %v4511_v36 = vld [vmem:[%s5439_s1 + $0x120] sm:$0xff]  }
  0xbc   : > { %3878 = vmatpush3.bf16.msra.mxu1 %v4497_v18  ;;  %v3165_v18 = vld [vmem:[%s4586_s10 + $0x34] sm:$0xff] }
  0xbd   : > { %3879 = vmatprep.subr.bf16.mxu1 %v4499_v47 }
  0xbe   : > { %3848 = vmatmul.mubr.bf16.gmra.mrb[12].mxu1 %v745_v58  ;;  %v3168_v58 = vld [vmem:[%s4586_s10 + $0x4c] sm:$0xff] }
  0xbf   : > { %4056 = vmatmul.mubr.bf16.gmra.mrb[28].mxu0 %v1985_v49  ;;  %3851 = vmatprep.mubr.bf16.mxu1 %v746_v51  ;;  %v1047_v49 = vpack.c.bf16 %v3166_v42, %v3165_v18  ;;  %v5450_v51 = vpack.c.bf16 %v4809_v14, %v4797_v2  ;;  %v3180_v18 = vld [vmem:[%s4586_s10 + $0xac] sm:$0xff] }
  0xc0   : > { %4075 = vmatprep.mubr.bf16.mxu0 %v2278_v27  ;;  %3880 = vmatpush3.bf16.msra.mxu1 %v4499_v47  ;;  %v749_v27 = vpack.c.bf16 %v5059_v63, %v5041_v12  ;;  %v3167_v47 = vld [vmem:[%s4586_s10 + $0x44] sm:$0xff] }
  0xc1   : > { %3881 = vmatprep.subr.bf16.mxu1 %v4501_v17  ;;  %v4512_v42 = vld [vmem:[%s5439_s1 + $0x128] sm:$0xff]  }
  0xc4   : > { %3882 = vmatpush3.bf16.msra.mxu1 %v4501_v17  ;;  %v3414_v17 = vld [vmem:[%s4586_s10 + $0x101] sm:$0xff] }
  0xc5   : > { %4155 = vmatprep.subr.bf16.mxu1 %v4507_v1 }
  0xc6   : > { %3852 = vmatmul.mubr.bf16.gmra.mrb[16].mxu1 %v747_v52  ;;  %v3171_v52 = vld [vmem:[%s4586_s10 + $0x64] sm:$0xff] }
  0xc7   : > { %4076 = vmatmul.mubr.bf16.vlgmr.msra.gmra.mrb[0].mxu0 %v2279_v38  ;;  %3855 = vmatprep.mubr.bf16.mxu1 %v748_v30  ;;  %v751_v38 = vpack.c.bf16 %v5090_v20, %v5073_v41  ;;  %v3172_v30 = vld [vmem:[%s4586_s10 + $0x6c] sm:$0xff] }
  0xc8   : > { %4108 = vmatpush3.bf16.msra.mxu0 %v5084_v57  ;;  %4079 = vmatprep.mubr.bf16.mxu0 %v5442_v44  ;;  %v5446_v57 = vpack.c.bf16 %v4753_v39, %v4734_v29  ;;  %v4506_v29 = vld [vmem:[%s5439_s1 + $0x238] sm:$0xff]   ;;  %v5447_v39 = vpack.c.bf16 %v4762_v43, %v4756_v40  ;;  %v1048_v40 = vpack.c.bf16 %v3168_v58, %v3167_v47 }
  0xc9   : > { %4109 = vmatprep.subr.bf16.mxu0 %v4498_v48  ;;  %v5449_v43 = vpack.c.bf16 %v4792_v0, %v4787_v61  ;;  %v3415_v61 = vld [vmem:[%s4586_s10 + $0x109] sm:$0xff]  ;;  %v3416_v0 = vld [vmem:[%s4586_s10 + $0x111] sm:$0xff]  ;;  %v2289_v44 = vpack.c.bf16 %v3414_v17, %v4812_v15  ;;  %v1050_v2 = vpack.c.bf16 %v3172_v30, %v3171_v52 }
  0xca   : > { %v2290_v14 = vpack.c.bf16 %v3416_v0, %v3415_v61  ;;  %v3175_v15 = vld [vmem:[%s4586_s10 + $0x84] sm:$0xff]  ;;  %v4514_v17 = vld [vmem:[%s5439_s1 + $0x138] sm:$0xff]   ;;  %v5453_v61 = vpack.c.bf16 %v4964_v46, %v4959_v13  ;;  %v5455_v13 = vpack.c.bf16 %v5003_v9, %v5000_v16  ;;  %v5457_v16 = vpack.c.bf16 %v5041_v12, %v5038_v34 }
  0xcb   : > { %v3187_v0 = vld [vmem:[%s4586_s10 + $0xe4] sm:$0xff]  ;;  %v5459_v12 = vpack.c.bf16 %v5073_v41, %v5070_v7 }
  0xcc   : > { %4110 = vmatpush3.bf16.msra.mxu0 %v4498_v48  ;;  %v4508_v48 = vld [vmem:[%s5439_s1 + $0x108] sm:$0xff]  }
  0xcd   : > { %4111 = vmatprep.subr.bf16.mxu0 %v4500_v53  ;;  %v3191_v46 = vld [vmem:[%s4586_s10 + $0x104] sm:$0xff] }
  0xce   : > { %3856 = vmatmul.mubr.bf16.gmra.mrb[20].mxu1 %v749_v27  ;;  %v3173_v27 = vld [vmem:[%s4586_s10 + $0x74] sm:$0xff]  ;;  %v3236_v9 = vld [vmem:[%s4586_s10 + $0xa5] sm:$0xff] }
  0xcf   : > { %4080 = vmatmul.mubr.bf16.gmra.mrb[4].mxu0 %v5443_v59  ;;  %3859 = vmatprep.mubr.bf16.mxu1 %v750_v50  ;;  %v3174_v50 = vld [vmem:[%s4586_s10 + $0x7c] sm:$0xff]  ;;  %v3240_v34 = vld [vmem:[%s4586_s10 + $0xc5] sm:$0xff] }
  0xd0   : > { %4083 = vmatprep.mubr.bf16.mxu0 %v5444_v60  ;;  %4112 = vmatpush3.bf16.msra.mxu0 %v4500_v53  ;;  %v4509_v53 = vld [vmem:[%s5439_s1 + $0x110] sm:$0xff]   ;;  %v3418_v59 = vld [vmem:[%s4586_s10 + $0x121] sm:$0xff] }
  0xd1   : > { %4113 = vmatprep.subr.bf16.mxu0 %v4502_v54  ;;  %v3176_v60 = vld [vmem:[%s4586_s10 + $0x8c] sm:$0xff]  ;;  %v3471_v7 = vld [vmem:[%s4586_s10 + $0x102] sm:$0xff] }
  0xd2   : > { %v3244_v41 = vld [vmem:[%s4586_s10 + $0xe5] sm:$0xff] }
  0xd4   : > { %4114 = vmatpush3.bf16.msra.mxu0 %v4502_v54  ;;  %v3417_v54 = vld [vmem:[%s4586_s10 + $0x119] sm:$0xff] }
  0xd5   : > { %4115 = vmatprep.subr.bf16.mxu0 %v4503_v5 }
  0xd6   : > { %3860 = vmatmul.mubr.bf16.gmra.mrb[24].mxu1 %v751_v38  ;;  %v3420_v38 = vld [vmem:[%s4586_s10 + $0x131] sm:$0xff] }
  0xd7   : > { %4084 = vmatmul.mubr.bf16.gmra.mrb[8].mxu0 %v5445_v11  ;;  %3863 = vmatprep.mubr.bf16.mxu1 %v752_v6  ;;  %v4510_v6 = vld [vmem:[%s5439_s1 + $0x118] sm:$0xff]   ;;  %v2291_v11 = vpack.c.bf16 %v3418_v59, %v3417_v54  ;;  %v3237_v59 = vld [vmem:[%s4586_s10 + $0xad] sm:$0xff] }
  0xd8   : > { %4087 = vmatprep.mubr.bf16.mxu0 %v5446_v57  ;;  %4116 = vmatpush3.bf16.msra.mxu0 %v4503_v5  ;;  %v3419_v5 = vld [vmem:[%s4586_s10 + $0x129] sm:$0xff]  ;;  %v1052_v57 = vpack.c.bf16 %v3176_v60, %v3175_v15  ;;  %v3194_v54 = vld [vmem:[%s4586_s10 + $0x11c] sm:$0xff]  ;;  %v1362_v60 = vpack.c.bf16 %v3237_v59, %v3236_v9 }
  0xd9   : > { %4117 = vmatprep.subr.bf16.mxu0 %v4504_v10  ;;  %v2292_v23 = vpack.c.bf16 %v3420_v38, %v3419_v5  ;;  %v3239_v5 = vld [vmem:[%s4586_s10 + $0xbd] sm:$0xff]  ;;  %v3241_v38 = vld [vmem:[%s4586_s10 + $0xcd] sm:$0xff] }
  0xdc   : > { %4118 = vmatpush3.bf16.msra.mxu0 %v4504_v10  ;;  %v1051_v10 = vpack.c.bf16 %v3174_v50, %v3173_v27 }
  0xdd   : > { %4119 = vmatprep.subr.bf16.mxu0 %v4505_v22 }
  0xde   : > { %3864 = vmatmul.mubr.bf16.gmra.mrb[28].mxu1 %v753_v28  ;;  %v3178_v28 = vld [vmem:[%s4586_s10 + $0x9c] sm:$0xff] }
  0xdf   : > { %4088 = vmatmul.mubr.bf16.gmra.mrb[12].mxu0 %v5447_v39  ;;  %3883 = vmatprep.mubr.bf16.mxu1 %v1046_v33  ;;  %v3421_v33 = vld [vmem:[%s4586_s10 + $0x139] sm:$0xff]  ;;  %v3179_v39 = vld [vmem:[%s4586_s10 + $0xa4] sm:$0xff] }
  0xe0   : > { %4091 = vmatprep.mubr.bf16.mxu0 %v5448_v26  ;;  %4120 = vmatpush3.bf16.msra.mxu0 %v4505_v22  ;;  %v3177_v22 = vld [vmem:[%s4586_s10 + $0x94] sm:$0xff]  ;;  %v1054_v58 = vpack.c.bf16 %v3180_v18, %v3179_v39  ;;  %v3475_v39 = vld [vmem:[%s4586_s10 + $0x122] sm:$0xff] }
  0xe1   : > { %4121 = vmatprep.subr.bf16.mxu0 %v4506_v29  ;;  %v1053_v26 = vpack.c.bf16 %v3178_v28, %v3177_v22  ;;  %v2597_v22 = vpack.c.bf16 %v3471_v7, %v5200_v21  ;;  %v3248_v18 = vld [vmem:[%s4586_s10 + $0x105] sm:$0xff] }
  0xe4   : > { %4122 = vmatpush3.bf16.msra.mxu0 %v4506_v29  ;;  %v3422_v29 = vld [vmem:[%s4586_s10 + $0x141] sm:$0xff] }
  0xe5   : > { %v2293_v47 = vpack.c.bf16 %v3422_v29, %v3421_v33  ;;  %v3474_v29 = vld [vmem:[%s4586_s10 + $0x11a] sm:$0xff] }
  0xe6   : > { %3884 = vmatmul.mubr.bf16.vlgmr.msra.gmra.mrb[0].mxu1 %v1047_v49  ;;  %v4513_v49 = vld [vmem:[%s5439_s1 + $0x130] sm:$0xff]   ;;  %v2599_v21 = vpack.c.bf16 %v3475_v39, %v3474_v29 }
  0xe7   : > { %4092 = vmatmul.mubr.bf16.gmra.mrb[16].mxu0 %v5449_v43  ;;  %4163 = vmatpush3.bf16.msra.mxu1 %v4507_v1  ;;  %v1049_v1 = vpack.c.bf16 %v3170_v56, %v3169_v45  ;;  %v3182_v43 = vld [vmem:[%s4586_s10 + $0xbc] sm:$0xff]  ;;  %v5451_v45 = vpack.c.bf16 %v4925_v37, %v4922_v35  ;;  %v3183_v56 = vld [vmem:[%s4586_s10 + $0xc4] sm:$0xff]  ;;  %v5452_v35 = vpack.c.bf16 %v4952_v4, %v4949_v3  ;;  %v3185_v37 = vld [vmem:[%s4586_s10 + $0xd4] sm:$0xff] }
  0xe8   : > { %3887 = vmatprep.mubr.bf16.mxu1 %v1048_v40  ;;  %4095 = vmatprep.mubr.bf16.mxu0 %v5450_v51  ;;  %v3181_v40 = vld [vmem:[%s4586_s10 + $0xb4] sm:$0xff]  ;;  %v3184_v51 = vld [vmem:[%s4586_s10 + $0xcc] sm:$0xff]  ;;  %v5454_v3 = vpack.c.bf16 %v4992_v62, %v4989_v55  ;;  %v5456_v55 = vpack.c.bf16 %v5030_v19, %v5027_v8  ;;  %v5458_v19 = vpack.c.bf16 %v5062_v31, %v5059_v63 }
  0xe9   : > { %4156 = vmatprep.subr.bf16.mxu1 %v4508_v48  ;;  %v1055_v52 = vpack.c.bf16 %v3182_v43, %v3181_v40  ;;  %v1056_v30 = vpack.c.bf16 %v3184_v51, %v3183_v56  ;;  %v3189_v4 = vld [vmem:[%s4586_s10 + $0xf4] sm:$0xff]  ;;  %v5460_v63 = vpack.c.bf16 %v5093_v24, %v5090_v20  ;;  %v3479_v51 = vld [vmem:[%s4586_s10 + $0x142] sm:$0xff] }
  0xea   : > { %v3193_v62 = vld [vmem:[%s4586_s10 + $0x114] sm:$0xff] }
  0xeb   : > { %4164 = vmatpush3.bf16.msra.mxu1 %v4508_v48  ;;  %v3186_v48 = vld [vmem:[%s4586_s10 + $0xdc] sm:$0xff]  ;;  %v1061_v15 = vpack.c.bf16 %v3194_v54, %v3193_v62  ;;  %v3473_v24 = vld [vmem:[%s4586_s10 + $0x112] sm:$0xff] }
  0xec   : > { %4157 = vmatprep.subr.bf16.mxu1 %v4509_v53  ;;  %v3238_v8 = vld [vmem:[%s4586_s10 + $0xb5] sm:$0xff] }
  0xed   : > { %v3242_v31 = vld [vmem:[%s4586_s10 + $0xd5] sm:$0xff] }
  0xee   : > { %3888 = vmatmul.mubr.bf16.gmra.mrb[4].mxu1 %v1049_v1  ;;  %v3188_v1 = vld [vmem:[%s4586_s10 + $0xec] sm:$0xff]  ;;  %v3250_v43 = vld [vmem:[%s4586_s10 + $0x115] sm:$0xff] }
  0xef   : > { %4096 = vmatmul.mubr.bf16.gmra.mrb[20].mxu0 %v2289_v44  ;;  %3891 = vmatprep.mubr.bf16.mxu1 %v1050_v2  ;;  %v1057_v44 = vpack.c.bf16 %v3186_v48, %v3185_v37  ;;  %v1058_v2 = vpack.c.bf16 %v3188_v1, %v3187_v0  ;;  %v3478_v56 = vld [vmem:[%s4586_s10 + $0x13a] sm:$0xff] }
  0xf0   : > { %4099 = vmatprep.mubr.bf16.mxu0 %v2290_v14  ;;  %4165 = vmatpush3.bf16.msra.mxu1 %v4509_v53  ;;  %v3190_v14 = vld [vmem:[%s4586_s10 + $0xfc] sm:$0xff]  ;;  %v3192_v53 = vld [vmem:[%s4586_s10 + $0x10c] sm:$0xff] }
  0xf1   : > { %4158 = vmatprep.subr.bf16.mxu1 %v4510_v6  ;;  %v1059_v27 = vpack.c.bf16 %v3190_v14, %v3189_v4  ;;  %v1060_v50 = vpack.c.bf16 %v3192_v53, %v3191_v46 }
  0xf4   : > { %4166 = vmatpush3.bf16.msra.mxu1 %v4510_v6  ;;  %v1363_v6 = vpack.c.bf16 %v3239_v5, %v3238_v8 }
  0xf5   : > { %4159 = vmatprep.subr.bf16.mxu1 %v4511_v36 }
  0xf6   : > { %3892 = vmatmul.mubr.bf16.gmra.mrb[8].mxu1 %v1051_v10  ;;  %v1364_v10 = vpack.c.bf16 %v3241_v38, %v3240_v34 }
  0xf7   : > { %4100 = vmatmul.mubr.bf16.gmra.mrb[24].mxu0 %v2291_v11  ;;  %3895 = vmatprep.mubr.bf16.mxu1 %v1052_v57  ;;  %v3243_v11 = vld [vmem:[%s4586_s10 + $0xdd] sm:$0xff]  ;;  %v5461_v57 = vpack.c.bf16 %v5105_v25, %v5102_v32  ;;  %v3246_v32 = vld [vmem:[%s4586_s10 + $0xf5] sm:$0xff] }
  0xf8   : > { %4103 = vmatprep.mubr.bf16.mxu0 %v2292_v23  ;;  %4167 = vmatpush3.bf16.msra.mxu1 %v4511_v36  ;;  %v3245_v23 = vld [vmem:[%s4586_s10 + $0xed] sm:$0xff]  ;;  %v1365_v20 = vpack.c.bf16 %v3243_v11, %v3242_v31  ;;  %v3247_v25 = vld [vmem:[%s4586_s10 + $0xfd] sm:$0xff] }
  0xf9   : > { %4160 = vmatprep.subr.bf16.mxu1 %v4512_v42  ;;  %v3472_v36 = vld [vmem:[%s4586_s10 + $0x10a] sm:$0xff]  ;;  %v1366_v28 = vpack.c.bf16 %v3245_v23, %v3244_v41 }
  0xfa   : > { %v2598_v33 = vpack.c.bf16 %v3473_v24, %v3472_v36 }
  0xfc   : > { %4168 = vmatpush3.bf16.msra.mxu1 %v4512_v42  ;;  %v3249_v42 = vld [vmem:[%s4586_s10 + $0x10d] sm:$0xff] }
  0xfd   : > { %4161 = vmatprep.subr.bf16.mxu1 %v4513_v49 }
  0xfe   : > { %3896 = vmatmul.mubr.bf16.gmra.mrb[12].mxu1 %v1053_v26  ;;  %v3476_v26 = vld [vmem:[%s4586_s10 + $0x12a] sm:$0xff] }
  0xff   : > { %4104 = vmatmul.mubr.bf16.gmra.mrb[28].mxu0 %v2293_v47  ;;  %3899 = vmatprep.mubr.bf16.mxu1 %v1054_v58  ;;  %v3477_v47 = vld [vmem:[%s4586_s10 + $0x132] sm:$0xff]  ;;  %v1367_v58 = vpack.c.bf16 %v3247_v25, %v3246_v32 }
 0x100   : > { %4123 = vmatprep.mubr.bf16.mxu0 %v5451_v45  ;;  %4169 = vmatpush3.bf16.msra.mxu1 %v4513_v49  ;;  %v1368_v49 = vpack.c.bf16 %v3249_v42, %v3248_v18  ;;  %v2600_v40 = vpack.c.bf16 %v3477_v47, %v3476_v26  ;;  %v3251_v45 = vld [vmem:[%s4586_s10 + $0x11d] sm:$0xff] }
 0x101   : > { %4162 = vmatprep.subr.bf16.mxu1 %v4514_v17 }
 0x104   : > { %4170 = vmatpush3.bf16.msra.mxu1 %v4514_v17  ;;  %v1369_v17 = vpack.c.bf16 %v3251_v45, %v3250_v43 }
 0x106   : > { %3900 = vmatmul.mubr.bf16.gmra.mrb[16].mxu1 %v1055_v52  ;;  %v2601_v52 = vpack.c.bf16 %v3479_v51, %v3478_v56 }
 0x107   : > { %4124 = vmatmul.mubr.bf16.vlgmr.msra.gmra.mrb[0].mxu0 %v5452_v35  ;;  %3903 = vmatprep.mubr.bf16.mxu1 %v1056_v30 }
 0x108   : > { %4127 = vmatprep.mubr.bf16.mxu0 %v5453_v61 }
 0x10e   : > { %3904 = vmatmul.mubr.bf16.gmra.mrb[20].mxu1 %v1057_v44 }
 0x10f   : > { %4128 = vmatmul.mubr.bf16.gmra.mrb[4].mxu0 %v5454_v3  ;;  %3907 = vmatprep.mubr.bf16.mxu1 %v1058_v2 }
 0x110   : > { %4131 = vmatprep.mubr.bf16.mxu0 %v5455_v13 }
 0x116   : > { %3908 = vmatmul.mubr.bf16.gmra.mrb[24].mxu1 %v1059_v27 }
 0x117   : > { %4132 = vmatmul.mubr.bf16.gmra.mrb[8].mxu0 %v5456_v55  ;;  %3911 = vmatprep.mubr.bf16.mxu1 %v1060_v50  ;;  %v5360_v55 = vld [vmem:[%s5440_s2] ss:$0 sm:$0xff] }
 0x118   : > { %4135 = vmatprep.mubr.bf16.mxu0 %v5457_v16 }
 0x11e   : > { %3912 = vmatmul.mubr.bf16.gmra.mrb[28].mxu1 %v1061_v15 }
 0x11f   : > { %4136 = vmatmul.mubr.bf16.gmra.mrb[12].mxu0 %v5458_v19  ;;  %3947 = vmatprep.mubr.bf16.mxu1 %v1362_v60 }
 0x120   : > { %4139 = vmatprep.mubr.bf16.mxu0 %v5459_v12 }
 0x126   : > { %3948 = vmatmul.mubr.bf16.vlgmr.msra.gmra.mrb[16].mxu1 %v1363_v6 }
 0x127   : > { %4140 = vmatmul.mubr.bf16.gmra.mrb[16].mxu0 %v5460_v63  ;;  %3951 = vmatprep.mubr.bf16.mxu1 %v1364_v10 }
 0x128   : > { %4143 = vmatprep.mubr.bf16.mxu0 %v5461_v57 }
 0x12e   : > { %3952 = vmatmul.mubr.bf16.gmra.mrb[20].mxu1 %v1365_v20 }
 0x12f   : > { %4144 = vmatmul.mubr.bf16.gmra.mrb[20].mxu0 %v2597_v22  ;;  %3955 = vmatprep.mubr.bf16.mxu1 %v1366_v28 }
 0x130   : > { %4147 = vmatprep.mubr.bf16.mxu0 %v2598_v33 }
 0x136   : > { %3956 = vmatmul.mubr.bf16.gmra.mrb[24].mxu1 %v1367_v58 }
 0x137   : > { %4148 = vmatmul.mubr.bf16.gmra.mrb[24].mxu0 %v2599_v21  ;;  %3959 = vmatprep.mubr.bf16.mxu1 %v1368_v49 }
 0x138   : > { %4151 = vmatprep.mubr.bf16.mxu0 %v2600_v40 }
 0x13e   : > { %3960 = vmatmul.mubr.bf16.gmra.mrb[28].mxu1 %v1369_v17 }
 0x13f   : > { %4152 = vmatmul.mubr.bf16.gmra.mrb[28].mxu0 %v2601_v52 }
 0x1b9   : > { %v3885_v30 = vpop.f32.mrb[0].mxu1 }
 0x1ba   : > { %v1161_v35 = vpop.f32.mrb[1].mxu1 }
 0x1bb   : > { %v3886_v37 = vpop.f32.mrb[2].mxu1 }
 0x1bc   : > { %v1164_v48 = vpop.f32.mrb[3].mxu1 }
 0x1c1   : > { %v3889_v61 = vpop.f32.mrb[4].mxu1 }
 0x1c2   : > { %v1177_v0 = vpop.f32.mrb[5].mxu1 }
 0x1c3   : > { %v3890_v1 = vpop.f32.mrb[6].mxu1 }
 0x1c4   : > { %v1180_v44 = vpop.f32.mrb[7].mxu1 }
 0x1c9   : > { %v3893_v2 = vpop.f32.mrb[8].mxu1 }
 0x1ca   : > { %v1193_v3 = vpop.f32.mrb[9].mxu1 }
 0x1cb   : > { %v3894_v4 = vpop.f32.mrb[10].mxu1 }
 0x1cc   : > { %v1196_v14 = vpop.f32.mrb[11].mxu1 }
 0x1d1   : > { %v5349_v13 = vpop.f32.mrb[12].mxu1 }
 0x1d2   : > { %v5351_v46 = vpop.f32.mrb[13].mxu1 }
 0x1d3   : > { %v5353_v53 = vpop.f32.mrb[14].mxu1 }
 0x1d4   : > { %v5355_v27 = vpop.f32.mrb[15].mxu1 }
 0x1da   : > { %v4125_v50 = vpop.f32.mrb[0].mxu0 }
 0x1db   : > { %v4171_v62 = vadd.f32 %v4125_v50, %v3885_v30  ;;  %v2701_v54 = vpop.f32.mrb[1].mxu0 }
 0x1dc   : > { %v4172_v16 = vadd.f32 %v2701_v54, %v1161_v35  ;;  %v4126_v9 = vpop.f32.mrb[2].mxu0 }
 0x1dd   : > { %v2869_v59 = vadd.f32 %v4171_v62, %v5360_v55  ;;  %v4173_v15 = vadd.f32 %v4126_v9, %v3886_v37  ;;  %v2704_v60 = vpop.f32.mrb[3].mxu0 }
 0x1de   : > { %v2867_v19 = vadd.f32 %v4172_v16, %v5360_v55  ;;  %v4174_v8 = vadd.f32 %v2704_v60, %v1164_v48 }
 0x1df   : > { %v2901_v5 = vmax.f32 %v2869_v59, 0.0  ;;  %v2870_v12 = vadd.f32 %v4173_v15, %v5360_v55 }
 0x1e0   : > { %v2899_v34 = vmax.f32 %v2867_v19, 0.0  ;;  %v2868_v38 = vadd.f32 %v4174_v8, %v5360_v55 }
 0x1e1   : > { %2933 = vst [vmem:[%s5366_s11 + $0x10] sm:$0xff] %v2901_v5  ;;  %v2902_v6 = vmax.f32 %v2870_v12, 0.0 }
 0x1e2   : > { %2931 = vst [vmem:[%s5366_s11] sm:$0xff] %v2899_v34  ;;  %v2900_v10 = vmax.f32 %v2868_v38, 0.0  ;;  %v4129_v63 = vpop.f32.mrb[4].mxu0 }
 0x1e3   : > { %2934 = vst [vmem:[%s5366_s11 + $0x18] sm:$0xff] %v2902_v6  ;;  %v4175_v31 = vadd.f32 %v4129_v63, %v3889_v61  ;;  %v2717_v11 = vpop.f32.mrb[5].mxu0 }
 0x1e4   : > { %2932 = vst [vmem:[%s5366_s11 + $0x8] sm:$0xff] %v2900_v10  ;;  %v4176_v57 = vadd.f32 %v2717_v11, %v1177_v0  ;;  %v4130_v7 = vpop.f32.mrb[6].mxu0 }
 0x1e5   : > { %v2873_v41 = vadd.f32 %v4175_v31, %v5360_v55  ;;  %v4177_v23 = vadd.f32 %v4130_v7, %v3890_v1  ;;  %v2720_v36 = vpop.f32.mrb[7].mxu0 }
 0x1e6   : > { %v2871_v24 = vadd.f32 %v4176_v57, %v5360_v55  ;;  %v4178_v20 = vadd.f32 %v2720_v36, %v1180_v44 }
 0x1e7   : > { %v2905_v22 = vmax.f32 %v2873_v41, 0.0  ;;  %v2874_v28 = vadd.f32 %v4177_v23, %v5360_v55 }
 0x1e8   : > { %v2903_v33 = vmax.f32 %v2871_v24, 0.0  ;;  %v2872_v32 = vadd.f32 %v4178_v20, %v5360_v55 }
 0x1e9   : > { %2937 = vst [vmem:[%s5366_s11 + $0x30] sm:$0xff] %v2905_v22  ;;  %v2906_v25 = vmax.f32 %v2874_v28, 0.0 }
 0x1ea   : > { %2935 = vst [vmem:[%s5366_s11 + $0x20] sm:$0xff] %v2903_v33  ;;  %v2904_v29 = vmax.f32 %v2872_v32, 0.0  ;;  %v4133_v39 = vpop.f32.mrb[8].mxu0 }
 0x1eb   : > { %2938 = vst [vmem:[%s5366_s11 + $0x38] sm:$0xff] %v2906_v25  ;;  %v4179_v18 = vadd.f32 %v4133_v39, %v3893_v2  ;;  %v2733_v42 = vpop.f32.mrb[9].mxu0 }
 0x1ec   : > { %2936 = vst [vmem:[%s5366_s11 + $0x28] sm:$0xff] %v2904_v29  ;;  %v4180_v26 = vadd.f32 %v2733_v42, %v1193_v3  ;;  %v4134_v47 = vpop.f32.mrb[10].mxu0 }
 0x1ed   : > { %v2877_v58 = vadd.f32 %v4179_v18, %v5360_v55  ;;  %v4181_v21 = vadd.f32 %v4134_v47, %v3894_v4  ;;  %v2736_v49 = vpop.f32.mrb[11].mxu0 }
 0x1ee   : > { %v2875_v40 = vadd.f32 %v4180_v26, %v5360_v55  ;;  %v4182_v43 = vadd.f32 %v2736_v49, %v1196_v14 }
 0x1ef   : > { %v2909_v45 = vmax.f32 %v2877_v58, 0.0  ;;  %v2878_v56 = vadd.f32 %v4181_v21, %v5360_v55 }
 0x1f0   : > { %v2907_v51 = vmax.f32 %v2875_v40, 0.0  ;;  %v2876_v17 = vadd.f32 %v4182_v43, %v5360_v55 }
 0x1f1   : > { %2941 = vst [vmem:[%s5366_s11 + $0x50] sm:$0xff] %v2909_v45  ;;  %v2910_v52 = vmax.f32 %v2878_v56, 0.0 }
 0x1f2   : > { %2939 = vst [vmem:[%s5366_s11 + $0x40] sm:$0xff] %v2907_v51  ;;  %v2908_v30 = vmax.f32 %v2876_v17, 0.0  ;;  %v4137_v35 = vpop.f32.mrb[12].mxu0 }
 0x1f3   : > { %2942 = vst [vmem:[%s5366_s11 + $0x58] sm:$0xff] %v2910_v52  ;;  %v4183_v37 = vadd.f32 %v4137_v35, %v5349_v13  ;;  %v2749_v48 = vpop.f32.mrb[13].mxu0 }
 0x1f4   : > { %2940 = vst [vmem:[%s5366_s11 + $0x48] sm:$0xff] %v2908_v30  ;;  %v4184_v61 = vadd.f32 %v2749_v48, %v5351_v46  ;;  %v4138_v0 = vpop.f32.mrb[14].mxu0 }
 0x1f5   : > { %v2881_v1 = vadd.f32 %v4183_v37, %v5360_v55  ;;  %v4185_v44 = vadd.f32 %v4138_v0, %v5353_v53  ;;  %v2752_v2 = vpop.f32.mrb[15].mxu0 }
 0x1f6   : > { %v2879_v3 = vadd.f32 %v4184_v61, %v5360_v55  ;;  %v4186_v4 = vadd.f32 %v2752_v2, %v5355_v27 }
 0x1f7   : > { %v2913_v14 = vmax.f32 %v2881_v1, 0.0  ;;  %v2882_v13 = vadd.f32 %v4185_v44, %v5360_v55 }
 0x1f8   : > { %v2911_v50 = vmax.f32 %v2879_v3, 0.0  ;;  %v2880_v62 = vadd.f32 %v4186_v4, %v5360_v55 }
 0x1f9   : > { %2945 = vst [vmem:[%s5366_s11 + $0x70] sm:$0xff] %v2913_v14  ;;  %v2914_v46 = vmax.f32 %v2882_v13, 0.0  ;;  %v3949_v54 = vpop.f32.mrb[16].mxu1 }
 0x1fa   : > { %2943 = vst [vmem:[%s5366_s11 + $0x60] sm:$0xff] %v2911_v50  ;;  %v2912_v16 = vmax.f32 %v2880_v62, 0.0  ;;  %v4141_v9 = vpop.f32.mrb[16].mxu0  ;;  %v1533_v59 = vpop.f32.mrb[17].mxu1 }
 0x1fb   : > { %2946 = vst [vmem:[%s5366_s11 + $0x78] sm:$0xff] %v2914_v46  ;;  %v4187_v53 = vadd.f32 %v4141_v9, %v3949_v54  ;;  %v2765_v15 = vpop.f32.mrb[17].mxu0  ;;  %v3950_v60 = vpop.f32.mrb[18].mxu1 }
 0x1fc   : > { %2944 = vst [vmem:[%s5366_s11 + $0x68] sm:$0xff] %v2912_v16  ;;  %v4188_v27 = vadd.f32 %v2765_v15, %v1533_v59  ;;  %v4142_v19 = vpop.f32.mrb[18].mxu0  ;;  %v1536_v8 = vpop.f32.mrb[19].mxu1 }
 0x1fd   : > { %v2885_v5 = vadd.f32 %v4187_v53, %v5360_v55  ;;  %v4189_v12 = vadd.f32 %v4142_v19, %v3950_v60  ;;  %v2768_v34 = vpop.f32.mrb[19].mxu0 }
 0x1fe   : > { %v2883_v38 = vadd.f32 %v4188_v27, %v5360_v55  ;;  %v4190_v6 = vadd.f32 %v2768_v34, %v1536_v8 }
 0x1ff   : > { %v2917_v10 = vmax.f32 %v2885_v5, 0.0  ;;  %v2886_v63 = vadd.f32 %v4189_v12, %v5360_v55 }
 0x200   : > { %v2915_v31 = vmax.f32 %v2883_v38, 0.0  ;;  %v2884_v11 = vadd.f32 %v4190_v6, %v5360_v55 }
 0x201   : > { %2949 = vst [vmem:[%s5366_s11 + $0x90] sm:$0xff] %v2917_v10  ;;  %v2918_v57 = vmax.f32 %v2886_v63, 0.0  ;;  %v3953_v7 = vpop.f32.mrb[20].mxu1 }
 0x202   : > { %2947 = vst [vmem:[%s5366_s11 + $0x80] sm:$0xff] %v2915_v31  ;;  %v2916_v41 = vmax.f32 %v2884_v11, 0.0  ;;  %v4145_v23 = vpop.f32.mrb[20].mxu0  ;;  %v1549_v36 = vpop.f32.mrb[21].mxu1 }
 0x203   : > { %2950 = vst [vmem:[%s5366_s11 + $0x98] sm:$0xff] %v2918_v57  ;;  %v4191_v24 = vadd.f32 %v4145_v23, %v3953_v7  ;;  %v2781_v20 = vpop.f32.mrb[21].mxu0  ;;  %v3954_v22 = vpop.f32.mrb[22].mxu1 }
 0x204   : > { %2948 = vst [vmem:[%s5366_s11 + $0x88] sm:$0xff] %v2916_v41  ;;  %v4192_v28 = vadd.f32 %v2781_v20, %v1549_v36  ;;  %v4146_v33 = vpop.f32.mrb[22].mxu0  ;;  %v1552_v32 = vpop.f32.mrb[23].mxu1 }
 0x205   : > { %v2889_v25 = vadd.f32 %v4191_v24, %v5360_v55  ;;  %v4193_v29 = vadd.f32 %v4146_v33, %v3954_v22  ;;  %v2784_v39 = vpop.f32.mrb[23].mxu0 }
 0x206   : > { %v2887_v18 = vadd.f32 %v4192_v28, %v5360_v55  ;;  %v4194_v42 = vadd.f32 %v2784_v39, %v1552_v32 }
 0x207   : > { %v2921_v26 = vmax.f32 %v2889_v25, 0.0  ;;  %v2890_v47 = vadd.f32 %v4193_v29, %v5360_v55 }
 0x208   : > { %v2919_v58 = vmax.f32 %v2887_v18, 0.0  ;;  %v2888_v21 = vadd.f32 %v4194_v42, %v5360_v55 }
 0x209   : > { %2953 = vst [vmem:[%s5366_s11 + $0xb0] sm:$0xff] %v2921_v26  ;;  %v2922_v49 = vmax.f32 %v2890_v47, 0.0  ;;  %v3957_v40 = vpop.f32.mrb[24].mxu1 }
 0x20a   : > { %2951 = vst [vmem:[%s5366_s11 + $0xa0] sm:$0xff] %v2919_v58  ;;  %v2920_v43 = vmax.f32 %v2888_v21, 0.0  ;;  %v4149_v45 = vpop.f32.mrb[24].mxu0  ;;  %v1565_v56 = vpop.f32.mrb[25].mxu1 }
 0x20b   : > { %2954 = vst [vmem:[%s5366_s11 + $0xb8] sm:$0xff] %v2922_v49  ;;  %v4195_v51 = vadd.f32 %v4149_v45, %v3957_v40  ;;  %v2797_v17 = vpop.f32.mrb[25].mxu0  ;;  %v3958_v52 = vpop.f32.mrb[26].mxu1 }
 0x20c   : > { %2952 = vst [vmem:[%s5366_s11 + $0xa8] sm:$0xff] %v2920_v43  ;;  %v4196_v30 = vadd.f32 %v2797_v17, %v1565_v56  ;;  %v4150_v35 = vpop.f32.mrb[26].mxu0  ;;  %v1568_v37 = vpop.f32.mrb[27].mxu1 }
 0x20d   : > { %v2893_v48 = vadd.f32 %v4195_v51, %v5360_v55  ;;  %v4197_v61 = vadd.f32 %v4150_v35, %v3958_v52  ;;  %v2800_v0 = vpop.f32.mrb[27].mxu0 }
 0x20e   : > { %v2891_v1 = vadd.f32 %v4196_v30, %v5360_v55  ;;  %v4198_v44 = vadd.f32 %v2800_v0, %v1568_v37 }
 0x20f   : > { %v2925_v2 = vmax.f32 %v2893_v48, 0.0  ;;  %v2894_v3 = vadd.f32 %v4197_v61, %v5360_v55 }
 0x210   : > { %v2923_v4 = vmax.f32 %v2891_v1, 0.0  ;;  %v2892_v14 = vadd.f32 %v4198_v44, %v5360_v55 }
 0x211   : > { %2957 = vst [vmem:[%s5366_s11 + $0xd0] sm:$0xff] %v2925_v2  ;;  %v2926_v13 = vmax.f32 %v2894_v3, 0.0  ;;  %v3961_v50 = vpop.f32.mrb[28].mxu1 }
 0x212   : > { %2955 = vst [vmem:[%s5366_s11 + $0xc0] sm:$0xff] %v2923_v4  ;;  %v2924_v62 = vmax.f32 %v2892_v14, 0.0  ;;  %v4153_v46 = vpop.f32.mrb[28].mxu0  ;;  %v1581_v54 = vpop.f32.mrb[29].mxu1 }
 0x213   : > { %2958 = vst [vmem:[%s5366_s11 + $0xd8] sm:$0xff] %v2926_v13  ;;  %v4199_v16 = vadd.f32 %v4153_v46, %v3961_v50  ;;  %v2813_v9 = vpop.f32.mrb[29].mxu0  ;;  %v3962_v59 = vpop.f32.mrb[30].mxu1 }
 0x214   : > { %2956 = vst [vmem:[%s5366_s11 + $0xc8] sm:$0xff] %v2924_v62  ;;  %v4200_v53 = vadd.f32 %v2813_v9, %v1581_v54  ;;  %v4154_v15 = vpop.f32.mrb[30].mxu0  ;;  %v1584_v60 = vpop.f32.mrb[31].mxu1 }
 0x215   : > { %v2897_v27 = vadd.f32 %v4199_v16, %v5360_v55  ;;  %v4201_v19 = vadd.f32 %v4154_v15, %v3962_v59  ;;  %v2816_v8 = vpop.f32.mrb[31].mxu0 }
 0x216   : > { %v2895_v5 = vadd.f32 %v4200_v53, %v5360_v55  ;;  %v4202_v12 = vadd.f32 %v2816_v8, %v1584_v60 }
 0x217   : > { %v2929_v34 = vmax.f32 %v2897_v27, 0.0  ;;  %v2898_v38 = vadd.f32 %v4201_v19, %v5360_v55 }
 0x218   : > { %v2927_v6 = vmax.f32 %v2895_v5, 0.0  ;;  %v2896_v10 = vadd.f32 %v4202_v12, %v5360_v55 }
 0x219   : > { %2961 = vst [vmem:[%s5366_s11 + $0xf0] sm:$0xff] %v2929_v34  ;;  %v2930_v63 = vmax.f32 %v2898_v38, 0.0 }
 0x21a   : > { %2959 = vst [vmem:[%s5366_s11 + $0xe0] sm:$0xff] %v2927_v6  ;;  %v2928_v31 = vmax.f32 %v2896_v10, 0.0 }
 0x21b   : > { %2962 = vst [vmem:[%s5366_s11 + $0xf8] sm:$0xff] %v2930_v63 }
 0x21c   : > { %2960 = vst [vmem:[%s5366_s11 + $0xe8] sm:$0xff] %v2928_v31 }
 0x21d PF: > { %s13_s12 = sadd.s32 1, %s4521_s12  }
 0x21e   : > { %p10_p4 = scmp.ge.s32.totalorder %s13_s12, 13  }
 0x220   :  { %12 = sbr.rel (!%p10_p4) target bundleno = 1 (0x1), region = 76 }

// kernel: simple_forward.6
= control target key start
LH: loop header
LB: loop body
LE: loop exit
PB: predicated region body
PF: predicated region fallthrough
CT: control target
= control target key end

     0   :  { %s4543_s12 = smov 0   ;;  %s5253_s0 = inlined_call_operand.vmem [shape: f32[2630,128], index: 0, kind: input, shape index: {}]   ;;  %s5254_s1 = inlined_call_operand.vmem [shape: bf16[9,128,128], index: 1, kind: input, shape index: {}]   ;;  %s5255_s2 = inlined_call_operand.vmem [shape: f32[1,128], index: 2, kind: input, shape index: {}]   ;;  %s5256_s3 = inlined_call_operand.vmem [shape: f32[2560,128], index: 3, kind: output, shape index: {}]  }
   0x1 LB: > { %s3033_s13 = sadd.s32 4294967295, %s4521_s12   ;;  %p3036_p0 = scmp.ge.s32.totalorder %s4521_s12, 1  ;;  %s4521_s12 = sphi %s4543_s12, %s13_s12  }
   0x2   : > { %p127_p1 = scmp.lt.s32.totalorder %s4521_s12, 11 }
   0x4   : > { %p128_p2 = pnand %p3036_p0, %p127_p1 }
   0x5   : > { %v4435_v0 = vld [vmem:[%s5254_s1 + $0x40] sm:$0xff] (!%p128_p2)   ;;  %v4437_v2 = vld [vmem:[%s5254_s1 + $0x48] sm:$0xff] (!%p128_p2)   ;;  %v4439_v4 = vld [vmem:[%s5254_s1 + $0x50] sm:$0xff] (!%p128_p2)   ;;  %s3039_s30 = sshll.u32 (!%p128_p2), %s3033_s13, 8  ;;  %s3037_s6 = sshll.u32 (!%p128_p2), %s3033_s13, 5 }
   0x6   : > { %131 = sbr.rel (%p128_p2) target bundleno = 541 (0x21d), region = 32  ;;  %v4436_v1 = vld [vmem:[%s5254_s1 + $0x100] sm:$0xff] (!%p128_p2)   ;;  %3723 = vmatprep.subr.bf16.mxu1 (!%p128_p2), %v4435_v0  ;;  %v4438_v3 = vld [vmem:[%s5254_s1 + $0x108] sm:$0xff] (!%p128_p2)   ;;  %v4440_v5 = vld [vmem:[%s5254_s1 + $0x110] sm:$0xff] (!%p128_p2)   ;;  %s4586_s10 = scalar_lea.vmem (!%p128_p2), %s5253_s0, %s3039_s30 }
   0x7   : > { %3915 = vmatprep.subr.bf16.mxu0 (!%p128_p2), %v4436_v1  ;;  %3724 = vmatpush3.bf16.msra.mxu1 (!%p128_p2), %v4435_v0  ;;  %v4441_v6 = vld [vmem:[%s5254_s1 + $0x58] sm:$0xff] (!%p128_p2)   ;;  %v4443_v8 = vld [vmem:[%s5254_s1 + $0x60] sm:$0xff] (!%p128_p2)   ;;  %v4445_v10 = vld [vmem:[%s5254_s1 + $0x68] sm:$0xff] (!%p128_p2)   ;;  %p147_p3 = scmp.lt.s32.totalorder (!%p128_p2), %s3037_s6, 319 }
   0x8   : > { %3916 = vmatpush3.bf16.msra.mxu0 (!%p128_p2), %v4436_v1  ;;  %3725 = vmatprep.subr.bf16.mxu1 (!%p128_p2), %v4437_v2  ;;  %v4442_v7 = vld [vmem:[%s5254_s1 + $0x118] sm:$0xff] (!%p128_p2)   ;;  %v4444_v9 = vld [vmem:[%s5254_s1 + $0x120] sm:$0xff] (!%p128_p2)   ;;  %v3042_v12 = vld [vmem:[%s4586_s10 + $0x9] sm:$0xff] (!%p128_p2) }
   0x9   : > { %3917 = vmatprep.subr.bf16.mxu0 (!%p128_p2), %v4438_v3  ;;  %v3041_v11 = vld [vmem:[%s4586_s10 + $0x1] sm:$0xff] (!%p128_p2)  ;;  %v3221_v16 = vld [vmem:[%s4586_s10 + $0x2b] sm:$0xff] (!%p128_p2)  ;;  %v4449_v20 = vld [vmem:[%s5254_s1 + $0x78] sm:$0xff] (!%p128_p2)  }
   0xa   : > { %v3220_v13 = vld [vmem:[%s4586_s10 + $0x23] sm:$0xff] (!%p128_p2)  ;;  %v253_v15 = vpack.c.bf16 (!%p128_p2), %v3042_v12, %v3041_v11  ;;  %v4447_v18 = vld [vmem:[%s5254_s1 + $0x70] sm:$0xff] (!%p128_p2)   ;;  %v4450_v21 = vld [vmem:[%s5254_s1 + $0x138] sm:$0xff] (!%p128_p2)  }
   0xb   : > { %3726 = vmatpush3.bf16.msra.mxu1 (!%p128_p2), %v4437_v2  ;;  %v4446_v14 = vld [vmem:[%s5254_s1 + $0x128] sm:$0xff] (!%p128_p2)   ;;  %v1354_v17 = vpack.c.bf16 (!%p128_p2), %v3221_v16, %v3220_v13  ;;  %v4448_v19 = vld [vmem:[%s5254_s1 + $0x130] sm:$0xff] (!%p128_p2)   ;;  %v3044_v23 = vld [vmem:[%s4586_s10 + $0x19] sm:$0xff] (!%p128_p2) }
   0xc   : > { %3918 = vmatpush3.bf16.msra.mxu0 (!%p128_p2), %v4438_v3  ;;  %3727 = vmatprep.subr.bf16.mxu1 (!%p128_p2), %v4439_v4  ;;  %v3043_v22 = vld [vmem:[%s4586_s10 + $0x11] sm:$0xff] (!%p128_p2)  ;;  %v4451_v24 = vld [vmem:[%s5254_s1] sm:$0xff] (!%p128_p2)   ;;  %v3046_v29 = vld [vmem:[%s4586_s10 + $0x29] sm:$0xff] (!%p128_p2) }
   0xd   : > { %3919 = vmatprep.subr.bf16.mxu0 %v4440_v5  ;;  %3739 = vmatprep.mubr.bf16.mxu1 %v253_v15  ;;  %v3222_v25 = vld [vmem:[%s4586_s10 + $0x33] sm:$0xff]  ;;  %v3223_v26 = vld [vmem:[%s4586_s10 + $0x3b] sm:$0xff]  ;;  %v254_v30 = vpack.c.bf16 %v3044_v23, %v3043_v22  ;;  %v3224_v31 = vld [vmem:[%s4586_s10 + $0x43] sm:$0xff]  ;;  %s5258_s6 = smov (!%p147_p3, %s3037_s6), 319 }
   0xe   : > { %3931 = vmatprep.mubr.bf16.mxu0 %v1354_v17  ;;  %v4452_v27 = vld [vmem:[%s5254_s1 + $0x140] sm:$0xff]   ;;  %v3225_v32 = vld [vmem:[%s4586_s10 + $0x4b] sm:$0xff]  ;;  %v1355_v33 = vpack.c.bf16 %v3223_v26, %v3222_v25  ;;  %v3226_v40 = vld [vmem:[%s4586_s10 + $0x53] sm:$0xff]  ;;  %s3038_s8 = sshll.u32 %s5258_s6, 3 }
   0xf   : > { %3728 = vmatpush3.bf16.msra.mxu1 %v4439_v4  ;;  %v3045_v28 = vld [vmem:[%s4586_s10 + $0x21] sm:$0xff]  ;;  %v1356_v36 = vpack.c.bf16 %v3225_v32, %v3224_v31  ;;  %v3047_v37 = vld [vmem:[%s4586_s10 + $0x31] sm:$0xff]  ;;  %v3048_v38 = vld [vmem:[%s4586_s10 + $0x39] sm:$0xff]  ;;  %s5181_s11 = scalar_lea.vmem %s5256_s3, %s3038_s8 }
  0x10   : > { %3920 = vmatpush3.bf16.msra.mxu0 %v4440_v5  ;;  %3729 = vmatprep.subr.bf16.mxu1 %v4441_v6  ;;  %v4453_v34 = vld [vmem:[%s5254_s1 + $0x148] sm:$0xff]   ;;  %v255_v35 = vpack.c.bf16 %v3046_v29, %v3045_v28  ;;  %v3227_v41 = vld [vmem:[%s4586_s10 + $0x5b] sm:$0xff]  ;;  %v4455_v43 = vld [vmem:[%s5254_s1 + $0x150] sm:$0xff]   ;;  %v256_v48 = vpack.c.bf16 %v3048_v38, %v3047_v37 }
  0x11   : > { %3921 = vmatprep.subr.bf16.mxu0 %v4442_v7  ;;  %v4454_v39 = vld [vmem:[%s5254_s1 + $0x8] sm:$0xff]   ;;  %v4457_v46 = vld [vmem:[%s5254_s1 + $0x10] sm:$0xff]   ;;  %v1357_v49 = vpack.c.bf16 %v3227_v41, %v3226_v40  ;;  %v4456_v51 = vld [vmem:[%s5254_s1 + $0x158] sm:$0xff]  }
  0x12   : > { %v3049_v42 = vld [vmem:[%s4586_s10 + $0x41] sm:$0xff]  ;;  %v3050_v44 = vld [vmem:[%s4586_s10 + $0x49] sm:$0xff]  ;;  %v3051_v53 = vld [vmem:[%s4586_s10 + $0x51] sm:$0xff] }
  0x13   : > { %3730 = vmatpush3.bf16.msra.mxu1 %v4441_v6  ;;  %v3228_v45 = vld [vmem:[%s4586_s10 + $0x63] sm:$0xff]  ;;  %v3229_v47 = vld [vmem:[%s4586_s10 + $0x6b] sm:$0xff]  ;;  %v257_v50 = vpack.c.bf16 %v3050_v44, %v3049_v42  ;;  %v3052_v54 = vld [vmem:[%s4586_s10 + $0x59] sm:$0xff] }
  0x14   : > { %3922 = vmatpush3.bf16.msra.mxu0 %v4442_v7  ;;  %3731 = vmatprep.subr.bf16.mxu1 %v4443_v8  ;;  %v1358_v52 = vpack.c.bf16 %v3229_v47, %v3228_v45  ;;  %v4460_v55 = vld [vmem:[%s5254_s1 + $0x18] sm:$0xff]   ;;  %v4458_v58 = vld [vmem:[%s5254_s1 + $0x160] sm:$0xff]   ;;  %v3054_v60 = vld [vmem:[%s4586_s10 + $0x69] sm:$0xff]  ;;  %v258_v63 = vpack.c.bf16 %v3052_v54, %v3051_v53 }
  0x15   : > { %3923 = vmatprep.subr.bf16.mxu0 %v4444_v9  ;;  %v3230_v56 = vld [vmem:[%s4586_s10 + $0x73] sm:$0xff]  ;;  %v3231_v57 = vld [vmem:[%s4586_s10 + $0x7b] sm:$0xff]  ;;  %v3232_v61 = vld [vmem:[%s4586_s10 + $0x83] sm:$0xff] }
  0x16   : > { %v3053_v59 = vld [vmem:[%s4586_s10 + $0x61] sm:$0xff]  ;;  %v3233_v62 = vld [vmem:[%s4586_s10 + $0x8b] sm:$0xff]  ;;  %v1359_v1 = vpack.c.bf16 %v3231_v57, %v3230_v56  ;;  %v3056_v6 = vld [vmem:[%s4586_s10 + $0x79] sm:$0xff] }
  0x17   : > { %3732 = vmatpush3.bf16.msra.mxu1 %v4443_v8  ;;  %v4463_v0 = vld [vmem:[%s5254_s1 + $0x20] sm:$0xff]   ;;  %v259_v2 = vpack.c.bf16 %v3054_v60, %v3053_v59  ;;  %v1360_v3 = vpack.c.bf16 %v3233_v62, %v3232_v61  ;;  %v4459_v4 = vld [vmem:[%s5254_s1 + $0x168] sm:$0xff]   ;;  %v3055_v5 = vld [vmem:[%s4586_s10 + $0x71] sm:$0xff] }
  0x18   : > { %3924 = vmatpush3.bf16.msra.mxu0 %v4444_v9  ;;  %3733 = vmatprep.subr.bf16.mxu1 %v4445_v10  ;;  %v4465_v7 = vld [vmem:[%s5254_s1 + $0x28] sm:$0xff]   ;;  %v3234_v8 = vld [vmem:[%s4586_s10 + $0x93] sm:$0xff]  ;;  %v3235_v9 = vld [vmem:[%s4586_s10 + $0x9b] sm:$0xff]  ;;  %v260_v15 = vpack.c.bf16 %v3056_v6, %v3055_v5 }
  0x19   : > { %3925 = vmatprep.subr.bf16.mxu0 %v4446_v14  ;;  %v3058_v11 = vld [vmem:[%s4586_s10 + $0x89] sm:$0xff]  ;;  %v1361_v17 = vpack.c.bf16 %v3235_v9, %v3234_v8  ;;  %v3060_v22 = vld [vmem:[%s4586_s10 + $0x99] sm:$0xff]  ;;  %v3063_v37 = vld [vmem:[%s4586_s10 + $0xb1] sm:$0xff] }
  0x1a   : > { %v4461_v12 = vld [vmem:[%s5254_s1 + $0x170] sm:$0xff]   ;;  %v3277_v13 = vld [vmem:[%s4586_s10 + $0x24] sm:$0xff]  ;;  %v4469_v25 = vld [vmem:[%s5254_s1 + $0x38] sm:$0xff]  }
  0x1b   : > { %3734 = vmatpush3.bf16.msra.mxu1 %v4445_v10  ;;  %v3057_v10 = vld [vmem:[%s4586_s10 + $0x81] sm:$0xff]  ;;  %v4467_v16 = vld [vmem:[%s5254_s1 + $0x30] sm:$0xff]   ;;  %v3064_v38 = vld [vmem:[%s4586_s10 + $0xb9] sm:$0xff] }
  0x1c   : > { %3926 = vmatpush3.bf16.msra.mxu0 %v4446_v14  ;;  %3735 = vmatprep.subr.bf16.mxu1 %v4447_v18  ;;  %v3278_v14 = vld [vmem:[%s4586_s10 + $0x2c] sm:$0xff]  ;;  %v3279_v23 = vld [vmem:[%s4586_s10 + $0x34] sm:$0xff]  ;;  %v4464_v26 = vld [vmem:[%s5254_s1 + $0x180] sm:$0xff]  }
  0x1d   : > { %3927 = vmatprep.subr.bf16.mxu0 %v4448_v19  ;;  %v3062_v28 = vld [vmem:[%s4586_s10 + $0xa9] sm:$0xff]  ;;  %v4704_v32 = vld [vmem:[%s5254_s1 + $0x80] sm:$0xff]   ;;  %v3287_v53 = vld [vmem:[%s4586_s10 + $0x74] sm:$0xff] }
  0x1e   : > { %v3281_v29 = vld [vmem:[%s4586_s10 + $0x44] sm:$0xff]  ;;  %v3284_v40 = vld [vmem:[%s4586_s10 + $0x5c] sm:$0xff]  ;;  %v3286_v44 = vld [vmem:[%s4586_s10 + $0x6c] sm:$0xff] }
  0x1f   : > { %3736 = vmatpush3.bf16.msra.mxu1 %v4447_v18  ;;  %v261_v18 = vpack.c.bf16 %v3058_v11, %v3057_v10  ;;  %v3065_v41 = vld [vmem:[%s4586_s10 + $0xc1] sm:$0xff]  ;;  %v3066_v42 = vld [vmem:[%s4586_s10 + $0xc9] sm:$0xff] }
  0x20   : > { %3928 = vmatpush3.bf16.msra.mxu0 %v4448_v19  ;;  %3737 = vmatprep.subr.bf16.mxu1 %v4449_v20  ;;  %v1662_v19 = vpack.c.bf16 %v3278_v14, %v3277_v13  ;;  %v4468_v45 = vld [vmem:[%s5254_s1 + $0x190] sm:$0xff]   ;;  %v3288_v54 = vld [vmem:[%s4586_s10 + $0x7c] sm:$0xff]  ;;  %v3289_v57 = vld [vmem:[%s4586_s10 + $0x84] sm:$0xff] }
  0x21   : > { %3929 = vmatprep.subr.bf16.mxu0 %v4450_v21  ;;  %v3070_v56 = vld [vmem:[%s4586_s10 + $0xe9] sm:$0xff]  ;;  %v4472_v59 = vld [vmem:[%s5254_s1 + $0x1a0] sm:$0xff]   ;;  %v4744_v61 = vpack.c.bf16 %v3288_v54, %v3287_v53 }
  0x22   : > { %v155_v5 = vld [vmem:[%s4586_s10] sm:$0xff]  ;;  %v156_v6 = vld [vmem:[%s4586_s10 + $0x8] sm:$0xff]  ;;  %v4476_v9 = vld [vmem:[%s5254_s1 + $0x1b0] sm:$0xff]  }
  0x23   : > { %3738 = vmatpush3.bf16.msra.mxu1 %v4449_v20  ;;  %v4462_v20 = vld [vmem:[%s5254_s1 + $0x178] sm:$0xff]   ;;  %v3294_v8 = vld [vmem:[%s4586_s10 + $0xac] sm:$0xff]  ;;  %v4479_v54 = vld [vmem:[%s5254_s1 + $0xa0] sm:$0xff]  }
  0x24   : > { %3930 = vmatpush3.bf16.msra.mxu0 %v4450_v21  ;;  %3771 = vmatprep.subr.bf16.mxu1 %v4451_v24  ;;  %v3059_v21 = vld [vmem:[%s4586_s10 + $0x91] sm:$0xff] }
  0x25   : > { %3963 = vmatprep.subr.bf16.mxu0 %v4452_v27  ;;  %v262_v31 = vpack.c.bf16 %v3060_v22, %v3059_v21  ;;  %v157_v14 = vld [vmem:[%s4586_s10 + $0x10] sm:$0xff]  ;;  %v3297_v21 = vld [vmem:[%s4586_s10 + $0xc4] sm:$0xff] }
  0x26   : > { %3740 = vmatmul.mubr.bf16.vlgmr.msra.gmra.mrb[0].mxu1 %v254_v30  ;;  %v3282_v30 = vld [vmem:[%s4586_s10 + $0x4c] sm:$0xff] }
  0x27   : > { %3932 = vmatmul.mubr.bf16.vlgmr.msra.gmra.mrb[0].mxu0 %v1355_v33  ;;  %3772 = vmatpush3.bf16.msra.mxu1 %v4451_v24  ;;  %v3280_v24 = vld [vmem:[%s4586_s10 + $0x3c] sm:$0xff]  ;;  %v3298_v22 = vld [vmem:[%s4586_s10 + $0xcc] sm:$0xff] }
  0x28   : > { %3964 = vmatpush3.bf16.msra.mxu0 %v4452_v27  ;;  %3743 = vmatprep.mubr.bf16.mxu1 %v255_v35  ;;  %v3061_v27 = vld [vmem:[%s4586_s10 + $0xa1] sm:$0xff]  ;;  %v1663_v33 = vpack.c.bf16 %v3280_v24, %v3279_v23  ;;  %v4706_v35 = vpack.c.bf16 %v3282_v30, %v3281_v29  ;;  %v162_v30 = vld [vmem:[%s4586_s10 + $0x38] sm:$0xff]  ;;  %v3306_v53 = vld [vmem:[%s4586_s10 + $0x10c] sm:$0xff] }
  0x29   : > { %3965 = vmatprep.subr.bf16.mxu0 %v4453_v34  ;;  %3935 = vmatprep.mubr.bf16.mxu0 %v1356_v36  ;;  %v4466_v36 = vld [vmem:[%s5254_s1 + $0x188] sm:$0xff]   ;;  %v4784_v23 = vld [vmem:[%s5254_s1 + $0x1c0] sm:$0xff]  }
  0x2a   : > { %3773 = vmatprep.subr.bf16.mxu1 %v4454_v39  ;;  %v4473_v29 = vld [vmem:[%s5254_s1 + $0x88] sm:$0xff]  }
  0x2b   : > { %3774 = vmatpush3.bf16.msra.mxu1 %v4454_v39  ;;  %v3283_v39 = vld [vmem:[%s4586_s10 + $0x54] sm:$0xff] }
  0x2c   : > { %3966 = vmatpush3.bf16.msra.mxu0 %v4453_v34  ;;  %3775 = vmatprep.subr.bf16.mxu1 %v4457_v46  ;;  %v263_v34 = vpack.c.bf16 %v3062_v28, %v3061_v27  ;;  %v4724_v47 = vpack.c.bf16 %v3284_v40, %v3283_v39  ;;  %v4788_v27 = vpack.c.bf16 %v3298_v22, %v3297_v21  ;;  %v161_v28 = vld [vmem:[%s4586_s10 + $0x30] sm:$0xff]  ;;  %v180_v21 = vld [vmem:[%s4586_s10 + $0xc8] sm:$0xff] }
  0x2d   : > { %3967 = vmatprep.subr.bf16.mxu0 %v4455_v43  ;;  %v3302_v39 = vld [vmem:[%s4586_s10 + $0xec] sm:$0xff]  ;;  %v190_v40 = vpack.c.bf16 %v162_v30, %v161_v28  ;;  %v183_v28 = vld [vmem:[%s4586_s10 + $0xe0] sm:$0xff] }
  0x2e   : > { %3744 = vmatmul.mubr.bf16.gmra.mrb[4].mxu1 %v256_v48  ;;  %v265_v48 = vpack.c.bf16 %v3066_v42, %v3065_v41  ;;  %v4484_v22 = vld [vmem:[%s5254_s1 + $0x1d0] sm:$0xff]   ;;  %v4488_v30 = vld [vmem:[%s5254_s1 + $0x1e0] sm:$0xff]  }
  0x2f   : > { %3936 = vmatmul.mubr.bf16.gmra.mrb[4].mxu0 %v1357_v49  ;;  %3747 = vmatprep.mubr.bf16.mxu1 %v257_v50  ;;  %v3067_v50 = vld [vmem:[%s4586_s10 + $0xd1] sm:$0xff] }
  0x30   : > { %3968 = vmatpush3.bf16.msra.mxu0 %v4455_v43  ;;  %3939 = vmatprep.mubr.bf16.mxu0 %v1358_v52  ;;  %v3285_v43 = vld [vmem:[%s4586_s10 + $0x64] sm:$0xff]  ;;  %v3068_v52 = vld [vmem:[%s4586_s10 + $0xd9] sm:$0xff] }
  0x31   : > { %3969 = vmatprep.subr.bf16.mxu0 %v4456_v51  ;;  %3776 = vmatpush3.bf16.msra.mxu1 %v4457_v46  ;;  %v264_v46 = vpack.c.bf16 %v3064_v38, %v3063_v37  ;;  %v4726_v49 = vpack.c.bf16 %v3286_v44, %v3285_v43  ;;  %v266_v60 = vpack.c.bf16 %v3068_v52, %v3067_v50  ;;  %v3301_v37 = vld [vmem:[%s4586_s10 + $0xe4] sm:$0xff]  ;;  %v4475_v38 = vld [vmem:[%s5254_s1 + $0x90] sm:$0xff]   ;;  %v4477_v44 = vld [vmem:[%s5254_s1 + $0x98] sm:$0xff]  }
  0x32   : > { %3777 = vmatprep.subr.bf16.mxu1 %v4460_v55  ;;  %v4810_v42 = vpack.c.bf16 %v3302_v39, %v3301_v37  ;;  %v165_v43 = vld [vmem:[%s4586_s10 + $0x50] sm:$0xff]  ;;  %v167_v50 = vld [vmem:[%s4586_s10 + $0x60] sm:$0xff] }
  0x33   : > { %v3305_v52 = vld [vmem:[%s4586_s10 + $0x104] sm:$0xff] }
  0x34   : > { %3970 = vmatpush3.bf16.msra.mxu0 %v4456_v51  ;;  %v4470_v51 = vld [vmem:[%s5254_s1 + $0x198] sm:$0xff]   ;;  %v3107_v37 = vld [vmem:[%s4586_s10 + $0xa] sm:$0xff] }
  0x35   : > { %3971 = vmatprep.subr.bf16.mxu0 %v4458_v58  ;;  %3778 = vmatpush3.bf16.msra.mxu1 %v4460_v55  ;;  %v3069_v55 = vld [vmem:[%s4586_s10 + $0xe1] sm:$0xff] }
  0x36   : > { %3748 = vmatmul.mubr.bf16.gmra.mrb[8].mxu1 %v258_v63  ;;  %3779 = vmatprep.subr.bf16.mxu1 %v4463_v0  ;;  %v267_v62 = vpack.c.bf16 %v3070_v56, %v3069_v55 }
  0x37   : > { %3940 = vmatmul.mubr.bf16.gmra.mrb[8].mxu0 %v1359_v1  ;;  %3751 = vmatprep.mubr.bf16.mxu1 %v259_v2  ;;  %v3072_v1 = vld [vmem:[%s4586_s10 + $0xf9] sm:$0xff]  ;;  %v4474_v2 = vld [vmem:[%s5254_s1 + $0x1a8] sm:$0xff]  }
  0x38   : > { %3972 = vmatpush3.bf16.msra.mxu0 %v4458_v58  ;;  %3943 = vmatprep.mubr.bf16.mxu0 %v1360_v3  ;;  %v3290_v58 = vld [vmem:[%s4586_s10 + $0x8c] sm:$0xff]  ;;  %v3291_v3 = vld [vmem:[%s4586_s10 + $0x94] sm:$0xff] }
  0x39   : > { %3973 = vmatprep.subr.bf16.mxu0 %v4459_v4  ;;  %3780 = vmatpush3.bf16.msra.mxu1 %v4463_v0  ;;  %v4746_v63 = vpack.c.bf16 %v3290_v58, %v3289_v57  ;;  %v3071_v0 = vld [vmem:[%s4586_s10 + $0xf1] sm:$0xff]  ;;  %v4830_v58 = vpack.c.bf16 %v3306_v53, %v3305_v52 }
  0x3a   : > { %3781 = vmatprep.subr.bf16.mxu1 %v4465_v7  ;;  %v268_v10 = vpack.c.bf16 %v3072_v1, %v3071_v0  ;;  %v3307_v0 = vld [vmem:[%s4586_s10 + $0x114] sm:$0xff]  ;;  %v3308_v1 = vld [vmem:[%s4586_s10 + $0x11c] sm:$0xff]  ;;  %v3115_v52 = vld [vmem:[%s4586_s10 + $0x4a] sm:$0xff] }
  0x3b   : > { %v4491_v53 = vld [vmem:[%s5254_s1 + $0xd0] sm:$0xff]  }
  0x3c   : > { %3974 = vmatpush3.bf16.msra.mxu0 %v4459_v4  ;;  %v3292_v4 = vld [vmem:[%s4586_s10 + $0x9c] sm:$0xff] }
  0x3d   : > { %3975 = vmatprep.subr.bf16.mxu0 %v4461_v12  ;;  %3782 = vmatpush3.bf16.msra.mxu1 %v4465_v7  ;;  %v3293_v7 = vld [vmem:[%s4586_s10 + $0xa4] sm:$0xff]  ;;  %v4764_v11 = vpack.c.bf16 %v3292_v4, %v3291_v3  ;;  %v4483_v4 = vld [vmem:[%s5254_s1 + $0xb0] sm:$0xff]  }
  0x3e   : > { %3752 = vmatmul.mubr.bf16.gmra.mrb[12].mxu1 %v260_v15  ;;  %3783 = vmatprep.subr.bf16.mxu1 %v4467_v16  ;;  %v4766_v13 = vpack.c.bf16 %v3294_v8, %v3293_v7  ;;  %v4478_v15 = vld [vmem:[%s5254_s1 + $0x1b8] sm:$0xff]   ;;  %v172_v3 = vld [vmem:[%s4586_s10 + $0x88] sm:$0xff] }
  0x3f   : > { %3944 = vmatmul.mubr.bf16.gmra.mrb[12].mxu0 %v1361_v17  ;;  %3755 = vmatprep.mubr.bf16.mxu1 %v261_v18  ;;  %v3295_v17 = vld [vmem:[%s4586_s10 + $0xb4] sm:$0xff]  ;;  %v3296_v18 = vld [vmem:[%s4586_s10 + $0xbc] sm:$0xff] }
  0x40   : > { %3976 = vmatpush3.bf16.msra.mxu0 %v4461_v12  ;;  %3979 = vmatprep.mubr.bf16.mxu0 %v1662_v19  ;;  %v187_v12 = vpack.c.bf16 %v156_v6, %v155_v5  ;;  %v159_v19 = vld [vmem:[%s4586_s10 + $0x20] sm:$0xff]  ;;  %v4846_v6 = vpack.c.bf16 %v3308_v1, %v3307_v0  ;;  %v4485_v8 = vld [vmem:[%s5254_s1 + $0xb8] sm:$0xff]   ;;  %v3363_v0 = vld [vmem:[%s4586_s10 + $0x12c] sm:$0xff] }
  0x41   : > { %3977 = vmatprep.subr.bf16.mxu0 %v4462_v20  ;;  %3784 = vmatpush3.bf16.msra.mxu1 %v4467_v16  ;;  %v158_v16 = vld [vmem:[%s4586_s10 + $0x18] sm:$0xff] }
  0x42   : > { %3785 = vmatprep.subr.bf16.mxu1 %v4469_v25  ;;  %v188_v24 = vpack.c.bf16 %v158_v16, %v157_v14  ;;  %v176_v14 = vld [vmem:[%s4586_s10 + $0xa8] sm:$0xff] }
  0x44   : > { %3978 = vmatpush3.bf16.msra.mxu0 %v4462_v20  ;;  %v160_v20 = vld [vmem:[%s4586_s10 + $0x28] sm:$0xff] }
  0x45   : > { %4011 = vmatprep.subr.bf16.mxu0 %v4464_v26  ;;  %3786 = vmatpush3.bf16.msra.mxu1 %v4469_v25  ;;  %v4786_v25 = vpack.c.bf16 %v3296_v18, %v3295_v17  ;;  %v4482_v18 = vld [vmem:[%s5254_s1 + $0x1c8] sm:$0xff]  }
  0x46   : > { %3756 = vmatmul.mubr.bf16.gmra.mrb[16].mxu1 %v262_v31  ;;  %3819 = vmatprep.subr.bf16.mxu1 %v4704_v32  ;;  %v3299_v31 = vld [vmem:[%s4586_s10 + $0xd4] sm:$0xff] }
  0x47   : > { %3980 = vmatmul.mubr.bf16.vlgmr.msra.gmra.mrb[0].mxu0 %v1663_v33  ;;  %3759 = vmatprep.mubr.bf16.mxu1 %v263_v34  ;;  %v3300_v33 = vld [vmem:[%s4586_s10 + $0xdc] sm:$0xff] }
  0x48   : > { %4012 = vmatpush3.bf16.msra.mxu0 %v4464_v26  ;;  %3983 = vmatprep.mubr.bf16.mxu0 %v4706_v35  ;;  %v189_v26 = vpack.c.bf16 %v160_v20, %v159_v19  ;;  %v163_v34 = vld [vmem:[%s4586_s10 + $0x40] sm:$0xff]  ;;  %v178_v19 = vld [vmem:[%s4586_s10 + $0xb8] sm:$0xff] }
  0x49   : > { %4013 = vmatprep.subr.bf16.mxu0 %v4466_v36  ;;  %v179_v20 = vld [vmem:[%s4586_s10 + $0xc0] sm:$0xff] }
  0x4c   : > { %4014 = vmatpush3.bf16.msra.mxu0 %v4466_v36  ;;  %v164_v36 = vld [vmem:[%s4586_s10 + $0x48] sm:$0xff] }
  0x4d   : > { %4015 = vmatprep.subr.bf16.mxu0 %v4468_v45  ;;  %v191_v41 = vpack.c.bf16 %v164_v36, %v163_v34  ;;  %v186_v34 = vld [vmem:[%s4586_s10 + $0xf8] sm:$0xff]  ;;  %v3106_v36 = vld [vmem:[%s4586_s10 + $0x2] sm:$0xff] }
  0x4e   : > { %3760 = vmatmul.mubr.bf16.gmra.mrb[20].mxu1 %v264_v46  ;;  %v3303_v46 = vld [vmem:[%s4586_s10 + $0xf4] sm:$0xff] }
  0x4f   : > { %3984 = vmatmul.mubr.bf16.gmra.mrb[4].mxu0 %v4724_v47  ;;  %3763 = vmatprep.mubr.bf16.mxu1 %v265_v48  ;;  %v3304_v48 = vld [vmem:[%s4586_s10 + $0xfc] sm:$0xff] }
  0x50   : > { %3987 = vmatprep.mubr.bf16.mxu0 %v4726_v49  ;;  %4016 = vmatpush3.bf16.msra.mxu0 %v4468_v45  ;;  %v166_v45 = vld [vmem:[%s4586_s10 + $0x58] sm:$0xff]  ;;  %v4828_v56 = vpack.c.bf16 %v3304_v48, %v3303_v46  ;;  %v4489_v48 = vld [vmem:[%s5254_s1 + $0xc8] sm:$0xff]  }
  0x51   : > { %4017 = vmatprep.subr.bf16.mxu0 %v4470_v51  ;;  %v192_v55 = vpack.c.bf16 %v166_v45, %v165_v43  ;;  %v3110_v43 = vld [vmem:[%s4586_s10 + $0x22] sm:$0xff] }
  0x52   : > { %v4912_v45 = vld [vmem:[%s5254_s1 + $0x200] sm:$0xff]  }
  0x54   : > { %4018 = vmatpush3.bf16.msra.mxu0 %v4470_v51  ;;  %v168_v51 = vld [vmem:[%s4586_s10 + $0x68] sm:$0xff] }
  0x55   : > { %4019 = vmatprep.subr.bf16.mxu0 %v4472_v59  ;;  %v193_v57 = vpack.c.bf16 %v168_v51, %v167_v50  ;;  %v3113_v50 = vld [vmem:[%s4586_s10 + $0x3a] sm:$0xff]  ;;  %v3114_v51 = vld [vmem:[%s4586_s10 + $0x42] sm:$0xff] }
  0x56   : > { %3764 = vmatmul.mubr.bf16.gmra.mrb[24].mxu1 %v266_v60  ;;  %v169_v60 = vld [vmem:[%s4586_s10 + $0x70] sm:$0xff] }
  0x57   : > { %3988 = vmatmul.mubr.bf16.gmra.mrb[8].mxu0 %v4744_v61  ;;  %3767 = vmatprep.mubr.bf16.mxu1 %v267_v62  ;;  %v170_v62 = vld [vmem:[%s4586_s10 + $0x78] sm:$0xff] }
  0x58   : > { %3991 = vmatprep.mubr.bf16.mxu0 %v4746_v63  ;;  %4020 = vmatpush3.bf16.msra.mxu0 %v4472_v59  ;;  %v4481_v59 = vld [vmem:[%s5254_s1 + $0xa8] sm:$0xff]   ;;  %v194_v5 = vpack.c.bf16 %v170_v62, %v169_v60 }
  0x59   : > { %4021 = vmatprep.subr.bf16.mxu0 %v4474_v2  ;;  %v3119_v60 = vld [vmem:[%s4586_s10 + $0x6a] sm:$0xff] }
  0x5a   : > { %v3362_v62 = vld [vmem:[%s4586_s10 + $0x124] sm:$0xff] }
  0x5c   : > { %4022 = vmatpush3.bf16.msra.mxu0 %v4474_v2  ;;  %v171_v2 = vld [vmem:[%s4586_s10 + $0x80] sm:$0xff] }
  0x5d   : > { %4023 = vmatprep.subr.bf16.mxu0 %v4476_v9  ;;  %v195_v7 = vpack.c.bf16 %v172_v3, %v171_v2  ;;  %v4497_v3 = vld [vmem:[%s5254_s1 + $0xe8] sm:$0xff]  }
  0x5e   : > { %3768 = vmatmul.mubr.bf16.gmra.mrb[28].mxu1 %v268_v10  ;;  %v174_v10 = vld [vmem:[%s4586_s10 + $0x98] sm:$0xff] }
  0x5f   : > { %3992 = vmatmul.mubr.bf16.gmra.mrb[12].mxu0 %v4764_v11  ;;  %3787 = vmatprep.mubr.bf16.mxu1 %v187_v12  ;;  %v175_v12 = vld [vmem:[%s4586_s10 + $0xa0] sm:$0xff] }
  0x60   : > { %3995 = vmatprep.mubr.bf16.mxu0 %v4766_v13  ;;  %4024 = vmatpush3.bf16.msra.mxu0 %v4476_v9  ;;  %v173_v9 = vld [vmem:[%s4586_s10 + $0x90] sm:$0xff]  ;;  %v197_v17 = vpack.c.bf16 %v176_v14, %v175_v12  ;;  %v3391_v12 = vld [vmem:[%s4586_s10 + $0x45] sm:$0xff] }
  0x61   : > { %4025 = vmatprep.subr.bf16.mxu0 %v4478_v15  ;;  %v196_v16 = vpack.c.bf16 %v174_v10, %v173_v9  ;;  %v3122_v9 = vld [vmem:[%s4586_s10 + $0x82] sm:$0xff]  ;;  %v3123_v10 = vld [vmem:[%s4586_s10 + $0x8a] sm:$0xff] }
  0x62   : > { %v3392_v14 = vld [vmem:[%s4586_s10 + $0x4d] sm:$0xff] }
  0x64   : > { %4026 = vmatpush3.bf16.msra.mxu0 %v4478_v15  ;;  %v4860_v15 = vld [vmem:[%s5254_s1 + $0xc0] sm:$0xff]  }
  0x65   : > { %4059 = vmatprep.subr.bf16.mxu0 %v4784_v23 }
  0x66   : > { %3788 = vmatmul.mubr.bf16.vlgmr.msra.gmra.mrb[0].mxu1 %v188_v24 }
  0x67   : > { %3996 = vmatmul.mubr.bf16.gmra.mrb[16].mxu0 %v4786_v25  ;;  %3820 = vmatpush3.bf16.msra.mxu1 %v4704_v32  ;;  %v4808_v32 = vpack.c.bf16 %v3300_v33, %v3299_v31 }
  0x68   : > { %3791 = vmatprep.mubr.bf16.mxu1 %v189_v26  ;;  %3999 = vmatprep.mubr.bf16.mxu0 %v4788_v27  ;;  %v199_v26 = vpack.c.bf16 %v180_v21, %v179_v20  ;;  %v3125_v20 = vld [vmem:[%s4586_s10 + $0x9a] sm:$0xff] }
  0x69   : > { %3821 = vmatprep.subr.bf16.mxu1 %v4473_v29  ;;  %v3393_v21 = vld [vmem:[%s4586_s10 + $0x55] sm:$0xff] }
  0x6b   : > { %3822 = vmatpush3.bf16.msra.mxu1 %v4473_v29  ;;  %v184_v29 = vld [vmem:[%s4586_s10 + $0xe8] sm:$0xff] }
  0x6c   : > { %3823 = vmatprep.subr.bf16.mxu1 %v4475_v38  ;;  %v201_v33 = vpack.c.bf16 %v184_v29, %v183_v28 }
  0x6e   : > { %3792 = vmatmul.mubr.bf16.gmra.mrb[4].mxu1 %v190_v40  ;;  %v738_v40 = vpack.c.bf16 %v3107_v37, %v3106_v36  ;;  %v3398_v36 = vld [vmem:[%s4586_s10 + $0x7d] sm:$0xff] }
  0x6f   : > { %4000 = vmatmul.mubr.bf16.gmra.mrb[20].mxu0 %v4808_v32  ;;  %3795 = vmatprep.mubr.bf16.mxu1 %v191_v41  ;;  %v3109_v41 = vld [vmem:[%s4586_s10 + $0x1a] sm:$0xff]  ;;  %v3130_v37 = vld [vmem:[%s4586_s10 + $0xc2] sm:$0xff] }
  0x70   : > { %4003 = vmatprep.mubr.bf16.mxu0 %v4810_v42  ;;  %3824 = vmatpush3.bf16.msra.mxu1 %v4475_v38  ;;  %v4492_v38 = vld [vmem:[%s5254_s1 + $0x1f0] sm:$0xff]  }
  0x71   : > { %3825 = vmatprep.subr.bf16.mxu1 %v4477_v44 }
  0x74   : > { %3826 = vmatpush3.bf16.msra.mxu1 %v4477_v44  ;;  %v3111_v44 = vld [vmem:[%s4586_s10 + $0x2a] sm:$0xff] }
  0x75   : > { %3827 = vmatprep.subr.bf16.mxu1 %v4479_v54 }
  0x76   : > { %3796 = vmatmul.mubr.bf16.gmra.mrb[8].mxu1 %v192_v55  ;;  %v3116_v55 = vld [vmem:[%s4586_s10 + $0x52] sm:$0xff] }
  0x77   : > { %4004 = vmatmul.mubr.bf16.gmra.mrb[24].mxu0 %v4828_v56  ;;  %3799 = vmatprep.mubr.bf16.mxu1 %v193_v57  ;;  %v3117_v57 = vld [vmem:[%s4586_s10 + $0x5a] sm:$0xff] }
  0x78   : > { %4007 = vmatprep.mubr.bf16.mxu0 %v4830_v58  ;;  %3828 = vmatpush3.bf16.msra.mxu1 %v4479_v54  ;;  %v4933_v54 = vpack.c.bf16 %v3115_v52, %v3114_v51  ;;  %v4951_v1 = vpack.c.bf16 %v3117_v57, %v3116_v55  ;;  %v3134_v51 = vld [vmem:[%s4586_s10 + $0xe2] sm:$0xff]  ;;  %v3135_v52 = vld [vmem:[%s4586_s10 + $0xea] sm:$0xff] }
  0x79   : > { %3829 = vmatprep.subr.bf16.mxu1 %v4481_v59  ;;  %v4503_v55 = vld [vmem:[%s5254_s1 + $0x220] sm:$0xff]  }
  0x7c   : > { %3830 = vmatpush3.bf16.msra.mxu1 %v4481_v59  ;;  %v3118_v59 = vld [vmem:[%s4586_s10 + $0x62] sm:$0xff] }
  0x7d   : > { %3831 = vmatprep.subr.bf16.mxu1 %v4483_v4  ;;  %v4953_v2 = vpack.c.bf16 %v3119_v60, %v3118_v59  ;;  %v5038_v60 = vpack.c.bf16 %v3135_v52, %v3134_v51 }
  0x7e   : > { %3800 = vmatmul.mubr.bf16.gmra.mrb[12].mxu1 %v194_v5  ;;  %v3121_v5 = vld [vmem:[%s4586_s10 + $0x7a] sm:$0xff] }
  0x7f   : > { %4008 = vmatmul.mubr.bf16.gmra.mrb[28].mxu0 %v4846_v6  ;;  %3803 = vmatprep.mubr.bf16.mxu1 %v195_v7  ;;  %v3364_v7 = vld [vmem:[%s4586_s10 + $0x134] sm:$0xff] }
  0x80   : > { %4027 = vmatprep.mubr.bf16.mxu0 %v4706_v35  ;;  %3832 = vmatpush3.bf16.msra.mxu1 %v4483_v4  ;;  %v177_v35 = vld [vmem:[%s4586_s10 + $0xb0] sm:$0xff] }
  0x81   : > { %3833 = vmatprep.subr.bf16.mxu1 %v4485_v8  ;;  %v198_v24 = vpack.c.bf16 %v178_v19, %v177_v35  ;;  %v3120_v4 = vld [vmem:[%s4586_s10 + $0x72] sm:$0xff] }
  0x82   : > { %v4501_v35 = vld [vmem:[%s5254_s1 + $0xf8] sm:$0xff]  }
  0x83   : > { %v3124_v19 = vld [vmem:[%s4586_s10 + $0x92] sm:$0xff] }
  0x84   : > { %3834 = vmatpush3.bf16.msra.mxu1 %v4485_v8  ;;  %v3365_v8 = vld [vmem:[%s4586_s10 + $0x13c] sm:$0xff] }
  0x85   : > { %3867 = vmatprep.subr.bf16.mxu1 %v4860_v15 }
  0x86   : > { %3804 = vmatmul.mubr.bf16.gmra.mrb[16].mxu1 %v196_v16  ;;  %v1985_v16 = vpack.c.bf16 %v3365_v8, %v3364_v7  ;;  %v3408_v7 = vld [vmem:[%s4586_s10 + $0xcd] sm:$0xff] }
  0x87   : > { %4028 = vmatmul.mubr.bf16.vlgmr.msra.gmra.mrb[0].mxu0 %v4724_v47  ;;  %3807 = vmatprep.mubr.bf16.mxu1 %v197_v17  ;;  %v4486_v47 = vld [vmem:[%s5254_s1 + $0x1d8] sm:$0xff]   ;;  %v4974_v17 = vpack.c.bf16 %v3123_v10, %v3122_v9  ;;  %v4505_v8 = vld [vmem:[%s5254_s1 + $0x230] sm:$0xff]  }
  0x88   : > { %4060 = vmatpush3.bf16.msra.mxu0 %v4784_v23  ;;  %4031 = vmatprep.mubr.bf16.mxu0 %v4726_v49  ;;  %v181_v49 = vld [vmem:[%s4586_s10 + $0xd0] sm:$0xff]  ;;  %v182_v23 = vld [vmem:[%s4586_s10 + $0xd8] sm:$0xff] }
  0x89   : > { %4061 = vmatprep.subr.bf16.mxu0 %v4482_v18  ;;  %v200_v31 = vpack.c.bf16 %v182_v23, %v181_v49  ;;  %v3396_v49 = vld [vmem:[%s4586_s10 + $0x6d] sm:$0xff]  ;;  %v4989_v23 = vpack.c.bf16 %v3125_v20, %v3124_v19 }
  0x8c   : > { %4062 = vmatpush3.bf16.msra.mxu0 %v4482_v18  ;;  %v2278_v18 = vpack.c.bf16 %v3392_v14, %v3391_v12  ;;  %v4506_v14 = vld [vmem:[%s5254_s1 + $0x238] sm:$0xff]  }
  0x8d   : > { %4063 = vmatprep.subr.bf16.mxu0 %v4484_v22 }
  0x8e   : > { %3808 = vmatmul.mubr.bf16.gmra.mrb[20].mxu1 %v198_v24  ;;  %v3126_v24 = vld [vmem:[%s4586_s10 + $0xa2] sm:$0xff] }
  0x8f   : > { %4032 = vmatmul.mubr.bf16.gmra.mrb[4].mxu0 %v4744_v61  ;;  %3811 = vmatprep.mubr.bf16.mxu1 %v199_v26  ;;  %v4490_v61 = vld [vmem:[%s5254_s1 + $0x1e8] sm:$0xff]  }
  0x90   : > { %4035 = vmatprep.mubr.bf16.mxu0 %v4746_v63  ;;  %4064 = vmatpush3.bf16.msra.mxu0 %v4484_v22  ;;  %v185_v63 = vld [vmem:[%s4586_s10 + $0xf0] sm:$0xff]  ;;  %v3394_v22 = vld [vmem:[%s4586_s10 + $0x5d] sm:$0xff] }
  0x91   : > { %4065 = vmatprep.subr.bf16.mxu0 %v4486_v47  ;;  %v202_v39 = vpack.c.bf16 %v186_v34, %v185_v63  ;;  %v3127_v26 = vld [vmem:[%s4586_s10 + $0xaa] sm:$0xff]  ;;  %v2279_v28 = vpack.c.bf16 %v3394_v22, %v3393_v21  ;;  %v3129_v63 = vld [vmem:[%s4586_s10 + $0xba] sm:$0xff] }
  0x92   : > { %v4991_v29 = vpack.c.bf16 %v3127_v26, %v3126_v24  ;;  %v3397_v34 = vld [vmem:[%s4586_s10 + $0x75] sm:$0xff]  ;;  %v3414_v21 = vld [vmem:[%s4586_s10 + $0xfd] sm:$0xff]  ;;  %v4508_v22 = vld [vmem:[%s5254_s1 + $0x108] sm:$0xff]  }
  0x93   : > { %v3415_v24 = vld [vmem:[%s4586_s10 + $0x105] sm:$0xff]  ;;  %v3416_v26 = vld [vmem:[%s4586_s10 + $0x10d] sm:$0xff] }
  0x94   : > { %4066 = vmatpush3.bf16.msra.mxu0 %v4486_v47  ;;  %v3395_v47 = vld [vmem:[%s4586_s10 + $0x65] sm:$0xff] }
  0x95   : > { %4067 = vmatprep.subr.bf16.mxu0 %v4488_v30 }
  0x96   : > { %3812 = vmatmul.mubr.bf16.gmra.mrb[24].mxu1 %v200_v31  ;;  %v4498_v31 = vld [vmem:[%s5254_s1 + $0x208] sm:$0xff]  }
  0x97   : > { %4036 = vmatmul.mubr.bf16.gmra.mrb[8].mxu0 %v4764_v11  ;;  %3815 = vmatprep.mubr.bf16.mxu1 %v201_v33  ;;  %v4494_v11 = vld [vmem:[%s5254_s1 + $0x1f8] sm:$0xff]   ;;  %v4999_v33 = vld [vmem:[%s5254_s1 + $0x100] sm:$0xff]  }
  0x98   : > { %4039 = vmatprep.mubr.bf16.mxu0 %v4766_v13  ;;  %4068 = vmatpush3.bf16.msra.mxu0 %v4488_v30  ;;  %v3108_v13 = vld [vmem:[%s4586_s10 + $0x12] sm:$0xff]  ;;  %v2280_v30 = vpack.c.bf16 %v3396_v49, %v3395_v47  ;;  %v2290_v47 = vpack.c.bf16 %v3416_v26, %v3415_v24 }
  0x99   : > { %4069 = vmatprep.subr.bf16.mxu0 %v4490_v61  ;;  %v739_v46 = vpack.c.bf16 %v3109_v41, %v3108_v13  ;;  %v2281_v41 = vpack.c.bf16 %v3398_v36, %v3397_v34  ;;  %v3417_v49 = vld [vmem:[%s4586_s10 + $0x115] sm:$0xff]  ;;  %v3422_v34 = vld [vmem:[%s4586_s10 + $0x13d] sm:$0xff]  ;;  %v3448_v36 = vld [vmem:[%s4586_s10 + $0x46] sm:$0xff] }
  0x9c   : > { %4070 = vmatpush3.bf16.msra.mxu0 %v4490_v61  ;;  %v3128_v61 = vld [vmem:[%s4586_s10 + $0xb2] sm:$0xff] }
  0x9d   : > { %4071 = vmatprep.subr.bf16.mxu0 %v4492_v38  ;;  %v5016_v13 = vpack.c.bf16 %v3129_v63, %v3128_v61  ;;  %v3421_v63 = vld [vmem:[%s4586_s10 + $0x135] sm:$0xff] }
  0x9e   : > { %3816 = vmatmul.mubr.bf16.gmra.mrb[28].mxu1 %v202_v39  ;;  %v3399_v39 = vld [vmem:[%s4586_s10 + $0x85] sm:$0xff] }
  0x9f   : > { %4040 = vmatmul.mubr.bf16.gmra.mrb[12].mxu0 %v4786_v25  ;;  %3835 = vmatprep.mubr.bf16.mxu1 %v738_v40  ;;  %v4914_v25 = vpack.c.bf16 %v3111_v44, %v3110_v43  ;;  %v3400_v40 = vld [vmem:[%s4586_s10 + $0x8d] sm:$0xff] }
  0xa0   : > { %4043 = vmatprep.mubr.bf16.mxu0 %v4788_v27  ;;  %4072 = vmatpush3.bf16.msra.mxu0 %v4492_v38  ;;  %v3112_v27 = vld [vmem:[%s4586_s10 + $0x32] sm:$0xff]  ;;  %v3131_v38 = vld [vmem:[%s4586_s10 + $0xca] sm:$0xff]  ;;  %v2282_v44 = vpack.c.bf16 %v3400_v40, %v3399_v39  ;;  %v2293_v39 = vpack.c.bf16 %v3422_v34, %v3421_v63 }
  0xa1   : > { %4073 = vmatprep.subr.bf16.mxu0 %v4494_v11  ;;  %v5018_v43 = vpack.c.bf16 %v3131_v38, %v3130_v37  ;;  %v3449_v37 = vld [vmem:[%s4586_s10 + $0x4e] sm:$0xff]  ;;  %v3450_v40 = vld [vmem:[%s4586_s10 + $0x56] sm:$0xff] }
  0xa2   : > { %v4512_v38 = vld [vmem:[%s5254_s1 + $0x128] sm:$0xff]  }
  0xa4   : > { %4074 = vmatpush3.bf16.msra.mxu0 %v4494_v11  ;;  %v4500_v11 = vld [vmem:[%s5254_s1 + $0x210] sm:$0xff]  }
  0xa5   : > { %4107 = vmatprep.subr.bf16.mxu0 %v4912_v45 }
  0xa6   : > { %3836 = vmatmul.mubr.bf16.vlgmr.msra.gmra.mrb[0].mxu1 %v739_v46  ;;  %v3132_v46 = vld [vmem:[%s4586_s10 + $0xd2] sm:$0xff] }
  0xa7   : > { %4044 = vmatmul.mubr.bf16.gmra.mrb[16].mxu0 %v4808_v32  ;;  %3868 = vmatpush3.bf16.msra.mxu1 %v4860_v15  ;;  %v4931_v32 = vpack.c.bf16 %v3113_v50, %v3112_v27  ;;  %v4972_v15 = vpack.c.bf16 %v3121_v5, %v3120_v4  ;;  %v3401_v27 = vld [vmem:[%s4586_s10 + $0x95] sm:$0xff]  ;;  %v3402_v50 = vld [vmem:[%s4586_s10 + $0x9d] sm:$0xff]  ;;  %v3407_v5 = vld [vmem:[%s4586_s10 + $0xc5] sm:$0xff] }
  0xa8   : > { %3839 = vmatprep.mubr.bf16.mxu1 %v4914_v25  ;;  %4047 = vmatprep.mubr.bf16.mxu0 %v4810_v42  ;;  %v4493_v42 = vld [vmem:[%s5254_s1 + $0xd8] sm:$0xff]   ;;  %v2283_v59 = vpack.c.bf16 %v3402_v50, %v3401_v27  ;;  %v2286_v12 = vpack.c.bf16 %v3408_v7, %v3407_v5  ;;  %v3456_v27 = vld [vmem:[%s4586_s10 + $0x86] sm:$0xff]  ;;  %v3457_v50 = vld [vmem:[%s4586_s10 + $0x8e] sm:$0xff] }
  0xa9   : > { %3869 = vmatprep.subr.bf16.mxu1 %v4489_v48  ;;  %v3406_v4 = vld [vmem:[%s4586_s10 + $0xbd] sm:$0xff]  ;;  %v2590_v52 = vpack.c.bf16 %v3457_v50, %v3456_v27  ;;  %v3237_v5 = vld [vmem:[%s4586_s10 + $0xab] sm:$0xff] }
  0xaa   : > { %v3464_v7 = vld [vmem:[%s4586_s10 + $0xc6] sm:$0xff]  ;;  %v3479_v27 = vld [vmem:[%s4586_s10 + $0x13e] sm:$0xff] }
  0xab   : > { %3870 = vmatpush3.bf16.msra.mxu1 %v4489_v48  ;;  %v3133_v48 = vld [vmem:[%s4586_s10 + $0xda] sm:$0xff] }
  0xac   : > { %3871 = vmatprep.subr.bf16.mxu1 %v4491_v53  ;;  %v5036_v57 = vpack.c.bf16 %v3133_v48, %v3132_v46  ;;  %v3455_v48 = vld [vmem:[%s4586_s10 + $0x7e] sm:$0xff] }
  0xae   : > { %3840 = vmatmul.mubr.bf16.gmra.mrb[4].mxu1 %v4931_v32 }
  0xaf   : > { %4048 = vmatmul.mubr.bf16.gmra.mrb[20].mxu0 %v4828_v56  ;;  %3843 = vmatprep.mubr.bf16.mxu1 %v4933_v54  ;;  %v4495_v56 = vld [vmem:[%s5254_s1 + $0xe0] sm:$0xff]  }
  0xb0   : > { %4051 = vmatprep.mubr.bf16.mxu0 %v4830_v58  ;;  %3872 = vmatpush3.bf16.msra.mxu1 %v4491_v53  ;;  %v1984_v58 = vpack.c.bf16 %v3363_v0, %v3362_v62  ;;  %v3403_v53 = vld [vmem:[%s4586_s10 + $0xa5] sm:$0xff] }
  0xb1   : > { %3873 = vmatprep.subr.bf16.mxu1 %v4493_v42  ;;  %v4504_v0 = vld [vmem:[%s5254_s1 + $0x228] sm:$0xff]  }
  0xb4   : > { %3874 = vmatpush3.bf16.msra.mxu1 %v4493_v42  ;;  %v3404_v42 = vld [vmem:[%s4586_s10 + $0xad] sm:$0xff] }
  0xb5   : > { %3875 = vmatprep.subr.bf16.mxu1 %v4495_v56  ;;  %v2284_v62 = vpack.c.bf16 %v3404_v42, %v3403_v53  ;;  %v3191_v53 = vld [vmem:[%s4586_s10 + $0x102] sm:$0xff]  ;;  %v3192_v42 = vld [vmem:[%s4586_s10 + $0x10a] sm:$0xff] }
  0xb6   : > { %3844 = vmatmul.mubr.bf16.gmra.mrb[8].mxu1 %v4951_v1 }
  0xb7   : > { %4052 = vmatmul.mubr.bf16.gmra.mrb[24].mxu0 %v4846_v6  ;;  %3847 = vmatprep.mubr.bf16.mxu1 %v4953_v2  ;;  %v4499_v6 = vld [vmem:[%s5254_s1 + $0xf0] sm:$0xff]  }
  0xb8   : > { %4055 = vmatprep.mubr.bf16.mxu0 %v1984_v58  ;;  %3876 = vmatpush3.bf16.msra.mxu1 %v4495_v56  ;;  %v3136_v56 = vld [vmem:[%s4586_s10 + $0xf2] sm:$0xff]  ;;  %v3137_v58 = vld [vmem:[%s4586_s10 + $0xfa] sm:$0xff] }
  0xb9   : > { %3877 = vmatprep.subr.bf16.mxu1 %v4497_v3  ;;  %v5054_v9 = vpack.c.bf16 %v3137_v58, %v3136_v56  ;;  %v3194_v56 = vld [vmem:[%s4586_s10 + $0x11a] sm:$0xff] }
  0xba   : > { %v3462_v58 = vld [vmem:[%s4586_s10 + $0xb6] sm:$0xff] }
  0xbc   : > { %3878 = vmatpush3.bf16.msra.mxu1 %v4497_v3  ;;  %v3405_v3 = vld [vmem:[%s4586_s10 + $0xb5] sm:$0xff] }
  0xbd   : > { %3879 = vmatprep.subr.bf16.mxu1 %v4499_v6  ;;  %v2285_v10 = vpack.c.bf16 %v3406_v4, %v3405_v3  ;;  %v3463_v3 = vld [vmem:[%s4586_s10 + $0xbe] sm:$0xff] }
  0xbe   : > { %3848 = vmatmul.mubr.bf16.gmra.mrb[12].mxu1 %v4972_v15  ;;  %v3236_v4 = vld [vmem:[%s4586_s10 + $0xa3] sm:$0xff] }
  0xbf   : > { %4056 = vmatmul.mubr.bf16.gmra.mrb[28].mxu0 %v1985_v16  ;;  %3851 = vmatprep.mubr.bf16.mxu1 %v4974_v17  ;;  %v3410_v16 = vld [vmem:[%s4586_s10 + $0xdd] sm:$0xff] }
  0xc0   : > { %4075 = vmatprep.mubr.bf16.mxu0 %v2278_v18  ;;  %3880 = vmatpush3.bf16.msra.mxu1 %v4499_v6  ;;  %v3409_v6 = vld [vmem:[%s4586_s10 + $0xd5] sm:$0xff]  ;;  %v3411_v18 = vld [vmem:[%s4586_s10 + $0xe5] sm:$0xff] }
  0xc1   : > { %3881 = vmatprep.subr.bf16.mxu1 %v4501_v35  ;;  %v2287_v19 = vpack.c.bf16 %v3410_v16, %v3409_v6  ;;  %v3238_v6 = vld [vmem:[%s4586_s10 + $0xb3] sm:$0xff]  ;;  %v3239_v16 = vld [vmem:[%s4586_s10 + $0xbb] sm:$0xff] }
  0xc4   : > { %3882 = vmatpush3.bf16.msra.mxu1 %v4501_v35  ;;  %v3412_v35 = vld [vmem:[%s4586_s10 + $0xed] sm:$0xff] }
  0xc5   : > { %4155 = vmatprep.subr.bf16.mxu1 %v4999_v33  ;;  %v2288_v20 = vpack.c.bf16 %v3412_v35, %v3411_v18  ;;  %v3466_v18 = vld [vmem:[%s4586_s10 + $0xd6] sm:$0xff]  ;;  %v3467_v35 = vld [vmem:[%s4586_s10 + $0xde] sm:$0xff] }
  0xc6   : > { %3852 = vmatmul.mubr.bf16.gmra.mrb[16].mxu1 %v4989_v23  ;;  %v2595_v24 = vpack.c.bf16 %v3467_v35, %v3466_v18 }
  0xc7   : > { %4076 = vmatmul.mubr.bf16.vlgmr.msra.gmra.mrb[0].mxu0 %v2279_v28  ;;  %3855 = vmatprep.mubr.bf16.mxu1 %v4991_v29  ;;  %v3418_v28 = vld [vmem:[%s4586_s10 + $0x11d] sm:$0xff] }
  0xc8   : > { %4108 = vmatpush3.bf16.msra.mxu0 %v4912_v45  ;;  %4079 = vmatprep.mubr.bf16.mxu0 %v2280_v30  ;;  %v4502_v45 = vld [vmem:[%s5254_s1 + $0x218] sm:$0xff]   ;;  %v3419_v30 = vld [vmem:[%s4586_s10 + $0x125] sm:$0xff]  ;;  %v2291_v61 = vpack.c.bf16 %v3418_v28, %v3417_v49 }
  0xc9   : > { %4109 = vmatprep.subr.bf16.mxu0 %v4498_v31  ;;  %v3470_v49 = vld [vmem:[%s4586_s10 + $0xf6] sm:$0xff]  ;;  %v3471_v28 = vld [vmem:[%s4586_s10 + $0xfe] sm:$0xff] }
  0xcc   : > { %4110 = vmatpush3.bf16.msra.mxu0 %v4498_v31  ;;  %v3420_v31 = vld [vmem:[%s4586_s10 + $0x12d] sm:$0xff] }
  0xcd   : > { %4111 = vmatprep.subr.bf16.mxu0 %v4500_v11 }
  0xce   : > { %3856 = vmatmul.mubr.bf16.gmra.mrb[20].mxu1 %v5016_v13 }
  0xcf   : > { %4080 = vmatmul.mubr.bf16.gmra.mrb[4].mxu0 %v2281_v41  ;;  %3859 = vmatprep.mubr.bf16.mxu1 %v5018_v43  ;;  %v3452_v41 = vld [vmem:[%s4586_s10 + $0x66] sm:$0xff] }
  0xd0   : > { %4083 = vmatprep.mubr.bf16.mxu0 %v2282_v44  ;;  %4112 = vmatpush3.bf16.msra.mxu0 %v4500_v11  ;;  %v3451_v11 = vld [vmem:[%s4586_s10 + $0x5e] sm:$0xff]  ;;  %v3453_v44 = vld [vmem:[%s4586_s10 + $0x6e] sm:$0xff] }
  0xd1   : > { %4113 = vmatprep.subr.bf16.mxu0 %v4502_v45  ;;  %v2587_v46 = vpack.c.bf16 %v3451_v11, %v3450_v40  ;;  %v3476_v40 = vld [vmem:[%s4586_s10 + $0x126] sm:$0xff]  ;;  %v3477_v11 = vld [vmem:[%s4586_s10 + $0x12e] sm:$0xff] }
  0xd4   : > { %4114 = vmatpush3.bf16.msra.mxu0 %v4502_v45  ;;  %v4514_v45 = vld [vmem:[%s5254_s1 + $0x138] sm:$0xff]  }
  0xd5   : > { %4115 = vmatprep.subr.bf16.mxu0 %v4503_v55 }
  0xd6   : > { %3860 = vmatmul.mubr.bf16.gmra.mrb[24].mxu1 %v5036_v57 }
  0xd7   : > { %4084 = vmatmul.mubr.bf16.gmra.mrb[8].mxu0 %v2283_v59  ;;  %3863 = vmatprep.mubr.bf16.mxu1 %v5038_v60  ;;  %v3461_v59 = vld [vmem:[%s4586_s10 + $0xae] sm:$0xff] }
  0xd8   : > { %4087 = vmatprep.mubr.bf16.mxu0 %v2284_v62  ;;  %4116 = vmatpush3.bf16.msra.mxu0 %v4503_v55  ;;  %v3460_v55 = vld [vmem:[%s4586_s10 + $0xa6] sm:$0xff] }
  0xd9   : > { %4117 = vmatprep.subr.bf16.mxu0 %v4504_v0 }
  0xdc   : > { %4118 = vmatpush3.bf16.msra.mxu0 %v4504_v0  ;;  %v2592_v0 = vpack.c.bf16 %v3461_v59, %v3460_v55 }
  0xdd   : > { %4119 = vmatprep.subr.bf16.mxu0 %v4505_v8 }
  0xde   : > { %3864 = vmatmul.mubr.bf16.gmra.mrb[28].mxu1 %v5054_v9 }
  0xdf   : > { %4088 = vmatmul.mubr.bf16.gmra.mrb[12].mxu0 %v2285_v10  ;;  %3883 = vmatprep.mubr.bf16.mxu1 %v4914_v25  ;;  %v3413_v25 = vld [vmem:[%s4586_s10 + $0xf5] sm:$0xff]  ;;  %v2593_v10 = vpack.c.bf16 %v3463_v3, %v3462_v58 }
  0xe0   : > { %4091 = vmatprep.mubr.bf16.mxu0 %v2286_v12  ;;  %4120 = vmatpush3.bf16.msra.mxu0 %v4505_v8  ;;  %v3465_v8 = vld [vmem:[%s4586_s10 + $0xce] sm:$0xff]  ;;  %v1362_v12 = vpack.c.bf16 %v3237_v5, %v3236_v4 }
  0xe1   : > { %4121 = vmatprep.subr.bf16.mxu0 %v4506_v14 }
  0xe4   : > { %4122 = vmatpush3.bf16.msra.mxu0 %v4506_v14  ;;  %v2594_v14 = vpack.c.bf16 %v3465_v8, %v3464_v7  ;;  %v5175_v8 = vld [vmem:[%s5255_s2] ss:$0 sm:$0xff] }
  0xe6   : > { %3884 = vmatmul.mubr.bf16.vlgmr.msra.gmra.mrb[0].mxu1 %v4931_v32  ;;  %v2289_v32 = vpack.c.bf16 %v3414_v21, %v3413_v25  ;;  %v3468_v25 = vld [vmem:[%s4586_s10 + $0xe6] sm:$0xff]  ;;  %v3469_v21 = vld [vmem:[%s4586_s10 + $0xee] sm:$0xff] }
  0xe7   : > { %4092 = vmatmul.mubr.bf16.gmra.mrb[16].mxu0 %v2287_v19  ;;  %4163 = vmatpush3.bf16.msra.mxu1 %v4999_v33  ;;  %v4510_v33 = vld [vmem:[%s5254_s1 + $0x118] sm:$0xff]   ;;  %v3240_v19 = vld [vmem:[%s4586_s10 + $0xc3] sm:$0xff] }
  0xe8   : > { %3887 = vmatprep.mubr.bf16.mxu1 %v4933_v54  ;;  %4095 = vmatprep.mubr.bf16.mxu0 %v2288_v20  ;;  %v4509_v54 = vld [vmem:[%s5254_s1 + $0x110] sm:$0xff]  }
  0xe9   : > { %4156 = vmatprep.subr.bf16.mxu1 %v4508_v22  ;;  %v3241_v20 = vld [vmem:[%s4586_s10 + $0xcb] sm:$0xff] }
  0xea   : > { %v1364_v26 = vpack.c.bf16 %v3241_v20, %v3240_v19 }
  0xeb   : > { %4164 = vmatpush3.bf16.msra.mxu1 %v4508_v22  ;;  %v1363_v22 = vpack.c.bf16 %v3239_v16, %v3238_v6 }
  0xec   : > { %4157 = vmatprep.subr.bf16.mxu1 %v4509_v54 }
  0xee   : > { %3888 = vmatmul.mubr.bf16.gmra.mrb[4].mxu1 %v4951_v1  ;;  %v2292_v1 = vpack.c.bf16 %v3420_v31, %v3419_v30  ;;  %v3244_v30 = vld [vmem:[%s4586_s10 + $0xe3] sm:$0xff]  ;;  %v3245_v31 = vld [vmem:[%s4586_s10 + $0xeb] sm:$0xff] }
  0xef   : > { %4096 = vmatmul.mubr.bf16.gmra.mrb[20].mxu0 %v2289_v32  ;;  %3891 = vmatprep.mubr.bf16.mxu1 %v4953_v2  ;;  %v4511_v2 = vld [vmem:[%s5254_s1 + $0x120] sm:$0xff]   ;;  %v2596_v32 = vpack.c.bf16 %v3469_v21, %v3468_v25  ;;  %v1366_v63 = vpack.c.bf16 %v3245_v31, %v3244_v30 }
  0xf0   : > { %4099 = vmatprep.mubr.bf16.mxu0 %v2290_v47  ;;  %4165 = vmatpush3.bf16.msra.mxu1 %v4509_v54  ;;  %v3242_v47 = vld [vmem:[%s4586_s10 + $0xd3] sm:$0xff]  ;;  %v3243_v54 = vld [vmem:[%s4586_s10 + $0xdb] sm:$0xff] }
  0xf1   : > { %4158 = vmatprep.subr.bf16.mxu1 %v4510_v33 }
  0xf4   : > { %4166 = vmatpush3.bf16.msra.mxu1 %v4510_v33  ;;  %v3472_v33 = vld [vmem:[%s4586_s10 + $0x106] sm:$0xff] }
  0xf5   : > { %4159 = vmatprep.subr.bf16.mxu1 %v4511_v2 }
  0xf6   : > { %3892 = vmatmul.mubr.bf16.gmra.mrb[8].mxu1 %v4972_v15  ;;  %v2586_v15 = vpack.c.bf16 %v3449_v37, %v3448_v36  ;;  %v3246_v36 = vld [vmem:[%s4586_s10 + $0xf3] sm:$0xff]  ;;  %v3247_v37 = vld [vmem:[%s4586_s10 + $0xfb] sm:$0xff] }
  0xf7   : > { %4100 = vmatmul.mubr.bf16.gmra.mrb[24].mxu0 %v2291_v61  ;;  %3895 = vmatprep.mubr.bf16.mxu1 %v4974_v17  ;;  %v4513_v17 = vld [vmem:[%s5254_s1 + $0x130] sm:$0xff]  }
  0xf8   : > { %4103 = vmatprep.mubr.bf16.mxu0 %v2292_v1  ;;  %4167 = vmatpush3.bf16.msra.mxu1 %v4511_v2  ;;  %v3473_v61 = vld [vmem:[%s4586_s10 + $0x10e] sm:$0xff]  ;;  %v1365_v1 = vpack.c.bf16 %v3243_v54, %v3242_v47  ;;  %v2597_v2 = vpack.c.bf16 %v3471_v28, %v3470_v49 }
  0xf9   : > { %4160 = vmatprep.subr.bf16.mxu1 %v4512_v38  ;;  %v2598_v34 = vpack.c.bf16 %v3473_v61, %v3472_v33 }
  0xfc   : > { %4168 = vmatpush3.bf16.msra.mxu1 %v4512_v38  ;;  %v3474_v38 = vld [vmem:[%s4586_s10 + $0x116] sm:$0xff] }
  0xfd   : > { %4161 = vmatprep.subr.bf16.mxu1 %v4513_v17 }
  0xfe   : > { %3896 = vmatmul.mubr.bf16.gmra.mrb[12].mxu1 %v4989_v23  ;;  %v2588_v23 = vpack.c.bf16 %v3453_v44, %v3452_v41  ;;  %v1367_v41 = vpack.c.bf16 %v3247_v37, %v3246_v36 }
  0xff   : > { %4104 = vmatmul.mubr.bf16.gmra.mrb[28].mxu0 %v2293_v39  ;;  %3899 = vmatprep.mubr.bf16.mxu1 %v4991_v29  ;;  %v3454_v29 = vld [vmem:[%s4586_s10 + $0x76] sm:$0xff]  ;;  %v3475_v39 = vld [vmem:[%s4586_s10 + $0x11e] sm:$0xff] }
 0x100   : > { %4123 = vmatprep.mubr.bf16.mxu0 %v2586_v15  ;;  %4169 = vmatpush3.bf16.msra.mxu1 %v4513_v17  ;;  %v2589_v51 = vpack.c.bf16 %v3455_v48, %v3454_v29  ;;  %v3248_v15 = vld [vmem:[%s4586_s10 + $0x103] sm:$0xff]  ;;  %v3249_v17 = vld [vmem:[%s4586_s10 + $0x10b] sm:$0xff]  ;;  %v2599_v44 = vpack.c.bf16 %v3475_v39, %v3474_v38  ;;  %v3251_v29 = vld [vmem:[%s4586_s10 + $0x11b] sm:$0xff] }
 0x101   : > { %4162 = vmatprep.subr.bf16.mxu1 %v4514_v45  ;;  %v3478_v48 = vld [vmem:[%s4586_s10 + $0x136] sm:$0xff] }
 0x104   : > { %4170 = vmatpush3.bf16.msra.mxu1 %v4514_v45  ;;  %v1368_v45 = vpack.c.bf16 %v3249_v17, %v3248_v15 }
 0x106   : > { %3900 = vmatmul.mubr.bf16.gmra.mrb[16].mxu1 %v5016_v13  ;;  %v3458_v13 = vld [vmem:[%s4586_s10 + $0x96] sm:$0xff] }
 0x107   : > { %4124 = vmatmul.mubr.bf16.vlgmr.msra.gmra.mrb[0].mxu0 %v2587_v46  ;;  %3903 = vmatprep.mubr.bf16.mxu1 %v5018_v43  ;;  %v3459_v43 = vld [vmem:[%s4586_s10 + $0x9e] sm:$0xff]  ;;  %v2600_v46 = vpack.c.bf16 %v3477_v11, %v3476_v40 }
 0x108   : > { %4127 = vmatprep.mubr.bf16.mxu0 %v2588_v23  ;;  %v2591_v62 = vpack.c.bf16 %v3459_v43, %v3458_v13  ;;  %v3250_v23 = vld [vmem:[%s4586_s10 + $0x113] sm:$0xff] }
 0x109   : > { %v1369_v50 = vpack.c.bf16 %v3251_v29, %v3250_v23 }
 0x10e   : > { %3904 = vmatmul.mubr.bf16.gmra.mrb[20].mxu1 %v5036_v57  ;;  %v1060_v57 = vpack.c.bf16 %v3192_v42, %v3191_v53 }
 0x10f   : > { %4128 = vmatmul.mubr.bf16.gmra.mrb[4].mxu0 %v2589_v51  ;;  %3907 = vmatprep.mubr.bf16.mxu1 %v5038_v60  ;;  %v3193_v60 = vld [vmem:[%s4586_s10 + $0x112] sm:$0xff]  ;;  %v2601_v51 = vpack.c.bf16 %v3479_v27, %v3478_v48 }
 0x110   : > { %4131 = vmatprep.mubr.bf16.mxu0 %v2590_v52 }
 0x116   : > { %3908 = vmatmul.mubr.bf16.gmra.mrb[24].mxu1 %v5054_v9  ;;  %v1061_v9 = vpack.c.bf16 %v3194_v56, %v3193_v60 }
 0x117   : > { %4132 = vmatmul.mubr.bf16.gmra.mrb[8].mxu0 %v2591_v62  ;;  %3911 = vmatprep.mubr.bf16.mxu1 %v1060_v57 }
 0x118   : > { %4135 = vmatprep.mubr.bf16.mxu0 %v2592_v0 }
 0x11e   : > { %3912 = vmatmul.mubr.bf16.gmra.mrb[28].mxu1 %v1061_v9 }
 0x11f   : > { %4136 = vmatmul.mubr.bf16.gmra.mrb[12].mxu0 %v2593_v10  ;;  %3947 = vmatprep.mubr.bf16.mxu1 %v1362_v12 }
 0x120   : > { %4139 = vmatprep.mubr.bf16.mxu0 %v2594_v14 }
 0x126   : > { %3948 = vmatmul.mubr.bf16.vlgmr.msra.gmra.mrb[16].mxu1 %v1363_v22 }
 0x127   : > { %4140 = vmatmul.mubr.bf16.gmra.mrb[16].mxu0 %v2595_v24  ;;  %3951 = vmatprep.mubr.bf16.mxu1 %v1364_v26 }
 0x128   : > { %4143 = vmatprep.mubr.bf16.mxu0 %v2596_v32 }
 0x12e   : > { %3952 = vmatmul.mubr.bf16.gmra.mrb[20].mxu1 %v1365_v1 }
 0x12f   : > { %4144 = vmatmul.mubr.bf16.gmra.mrb[20].mxu0 %v2597_v2  ;;  %3955 = vmatprep.mubr.bf16.mxu1 %v1366_v63 }
 0x130   : > { %4147 = vmatprep.mubr.bf16.mxu0 %v2598_v34 }
 0x136   : > { %3956 = vmatmul.mubr.bf16.gmra.mrb[24].mxu1 %v1367_v41 }
 0x137   : > { %4148 = vmatmul.mubr.bf16.gmra.mrb[24].mxu0 %v2599_v44  ;;  %3959 = vmatprep.mubr.bf16.mxu1 %v1368_v45 }
 0x138   : > { %4151 = vmatprep.mubr.bf16.mxu0 %v2600_v46 }
 0x13e   : > { %3960 = vmatmul.mubr.bf16.gmra.mrb[28].mxu1 %v1369_v50 }
 0x13f   : > { %4152 = vmatmul.mubr.bf16.gmra.mrb[28].mxu0 %v2601_v51 }
 0x1b9   : > { %v3885_v52 = vpop.f32.mrb[0].mxu1 }
 0x1ba   : > { %v1161_v13 = vpop.f32.mrb[1].mxu1 }
 0x1bb   : > { %v3886_v43 = vpop.f32.mrb[2].mxu1 }
 0x1bc   : > { %v1164_v53 = vpop.f32.mrb[3].mxu1 }
 0x1c1   : > { %v3889_v42 = vpop.f32.mrb[4].mxu1 }
 0x1c2   : > { %v1177_v55 = vpop.f32.mrb[5].mxu1 }
 0x1c3   : > { %v3890_v59 = vpop.f32.mrb[6].mxu1 }
 0x1c4   : > { %v1180_v62 = vpop.f32.mrb[7].mxu1 }
 0x1c9   : > { %v3893_v57 = vpop.f32.mrb[8].mxu1 }
 0x1ca   : > { %v1193_v0 = vpop.f32.mrb[9].mxu1 }
 0x1cb   : > { %v3894_v60 = vpop.f32.mrb[10].mxu1 }
 0x1cc   : > { %v1196_v56 = vpop.f32.mrb[11].mxu1 }
 0x1d1   : > { %v5164_v58 = vpop.f32.mrb[12].mxu1 }
 0x1d2   : > { %v5166_v3 = vpop.f32.mrb[13].mxu1 }
 0x1d3   : > { %v5168_v4 = vpop.f32.mrb[14].mxu1 }
 0x1d4   : > { %v5170_v5 = vpop.f32.mrb[15].mxu1 }
 0x1da   : > { %v4125_v7 = vpop.f32.mrb[0].mxu0 }
 0x1db   : > { %v4171_v9 = vadd.f32 %v4125_v7, %v3885_v52  ;;  %v2701_v10 = vpop.f32.mrb[1].mxu0 }
 0x1dc   : > { %v4172_v12 = vadd.f32 %v2701_v10, %v1161_v13  ;;  %v4126_v14 = vpop.f32.mrb[2].mxu0 }
 0x1dd   : > { %v2869_v6 = vadd.f32 %v4171_v9, %v5175_v8  ;;  %v4173_v16 = vadd.f32 %v4126_v14, %v3886_v43  ;;  %v2704_v18 = vpop.f32.mrb[3].mxu0 }
 0x1de   : > { %v2867_v35 = vadd.f32 %v4172_v12, %v5175_v8  ;;  %v4174_v19 = vadd.f32 %v2704_v18, %v1164_v53 }
 0x1df   : > { %v2901_v20 = vmax.f32 %v2869_v6, 0.0  ;;  %v2870_v25 = vadd.f32 %v4173_v16, %v5175_v8 }
 0x1e0   : > { %v2899_v21 = vmax.f32 %v2867_v35, 0.0  ;;  %v2868_v22 = vadd.f32 %v4174_v19, %v5175_v8 }
 0x1e1   : > { %2933 = vst [vmem:[%s5181_s11 + $0x10] sm:$0xff] %v2901_v20  ;;  %v2902_v24 = vmax.f32 %v2870_v25, 0.0 }
 0x1e2   : > { %2931 = vst [vmem:[%s5181_s11] sm:$0xff] %v2899_v21  ;;  %v2900_v26 = vmax.f32 %v2868_v22, 0.0  ;;  %v4129_v32 = vpop.f32.mrb[4].mxu0 }
 0x1e3   : > { %2934 = vst [vmem:[%s5181_s11 + $0x18] sm:$0xff] %v2902_v24  ;;  %v4175_v47 = vadd.f32 %v4129_v32, %v3889_v42  ;;  %v2717_v54 = vpop.f32.mrb[5].mxu0 }
 0x1e4   : > { %2932 = vst [vmem:[%s5181_s11 + $0x8] sm:$0xff] %v2900_v26  ;;  %v4176_v49 = vadd.f32 %v2717_v54, %v1177_v55  ;;  %v4130_v28 = vpop.f32.mrb[6].mxu0 }
 0x1e5   : > { %v2873_v30 = vadd.f32 %v4175_v47, %v5175_v8  ;;  %v4177_v31 = vadd.f32 %v4130_v28, %v3890_v59  ;;  %v2720_v33 = vpop.f32.mrb[7].mxu0 }
 0x1e6   : > { %v2871_v61 = vadd.f32 %v4176_v49, %v5175_v8  ;;  %v4178_v1 = vadd.f32 %v2720_v33, %v1180_v62 }
 0x1e7   : > { %v2905_v2 = vmax.f32 %v2873_v30, 0.0  ;;  %v2874_v63 = vadd.f32 %v4177_v31, %v5175_v8 }
 0x1e8   : > { %v2903_v34 = vmax.f32 %v2871_v61, 0.0  ;;  %v2872_v36 = vadd.f32 %v4178_v1, %v5175_v8 }
 0x1e9   : > { %2937 = vst [vmem:[%s5181_s11 + $0x30] sm:$0xff] %v2905_v2  ;;  %v2906_v37 = vmax.f32 %v2874_v63, 0.0 }
 0x1ea   : > { %2935 = vst [vmem:[%s5181_s11 + $0x20] sm:$0xff] %v2903_v34  ;;  %v2904_v38 = vmax.f32 %v2872_v36, 0.0  ;;  %v4133_v39 = vpop.f32.mrb[8].mxu0 }
 0x1eb   : > { %2938 = vst [vmem:[%s5181_s11 + $0x38] sm:$0xff] %v2906_v37  ;;  %v4179_v15 = vadd.f32 %v4133_v39, %v3893_v57  ;;  %v2733_v17 = vpop.f32.mrb[9].mxu0 }
 0x1ec   : > { %2936 = vst [vmem:[%s5181_s11 + $0x28] sm:$0xff] %v2904_v38  ;;  %v4180_v40 = vadd.f32 %v2733_v17, %v1193_v0  ;;  %v4134_v11 = vpop.f32.mrb[10].mxu0 }
 0x1ed   : > { %v2877_v41 = vadd.f32 %v4179_v15, %v5175_v8  ;;  %v4181_v44 = vadd.f32 %v4134_v11, %v3894_v60  ;;  %v2736_v45 = vpop.f32.mrb[11].mxu0 }
 0x1ee   : > { %v2875_v46 = vadd.f32 %v4180_v40, %v5175_v8  ;;  %v4182_v23 = vadd.f32 %v2736_v45, %v1196_v56 }
 0x1ef   : > { %v2909_v29 = vmax.f32 %v2877_v41, 0.0  ;;  %v2878_v48 = vadd.f32 %v4181_v44, %v5175_v8 }
 0x1f0   : > { %v2907_v27 = vmax.f32 %v2875_v46, 0.0  ;;  %v2876_v50 = vadd.f32 %v4182_v23, %v5175_v8 }
 0x1f1   : > { %2941 = vst [vmem:[%s5181_s11 + $0x50] sm:$0xff] %v2909_v29  ;;  %v2910_v51 = vmax.f32 %v2878_v48, 0.0 }
 0x1f2   : > { %2939 = vst [vmem:[%s5181_s11 + $0x40] sm:$0xff] %v2907_v27  ;;  %v2908_v52 = vmax.f32 %v2876_v50, 0.0  ;;  %v4137_v13 = vpop.f32.mrb[12].mxu0 }
 0x1f3   : > { %2942 = vst [vmem:[%s5181_s11 + $0x58] sm:$0xff] %v2910_v51  ;;  %v4183_v43 = vadd.f32 %v4137_v13, %v5164_v58  ;;  %v2749_v53 = vpop.f32.mrb[13].mxu0 }
 0x1f4   : > { %2940 = vst [vmem:[%s5181_s11 + $0x48] sm:$0xff] %v2908_v52  ;;  %v4184_v42 = vadd.f32 %v2749_v53, %v5166_v3  ;;  %v4138_v55 = vpop.f32.mrb[14].mxu0 }
 0x1f5   : > { %v2881_v59 = vadd.f32 %v4183_v43, %v5175_v8  ;;  %v4185_v62 = vadd.f32 %v4138_v55, %v5168_v4  ;;  %v2752_v57 = vpop.f32.mrb[15].mxu0 }
 0x1f6   : > { %v2879_v0 = vadd.f32 %v4184_v42, %v5175_v8  ;;  %v4186_v60 = vadd.f32 %v2752_v57, %v5170_v5 }
 0x1f7   : > { %v2913_v56 = vmax.f32 %v2881_v59, 0.0  ;;  %v2882_v58 = vadd.f32 %v4185_v62, %v5175_v8 }
 0x1f8   : > { %v2911_v7 = vmax.f32 %v2879_v0, 0.0  ;;  %v2880_v9 = vadd.f32 %v4186_v60, %v5175_v8 }
 0x1f9   : > { %2945 = vst [vmem:[%s5181_s11 + $0x70] sm:$0xff] %v2913_v56  ;;  %v2914_v3 = vmax.f32 %v2882_v58, 0.0  ;;  %v3949_v10 = vpop.f32.mrb[16].mxu1 }
 0x1fa   : > { %2943 = vst [vmem:[%s5181_s11 + $0x60] sm:$0xff] %v2911_v7  ;;  %v2912_v12 = vmax.f32 %v2880_v9, 0.0  ;;  %v4141_v14 = vpop.f32.mrb[16].mxu0  ;;  %v1533_v6 = vpop.f32.mrb[17].mxu1 }
 0x1fb   : > { %2946 = vst [vmem:[%s5181_s11 + $0x78] sm:$0xff] %v2914_v3  ;;  %v4187_v4 = vadd.f32 %v4141_v14, %v3949_v10  ;;  %v2765_v16 = vpop.f32.mrb[17].mxu0  ;;  %v3950_v18 = vpop.f32.mrb[18].mxu1 }
 0x1fc   : > { %2944 = vst [vmem:[%s5181_s11 + $0x68] sm:$0xff] %v2912_v12  ;;  %v4188_v5 = vadd.f32 %v2765_v16, %v1533_v6  ;;  %v4142_v35 = vpop.f32.mrb[18].mxu0  ;;  %v1536_v19 = vpop.f32.mrb[19].mxu1 }
 0x1fd   : > { %v2885_v20 = vadd.f32 %v4187_v4, %v5175_v8  ;;  %v4189_v25 = vadd.f32 %v4142_v35, %v3950_v18  ;;  %v2768_v21 = vpop.f32.mrb[19].mxu0 }
 0x1fe   : > { %v2883_v22 = vadd.f32 %v4188_v5, %v5175_v8  ;;  %v4190_v24 = vadd.f32 %v2768_v21, %v1536_v19 }
 0x1ff   : > { %v2917_v26 = vmax.f32 %v2885_v20, 0.0  ;;  %v2886_v32 = vadd.f32 %v4189_v25, %v5175_v8 }
 0x200   : > { %v2915_v47 = vmax.f32 %v2883_v22, 0.0  ;;  %v2884_v54 = vadd.f32 %v4190_v24, %v5175_v8 }
 0x201   : > { %2949 = vst [vmem:[%s5181_s11 + $0x90] sm:$0xff] %v2917_v26  ;;  %v2918_v49 = vmax.f32 %v2886_v32, 0.0  ;;  %v3953_v28 = vpop.f32.mrb[20].mxu1 }
 0x202   : > { %2947 = vst [vmem:[%s5181_s11 + $0x80] sm:$0xff] %v2915_v47  ;;  %v2916_v30 = vmax.f32 %v2884_v54, 0.0  ;;  %v4145_v31 = vpop.f32.mrb[20].mxu0  ;;  %v1549_v33 = vpop.f32.mrb[21].mxu1 }
 0x203   : > { %2950 = vst [vmem:[%s5181_s11 + $0x98] sm:$0xff] %v2918_v49  ;;  %v4191_v61 = vadd.f32 %v4145_v31, %v3953_v28  ;;  %v2781_v1 = vpop.f32.mrb[21].mxu0  ;;  %v3954_v2 = vpop.f32.mrb[22].mxu1 }
 0x204   : > { %2948 = vst [vmem:[%s5181_s11 + $0x88] sm:$0xff] %v2916_v30  ;;  %v4192_v63 = vadd.f32 %v2781_v1, %v1549_v33  ;;  %v4146_v34 = vpop.f32.mrb[22].mxu0  ;;  %v1552_v36 = vpop.f32.mrb[23].mxu1 }
 0x205   : > { %v2889_v37 = vadd.f32 %v4191_v61, %v5175_v8  ;;  %v4193_v38 = vadd.f32 %v4146_v34, %v3954_v2  ;;  %v2784_v39 = vpop.f32.mrb[23].mxu0 }
 0x206   : > { %v2887_v15 = vadd.f32 %v4192_v63, %v5175_v8  ;;  %v4194_v17 = vadd.f32 %v2784_v39, %v1552_v36 }
 0x207   : > { %v2921_v40 = vmax.f32 %v2889_v37, 0.0  ;;  %v2890_v11 = vadd.f32 %v4193_v38, %v5175_v8 }
 0x208   : > { %v2919_v41 = vmax.f32 %v2887_v15, 0.0  ;;  %v2888_v44 = vadd.f32 %v4194_v17, %v5175_v8 }
 0x209   : > { %2953 = vst [vmem:[%s5181_s11 + $0xb0] sm:$0xff] %v2921_v40  ;;  %v2922_v45 = vmax.f32 %v2890_v11, 0.0  ;;  %v3957_v46 = vpop.f32.mrb[24].mxu1 }
 0x20a   : > { %2951 = vst [vmem:[%s5181_s11 + $0xa0] sm:$0xff] %v2919_v41  ;;  %v2920_v23 = vmax.f32 %v2888_v44, 0.0  ;;  %v4149_v29 = vpop.f32.mrb[24].mxu0  ;;  %v1565_v48 = vpop.f32.mrb[25].mxu1 }
 0x20b   : > { %2954 = vst [vmem:[%s5181_s11 + $0xb8] sm:$0xff] %v2922_v45  ;;  %v4195_v27 = vadd.f32 %v4149_v29, %v3957_v46  ;;  %v2797_v50 = vpop.f32.mrb[25].mxu0  ;;  %v3958_v51 = vpop.f32.mrb[26].mxu1 }
 0x20c   : > { %2952 = vst [vmem:[%s5181_s11 + $0xa8] sm:$0xff] %v2920_v23  ;;  %v4196_v52 = vadd.f32 %v2797_v50, %v1565_v48  ;;  %v4150_v13 = vpop.f32.mrb[26].mxu0  ;;  %v1568_v43 = vpop.f32.mrb[27].mxu1 }
 0x20d   : > { %v2893_v53 = vadd.f32 %v4195_v27, %v5175_v8  ;;  %v4197_v42 = vadd.f32 %v4150_v13, %v3958_v51  ;;  %v2800_v55 = vpop.f32.mrb[27].mxu0 }
 0x20e   : > { %v2891_v59 = vadd.f32 %v4196_v52, %v5175_v8  ;;  %v4198_v62 = vadd.f32 %v2800_v55, %v1568_v43 }
 0x20f   : > { %v2925_v57 = vmax.f32 %v2893_v53, 0.0  ;;  %v2894_v0 = vadd.f32 %v4197_v42, %v5175_v8 }
 0x210   : > { %v2923_v60 = vmax.f32 %v2891_v59, 0.0  ;;  %v2892_v56 = vadd.f32 %v4198_v62, %v5175_v8 }
 0x211   : > { %2957 = vst [vmem:[%s5181_s11 + $0xd0] sm:$0xff] %v2925_v57  ;;  %v2926_v58 = vmax.f32 %v2894_v0, 0.0  ;;  %v3961_v7 = vpop.f32.mrb[28].mxu1 }
 0x212   : > { %2955 = vst [vmem:[%s5181_s11 + $0xc0] sm:$0xff] %v2923_v60  ;;  %v2924_v9 = vmax.f32 %v2892_v56, 0.0  ;;  %v4153_v3 = vpop.f32.mrb[28].mxu0  ;;  %v1581_v10 = vpop.f32.mrb[29].mxu1 }
 0x213   : > { %2958 = vst [vmem:[%s5181_s11 + $0xd8] sm:$0xff] %v2926_v58  ;;  %v4199_v12 = vadd.f32 %v4153_v3, %v3961_v7  ;;  %v2813_v14 = vpop.f32.mrb[29].mxu0  ;;  %v3962_v6 = vpop.f32.mrb[30].mxu1 }
 0x214   : > { %2956 = vst [vmem:[%s5181_s11 + $0xc8] sm:$0xff] %v2924_v9  ;;  %v4200_v4 = vadd.f32 %v2813_v14, %v1581_v10  ;;  %v4154_v16 = vpop.f32.mrb[30].mxu0  ;;  %v1584_v18 = vpop.f32.mrb[31].mxu1 }
 0x215   : > { %v2897_v5 = vadd.f32 %v4199_v12, %v5175_v8  ;;  %v4201_v35 = vadd.f32 %v4154_v16, %v3962_v6  ;;  %v2816_v19 = vpop.f32.mrb[31].mxu0 }
 0x216   : > { %v2895_v20 = vadd.f32 %v4200_v4, %v5175_v8  ;;  %v4202_v25 = vadd.f32 %v2816_v19, %v1584_v18 }
 0x217   : > { %v2929_v21 = vmax.f32 %v2897_v5, 0.0  ;;  %v2898_v22 = vadd.f32 %v4201_v35, %v5175_v8 }
 0x218   : > { %v2927_v24 = vmax.f32 %v2895_v20, 0.0  ;;  %v2896_v26 = vadd.f32 %v4202_v25, %v5175_v8 }
 0x219   : > { %2961 = vst [vmem:[%s5181_s11 + $0xf0] sm:$0xff] %v2929_v21  ;;  %v2930_v32 = vmax.f32 %v2898_v22, 0.0 }
 0x21a   : > { %2959 = vst [vmem:[%s5181_s11 + $0xe0] sm:$0xff] %v2927_v24  ;;  %v2928_v47 = vmax.f32 %v2896_v26, 0.0 }
 0x21b   : > { %2962 = vst [vmem:[%s5181_s11 + $0xf8] sm:$0xff] %v2930_v32 }
 0x21c   : > { %2960 = vst [vmem:[%s5181_s11 + $0xe8] sm:$0xff] %v2928_v47 }
 0x21d PF: > { %s13_s12 = sadd.s32 1, %s4521_s12  }
 0x21e   : > { %p10_p4 = scmp.ge.s32.totalorder %s13_s12, 12  }
 0x220   :  { %12 = sbr.rel (!%p10_p4) target bundleno = 1 (0x1), region = 76 }

// kernel: simple_forward.7
= control target key start
LH: loop header
LB: loop body
LE: loop exit
PB: predicated region body
PF: predicated region fallthrough
CT: control target
= control target key end

     0   :  { %s4543_s12 = smov 0   ;;  %s5240_s0 = inlined_call_operand.vmem [shape: f32[546,128], index: 0, kind: input, shape index: {}]   ;;  %s5241_s1 = inlined_call_operand.vmem [shape: bf16[9,128,128], index: 1, kind: input, shape index: {}]   ;;  %s5242_s2 = inlined_call_operand.vmem [shape: f32[1,128], index: 2, kind: input, shape index: {}]   ;;  %s5243_s3 = inlined_call_operand.vmem [shape: f32[512,128], index: 3, kind: output, shape index: {}]  }
   0x1 LB: > { %s3033_s13 = sadd.s32 4294967295, %s4521_s12   ;;  %p3036_p0 = scmp.ge.s32.totalorder %s4521_s12, 1  ;;  %s4521_s12 = sphi %s4543_s12, %s13_s12  }
   0x2   : > { %p127_p1 = scmp.lt.s32.totalorder %s4521_s12, 3 }
   0x4   : > { %p128_p2 = pnand %p3036_p0, %p127_p1 }
   0x5   : > { %v4435_v0 = vld [vmem:[%s5241_s1 + $0x40] sm:$0xff] (!%p128_p2)   ;;  %v4437_v2 = vld [vmem:[%s5241_s1 + $0x48] sm:$0xff] (!%p128_p2)   ;;  %v4439_v4 = vld [vmem:[%s5241_s1 + $0x50] sm:$0xff] (!%p128_p2)   ;;  %s3039_s30 = sshll.u32 (!%p128_p2), %s3033_s13, 8  ;;  %s3037_s6 = sshll.u32 (!%p128_p2), %s3033_s13, 5 }
   0x6   : > { %131 = sbr.rel (%p128_p2) target bundleno = 541 (0x21d), region = 32  ;;  %v4436_v1 = vld [vmem:[%s5241_s1 + $0x100] sm:$0xff] (!%p128_p2)   ;;  %3723 = vmatprep.subr.bf16.mxu1 (!%p128_p2), %v4435_v0  ;;  %v4438_v3 = vld [vmem:[%s5241_s1 + $0x108] sm:$0xff] (!%p128_p2)   ;;  %v4440_v5 = vld [vmem:[%s5241_s1 + $0x110] sm:$0xff] (!%p128_p2)   ;;  %s4586_s10 = scalar_lea.vmem (!%p128_p2), %s5240_s0, %s3039_s30 }
   0x7   : > { %3915 = vmatprep.subr.bf16.mxu0 (!%p128_p2), %v4436_v1  ;;  %3724 = vmatpush3.bf16.msra.mxu1 (!%p128_p2), %v4435_v0  ;;  %v4441_v6 = vld [vmem:[%s5241_s1 + $0x58] sm:$0xff] (!%p128_p2)   ;;  %v4443_v8 = vld [vmem:[%s5241_s1 + $0x60] sm:$0xff] (!%p128_p2)   ;;  %v4445_v10 = vld [vmem:[%s5241_s1 + $0x68] sm:$0xff] (!%p128_p2)   ;;  %p147_p3 = scmp.lt.s32.totalorder (!%p128_p2), %s3037_s6, 63 }
   0x8   : > { %3916 = vmatpush3.bf16.msra.mxu0 (!%p128_p2), %v4436_v1  ;;  %3725 = vmatprep.subr.bf16.mxu1 (!%p128_p2), %v4437_v2  ;;  %v4442_v7 = vld [vmem:[%s5241_s1 + $0x118] sm:$0xff] (!%p128_p2)   ;;  %v4444_v9 = vld [vmem:[%s5241_s1 + $0x120] sm:$0xff] (!%p128_p2)   ;;  %v4446_v11 = vld [vmem:[%s5241_s1 + $0x128] sm:$0xff] (!%p128_p2)  }
   0x9   : > { %3917 = vmatprep.subr.bf16.mxu0 (!%p128_p2), %v4438_v3  ;;  %v3041_v12 = vld [vmem:[%s4586_s10 + $0x1] sm:$0xff] (!%p128_p2)  ;;  %v3042_v13 = vld [vmem:[%s4586_s10 + $0x9] sm:$0xff] (!%p128_p2)  ;;  %v3220_v14 = vld [vmem:[%s4586_s10 + $0x11] sm:$0xff] (!%p128_p2) }
   0xa   : > { %v253_v15 = vpack.c.bf16 (!%p128_p2), %v3042_v13, %v3041_v12  ;;  %v3221_v16 = vld [vmem:[%s4586_s10 + $0x19] sm:$0xff] (!%p128_p2)  ;;  %v4447_v18 = vld [vmem:[%s5241_s1 + $0x70] sm:$0xff] (!%p128_p2)   ;;  %v3222_v23 = vld [vmem:[%s4586_s10 + $0x21] sm:$0xff] (!%p128_p2) }
   0xb   : > { %3726 = vmatpush3.bf16.msra.mxu1 (!%p128_p2), %v4437_v2  ;;  %v1354_v17 = vpack.c.bf16 (!%p128_p2), %v3221_v16, %v3220_v14  ;;  %v4448_v19 = vld [vmem:[%s5241_s1 + $0x130] sm:$0xff] (!%p128_p2)   ;;  %v4449_v20 = vld [vmem:[%s5241_s1 + $0x78] sm:$0xff] (!%p128_p2)   ;;  %v4451_v22 = vld [vmem:[%s5241_s1] sm:$0xff] (!%p128_p2)  }
   0xc   : > { %3918 = vmatpush3.bf16.msra.mxu0 (!%p128_p2), %v4438_v3  ;;  %3727 = vmatprep.subr.bf16.mxu1 (!%p128_p2), %v4439_v4  ;;  %v4450_v21 = vld [vmem:[%s5241_s1 + $0x138] sm:$0xff] (!%p128_p2)   ;;  %v3223_v24 = vld [vmem:[%s4586_s10 + $0x29] sm:$0xff] (!%p128_p2)  ;;  %v4452_v25 = vld [vmem:[%s5241_s1 + $0x140] sm:$0xff] (!%p128_p2)  }
   0xd   : > { %3919 = vmatprep.subr.bf16.mxu0 %v4440_v5  ;;  %3739 = vmatprep.mubr.bf16.mxu1 %v253_v15  ;;  %v3224_v26 = vld [vmem:[%s4586_s10 + $0x31] sm:$0xff]  ;;  %v3225_v27 = vld [vmem:[%s4586_s10 + $0x39] sm:$0xff]  ;;  %v1355_v28 = vpack.c.bf16 %v3223_v24, %v3222_v23  ;;  %v4453_v29 = vld [vmem:[%s5241_s1 + $0x148] sm:$0xff]   ;;  %s5245_s6 = smov (!%p147_p3, %s3037_s6), 63 }
   0xe   : > { %3931 = vmatprep.mubr.bf16.mxu0 %v1354_v17  ;;  %v1356_v30 = vpack.c.bf16 %v3225_v27, %v3224_v26  ;;  %v4454_v31 = vld [vmem:[%s5241_s1 + $0x8] sm:$0xff]   ;;  %v4455_v34 = vld [vmem:[%s5241_s1 + $0x150] sm:$0xff]   ;;  %v3229_v37 = vld [vmem:[%s4586_s10 + $0x59] sm:$0xff]  ;;  %s3038_s8 = sshll.u32 %s5245_s6, 3 }
   0xf   : > { %3728 = vmatpush3.bf16.msra.mxu1 %v4439_v4  ;;  %v3226_v32 = vld [vmem:[%s4586_s10 + $0x41] sm:$0xff]  ;;  %v3227_v33 = vld [vmem:[%s4586_s10 + $0x49] sm:$0xff]  ;;  %v3228_v35 = vld [vmem:[%s4586_s10 + $0x51] sm:$0xff]  ;;  %s5168_s11 = scalar_lea.vmem %s5243_s3, %s3038_s8 }
  0x10   : > { %3920 = vmatpush3.bf16.msra.mxu0 %v4440_v5  ;;  %3729 = vmatprep.subr.bf16.mxu1 %v4441_v6  ;;  %v4457_v36 = vld [vmem:[%s5241_s1 + $0x10] sm:$0xff]   ;;  %v1357_v38 = vpack.c.bf16 %v3227_v33, %v3226_v32  ;;  %v1358_v39 = vpack.c.bf16 %v3229_v37, %v3228_v35  ;;  %v4456_v40 = vld [vmem:[%s5241_s1 + $0x158] sm:$0xff]   ;;  %v3230_v42 = vld [vmem:[%s4586_s10 + $0x61] sm:$0xff] }
  0x11   : > { %3921 = vmatprep.subr.bf16.mxu0 %v4442_v7  ;;  %v4460_v41 = vld [vmem:[%s5241_s1 + $0x18] sm:$0xff]   ;;  %v3231_v43 = vld [vmem:[%s4586_s10 + $0x69] sm:$0xff]  ;;  %v4458_v44 = vld [vmem:[%s5241_s1 + $0x160] sm:$0xff]  }
  0x12   : > { %v3232_v45 = vld [vmem:[%s4586_s10 + $0x71] sm:$0xff]  ;;  %v3233_v46 = vld [vmem:[%s4586_s10 + $0x79] sm:$0xff]  ;;  %v1359_v48 = vpack.c.bf16 %v3231_v43, %v3230_v42  ;;  %v4459_v50 = vld [vmem:[%s5241_s1 + $0x168] sm:$0xff]  }
  0x13   : > { %3730 = vmatpush3.bf16.msra.mxu1 %v4441_v6  ;;  %v4463_v47 = vld [vmem:[%s5241_s1 + $0x20] sm:$0xff]   ;;  %v4652_v49 = vpack.c.bf16 %v3233_v46, %v3232_v45  ;;  %v4465_v51 = vld [vmem:[%s5241_s1 + $0x28] sm:$0xff]   ;;  %v4461_v54 = vld [vmem:[%s5241_s1 + $0x170] sm:$0xff]  }
  0x14   : > { %3922 = vmatpush3.bf16.msra.mxu0 %v4442_v7  ;;  %3731 = vmatprep.subr.bf16.mxu1 %v4443_v8  ;;  %v3234_v52 = vld [vmem:[%s4586_s10 + $0x81] sm:$0xff]  ;;  %v3235_v53 = vld [vmem:[%s4586_s10 + $0x89] sm:$0xff]  ;;  %v3277_v55 = vld [vmem:[%s4586_s10 + $0x12] sm:$0xff] }
  0x15   : > { %3923 = vmatprep.subr.bf16.mxu0 %v4444_v9  ;;  %v3278_v56 = vld [vmem:[%s4586_s10 + $0x1a] sm:$0xff]  ;;  %v4467_v57 = vld [vmem:[%s5241_s1 + $0x30] sm:$0xff]   ;;  %v1361_v58 = vpack.c.bf16 %v3235_v53, %v3234_v52  ;;  %v3279_v63 = vld [vmem:[%s4586_s10 + $0x22] sm:$0xff] }
  0x16   : > { %v4671_v59 = vpack.c.bf16 %v3278_v56, %v3277_v55  ;;  %v4462_v60 = vld [vmem:[%s5241_s1 + $0x178] sm:$0xff]   ;;  %v3280_v1 = vld [vmem:[%s4586_s10 + $0x2a] sm:$0xff]  ;;  %v3061_v2 = vld [vmem:[%s4586_s10 + $0xa1] sm:$0xff] }
  0x17   : > { %3732 = vmatpush3.bf16.msra.mxu1 %v4443_v8  ;;  %v3059_v61 = vld [vmem:[%s4586_s10 + $0x91] sm:$0xff]  ;;  %v3060_v62 = vld [vmem:[%s4586_s10 + $0x99] sm:$0xff]  ;;  %v3062_v3 = vld [vmem:[%s4586_s10 + $0xa9] sm:$0xff] }
  0x18   : > { %3924 = vmatpush3.bf16.msra.mxu0 %v4444_v9  ;;  %3733 = vmatprep.subr.bf16.mxu1 %v4445_v10  ;;  %v4469_v0 = vld [vmem:[%s5241_s1 + $0x38] sm:$0xff]   ;;  %v4464_v4 = vld [vmem:[%s5241_s1 + $0x180] sm:$0xff]   ;;  %v4692_v7 = vpack.c.bf16 %v3060_v62, %v3059_v61  ;;  %v4699_v9 = vpack.c.bf16 %v3280_v1, %v3279_v63  ;;  %v4466_v12 = vld [vmem:[%s5241_s1 + $0x188] sm:$0xff]  }
  0x19   : > { %3925 = vmatprep.subr.bf16.mxu0 %v4446_v11  ;;  %v3281_v5 = vld [vmem:[%s4586_s10 + $0x32] sm:$0xff]  ;;  %v3282_v6 = vld [vmem:[%s4586_s10 + $0x3a] sm:$0xff]  ;;  %v3283_v15 = vld [vmem:[%s4586_s10 + $0x42] sm:$0xff] }
  0x1a   : > { %v4697_v8 = vld [vmem:[%s5241_s1 + $0x80] sm:$0xff]   ;;  %v3063_v13 = vld [vmem:[%s4586_s10 + $0xb1] sm:$0xff]  ;;  %v3070_v32 = vld [vmem:[%s4586_s10 + $0xe9] sm:$0xff] }
  0x1b   : > { %3734 = vmatpush3.bf16.msra.mxu1 %v4445_v10  ;;  %v4701_v10 = vpack.c.bf16 %v3062_v3, %v3061_v2  ;;  %v3064_v14 = vld [vmem:[%s4586_s10 + $0xb9] sm:$0xff]  ;;  %v3284_v16 = vld [vmem:[%s4586_s10 + $0x4a] sm:$0xff]  ;;  %v3291_v43 = vld [vmem:[%s4586_s10 + $0x82] sm:$0xff] }
  0x1c   : > { %3926 = vmatpush3.bf16.msra.mxu0 %v4446_v11  ;;  %3735 = vmatprep.subr.bf16.mxu1 %v4447_v18  ;;  %v4703_v11 = vpack.c.bf16 %v3282_v6, %v3281_v5  ;;  %v4726_v23 = vpack.c.bf16 %v3284_v16, %v3283_v15  ;;  %v3067_v26 = vld [vmem:[%s4586_s10 + $0xd1] sm:$0xff]  ;;  %v4472_v35 = vld [vmem:[%s5241_s1 + $0x1a0] sm:$0xff]   ;;  %v4474_v42 = vld [vmem:[%s5241_s1 + $0x1a8] sm:$0xff]  }
  0x1d   : > { %3927 = vmatprep.subr.bf16.mxu0 %v4448_v19  ;;  %v4470_v27 = vld [vmem:[%s5241_s1 + $0x198] sm:$0xff]   ;;  %v155_v45 = vld [vmem:[%s4586_s10] sm:$0xff]  ;;  %v156_v46 = vld [vmem:[%s4586_s10 + $0x8] sm:$0xff] }
  0x1e   : > { %v3289_v33 = vld [vmem:[%s4586_s10 + $0x72] sm:$0xff]  ;;  %v187_v53 = vpack.c.bf16 %v156_v46, %v155_v45  ;;  %v159_v61 = vld [vmem:[%s4586_s10 + $0x20] sm:$0xff]  ;;  %v160_v62 = vld [vmem:[%s4586_s10 + $0x28] sm:$0xff] }
  0x1f   : > { %3736 = vmatpush3.bf16.msra.mxu1 %v4447_v18  ;;  %v3066_v18 = vld [vmem:[%s4586_s10 + $0xc9] sm:$0xff]  ;;  %v158_v56 = vld [vmem:[%s4586_s10 + $0x18] sm:$0xff]  ;;  %v4799_v1 = vld [vmem:[%s5241_s1 + $0x1c0] sm:$0xff]  }
  0x20   : > { %3928 = vmatpush3.bf16.msra.mxu0 %v4448_v19  ;;  %3737 = vmatprep.subr.bf16.mxu1 %v4449_v20  ;;  %v3285_v19 = vld [vmem:[%s4586_s10 + $0x52] sm:$0xff]  ;;  %v3300_v15 = vld [vmem:[%s4586_s10 + $0xca] sm:$0xff]  ;;  %v163_v16 = vld [vmem:[%s4586_s10 + $0x40] sm:$0xff] }
  0x21   : > { %3929 = vmatprep.subr.bf16.mxu0 %v4450_v21  ;;  %v157_v55 = vld [vmem:[%s4586_s10 + $0x10] sm:$0xff]  ;;  %v4481_v46 = vld [vmem:[%s5241_s1 + $0xa8] sm:$0xff]  }
  0x22   : > { %v3297_v63 = vld [vmem:[%s4586_s10 + $0xb2] sm:$0xff]  ;;  %v4801_v2 = vpack.c.bf16 %v158_v56, %v157_v55  ;;  %v171_v55 = vld [vmem:[%s4586_s10 + $0x80] sm:$0xff]  ;;  %v172_v56 = vld [vmem:[%s4586_s10 + $0x88] sm:$0xff] }
  0x23   : > { %3738 = vmatpush3.bf16.msra.mxu1 %v4449_v20  ;;  %v3286_v20 = vld [vmem:[%s4586_s10 + $0x5a] sm:$0xff]  ;;  %v161_v6 = vld [vmem:[%s4586_s10 + $0x30] sm:$0xff] }
  0x24   : > { %3930 = vmatpush3.bf16.msra.mxu0 %v4450_v21  ;;  %3771 = vmatprep.subr.bf16.mxu1 %v4451_v22  ;;  %v4468_v21 = vld [vmem:[%s5241_s1 + $0x190] sm:$0xff]  }
  0x25   : > { %3963 = vmatprep.subr.bf16.mxu0 %v4452_v25 }
  0x26   : > { %3740 = vmatmul.mubr.bf16.vlgmr.msra.gmra.mrb[0].mxu1 %v1354_v17  ;;  %v3065_v17 = vld [vmem:[%s4586_s10 + $0xc1] sm:$0xff] }
  0x27   : > { %3932 = vmatmul.mubr.bf16.vlgmr.msra.gmra.mrb[0].mxu0 %v1355_v28  ;;  %3772 = vmatpush3.bf16.msra.mxu1 %v4451_v22  ;;  %v4724_v22 = vpack.c.bf16 %v3064_v14, %v3063_v13  ;;  %v4728_v24 = vpack.c.bf16 %v3066_v18, %v3065_v17  ;;  %v4473_v13 = vld [vmem:[%s5241_s1 + $0x88] sm:$0xff]   ;;  %v3301_v18 = vld [vmem:[%s4586_s10 + $0xd2] sm:$0xff] }
  0x28   : > { %3964 = vmatpush3.bf16.msra.mxu0 %v4452_v25  ;;  %3743 = vmatprep.mubr.bf16.mxu1 %v1355_v28  ;;  %v4730_v25 = vpack.c.bf16 %v3286_v20, %v3285_v19  ;;  %v3068_v28 = vld [vmem:[%s4586_s10 + $0xd9] sm:$0xff]  ;;  %v3299_v14 = vld [vmem:[%s4586_s10 + $0xc2] sm:$0xff]  ;;  %v4475_v19 = vld [vmem:[%s5241_s1 + $0x90] sm:$0xff]  }
  0x29   : > { %3965 = vmatprep.subr.bf16.mxu0 %v4453_v29  ;;  %3935 = vmatprep.mubr.bf16.mxu0 %v1356_v30  ;;  %v164_v17 = vld [vmem:[%s4586_s10 + $0x48] sm:$0xff]  ;;  %v3302_v20 = vld [vmem:[%s4586_s10 + $0xda] sm:$0xff] }
  0x2a   : > { %3773 = vmatprep.subr.bf16.mxu1 %v4454_v31 }
  0x2b   : > { %3774 = vmatpush3.bf16.msra.mxu1 %v4454_v31  ;;  %v3069_v31 = vld [vmem:[%s4586_s10 + $0xe1] sm:$0xff] }
  0x2c   : > { %3966 = vmatpush3.bf16.msra.mxu0 %v4453_v29  ;;  %3775 = vmatprep.subr.bf16.mxu1 %v4457_v36  ;;  %v3287_v29 = vld [vmem:[%s4586_s10 + $0x62] sm:$0xff] }
  0x2d   : > { %3967 = vmatprep.subr.bf16.mxu0 %v4455_v34 }
  0x2e   : > { %3744 = vmatmul.mubr.bf16.gmra.mrb[4].mxu1 %v1356_v30  ;;  %v3288_v30 = vld [vmem:[%s4586_s10 + $0x6a] sm:$0xff] }
  0x2f   : > { %3936 = vmatmul.mubr.bf16.gmra.mrb[4].mxu0 %v1357_v38  ;;  %3747 = vmatprep.mubr.bf16.mxu1 %v1357_v38  ;;  %v4752_v37 = vpack.c.bf16 %v3288_v30, %v3287_v29  ;;  %v4754_v38 = vpack.c.bf16 %v3070_v32, %v3069_v31  ;;  %v166_v29 = vld [vmem:[%s4586_s10 + $0x58] sm:$0xff]  ;;  %v3303_v31 = vld [vmem:[%s4586_s10 + $0xe2] sm:$0xff]  ;;  %v3304_v32 = vld [vmem:[%s4586_s10 + $0xea] sm:$0xff] }
  0x30   : > { %3968 = vmatpush3.bf16.msra.mxu0 %v4455_v34  ;;  %3939 = vmatprep.mubr.bf16.mxu0 %v1358_v39  ;;  %v3290_v34 = vld [vmem:[%s4586_s10 + $0x7a] sm:$0xff] }
  0x31   : > { %3969 = vmatprep.subr.bf16.mxu0 %v4456_v40  ;;  %3776 = vmatpush3.bf16.msra.mxu1 %v4457_v36  ;;  %v4750_v36 = vpack.c.bf16 %v3068_v28, %v3067_v26  ;;  %v4833_v26 = vpack.c.bf16 %v164_v17, %v163_v16  ;;  %v165_v28 = vld [vmem:[%s4586_s10 + $0x50] sm:$0xff]  ;;  %v4477_v30 = vld [vmem:[%s5241_s1 + $0x98] sm:$0xff]   ;;  %v4482_v16 = vld [vmem:[%s5241_s1 + $0x1c8] sm:$0xff]  }
  0x32   : > { %3777 = vmatprep.subr.bf16.mxu1 %v4460_v41  ;;  %v177_v17 = vld [vmem:[%s4586_s10 + $0xb0] sm:$0xff] }
  0x34   : > { %3970 = vmatpush3.bf16.msra.mxu0 %v4456_v40  ;;  %v3071_v40 = vld [vmem:[%s4586_s10 + $0xf1] sm:$0xff] }
  0x35   : > { %3971 = vmatprep.subr.bf16.mxu0 %v4458_v44  ;;  %3778 = vmatpush3.bf16.msra.mxu1 %v4460_v41  ;;  %v3072_v41 = vld [vmem:[%s4586_s10 + $0xf9] sm:$0xff] }
  0x36   : > { %3748 = vmatmul.mubr.bf16.gmra.mrb[8].mxu1 %v1358_v39  ;;  %3779 = vmatprep.subr.bf16.mxu1 %v4463_v47  ;;  %v4756_v39 = vpack.c.bf16 %v3290_v34, %v3289_v33  ;;  %v167_v33 = vld [vmem:[%s4586_s10 + $0x60] sm:$0xff]  ;;  %v168_v34 = vld [vmem:[%s4586_s10 + $0x68] sm:$0xff] }
  0x37   : > { %3940 = vmatmul.mubr.bf16.gmra.mrb[8].mxu0 %v1359_v48  ;;  %3751 = vmatprep.mubr.bf16.mxu1 %v1359_v48  ;;  %v3294_v48 = vld [vmem:[%s4586_s10 + $0x9a] sm:$0xff] }
  0x38   : > { %3972 = vmatpush3.bf16.msra.mxu0 %v4458_v44  ;;  %3943 = vmatprep.mubr.bf16.mxu0 %v4652_v49  ;;  %v3292_v44 = vld [vmem:[%s4586_s10 + $0x8a] sm:$0xff] }
  0x39   : > { %3973 = vmatprep.subr.bf16.mxu0 %v4459_v50  ;;  %3780 = vmatpush3.bf16.msra.mxu1 %v4463_v47  ;;  %v3293_v47 = vld [vmem:[%s4586_s10 + $0x92] sm:$0xff]  ;;  %v4778_v52 = vpack.c.bf16 %v3292_v44, %v3291_v43  ;;  %v4857_v43 = vpack.c.bf16 %v3304_v32, %v3303_v31  ;;  %v4859_v44 = vpack.c.bf16 %v168_v34, %v167_v33  ;;  %v183_v33 = vld [vmem:[%s4586_s10 + $0xe0] sm:$0xff]  ;;  %v184_v34 = vld [vmem:[%s4586_s10 + $0xe8] sm:$0xff] }
  0x3a   : > { %3781 = vmatprep.subr.bf16.mxu1 %v4465_v51  ;;  %v181_v31 = vld [vmem:[%s4586_s10 + $0xd0] sm:$0xff]  ;;  %v182_v32 = vld [vmem:[%s4586_s10 + $0xd8] sm:$0xff] }
  0x3c   : > { %3974 = vmatpush3.bf16.msra.mxu0 %v4459_v50  ;;  %v4476_v50 = vld [vmem:[%s5241_s1 + $0x1b0] sm:$0xff]  }
  0x3d   : > { %3975 = vmatprep.subr.bf16.mxu0 %v4461_v54  ;;  %3782 = vmatpush3.bf16.msra.mxu1 %v4465_v51  ;;  %v4776_v51 = vpack.c.bf16 %v3072_v41, %v3071_v40  ;;  %v3306_v40 = vld [vmem:[%s4586_s10 + $0xfa] sm:$0xff] }
  0x3e   : > { %3752 = vmatmul.mubr.bf16.gmra.mrb[12].mxu1 %v4652_v49  ;;  %3783 = vmatprep.subr.bf16.mxu1 %v4467_v57  ;;  %v4479_v41 = vld [vmem:[%s5241_s1 + $0xa0] sm:$0xff]  }
  0x3f   : > { %3944 = vmatmul.mubr.bf16.gmra.mrb[12].mxu0 %v1361_v58  ;;  %3755 = vmatprep.mubr.bf16.mxu1 %v1361_v58  ;;  %v3295_v58 = vld [vmem:[%s4586_s10 + $0xa2] sm:$0xff] }
  0x40   : > { %3976 = vmatpush3.bf16.msra.mxu0 %v4461_v54  ;;  %3979 = vmatprep.mubr.bf16.mxu0 %v4671_v59  ;;  %v4780_v54 = vpack.c.bf16 %v3294_v48, %v3293_v47  ;;  %v169_v47 = vld [vmem:[%s4586_s10 + $0x70] sm:$0xff]  ;;  %v170_v48 = vld [vmem:[%s4586_s10 + $0x78] sm:$0xff] }
  0x41   : > { %3977 = vmatprep.subr.bf16.mxu0 %v4462_v60  ;;  %3784 = vmatpush3.bf16.msra.mxu1 %v4467_v57  ;;  %v4478_v57 = vld [vmem:[%s5241_s1 + $0x1b8] sm:$0xff]  }
  0x42   : > { %3785 = vmatprep.subr.bf16.mxu1 %v4469_v0 }
  0x44   : > { %3978 = vmatpush3.bf16.msra.mxu0 %v4462_v60  ;;  %v3296_v60 = vld [vmem:[%s4586_s10 + $0xaa] sm:$0xff] }
  0x45   : > { %4011 = vmatprep.subr.bf16.mxu0 %v4464_v4  ;;  %3786 = vmatpush3.bf16.msra.mxu1 %v4469_v0  ;;  %v3298_v0 = vld [vmem:[%s4586_s10 + $0xba] sm:$0xff]  ;;  %v4803_v3 = vpack.c.bf16 %v3296_v60, %v3295_v58  ;;  %v4879_v58 = vpack.c.bf16 %v170_v48, %v169_v47  ;;  %v185_v47 = vld [vmem:[%s4586_s10 + $0xf0] sm:$0xff] }
  0x46   : > { %3756 = vmatmul.mubr.bf16.gmra.mrb[16].mxu1 %v4692_v7  ;;  %3819 = vmatprep.subr.bf16.mxu1 %v4697_v8  ;;  %v4807_v5 = vpack.c.bf16 %v3298_v0, %v3297_v63  ;;  %v173_v63 = vld [vmem:[%s4586_s10 + $0x90] sm:$0xff]  ;;  %v174_v0 = vld [vmem:[%s4586_s10 + $0x98] sm:$0xff] }
  0x47   : > { %3980 = vmatmul.mubr.bf16.vlgmr.msra.gmra.mrb[0].mxu0 %v4699_v9  ;;  %3759 = vmatprep.mubr.bf16.mxu1 %v4701_v10  ;;  %v186_v48 = vld [vmem:[%s4586_s10 + $0xf8] sm:$0xff] }
  0x48   : > { %4012 = vmatpush3.bf16.msra.mxu0 %v4464_v4  ;;  %3983 = vmatprep.mubr.bf16.mxu0 %v4703_v11  ;;  %v4805_v4 = vpack.c.bf16 %v160_v62, %v159_v61  ;;  %v4881_v61 = vpack.c.bf16 %v172_v56, %v171_v55  ;;  %v4485_v62 = vld [vmem:[%s5241_s1 + $0xb8] sm:$0xff]   ;;  %v4492_v55 = vld [vmem:[%s5241_s1 + $0x1f0] sm:$0xff]   ;;  %v4954_v56 = vpack.c.bf16 %v186_v48, %v185_v47  ;;  %v3399_v47 = vld [vmem:[%s4586_s10 + $0x61] sm:$0xff] }
  0x49   : > { %4013 = vmatprep.subr.bf16.mxu0 %v4466_v12  ;;  %v3400_v48 = vld [vmem:[%s4586_s10 + $0x69] sm:$0xff] }
  0x4c   : > { %4014 = vmatpush3.bf16.msra.mxu0 %v4466_v12  ;;  %v162_v12 = vld [vmem:[%s4586_s10 + $0x38] sm:$0xff] }
  0x4d   : > { %4015 = vmatprep.subr.bf16.mxu0 %v4468_v21 }
  0x4e   : > { %3760 = vmatmul.mubr.bf16.gmra.mrb[20].mxu1 %v4724_v22 }
  0x4f   : > { %3984 = vmatmul.mubr.bf16.gmra.mrb[4].mxu0 %v4726_v23  ;;  %3763 = vmatprep.mubr.bf16.mxu1 %v4728_v24 }
  0x50   : > { %3987 = vmatprep.mubr.bf16.mxu0 %v4730_v25  ;;  %4016 = vmatpush3.bf16.msra.mxu0 %v4468_v21  ;;  %v4829_v21 = vpack.c.bf16 %v162_v12, %v161_v6  ;;  %v175_v6 = vld [vmem:[%s4586_s10 + $0xa0] sm:$0xff]  ;;  %v176_v12 = vld [vmem:[%s4586_s10 + $0xa8] sm:$0xff] }
  0x51   : > { %4017 = vmatprep.subr.bf16.mxu0 %v4470_v27 }
  0x54   : > { %4018 = vmatpush3.bf16.msra.mxu0 %v4470_v27  ;;  %v4835_v27 = vpack.c.bf16 %v3302_v20, %v3301_v18  ;;  %v178_v18 = vld [vmem:[%s4586_s10 + $0xb8] sm:$0xff]  ;;  %v180_v20 = vld [vmem:[%s4586_s10 + $0xc8] sm:$0xff] }
  0x55   : > { %4019 = vmatprep.subr.bf16.mxu0 %v4472_v35 }
  0x56   : > { %3764 = vmatmul.mubr.bf16.gmra.mrb[24].mxu1 %v4750_v36 }
  0x57   : > { %3988 = vmatmul.mubr.bf16.gmra.mrb[8].mxu0 %v4752_v37  ;;  %3767 = vmatprep.mubr.bf16.mxu1 %v4754_v38 }
  0x58   : > { %3991 = vmatprep.mubr.bf16.mxu0 %v4756_v39  ;;  %4020 = vmatpush3.bf16.msra.mxu0 %v4472_v35  ;;  %v3305_v35 = vld [vmem:[%s4586_s10 + $0xf2] sm:$0xff] }
  0x59   : > { %4021 = vmatprep.subr.bf16.mxu0 %v4474_v42  ;;  %v4861_v45 = vpack.c.bf16 %v3306_v40, %v3305_v35  ;;  %v4488_v35 = vld [vmem:[%s5241_s1 + $0x1e0] sm:$0xff]   ;;  %v4936_v40 = vpack.c.bf16 %v182_v32, %v181_v31  ;;  %v3396_v32 = vld [vmem:[%s4586_s10 + $0x49] sm:$0xff] }
  0x5a   : > { %v3395_v31 = vld [vmem:[%s4586_s10 + $0x41] sm:$0xff] }
  0x5c   : > { %4022 = vmatpush3.bf16.msra.mxu0 %v4474_v42  ;;  %v4855_v42 = vpack.c.bf16 %v166_v29, %v165_v28  ;;  %v4484_v28 = vld [vmem:[%s5241_s1 + $0x1d0] sm:$0xff]   ;;  %v4918_v29 = vpack.c.bf16 %v178_v18, %v177_v17  ;;  %v3391_v17 = vld [vmem:[%s4586_s10 + $0x21] sm:$0xff] }
  0x5d   : > { %4023 = vmatprep.subr.bf16.mxu0 %v4476_v50  ;;  %v3392_v18 = vld [vmem:[%s4586_s10 + $0x29] sm:$0xff] }
  0x5e   : > { %3768 = vmatmul.mubr.bf16.gmra.mrb[28].mxu1 %v4776_v51 }
  0x5f   : > { %3992 = vmatmul.mubr.bf16.gmra.mrb[12].mxu0 %v4778_v52  ;;  %3787 = vmatprep.mubr.bf16.mxu1 %v187_v53  ;;  %v3308_v53 = vld [vmem:[%s4586_s10 + $0x10a] sm:$0xff] }
  0x60   : > { %3995 = vmatprep.mubr.bf16.mxu0 %v4780_v54  ;;  %4024 = vmatpush3.bf16.msra.mxu0 %v4476_v50  ;;  %v3307_v50 = vld [vmem:[%s4586_s10 + $0x102] sm:$0xff] }
  0x61   : > { %4025 = vmatprep.subr.bf16.mxu0 %v4478_v57  ;;  %v1677_v60 = vpack.c.bf16 %v3308_v53, %v3307_v50  ;;  %v3106_v50 = vld [vmem:[%s4586_s10 + $0x2] sm:$0xff]  ;;  %v3107_v53 = vld [vmem:[%s4586_s10 + $0xa] sm:$0xff] }
  0x64   : > { %4026 = vmatpush3.bf16.msra.mxu0 %v4478_v57  ;;  %v4483_v57 = vld [vmem:[%s5241_s1 + $0xb0] sm:$0xff]  }
  0x65   : > { %4059 = vmatprep.subr.bf16.mxu0 %v4799_v1 }
  0x66   : > { %3788 = vmatmul.mubr.bf16.vlgmr.msra.gmra.mrb[0].mxu1 %v4801_v2 }
  0x67   : > { %3996 = vmatmul.mubr.bf16.gmra.mrb[16].mxu0 %v4803_v3  ;;  %3820 = vmatpush3.bf16.msra.mxu1 %v4697_v8  ;;  %v4831_v8 = vpack.c.bf16 %v3300_v15, %v3299_v14  ;;  %v4898_v14 = vpack.c.bf16 %v174_v0, %v173_v63  ;;  %v4900_v15 = vpack.c.bf16 %v176_v12, %v175_v6  ;;  %v4489_v63 = vld [vmem:[%s5241_s1 + $0xc8] sm:$0xff]   ;;  %v4491_v0 = vld [vmem:[%s5241_s1 + $0xd0] sm:$0xff]   ;;  %v4495_v12 = vld [vmem:[%s5241_s1 + $0xe0] sm:$0xff]  }
  0x68   : > { %3791 = vmatprep.mubr.bf16.mxu1 %v4805_v4  ;;  %3999 = vmatprep.mubr.bf16.mxu0 %v4807_v5  ;;  %v3363_v6 = vld [vmem:[%s4586_s10 + $0x108] sm:$0xff] }
  0x69   : > { %3821 = vmatprep.subr.bf16.mxu1 %v4473_v13 }
  0x6b   : > { %3822 = vmatpush3.bf16.msra.mxu1 %v4473_v13  ;;  %v4896_v13 = vld [vmem:[%s5241_s1 + $0xc0] sm:$0xff]  }
  0x6c   : > { %3823 = vmatprep.subr.bf16.mxu1 %v4475_v19 }
  0x6e   : > { %3792 = vmatmul.mubr.bf16.gmra.mrb[4].mxu1 %v4829_v21 }
  0x6f   : > { %4000 = vmatmul.mubr.bf16.gmra.mrb[20].mxu0 %v4831_v8  ;;  %3795 = vmatprep.mubr.bf16.mxu1 %v4833_v26 }
  0x70   : > { %4003 = vmatprep.mubr.bf16.mxu0 %v4835_v27  ;;  %3824 = vmatpush3.bf16.msra.mxu1 %v4475_v19  ;;  %v179_v19 = vld [vmem:[%s4586_s10 + $0xc0] sm:$0xff] }
  0x71   : > { %3825 = vmatprep.subr.bf16.mxu1 %v4477_v30 }
  0x74   : > { %3826 = vmatpush3.bf16.msra.mxu1 %v4477_v30  ;;  %v4920_v30 = vpack.c.bf16 %v180_v20, %v179_v19  ;;  %v2278_v20 = vpack.c.bf16 %v3392_v18, %v3391_v17  ;;  %v3460_v17 = vld [vmem:[%s4586_s10 + $0x82] sm:$0xff]  ;;  %v3461_v18 = vld [vmem:[%s4586_s10 + $0x8a] sm:$0xff] }
  0x75   : > { %3827 = vmatprep.subr.bf16.mxu1 %v4479_v41 }
  0x76   : > { %3796 = vmatmul.mubr.bf16.gmra.mrb[8].mxu1 %v4855_v42 }
  0x77   : > { %4004 = vmatmul.mubr.bf16.gmra.mrb[24].mxu0 %v4857_v43  ;;  %3799 = vmatprep.mubr.bf16.mxu1 %v4859_v44 }
  0x78   : > { %4007 = vmatprep.mubr.bf16.mxu0 %v4861_v45  ;;  %3828 = vmatpush3.bf16.msra.mxu1 %v4479_v41  ;;  %v4938_v41 = vpack.c.bf16 %v184_v34, %v183_v33  ;;  %v2280_v34 = vpack.c.bf16 %v3396_v32, %v3395_v31 }
  0x79   : > { %3829 = vmatprep.subr.bf16.mxu1 %v4481_v46 }
  0x7c   : > { %3830 = vmatpush3.bf16.msra.mxu1 %v4481_v46  ;;  %v4490_v46 = vld [vmem:[%s5241_s1 + $0x1e8] sm:$0xff]  }
  0x7d   : > { %3831 = vmatprep.subr.bf16.mxu1 %v4483_v57 }
  0x7e   : > { %3800 = vmatmul.mubr.bf16.gmra.mrb[12].mxu1 %v4879_v58 }
  0x7f   : > { %4008 = vmatmul.mubr.bf16.gmra.mrb[28].mxu0 %v1677_v60  ;;  %3803 = vmatprep.mubr.bf16.mxu1 %v4881_v61  ;;  %v4494_v60 = vld [vmem:[%s5241_s1 + $0x1f8] sm:$0xff]  }
  0x80   : > { %4027 = vmatprep.mubr.bf16.mxu0 %v4805_v4  ;;  %3832 = vmatpush3.bf16.msra.mxu1 %v4483_v57  ;;  %v738_v57 = vpack.c.bf16 %v3107_v53, %v3106_v50  ;;  %v4500_v50 = vld [vmem:[%s5241_s1 + $0x210] sm:$0xff]  }
  0x81   : > { %3833 = vmatprep.subr.bf16.mxu1 %v4485_v62 }
  0x84   : > { %3834 = vmatpush3.bf16.msra.mxu1 %v4485_v62  ;;  %v4496_v62 = vld [vmem:[%s5241_s1 + $0x200] sm:$0xff]  }
  0x85   : > { %3867 = vmatprep.subr.bf16.mxu1 %v4896_v13 }
  0x86   : > { %3804 = vmatmul.mubr.bf16.gmra.mrb[16].mxu1 %v4898_v14 }
  0x87   : > { %4028 = vmatmul.mubr.bf16.vlgmr.msra.gmra.mrb[0].mxu0 %v4829_v21  ;;  %3807 = vmatprep.mubr.bf16.mxu1 %v4900_v15 }
  0x88   : > { %4060 = vmatpush3.bf16.msra.mxu0 %v4799_v1  ;;  %4031 = vmatprep.mubr.bf16.mxu0 %v4833_v26  ;;  %v4486_v1 = vld [vmem:[%s5241_s1 + $0x1d8] sm:$0xff]  }
  0x89   : > { %4061 = vmatprep.subr.bf16.mxu0 %v4482_v16 }
  0x8c   : > { %4062 = vmatpush3.bf16.msra.mxu0 %v4482_v16  ;;  %v3365_v16 = vld [vmem:[%s4586_s10 + $0x118] sm:$0xff] }
  0x8d   : > { %4063 = vmatprep.subr.bf16.mxu0 %v4484_v28 }
  0x8e   : > { %3808 = vmatmul.mubr.bf16.gmra.mrb[20].mxu1 %v4918_v29 }
  0x8f   : > { %4032 = vmatmul.mubr.bf16.gmra.mrb[4].mxu0 %v4855_v42  ;;  %3811 = vmatprep.mubr.bf16.mxu1 %v4920_v30 }
  0x90   : > { %4035 = vmatprep.mubr.bf16.mxu0 %v4859_v44  ;;  %4064 = vmatpush3.bf16.msra.mxu0 %v4484_v28  ;;  %v3393_v28 = vld [vmem:[%s4586_s10 + $0x31] sm:$0xff] }
  0x91   : > { %4065 = vmatprep.subr.bf16.mxu0 %v4486_v1 }
  0x94   : > { %4066 = vmatpush3.bf16.msra.mxu0 %v4486_v1  ;;  %v3394_v1 = vld [vmem:[%s4586_s10 + $0x39] sm:$0xff] }
  0x95   : > { %4067 = vmatprep.subr.bf16.mxu0 %v4488_v35  ;;  %v2279_v33 = vpack.c.bf16 %v3394_v1, %v3393_v28  ;;  %v3464_v28 = vld [vmem:[%s4586_s10 + $0xa2] sm:$0xff]  ;;  %v3465_v1 = vld [vmem:[%s4586_s10 + $0xaa] sm:$0xff] }
  0x96   : > { %3812 = vmatmul.mubr.bf16.gmra.mrb[24].mxu1 %v4936_v40  ;;  %v2594_v32 = vpack.c.bf16 %v3465_v1, %v3464_v28 }
  0x97   : > { %4036 = vmatmul.mubr.bf16.gmra.mrb[8].mxu0 %v4879_v58  ;;  %3815 = vmatprep.mubr.bf16.mxu1 %v4938_v41 }
  0x98   : > { %4039 = vmatprep.mubr.bf16.mxu0 %v4881_v61  ;;  %4068 = vmatpush3.bf16.msra.mxu0 %v4488_v35  ;;  %v3397_v35 = vld [vmem:[%s4586_s10 + $0x51] sm:$0xff] }
  0x99   : > { %4069 = vmatprep.subr.bf16.mxu0 %v4490_v46 }
  0x9c   : > { %4070 = vmatpush3.bf16.msra.mxu0 %v4490_v46  ;;  %v3398_v46 = vld [vmem:[%s4586_s10 + $0x59] sm:$0xff] }
  0x9d   : > { %4071 = vmatprep.subr.bf16.mxu0 %v4492_v55  ;;  %v2281_v53 = vpack.c.bf16 %v3398_v46, %v3397_v35  ;;  %v3241_v35 = vld [vmem:[%s4586_s10 + $0xb9] sm:$0xff]  ;;  %v3468_v46 = vld [vmem:[%s4586_s10 + $0xc2] sm:$0xff] }
  0x9e   : > { %3816 = vmatmul.mubr.bf16.gmra.mrb[28].mxu1 %v4954_v56 }
  0x9f   : > { %4040 = vmatmul.mubr.bf16.gmra.mrb[12].mxu0 %v4898_v14  ;;  %3835 = vmatprep.mubr.bf16.mxu1 %v738_v57  ;;  %v3404_v57 = vld [vmem:[%s4586_s10 + $0x89] sm:$0xff] }
  0xa0   : > { %4043 = vmatprep.mubr.bf16.mxu0 %v4900_v15  ;;  %4072 = vmatpush3.bf16.msra.mxu0 %v4492_v55  ;;  %v2282_v55 = vpack.c.bf16 %v3400_v48, %v3399_v47  ;;  %v3469_v47 = vld [vmem:[%s4586_s10 + $0xca] sm:$0xff] }
  0xa1   : > { %4073 = vmatprep.subr.bf16.mxu0 %v4494_v60 }
  0xa4   : > { %4074 = vmatpush3.bf16.msra.mxu0 %v4494_v60  ;;  %v4503_v60 = vld [vmem:[%s5241_s1 + $0x220] sm:$0xff]  }
  0xa5   : > { %4107 = vmatprep.subr.bf16.mxu0 %v4496_v62 }
  0xa6   : > { %3836 = vmatmul.mubr.bf16.vlgmr.msra.gmra.mrb[0].mxu1 %v4671_v59  ;;  %v4493_v59 = vld [vmem:[%s5241_s1 + $0xd8] sm:$0xff]  }
  0xa7   : > { %4044 = vmatmul.mubr.bf16.gmra.mrb[16].mxu0 %v4918_v29  ;;  %3868 = vmatpush3.bf16.msra.mxu1 %v4896_v13 }
  0xa8   : > { %3839 = vmatprep.mubr.bf16.mxu1 %v4699_v9  ;;  %4047 = vmatprep.mubr.bf16.mxu0 %v4920_v30  ;;  %v3362_v9 = vld [vmem:[%s4586_s10 + $0x100] sm:$0xff] }
  0xa9   : > { %3869 = vmatprep.subr.bf16.mxu1 %v4489_v63  ;;  %v4988_v13 = vpack.c.bf16 %v3363_v6, %v3362_v9  ;;  %v3455_v6 = vld [vmem:[%s4586_s10 + $0x5a] sm:$0xff] }
  0xab   : > { %3870 = vmatpush3.bf16.msra.mxu1 %v4489_v63  ;;  %v4504_v63 = vld [vmem:[%s5241_s1 + $0x228] sm:$0xff]  }
  0xac   : > { %3871 = vmatprep.subr.bf16.mxu1 %v4491_v0 }
  0xae   : > { %3840 = vmatmul.mubr.bf16.gmra.mrb[4].mxu1 %v4703_v11  ;;  %v4497_v11 = vld [vmem:[%s5241_s1 + $0xe8] sm:$0xff]  }
  0xaf   : > { %4048 = vmatmul.mubr.bf16.gmra.mrb[20].mxu0 %v4936_v40  ;;  %3843 = vmatprep.mubr.bf16.mxu1 %v4726_v23  ;;  %v3364_v23 = vld [vmem:[%s4586_s10 + $0x110] sm:$0xff] }
  0xb0   : > { %4051 = vmatprep.mubr.bf16.mxu0 %v4938_v41  ;;  %3872 = vmatpush3.bf16.msra.mxu1 %v4491_v0  ;;  %v1985_v19 = vpack.c.bf16 %v3365_v16, %v3364_v23  ;;  %v3453_v0 = vld [vmem:[%s4586_s10 + $0x4a] sm:$0xff] }
  0xb1   : > { %3873 = vmatprep.subr.bf16.mxu1 %v4493_v59 }
  0xb4   : > { %3874 = vmatpush3.bf16.msra.mxu1 %v4493_v59  ;;  %v4514_v59 = vld [vmem:[%s5241_s1 + $0x138] sm:$0xff]  }
  0xb5   : > { %3875 = vmatprep.subr.bf16.mxu1 %v4495_v12 }
  0xb6   : > { %3844 = vmatmul.mubr.bf16.gmra.mrb[8].mxu1 %v4730_v25  ;;  %v4499_v25 = vld [vmem:[%s5241_s1 + $0xf0] sm:$0xff]  }
  0xb7   : > { %4052 = vmatmul.mubr.bf16.gmra.mrb[24].mxu0 %v4954_v56  ;;  %3847 = vmatprep.mubr.bf16.mxu1 %v4752_v37  ;;  %v4501_v37 = vld [vmem:[%s5241_s1 + $0xf8] sm:$0xff]  }
  0xb8   : > { %4055 = vmatprep.mubr.bf16.mxu0 %v4988_v13  ;;  %3876 = vmatpush3.bf16.msra.mxu1 %v4495_v12  ;;  %v3456_v12 = vld [vmem:[%s4586_s10 + $0x62] sm:$0xff] }
  0xb9   : > { %3877 = vmatprep.subr.bf16.mxu1 %v4497_v11 }
  0xbc   : > { %3878 = vmatpush3.bf16.msra.mxu1 %v4497_v11  ;;  %v3457_v11 = vld [vmem:[%s4586_s10 + $0x6a] sm:$0xff] }
  0xbd   : > { %3879 = vmatprep.subr.bf16.mxu1 %v4499_v25  ;;  %v2590_v16 = vpack.c.bf16 %v3457_v11, %v3456_v12 }
  0xbe   : > { %3848 = vmatmul.mubr.bf16.gmra.mrb[12].mxu1 %v4756_v39  ;;  %v4498_v39 = vld [vmem:[%s5241_s1 + $0x208] sm:$0xff]  }
  0xbf   : > { %4056 = vmatmul.mubr.bf16.gmra.mrb[28].mxu0 %v1985_v19  ;;  %3851 = vmatprep.mubr.bf16.mxu1 %v4778_v52  ;;  %v4507_v52 = vld [vmem:[%s5241_s1 + $0x100] sm:$0xff]   ;;  %v2592_v19 = vpack.c.bf16 %v3461_v18, %v3460_v17 }
  0xc0   : > { %4075 = vmatprep.mubr.bf16.mxu0 %v2278_v20  ;;  %3880 = vmatpush3.bf16.msra.mxu1 %v4499_v25  ;;  %v3236_v20 = vld [vmem:[%s4586_s10 + $0x91] sm:$0xff] }
  0xc1   : > { %3881 = vmatprep.subr.bf16.mxu1 %v4501_v37 }
  0xc4   : > { %3882 = vmatpush3.bf16.msra.mxu1 %v4501_v37  ;;  %v3237_v37 = vld [vmem:[%s4586_s10 + $0x99] sm:$0xff] }
  0xc5   : > { %4155 = vmatprep.subr.bf16.mxu1 %v4507_v52 }
  0xc6   : > { %3852 = vmatmul.mubr.bf16.gmra.mrb[16].mxu1 %v4780_v54  ;;  %v4502_v54 = vld [vmem:[%s5241_s1 + $0x218] sm:$0xff]  }
  0xc7   : > { %4076 = vmatmul.mubr.bf16.vlgmr.msra.gmra.mrb[0].mxu0 %v2279_v33  ;;  %3855 = vmatprep.mubr.bf16.mxu1 %v4803_v3  ;;  %v3403_v3 = vld [vmem:[%s4586_s10 + $0x81] sm:$0xff]  ;;  %v3239_v33 = vld [vmem:[%s4586_s10 + $0xa9] sm:$0xff] }
  0xc8   : > { %4108 = vmatpush3.bf16.msra.mxu0 %v4496_v62  ;;  %4079 = vmatprep.mubr.bf16.mxu0 %v2280_v34  ;;  %v2284_v62 = vpack.c.bf16 %v3404_v57, %v3403_v3  ;;  %v3466_v34 = vld [vmem:[%s4586_s10 + $0xb2] sm:$0xff]  ;;  %v3471_v57 = vld [vmem:[%s4586_s10 + $0xda] sm:$0xff] }
  0xc9   : > { %4109 = vmatprep.subr.bf16.mxu0 %v4498_v39  ;;  %v3470_v3 = vld [vmem:[%s4586_s10 + $0xd2] sm:$0xff] }
  0xcc   : > { %4110 = vmatpush3.bf16.msra.mxu0 %v4498_v39  ;;  %v3467_v39 = vld [vmem:[%s4586_s10 + $0xba] sm:$0xff] }
  0xcd   : > { %4111 = vmatprep.subr.bf16.mxu0 %v4500_v50  ;;  %v2595_v48 = vpack.c.bf16 %v3467_v39, %v3466_v34 }
  0xce   : > { %3856 = vmatmul.mubr.bf16.gmra.mrb[20].mxu1 %v4807_v5  ;;  %v4505_v5 = vld [vmem:[%s5241_s1 + $0x230] sm:$0xff]  }
  0xcf   : > { %4080 = vmatmul.mubr.bf16.gmra.mrb[4].mxu0 %v2281_v53  ;;  %3859 = vmatprep.mubr.bf16.mxu1 %v4831_v8  ;;  %v4506_v8 = vld [vmem:[%s5241_s1 + $0x238] sm:$0xff]   ;;  %v2596_v53 = vpack.c.bf16 %v3469_v47, %v3468_v46 }
  0xd0   : > { %4083 = vmatprep.mubr.bf16.mxu0 %v2282_v55  ;;  %4112 = vmatpush3.bf16.msra.mxu0 %v4500_v50  ;;  %v3242_v55 = vld [vmem:[%s4586_s10 + $0xc1] sm:$0xff] }
  0xd1   : > { %4113 = vmatprep.subr.bf16.mxu0 %v4502_v54 }
  0xd4   : > { %4114 = vmatpush3.bf16.msra.mxu0 %v4502_v54  ;;  %v3243_v54 = vld [vmem:[%s4586_s10 + $0xc9] sm:$0xff] }
  0xd5   : > { %4115 = vmatprep.subr.bf16.mxu0 %v4503_v60 }
  0xd6   : > { %3860 = vmatmul.mubr.bf16.gmra.mrb[24].mxu1 %v4835_v27  ;;  %v4512_v27 = vld [vmem:[%s5241_s1 + $0x128] sm:$0xff]  }
  0xd7   : > { %4084 = vmatmul.mubr.bf16.gmra.mrb[8].mxu0 %v4652_v49  ;;  %3863 = vmatprep.mubr.bf16.mxu1 %v4857_v43  ;;  %v4508_v49 = vld [vmem:[%s5241_s1 + $0x108] sm:$0xff]   ;;  %v4513_v43 = vld [vmem:[%s5241_s1 + $0x130] sm:$0xff]  }
  0xd8   : > { %4087 = vmatprep.mubr.bf16.mxu0 %v2284_v62  ;;  %4116 = vmatpush3.bf16.msra.mxu0 %v4503_v60  ;;  %v3244_v60 = vld [vmem:[%s4586_s10 + $0xd1] sm:$0xff]  ;;  %v3245_v62 = vld [vmem:[%s4586_s10 + $0xd9] sm:$0xff] }
  0xd9   : > { %4117 = vmatprep.subr.bf16.mxu0 %v4504_v63 }
  0xdc   : > { %4118 = vmatpush3.bf16.msra.mxu0 %v4504_v63  ;;  %v3472_v63 = vld [vmem:[%s4586_s10 + $0xe2] sm:$0xff] }
  0xdd   : > { %4119 = vmatprep.subr.bf16.mxu0 %v4505_v5 }
  0xde   : > { %3864 = vmatmul.mubr.bf16.gmra.mrb[28].mxu1 %v4861_v45  ;;  %v3451_v45 = vld [vmem:[%s4586_s10 + $0x3a] sm:$0xff] }
  0xdf   : > { %4088 = vmatmul.mubr.bf16.gmra.mrb[12].mxu0 %v4692_v7  ;;  %3883 = vmatprep.mubr.bf16.mxu1 %v4801_v2  ;;  %v4509_v7 = vld [vmem:[%s5241_s1 + $0x110] sm:$0xff]  }
  0xe0   : > { %4091 = vmatprep.mubr.bf16.mxu0 %v4701_v10  ;;  %4120 = vmatpush3.bf16.msra.mxu0 %v4505_v5  ;;  %v3419_v10 = vld [vmem:[%s4586_s10 + $0x101] sm:$0xff]  ;;  %v3473_v5 = vld [vmem:[%s4586_s10 + $0xea] sm:$0xff] }
  0xe1   : > { %4121 = vmatprep.subr.bf16.mxu0 %v4506_v8 }
  0xe4   : > { %4122 = vmatpush3.bf16.msra.mxu0 %v4506_v8  ;;  %v1365_v8 = vpack.c.bf16 %v3243_v54, %v3242_v55 }
  0xe6   : > { %3884 = vmatmul.mubr.bf16.vlgmr.msra.gmra.mrb[0].mxu1 %v4805_v4  ;;  %v3422_v4 = vld [vmem:[%s4586_s10 + $0x119] sm:$0xff] }
  0xe7   : > { %4092 = vmatmul.mubr.bf16.gmra.mrb[16].mxu0 %v4724_v22  ;;  %4163 = vmatpush3.bf16.msra.mxu1 %v4507_v52  ;;  %v3420_v22 = vld [vmem:[%s4586_s10 + $0x109] sm:$0xff]  ;;  %v3240_v52 = vld [vmem:[%s4586_s10 + $0xb1] sm:$0xff] }
  0xe8   : > { %3887 = vmatprep.mubr.bf16.mxu1 %v4829_v21  ;;  %4095 = vmatprep.mubr.bf16.mxu0 %v4728_v24  ;;  %v4510_v24 = vld [vmem:[%s5241_s1 + $0x118] sm:$0xff]   ;;  %v5073_v2 = vpack.c.bf16 %v3420_v22, %v3419_v10  ;;  %v3448_v21 = vld [vmem:[%s4586_s10 + $0x22] sm:$0xff]  ;;  %v1364_v50 = vpack.c.bf16 %v3241_v35, %v3240_v52  ;;  %v2598_v10 = vpack.c.bf16 %v3473_v5, %v3472_v63 }
  0xe9   : > { %4156 = vmatprep.subr.bf16.mxu1 %v4508_v49  ;;  %v3246_v22 = vld [vmem:[%s4586_s10 + $0xe1] sm:$0xff] }
  0xeb   : > { %4164 = vmatpush3.bf16.msra.mxu1 %v4508_v49  ;;  %v2597_v49 = vpack.c.bf16 %v3471_v57, %v3470_v3 }
  0xec   : > { %4157 = vmatprep.subr.bf16.mxu1 %v4509_v7 }
  0xee   : > { %3888 = vmatmul.mubr.bf16.gmra.mrb[4].mxu1 %v4833_v26  ;;  %v3449_v26 = vld [vmem:[%s4586_s10 + $0x2a] sm:$0xff] }
  0xef   : > { %4096 = vmatmul.mubr.bf16.gmra.mrb[20].mxu0 %v4750_v36  ;;  %3891 = vmatprep.mubr.bf16.mxu1 %v4855_v42  ;;  %v4511_v36 = vld [vmem:[%s5241_s1 + $0x120] sm:$0xff]  }
  0xf0   : > { %4099 = vmatprep.mubr.bf16.mxu0 %v4754_v38  ;;  %4165 = vmatpush3.bf16.msra.mxu1 %v4509_v7  ;;  %v3421_v38 = vld [vmem:[%s4586_s10 + $0x111] sm:$0xff]  ;;  %v1366_v7 = vpack.c.bf16 %v3245_v62, %v3244_v60 }
  0xf1   : > { %4158 = vmatprep.subr.bf16.mxu1 %v4510_v24  ;;  %v2293_v42 = vpack.c.bf16 %v3422_v4, %v3421_v38  ;;  %v3475_v38 = vld [vmem:[%s4586_s10 + $0xfa] sm:$0xff]  ;;  %v3248_v4 = vld [vmem:[%s4586_s10 + $0xf1] sm:$0xff] }
  0xf4   : > { %4166 = vmatpush3.bf16.msra.mxu1 %v4510_v24  ;;  %v3247_v24 = vld [vmem:[%s4586_s10 + $0xe9] sm:$0xff] }
  0xf5   : > { %4159 = vmatprep.subr.bf16.mxu1 %v4511_v36 }
  0xf6   : > { %3892 = vmatmul.mubr.bf16.gmra.mrb[8].mxu1 %v4859_v44  ;;  %v3450_v44 = vld [vmem:[%s4586_s10 + $0x32] sm:$0xff] }
  0xf7   : > { %4100 = vmatmul.mubr.bf16.gmra.mrb[24].mxu0 %v4776_v51  ;;  %3895 = vmatprep.mubr.bf16.mxu1 %v4879_v58  ;;  %v2586_v51 = vpack.c.bf16 %v3449_v26, %v3448_v21  ;;  %v3452_v58 = vld [vmem:[%s4586_s10 + $0x42] sm:$0xff]  ;;  %v2587_v9 = vpack.c.bf16 %v3451_v45, %v3450_v44  ;;  %v3249_v21 = vld [vmem:[%s4586_s10 + $0xf9] sm:$0xff] }
  0xf8   : > { %4103 = vmatprep.mubr.bf16.mxu0 %v5073_v2  ;;  %4167 = vmatpush3.bf16.msra.mxu1 %v4511_v36  ;;  %v3474_v36 = vld [vmem:[%s4586_s10 + $0xf2] sm:$0xff]  ;;  %v3476_v26 = vld [vmem:[%s4586_s10 + $0x102] sm:$0xff] }
  0xf9   : > { %4160 = vmatprep.subr.bf16.mxu1 %v4512_v27  ;;  %v3478_v45 = vld [vmem:[%s4586_s10 + $0x112] sm:$0xff] }
  0xfc   : > { %4168 = vmatpush3.bf16.msra.mxu1 %v4512_v27  ;;  %v3477_v27 = vld [vmem:[%s4586_s10 + $0x10a] sm:$0xff] }
  0xfd   : > { %4161 = vmatprep.subr.bf16.mxu1 %v4513_v43  ;;  %v2600_v44 = vpack.c.bf16 %v3477_v27, %v3476_v26 }
  0xfe   : > { %3896 = vmatmul.mubr.bf16.gmra.mrb[12].mxu1 %v4881_v61  ;;  %v2588_v61 = vpack.c.bf16 %v3453_v0, %v3452_v58  ;;  %v3479_v58 = vld [vmem:[%s4586_s10 + $0x11a] sm:$0xff] }
  0xff   : > { %4104 = vmatmul.mubr.bf16.gmra.mrb[28].mxu0 %v2293_v42  ;;  %3899 = vmatprep.mubr.bf16.mxu1 %v4898_v14  ;;  %v3454_v14 = vld [vmem:[%s4586_s10 + $0x52] sm:$0xff]  ;;  %v1367_v42 = vpack.c.bf16 %v3247_v24, %v3246_v22  ;;  %v2601_v0 = vpack.c.bf16 %v3479_v58, %v3478_v45 }
 0x100   : > { %4123 = vmatprep.mubr.bf16.mxu0 %v2586_v51  ;;  %4169 = vmatpush3.bf16.msra.mxu1 %v4513_v43  ;;  %v2589_v23 = vpack.c.bf16 %v3455_v6, %v3454_v14  ;;  %v2599_v51 = vpack.c.bf16 %v3475_v38, %v3474_v36  ;;  %v1368_v43 = vpack.c.bf16 %v3249_v21, %v3248_v4 }
 0x101   : > { %4162 = vmatprep.subr.bf16.mxu1 %v4514_v59 }
 0x104   : > { %4170 = vmatpush3.bf16.msra.mxu1 %v4514_v59 }
 0x106   : > { %3900 = vmatmul.mubr.bf16.gmra.mrb[16].mxu1 %v4900_v15  ;;  %v3458_v15 = vld [vmem:[%s4586_s10 + $0x72] sm:$0xff] }
 0x107   : > { %4124 = vmatmul.mubr.bf16.vlgmr.msra.gmra.mrb[0].mxu0 %v2587_v9  ;;  %3903 = vmatprep.mubr.bf16.mxu1 %v4918_v29  ;;  %v3459_v29 = vld [vmem:[%s4586_s10 + $0x7a] sm:$0xff] }
 0x108   : > { %4127 = vmatprep.mubr.bf16.mxu0 %v2588_v61  ;;  %v2591_v25 = vpack.c.bf16 %v3459_v29, %v3458_v15 }
 0x10e   : > { %3904 = vmatmul.mubr.bf16.gmra.mrb[20].mxu1 %v4920_v30  ;;  %v3462_v30 = vld [vmem:[%s4586_s10 + $0x92] sm:$0xff] }
 0x10f   : > { %4128 = vmatmul.mubr.bf16.gmra.mrb[4].mxu0 %v2589_v23  ;;  %3907 = vmatprep.mubr.bf16.mxu1 %v4936_v40  ;;  %v3463_v40 = vld [vmem:[%s4586_s10 + $0x9a] sm:$0xff] }
 0x110   : > { %4131 = vmatprep.mubr.bf16.mxu0 %v2590_v16  ;;  %v2593_v31 = vpack.c.bf16 %v3463_v40, %v3462_v30  ;;  %v5162_v40 = vld [vmem:[%s5242_s2] ss:$0 sm:$0xff] }
 0x116   : > { %3908 = vmatmul.mubr.bf16.gmra.mrb[24].mxu1 %v4938_v41  ;;  %v1362_v41 = vpack.c.bf16 %v3237_v37, %v3236_v20 }
 0x117   : > { %4132 = vmatmul.mubr.bf16.gmra.mrb[8].mxu0 %v2591_v25  ;;  %3911 = vmatprep.mubr.bf16.mxu1 %v4954_v56  ;;  %v3238_v56 = vld [vmem:[%s4586_s10 + $0xa1] sm:$0xff] }
 0x118   : > { %4135 = vmatprep.mubr.bf16.mxu0 %v2592_v19 }
 0x11e   : > { %3912 = vmatmul.mubr.bf16.gmra.mrb[28].mxu1 %v4988_v13  ;;  %v1363_v13 = vpack.c.bf16 %v3239_v33, %v3238_v56 }
 0x11f   : > { %4136 = vmatmul.mubr.bf16.gmra.mrb[12].mxu0 %v2593_v31  ;;  %3947 = vmatprep.mubr.bf16.mxu1 %v1362_v41 }
 0x120   : > { %4139 = vmatprep.mubr.bf16.mxu0 %v2594_v32 }
 0x126   : > { %3948 = vmatmul.mubr.bf16.vlgmr.msra.gmra.mrb[16].mxu1 %v1363_v13 }
 0x127   : > { %4140 = vmatmul.mubr.bf16.gmra.mrb[16].mxu0 %v2595_v48  ;;  %3951 = vmatprep.mubr.bf16.mxu1 %v1364_v50 }
 0x128   : > { %4143 = vmatprep.mubr.bf16.mxu0 %v2596_v53 }
 0x12e   : > { %3952 = vmatmul.mubr.bf16.gmra.mrb[20].mxu1 %v1365_v8 }
 0x12f   : > { %4144 = vmatmul.mubr.bf16.gmra.mrb[20].mxu0 %v2597_v49  ;;  %3955 = vmatprep.mubr.bf16.mxu1 %v1366_v7 }
 0x130   : > { %4147 = vmatprep.mubr.bf16.mxu0 %v2598_v10 }
 0x136   : > { %3956 = vmatmul.mubr.bf16.gmra.mrb[24].mxu1 %v1367_v42 }
 0x137   : > { %4148 = vmatmul.mubr.bf16.gmra.mrb[24].mxu0 %v2599_v51  ;;  %3959 = vmatprep.mubr.bf16.mxu1 %v1368_v43 }
 0x138   : > { %4151 = vmatprep.mubr.bf16.mxu0 %v2600_v44 }
 0x13e   : > { %3960 = vmatmul.mubr.bf16.gmra.mrb[28].mxu1 %v5073_v2 }
 0x13f   : > { %4152 = vmatmul.mubr.bf16.gmra.mrb[28].mxu0 %v2601_v0 }
 0x1b9   : > { %v3885_v59 = vpop.f32.mrb[0].mxu1 }
 0x1ba   : > { %v1161_v9 = vpop.f32.mrb[1].mxu1 }
 0x1bb   : > { %v3886_v61 = vpop.f32.mrb[2].mxu1 }
 0x1bc   : > { %v1164_v14 = vpop.f32.mrb[3].mxu1 }
 0x1c1   : > { %v3889_v6 = vpop.f32.mrb[4].mxu1 }
 0x1c2   : > { %v1177_v12 = vpop.f32.mrb[5].mxu1 }
 0x1c3   : > { %v3890_v11 = vpop.f32.mrb[6].mxu1 }
 0x1c4   : > { %v1180_v23 = vpop.f32.mrb[7].mxu1 }
 0x1c9   : > { %v3893_v16 = vpop.f32.mrb[8].mxu1 }
 0x1ca   : > { %v1193_v15 = vpop.f32.mrb[9].mxu1 }
 0x1cb   : > { %v3894_v29 = vpop.f32.mrb[10].mxu1 }
 0x1cc   : > { %v1196_v17 = vpop.f32.mrb[11].mxu1 }
 0x1d1   : > { %v5151_v18 = vpop.f32.mrb[12].mxu1 }
 0x1d2   : > { %v5153_v25 = vpop.f32.mrb[13].mxu1 }
 0x1d3   : > { %v5155_v2 = vpop.f32.mrb[14].mxu1 }
 0x1d4   : > { %v5157_v19 = vpop.f32.mrb[15].mxu1 }
 0x1da   : > { %v4125_v30 = vpop.f32.mrb[0].mxu0 }
 0x1db   : > { %v4171_v20 = vadd.f32 %v4125_v30, %v3885_v59  ;;  %v2701_v37 = vpop.f32.mrb[1].mxu0 }
 0x1dc   : > { %v4172_v28 = vadd.f32 %v2701_v37, %v1161_v9  ;;  %v4126_v1 = vpop.f32.mrb[2].mxu0 }
 0x1dd   : > { %v2869_v31 = vadd.f32 %v4171_v20, %v5162_v40  ;;  %v4173_v41 = vadd.f32 %v4126_v1, %v3886_v61  ;;  %v2704_v32 = vpop.f32.mrb[3].mxu0 }
 0x1de   : > { %v2867_v56 = vadd.f32 %v4172_v28, %v5162_v40  ;;  %v4174_v33 = vadd.f32 %v2704_v32, %v1164_v14 }
 0x1df   : > { %v2901_v34 = vmax.f32 %v2869_v31, 0.0  ;;  %v2870_v39 = vadd.f32 %v4173_v41, %v5162_v40 }
 0x1e0   : > { %v2899_v52 = vmax.f32 %v2867_v56, 0.0  ;;  %v2868_v35 = vadd.f32 %v4174_v33, %v5162_v40 }
 0x1e1   : > { %2933 = vst [vmem:[%s5168_s11 + $0x10] sm:$0xff] %v2901_v34  ;;  %v2902_v46 = vmax.f32 %v2870_v39, 0.0 }
 0x1e2   : > { %2931 = vst [vmem:[%s5168_s11] sm:$0xff] %v2899_v52  ;;  %v2900_v47 = vmax.f32 %v2868_v35, 0.0  ;;  %v4129_v13 = vpop.f32.mrb[4].mxu0 }
 0x1e3   : > { %2934 = vst [vmem:[%s5168_s11 + $0x18] sm:$0xff] %v2902_v46  ;;  %v4175_v48 = vadd.f32 %v4129_v13, %v3889_v6  ;;  %v2717_v50 = vpop.f32.mrb[5].mxu0 }
 0x1e4   : > { %2932 = vst [vmem:[%s5168_s11 + $0x8] sm:$0xff] %v2900_v47  ;;  %v4176_v53 = vadd.f32 %v2717_v50, %v1177_v12  ;;  %v4130_v55 = vpop.f32.mrb[6].mxu0 }
 0x1e5   : > { %v2873_v54 = vadd.f32 %v4175_v48, %v5162_v40  ;;  %v4177_v3 = vadd.f32 %v4130_v55, %v3890_v11  ;;  %v2720_v57 = vpop.f32.mrb[7].mxu0 }
 0x1e6   : > { %v2871_v60 = vadd.f32 %v4176_v53, %v5162_v40  ;;  %v4178_v62 = vadd.f32 %v2720_v57, %v1180_v23 }
 0x1e7   : > { %v2905_v63 = vmax.f32 %v2873_v54, 0.0  ;;  %v2874_v5 = vadd.f32 %v4177_v3, %v5162_v40 }
 0x1e8   : > { %v2903_v8 = vmax.f32 %v2871_v60, 0.0  ;;  %v2872_v49 = vadd.f32 %v4178_v62, %v5162_v40 }
 0x1e9   : > { %2937 = vst [vmem:[%s5168_s11 + $0x30] sm:$0xff] %v2905_v63  ;;  %v2906_v7 = vmax.f32 %v2874_v5, 0.0 }
 0x1ea   : > { %2935 = vst [vmem:[%s5168_s11 + $0x20] sm:$0xff] %v2903_v8  ;;  %v2904_v10 = vmax.f32 %v2872_v49, 0.0  ;;  %v4133_v22 = vpop.f32.mrb[8].mxu0 }
 0x1eb   : > { %2938 = vst [vmem:[%s5168_s11 + $0x38] sm:$0xff] %v2906_v7  ;;  %v4179_v24 = vadd.f32 %v4133_v22, %v3893_v16  ;;  %v2733_v36 = vpop.f32.mrb[9].mxu0 }
 0x1ec   : > { %2936 = vst [vmem:[%s5168_s11 + $0x28] sm:$0xff] %v2904_v10  ;;  %v4180_v38 = vadd.f32 %v2733_v36, %v1193_v15  ;;  %v4134_v4 = vpop.f32.mrb[10].mxu0 }
 0x1ed   : > { %v2877_v21 = vadd.f32 %v4179_v24, %v5162_v40  ;;  %v4181_v26 = vadd.f32 %v4134_v4, %v3894_v29  ;;  %v2736_v27 = vpop.f32.mrb[11].mxu0 }
 0x1ee   : > { %v2875_v42 = vadd.f32 %v4180_v38, %v5162_v40  ;;  %v4182_v51 = vadd.f32 %v2736_v27, %v1196_v17 }
 0x1ef   : > { %v2909_v43 = vmax.f32 %v2877_v21, 0.0  ;;  %v2878_v44 = vadd.f32 %v4181_v26, %v5162_v40 }
 0x1f0   : > { %v2907_v45 = vmax.f32 %v2875_v42, 0.0  ;;  %v2876_v58 = vadd.f32 %v4182_v51, %v5162_v40 }
 0x1f1   : > { %2941 = vst [vmem:[%s5168_s11 + $0x50] sm:$0xff] %v2909_v43  ;;  %v2910_v0 = vmax.f32 %v2878_v44, 0.0 }
 0x1f2   : > { %2939 = vst [vmem:[%s5168_s11 + $0x40] sm:$0xff] %v2907_v45  ;;  %v2908_v59 = vmax.f32 %v2876_v58, 0.0  ;;  %v4137_v9 = vpop.f32.mrb[12].mxu0 }
 0x1f3   : > { %2942 = vst [vmem:[%s5168_s11 + $0x58] sm:$0xff] %v2910_v0  ;;  %v4183_v61 = vadd.f32 %v4137_v9, %v5151_v18  ;;  %v2749_v14 = vpop.f32.mrb[13].mxu0 }
 0x1f4   : > { %2940 = vst [vmem:[%s5168_s11 + $0x48] sm:$0xff] %v2908_v59  ;;  %v4184_v6 = vadd.f32 %v2749_v14, %v5153_v25  ;;  %v4138_v12 = vpop.f32.mrb[14].mxu0 }
 0x1f5   : > { %v2881_v11 = vadd.f32 %v4183_v61, %v5162_v40  ;;  %v4185_v23 = vadd.f32 %v4138_v12, %v5155_v2  ;;  %v2752_v16 = vpop.f32.mrb[15].mxu0 }
 0x1f6   : > { %v2879_v15 = vadd.f32 %v4184_v6, %v5162_v40  ;;  %v4186_v29 = vadd.f32 %v2752_v16, %v5157_v19 }
 0x1f7   : > { %v2913_v17 = vmax.f32 %v2881_v11, 0.0  ;;  %v2882_v18 = vadd.f32 %v4185_v23, %v5162_v40 }
 0x1f8   : > { %v2911_v30 = vmax.f32 %v2879_v15, 0.0  ;;  %v2880_v20 = vadd.f32 %v4186_v29, %v5162_v40 }
 0x1f9   : > { %2945 = vst [vmem:[%s5168_s11 + $0x70] sm:$0xff] %v2913_v17  ;;  %v2914_v25 = vmax.f32 %v2882_v18, 0.0  ;;  %v3949_v37 = vpop.f32.mrb[16].mxu1 }
 0x1fa   : > { %2943 = vst [vmem:[%s5168_s11 + $0x60] sm:$0xff] %v2911_v30  ;;  %v2912_v28 = vmax.f32 %v2880_v20, 0.0  ;;  %v4141_v1 = vpop.f32.mrb[16].mxu0  ;;  %v1533_v31 = vpop.f32.mrb[17].mxu1 }
 0x1fb   : > { %2946 = vst [vmem:[%s5168_s11 + $0x78] sm:$0xff] %v2914_v25  ;;  %v4187_v2 = vadd.f32 %v4141_v1, %v3949_v37  ;;  %v2765_v41 = vpop.f32.mrb[17].mxu0  ;;  %v3950_v32 = vpop.f32.mrb[18].mxu1 }
 0x1fc   : > { %2944 = vst [vmem:[%s5168_s11 + $0x68] sm:$0xff] %v2912_v28  ;;  %v4188_v19 = vadd.f32 %v2765_v41, %v1533_v31  ;;  %v4142_v56 = vpop.f32.mrb[18].mxu0  ;;  %v1536_v33 = vpop.f32.mrb[19].mxu1 }
 0x1fd   : > { %v2885_v34 = vadd.f32 %v4187_v2, %v5162_v40  ;;  %v4189_v39 = vadd.f32 %v4142_v56, %v3950_v32  ;;  %v2768_v52 = vpop.f32.mrb[19].mxu0 }
 0x1fe   : > { %v2883_v35 = vadd.f32 %v4188_v19, %v5162_v40  ;;  %v4190_v46 = vadd.f32 %v2768_v52, %v1536_v33 }
 0x1ff   : > { %v2917_v47 = vmax.f32 %v2885_v34, 0.0  ;;  %v2886_v13 = vadd.f32 %v4189_v39, %v5162_v40 }
 0x200   : > { %v2915_v48 = vmax.f32 %v2883_v35, 0.0  ;;  %v2884_v50 = vadd.f32 %v4190_v46, %v5162_v40 }
 0x201   : > { %2949 = vst [vmem:[%s5168_s11 + $0x90] sm:$0xff] %v2917_v47  ;;  %v2918_v53 = vmax.f32 %v2886_v13, 0.0  ;;  %v3953_v55 = vpop.f32.mrb[20].mxu1 }
 0x202   : > { %2947 = vst [vmem:[%s5168_s11 + $0x80] sm:$0xff] %v2915_v48  ;;  %v2916_v54 = vmax.f32 %v2884_v50, 0.0  ;;  %v4145_v3 = vpop.f32.mrb[20].mxu0  ;;  %v1549_v57 = vpop.f32.mrb[21].mxu1 }
 0x203   : > { %2950 = vst [vmem:[%s5168_s11 + $0x98] sm:$0xff] %v2918_v53  ;;  %v4191_v60 = vadd.f32 %v4145_v3, %v3953_v55  ;;  %v2781_v62 = vpop.f32.mrb[21].mxu0  ;;  %v3954_v63 = vpop.f32.mrb[22].mxu1 }
 0x204   : > { %2948 = vst [vmem:[%s5168_s11 + $0x88] sm:$0xff] %v2916_v54  ;;  %v4192_v5 = vadd.f32 %v2781_v62, %v1549_v57  ;;  %v4146_v8 = vpop.f32.mrb[22].mxu0  ;;  %v1552_v49 = vpop.f32.mrb[23].mxu1 }
 0x205   : > { %v2889_v7 = vadd.f32 %v4191_v60, %v5162_v40  ;;  %v4193_v10 = vadd.f32 %v4146_v8, %v3954_v63  ;;  %v2784_v22 = vpop.f32.mrb[23].mxu0 }
 0x206   : > { %v2887_v24 = vadd.f32 %v4192_v5, %v5162_v40  ;;  %v4194_v36 = vadd.f32 %v2784_v22, %v1552_v49 }
 0x207   : > { %v2921_v38 = vmax.f32 %v2889_v7, 0.0  ;;  %v2890_v4 = vadd.f32 %v4193_v10, %v5162_v40 }
 0x208   : > { %v2919_v21 = vmax.f32 %v2887_v24, 0.0  ;;  %v2888_v26 = vadd.f32 %v4194_v36, %v5162_v40 }
 0x209   : > { %2953 = vst [vmem:[%s5168_s11 + $0xb0] sm:$0xff] %v2921_v38  ;;  %v2922_v27 = vmax.f32 %v2890_v4, 0.0  ;;  %v3957_v42 = vpop.f32.mrb[24].mxu1 }
 0x20a   : > { %2951 = vst [vmem:[%s5168_s11 + $0xa0] sm:$0xff] %v2919_v21  ;;  %v2920_v51 = vmax.f32 %v2888_v26, 0.0  ;;  %v4149_v43 = vpop.f32.mrb[24].mxu0  ;;  %v1565_v44 = vpop.f32.mrb[25].mxu1 }
 0x20b   : > { %2954 = vst [vmem:[%s5168_s11 + $0xb8] sm:$0xff] %v2922_v27  ;;  %v4195_v45 = vadd.f32 %v4149_v43, %v3957_v42  ;;  %v2797_v58 = vpop.f32.mrb[25].mxu0  ;;  %v3958_v0 = vpop.f32.mrb[26].mxu1 }
 0x20c   : > { %2952 = vst [vmem:[%s5168_s11 + $0xa8] sm:$0xff] %v2920_v51  ;;  %v4196_v59 = vadd.f32 %v2797_v58, %v1565_v44  ;;  %v4150_v9 = vpop.f32.mrb[26].mxu0  ;;  %v1568_v61 = vpop.f32.mrb[27].mxu1 }
 0x20d   : > { %v2893_v14 = vadd.f32 %v4195_v45, %v5162_v40  ;;  %v4197_v6 = vadd.f32 %v4150_v9, %v3958_v0  ;;  %v2800_v12 = vpop.f32.mrb[27].mxu0 }
 0x20e   : > { %v2891_v11 = vadd.f32 %v4196_v59, %v5162_v40  ;;  %v4198_v23 = vadd.f32 %v2800_v12, %v1568_v61 }
 0x20f   : > { %v2925_v16 = vmax.f32 %v2893_v14, 0.0  ;;  %v2894_v15 = vadd.f32 %v4197_v6, %v5162_v40 }
 0x210   : > { %v2923_v29 = vmax.f32 %v2891_v11, 0.0  ;;  %v2892_v17 = vadd.f32 %v4198_v23, %v5162_v40 }
 0x211   : > { %2957 = vst [vmem:[%s5168_s11 + $0xd0] sm:$0xff] %v2925_v16  ;;  %v2926_v18 = vmax.f32 %v2894_v15, 0.0  ;;  %v3961_v30 = vpop.f32.mrb[28].mxu1 }
 0x212   : > { %2955 = vst [vmem:[%s5168_s11 + $0xc0] sm:$0xff] %v2923_v29  ;;  %v2924_v20 = vmax.f32 %v2892_v17, 0.0  ;;  %v4153_v25 = vpop.f32.mrb[28].mxu0  ;;  %v1581_v37 = vpop.f32.mrb[29].mxu1 }
 0x213   : > { %2958 = vst [vmem:[%s5168_s11 + $0xd8] sm:$0xff] %v2926_v18  ;;  %v4199_v28 = vadd.f32 %v4153_v25, %v3961_v30  ;;  %v2813_v1 = vpop.f32.mrb[29].mxu0  ;;  %v3962_v31 = vpop.f32.mrb[30].mxu1 }
 0x214   : > { %2956 = vst [vmem:[%s5168_s11 + $0xc8] sm:$0xff] %v2924_v20  ;;  %v4200_v2 = vadd.f32 %v2813_v1, %v1581_v37  ;;  %v4154_v41 = vpop.f32.mrb[30].mxu0  ;;  %v1584_v32 = vpop.f32.mrb[31].mxu1 }
 0x215   : > { %v2897_v19 = vadd.f32 %v4199_v28, %v5162_v40  ;;  %v4201_v56 = vadd.f32 %v4154_v41, %v3962_v31  ;;  %v2816_v33 = vpop.f32.mrb[31].mxu0 }
 0x216   : > { %v2895_v34 = vadd.f32 %v4200_v2, %v5162_v40  ;;  %v4202_v39 = vadd.f32 %v2816_v33, %v1584_v32 }
 0x217   : > { %v2929_v52 = vmax.f32 %v2897_v19, 0.0  ;;  %v2898_v35 = vadd.f32 %v4201_v56, %v5162_v40 }
 0x218   : > { %v2927_v46 = vmax.f32 %v2895_v34, 0.0  ;;  %v2896_v47 = vadd.f32 %v4202_v39, %v5162_v40 }
 0x219   : > { %2961 = vst [vmem:[%s5168_s11 + $0xf0] sm:$0xff] %v2929_v52  ;;  %v2930_v13 = vmax.f32 %v2898_v35, 0.0 }
 0x21a   : > { %2959 = vst [vmem:[%s5168_s11 + $0xe0] sm:$0xff] %v2927_v46  ;;  %v2928_v48 = vmax.f32 %v2896_v47, 0.0 }
 0x21b   : > { %2962 = vst [vmem:[%s5168_s11 + $0xf8] sm:$0xff] %v2930_v13 }
 0x21c   : > { %2960 = vst [vmem:[%s5168_s11 + $0xe8] sm:$0xff] %v2928_v48 }
 0x21d PF: > { %s13_s12 = sadd.s32 1, %s4521_s12  }
 0x21e   : > { %p10_p4 = scmp.ge.s32.totalorder %s13_s12, 4  }
 0x220   :  { %12 = sbr.rel (!%p10_p4) target bundleno = 1 (0x1), region = 76 }

// kernel: simple_forward.8
= control target key start
LH: loop header
LB: loop body
LE: loop exit
PB: predicated region body
PF: predicated region fallthrough
CT: control target
= control target key end

     0   :  { %s4543_s12 = smov 0   ;;  %s5213_s0 = inlined_call_operand.vmem [shape: f32[542,128], index: 0, kind: input, shape index: {}]   ;;  %s5214_s1 = inlined_call_operand.vmem [shape: bf16[9,128,128], index: 1, kind: input, shape index: {}]   ;;  %s5215_s2 = inlined_call_operand.vmem [shape: f32[1,128], index: 2, kind: input, shape index: {}]   ;;  %s5216_s3 = inlined_call_operand.vmem [shape: f32[512,128], index: 3, kind: output, shape index: {}]  }
   0x1 LB: > { %s3033_s13 = sadd.s32 4294967295, %s4521_s12   ;;  %p3036_p0 = scmp.ge.s32.totalorder %s4521_s12, 1  ;;  %s4521_s12 = sphi %s4543_s12, %s13_s12  }
   0x2   : > { %p127_p1 = scmp.lt.s32.totalorder %s4521_s12, 3 }
   0x4   : > { %p128_p2 = pnand %p3036_p0, %p127_p1 }
   0x5   : > { %v4435_v0 = vld [vmem:[%s5214_s1 + $0x40] sm:$0xff] (!%p128_p2)   ;;  %v4437_v2 = vld [vmem:[%s5214_s1 + $0x48] sm:$0xff] (!%p128_p2)   ;;  %v4439_v4 = vld [vmem:[%s5214_s1 + $0x50] sm:$0xff] (!%p128_p2)   ;;  %s3039_s30 = sshll.u32 (!%p128_p2), %s3033_s13, 8  ;;  %s3037_s6 = sshll.u32 (!%p128_p2), %s3033_s13, 5 }
   0x6   : > { %131 = sbr.rel (%p128_p2) target bundleno = 541 (0x21d), region = 32  ;;  %v4436_v1 = vld [vmem:[%s5214_s1 + $0x100] sm:$0xff] (!%p128_p2)   ;;  %3723 = vmatprep.subr.bf16.mxu1 (!%p128_p2), %v4435_v0  ;;  %v4438_v3 = vld [vmem:[%s5214_s1 + $0x108] sm:$0xff] (!%p128_p2)   ;;  %v4440_v5 = vld [vmem:[%s5214_s1 + $0x110] sm:$0xff] (!%p128_p2)   ;;  %s4586_s10 = scalar_lea.vmem (!%p128_p2), %s5213_s0, %s3039_s30 }
   0x7   : > { %3915 = vmatprep.subr.bf16.mxu0 (!%p128_p2), %v4436_v1  ;;  %3724 = vmatpush3.bf16.msra.mxu1 (!%p128_p2), %v4435_v0  ;;  %v4441_v6 = vld [vmem:[%s5214_s1 + $0x58] sm:$0xff] (!%p128_p2)   ;;  %v4443_v8 = vld [vmem:[%s5214_s1 + $0x60] sm:$0xff] (!%p128_p2)   ;;  %v4445_v10 = vld [vmem:[%s5214_s1 + $0x68] sm:$0xff] (!%p128_p2)   ;;  %p147_p3 = scmp.lt.s32.totalorder (!%p128_p2), %s3037_s6, 63 }
   0x8   : > { %3916 = vmatpush3.bf16.msra.mxu0 (!%p128_p2), %v4436_v1  ;;  %3725 = vmatprep.subr.bf16.mxu1 (!%p128_p2), %v4437_v2  ;;  %v4442_v7 = vld [vmem:[%s5214_s1 + $0x118] sm:$0xff] (!%p128_p2)   ;;  %v4444_v9 = vld [vmem:[%s5214_s1 + $0x120] sm:$0xff] (!%p128_p2)   ;;  %v3042_v12 = vld [vmem:[%s4586_s10 + $0x9] sm:$0xff] (!%p128_p2) }
   0x9   : > { %3917 = vmatprep.subr.bf16.mxu0 (!%p128_p2), %v4438_v3  ;;  %v3041_v11 = vld [vmem:[%s4586_s10 + $0x1] sm:$0xff] (!%p128_p2)  ;;  %v3220_v13 = vld [vmem:[%s4586_s10 + $0xf] sm:$0xff] (!%p128_p2)  ;;  %v3221_v16 = vld [vmem:[%s4586_s10 + $0x17] sm:$0xff] (!%p128_p2) }
   0xa   : > { %v4446_v14 = vld [vmem:[%s5214_s1 + $0x128] sm:$0xff] (!%p128_p2)   ;;  %v253_v15 = vpack.c.bf16 (!%p128_p2), %v3042_v12, %v3041_v11  ;;  %v1354_v17 = vpack.c.bf16 (!%p128_p2), %v3221_v16, %v3220_v13  ;;  %v4447_v18 = vld [vmem:[%s5214_s1 + $0x70] sm:$0xff] (!%p128_p2)   ;;  %v4449_v20 = vld [vmem:[%s5214_s1 + $0x78] sm:$0xff] (!%p128_p2)  }
   0xb   : > { %3726 = vmatpush3.bf16.msra.mxu1 (!%p128_p2), %v4437_v2  ;;  %v4448_v19 = vld [vmem:[%s5214_s1 + $0x130] sm:$0xff] (!%p128_p2)   ;;  %v4450_v21 = vld [vmem:[%s5214_s1 + $0x138] sm:$0xff] (!%p128_p2)   ;;  %v4451_v24 = vld [vmem:[%s5214_s1] sm:$0xff] (!%p128_p2)  }
   0xc   : > { %3918 = vmatpush3.bf16.msra.mxu0 (!%p128_p2), %v4438_v3  ;;  %3727 = vmatprep.subr.bf16.mxu1 (!%p128_p2), %v4439_v4  ;;  %v3043_v22 = vld [vmem:[%s4586_s10 + $0x11] sm:$0xff] (!%p128_p2)  ;;  %v3044_v23 = vld [vmem:[%s4586_s10 + $0x19] sm:$0xff] (!%p128_p2)  ;;  %v3223_v26 = vld [vmem:[%s4586_s10 + $0x27] sm:$0xff] (!%p128_p2) }
   0xd   : > { %3919 = vmatprep.subr.bf16.mxu0 %v4440_v5  ;;  %3739 = vmatprep.mubr.bf16.mxu1 %v253_v15  ;;  %v3222_v25 = vld [vmem:[%s4586_s10 + $0x1f] sm:$0xff]  ;;  %v3046_v29 = vld [vmem:[%s4586_s10 + $0x29] sm:$0xff]  ;;  %v254_v30 = vpack.c.bf16 %v3044_v23, %v3043_v22  ;;  %v3225_v32 = vld [vmem:[%s4586_s10 + $0x37] sm:$0xff]  ;;  %s5218_s6 = smov (!%p147_p3, %s3037_s6), 63 }
   0xe   : > { %3931 = vmatprep.mubr.bf16.mxu0 %v1354_v17  ;;  %v4452_v27 = vld [vmem:[%s5214_s1 + $0x140] sm:$0xff]   ;;  %v3224_v31 = vld [vmem:[%s4586_s10 + $0x2f] sm:$0xff]  ;;  %v1355_v33 = vpack.c.bf16 %v3223_v26, %v3222_v25  ;;  %v3229_v47 = vld [vmem:[%s4586_s10 + $0x57] sm:$0xff]  ;;  %s3038_s8 = sshll.u32 %s5218_s6, 3 }
   0xf   : > { %3728 = vmatpush3.bf16.msra.mxu1 %v4439_v4  ;;  %v3045_v28 = vld [vmem:[%s4586_s10 + $0x21] sm:$0xff]  ;;  %v1356_v36 = vpack.c.bf16 %v3225_v32, %v3224_v31  ;;  %v3047_v37 = vld [vmem:[%s4586_s10 + $0x31] sm:$0xff]  ;;  %v3048_v38 = vld [vmem:[%s4586_s10 + $0x39] sm:$0xff]  ;;  %s5141_s11 = scalar_lea.vmem %s5216_s3, %s3038_s8 }
  0x10   : > { %3920 = vmatpush3.bf16.msra.mxu0 %v4440_v5  ;;  %3729 = vmatprep.subr.bf16.mxu1 %v4441_v6  ;;  %v4453_v34 = vld [vmem:[%s5214_s1 + $0x148] sm:$0xff]   ;;  %v255_v35 = vpack.c.bf16 %v3046_v29, %v3045_v28  ;;  %v3226_v40 = vld [vmem:[%s4586_s10 + $0x3f] sm:$0xff]  ;;  %v4455_v43 = vld [vmem:[%s5214_s1 + $0x150] sm:$0xff]   ;;  %v256_v48 = vpack.c.bf16 %v3048_v38, %v3047_v37 }
  0x11   : > { %3921 = vmatprep.subr.bf16.mxu0 %v4442_v7  ;;  %v4454_v39 = vld [vmem:[%s5214_s1 + $0x8] sm:$0xff]   ;;  %v4457_v46 = vld [vmem:[%s5214_s1 + $0x10] sm:$0xff]   ;;  %v4456_v51 = vld [vmem:[%s5214_s1 + $0x158] sm:$0xff]  }
  0x12   : > { %v3227_v41 = vld [vmem:[%s4586_s10 + $0x47] sm:$0xff]  ;;  %v3228_v45 = vld [vmem:[%s4586_s10 + $0x4f] sm:$0xff]  ;;  %v3052_v54 = vld [vmem:[%s4586_s10 + $0x59] sm:$0xff] }
  0x13   : > { %3730 = vmatpush3.bf16.msra.mxu1 %v4441_v6  ;;  %v3049_v42 = vld [vmem:[%s4586_s10 + $0x41] sm:$0xff]  ;;  %v3050_v44 = vld [vmem:[%s4586_s10 + $0x49] sm:$0xff]  ;;  %v1357_v49 = vpack.c.bf16 %v3227_v41, %v3226_v40  ;;  %v1358_v52 = vpack.c.bf16 %v3229_v47, %v3228_v45  ;;  %v3051_v53 = vld [vmem:[%s4586_s10 + $0x51] sm:$0xff] }
  0x14   : > { %3922 = vmatpush3.bf16.msra.mxu0 %v4442_v7  ;;  %3731 = vmatprep.subr.bf16.mxu1 %v4443_v8  ;;  %v257_v50 = vpack.c.bf16 %v3050_v44, %v3049_v42  ;;  %v4460_v55 = vld [vmem:[%s5214_s1 + $0x18] sm:$0xff]   ;;  %v3231_v57 = vld [vmem:[%s4586_s10 + $0x67] sm:$0xff]  ;;  %v3232_v61 = vld [vmem:[%s4586_s10 + $0x6f] sm:$0xff]  ;;  %v258_v63 = vpack.c.bf16 %v3052_v54, %v3051_v53 }
  0x15   : > { %3923 = vmatprep.subr.bf16.mxu0 %v4444_v9  ;;  %v3230_v56 = vld [vmem:[%s4586_s10 + $0x5f] sm:$0xff]  ;;  %v3054_v60 = vld [vmem:[%s4586_s10 + $0x69] sm:$0xff]  ;;  %v3233_v62 = vld [vmem:[%s4586_s10 + $0x77] sm:$0xff] }
  0x16   : > { %v4458_v58 = vld [vmem:[%s5214_s1 + $0x160] sm:$0xff]   ;;  %v1359_v1 = vpack.c.bf16 %v3231_v57, %v3230_v56  ;;  %v1360_v3 = vpack.c.bf16 %v3233_v62, %v3232_v61  ;;  %v4459_v4 = vld [vmem:[%s5214_s1 + $0x168] sm:$0xff]   ;;  %v3055_v5 = vld [vmem:[%s4586_s10 + $0x71] sm:$0xff] }
  0x17   : > { %3732 = vmatpush3.bf16.msra.mxu1 %v4443_v8  ;;  %v3053_v59 = vld [vmem:[%s4586_s10 + $0x61] sm:$0xff]  ;;  %v3056_v6 = vld [vmem:[%s4586_s10 + $0x79] sm:$0xff]  ;;  %v3058_v11 = vld [vmem:[%s4586_s10 + $0x89] sm:$0xff] }
  0x18   : > { %3924 = vmatpush3.bf16.msra.mxu0 %v4444_v9  ;;  %3733 = vmatprep.subr.bf16.mxu1 %v4445_v10  ;;  %v4463_v0 = vld [vmem:[%s5214_s1 + $0x20] sm:$0xff]   ;;  %v259_v2 = vpack.c.bf16 %v3054_v60, %v3053_v59  ;;  %v4465_v7 = vld [vmem:[%s5214_s1 + $0x28] sm:$0xff]   ;;  %v4461_v12 = vld [vmem:[%s5214_s1 + $0x170] sm:$0xff]   ;;  %v260_v15 = vpack.c.bf16 %v3056_v6, %v3055_v5 }
  0x19   : > { %3925 = vmatprep.subr.bf16.mxu0 %v4446_v14  ;;  %v3234_v8 = vld [vmem:[%s4586_s10 + $0x7f] sm:$0xff]  ;;  %v3235_v9 = vld [vmem:[%s4586_s10 + $0x87] sm:$0xff]  ;;  %v3277_v13 = vld [vmem:[%s4586_s10 + $0x10] sm:$0xff] }
  0x1a   : > { %v4467_v16 = vld [vmem:[%s5214_s1 + $0x30] sm:$0xff]   ;;  %v1361_v17 = vpack.c.bf16 %v3235_v9, %v3234_v8  ;;  %v3060_v22 = vld [vmem:[%s4586_s10 + $0x99] sm:$0xff]  ;;  %v3280_v25 = vld [vmem:[%s4586_s10 + $0x28] sm:$0xff] }
  0x1b   : > { %3734 = vmatpush3.bf16.msra.mxu1 %v4445_v10  ;;  %v3057_v10 = vld [vmem:[%s4586_s10 + $0x81] sm:$0xff]  ;;  %v3281_v29 = vld [vmem:[%s4586_s10 + $0x30] sm:$0xff]  ;;  %v3064_v38 = vld [vmem:[%s4586_s10 + $0xb9] sm:$0xff] }
  0x1c   : > { %3926 = vmatpush3.bf16.msra.mxu0 %v4446_v14  ;;  %3735 = vmatprep.subr.bf16.mxu1 %v4447_v18  ;;  %v3278_v14 = vld [vmem:[%s4586_s10 + $0x18] sm:$0xff]  ;;  %v3279_v23 = vld [vmem:[%s4586_s10 + $0x20] sm:$0xff]  ;;  %v4466_v37 = vld [vmem:[%s5214_s1 + $0x188] sm:$0xff]  }
  0x1d   : > { %3927 = vmatprep.subr.bf16.mxu0 %v4448_v19  ;;  %v3061_v26 = vld [vmem:[%s4586_s10 + $0xa1] sm:$0xff]  ;;  %v3066_v42 = vld [vmem:[%s4586_s10 + $0xc9] sm:$0xff]  ;;  %v3286_v44 = vld [vmem:[%s4586_s10 + $0x58] sm:$0xff] }
  0x1e   : > { %v4464_v28 = vld [vmem:[%s5214_s1 + $0x180] sm:$0xff]   ;;  %v3284_v40 = vld [vmem:[%s4586_s10 + $0x48] sm:$0xff]  ;;  %v4468_v45 = vld [vmem:[%s5214_s1 + $0x190] sm:$0xff]  }
  0x1f   : > { %3736 = vmatpush3.bf16.msra.mxu1 %v4447_v18  ;;  %v261_v18 = vpack.c.bf16 %v3058_v11, %v3057_v10  ;;  %v4707_v32 = vld [vmem:[%s5214_s1 + $0x80] sm:$0xff]   ;;  %v3288_v54 = vld [vmem:[%s4586_s10 + $0x68] sm:$0xff]  ;;  %v3289_v57 = vld [vmem:[%s4586_s10 + $0x70] sm:$0xff] }
  0x20   : > { %3928 = vmatpush3.bf16.msra.mxu0 %v4448_v19  ;;  %3737 = vmatprep.subr.bf16.mxu1 %v4449_v20  ;;  %v4684_v19 = vpack.c.bf16 %v3278_v14, %v3277_v13  ;;  %v3065_v41 = vld [vmem:[%s4586_s10 + $0xc1] sm:$0xff]  ;;  %v3070_v56 = vld [vmem:[%s4586_s10 + $0xe9] sm:$0xff]  ;;  %v3294_v8 = vld [vmem:[%s4586_s10 + $0x98] sm:$0xff] }
  0x21   : > { %3929 = vmatprep.subr.bf16.mxu0 %v4450_v21  ;;  %v3287_v53 = vld [vmem:[%s4586_s10 + $0x60] sm:$0xff]  ;;  %v156_v6 = vld [vmem:[%s4586_s10 + $0x8] sm:$0xff]  ;;  %v4476_v9 = vld [vmem:[%s5214_s1 + $0x1b0] sm:$0xff]  }
  0x22   : > { %v4472_v59 = vld [vmem:[%s5214_s1 + $0x1a0] sm:$0xff]   ;;  %v4750_v61 = vpack.c.bf16 %v3288_v54, %v3287_v53  ;;  %v4478_v14 = vld [vmem:[%s5214_s1 + $0x1b8] sm:$0xff]   ;;  %v4482_v54 = vld [vmem:[%s5214_s1 + $0x1c8] sm:$0xff]  }
  0x23   : > { %3738 = vmatpush3.bf16.msra.mxu1 %v4449_v20  ;;  %v4462_v20 = vld [vmem:[%s5214_s1 + $0x178] sm:$0xff]   ;;  %v155_v5 = vld [vmem:[%s4586_s10] sm:$0xff] }
  0x24   : > { %3930 = vmatpush3.bf16.msra.mxu0 %v4450_v21  ;;  %3771 = vmatprep.subr.bf16.mxu1 %v4451_v24  ;;  %v3059_v21 = vld [vmem:[%s4586_s10 + $0x91] sm:$0xff] }
  0x25   : > { %3963 = vmatprep.subr.bf16.mxu0 %v4452_v27  ;;  %v262_v31 = vpack.c.bf16 %v3060_v22, %v3059_v21 }
  0x26   : > { %3740 = vmatmul.mubr.bf16.vlgmr.msra.gmra.mrb[0].mxu1 %v254_v30  ;;  %v3282_v30 = vld [vmem:[%s4586_s10 + $0x38] sm:$0xff] }
  0x27   : > { %3932 = vmatmul.mubr.bf16.vlgmr.msra.gmra.mrb[0].mxu0 %v1355_v33  ;;  %3772 = vmatpush3.bf16.msra.mxu1 %v4451_v24  ;;  %v4469_v24 = vld [vmem:[%s5214_s1 + $0x38] sm:$0xff]   ;;  %v4709_v33 = vpack.c.bf16 %v3280_v25, %v3279_v23  ;;  %v4473_v23 = vld [vmem:[%s5214_s1 + $0x88] sm:$0xff]  }
  0x28   : > { %3964 = vmatpush3.bf16.msra.mxu0 %v4452_v27  ;;  %3743 = vmatprep.mubr.bf16.mxu1 %v255_v35  ;;  %v3062_v27 = vld [vmem:[%s4586_s10 + $0xa9] sm:$0xff]  ;;  %v4711_v35 = vpack.c.bf16 %v3282_v30, %v3281_v29  ;;  %v4477_v30 = vld [vmem:[%s5214_s1 + $0x98] sm:$0xff]  }
  0x29   : > { %3965 = vmatprep.subr.bf16.mxu0 %v4453_v34  ;;  %3935 = vmatprep.mubr.bf16.mxu0 %v1356_v36  ;;  %v3063_v36 = vld [vmem:[%s4586_s10 + $0xb1] sm:$0xff]  ;;  %v3300_v25 = vld [vmem:[%s4586_s10 + $0xc8] sm:$0xff] }
  0x2a   : > { %3773 = vmatprep.subr.bf16.mxu1 %v4454_v39 }
  0x2b   : > { %3774 = vmatpush3.bf16.msra.mxu1 %v4454_v39  ;;  %v3283_v39 = vld [vmem:[%s4586_s10 + $0x40] sm:$0xff] }
  0x2c   : > { %3966 = vmatpush3.bf16.msra.mxu0 %v4453_v34  ;;  %3775 = vmatprep.subr.bf16.mxu1 %v4457_v46  ;;  %v263_v34 = vpack.c.bf16 %v3062_v27, %v3061_v26  ;;  %v4730_v47 = vpack.c.bf16 %v3284_v40, %v3283_v39  ;;  %v4475_v26 = vld [vmem:[%s5214_s1 + $0x90] sm:$0xff]   ;;  %v3302_v27 = vld [vmem:[%s4586_s10 + $0xd8] sm:$0xff]  ;;  %v3307_v39 = vld [vmem:[%s4586_s10 + $0x100] sm:$0xff] }
  0x2d   : > { %3967 = vmatprep.subr.bf16.mxu0 %v4455_v43  ;;  %v3308_v40 = vld [vmem:[%s4586_s10 + $0x108] sm:$0xff] }
  0x2e   : > { %3744 = vmatmul.mubr.bf16.gmra.mrb[4].mxu1 %v256_v48  ;;  %v265_v48 = vpack.c.bf16 %v3066_v42, %v3065_v41  ;;  %v3334_v41 = vld [vmem:[%s4586_s10 + $0x1c] sm:$0xff]  ;;  %v3335_v42 = vld [vmem:[%s4586_s10 + $0x24] sm:$0xff] }
  0x2f   : > { %3936 = vmatmul.mubr.bf16.gmra.mrb[4].mxu0 %v1357_v49  ;;  %3747 = vmatprep.mubr.bf16.mxu1 %v257_v50  ;;  %v3067_v50 = vld [vmem:[%s4586_s10 + $0xd1] sm:$0xff] }
  0x30   : > { %3968 = vmatpush3.bf16.msra.mxu0 %v4455_v43  ;;  %3939 = vmatprep.mubr.bf16.mxu0 %v1358_v52  ;;  %v3285_v43 = vld [vmem:[%s4586_s10 + $0x50] sm:$0xff]  ;;  %v4470_v52 = vld [vmem:[%s5214_s1 + $0x198] sm:$0xff]  }
  0x31   : > { %3969 = vmatprep.subr.bf16.mxu0 %v4456_v51  ;;  %3776 = vmatpush3.bf16.msra.mxu1 %v4457_v46  ;;  %v264_v46 = vpack.c.bf16 %v3064_v38, %v3063_v36  ;;  %v4732_v49 = vpack.c.bf16 %v3286_v44, %v3285_v43  ;;  %v4481_v38 = vld [vmem:[%s5214_s1 + $0xa8] sm:$0xff]   ;;  %v4483_v43 = vld [vmem:[%s5214_s1 + $0xb0] sm:$0xff]   ;;  %v1677_v44 = vpack.c.bf16 %v3308_v40, %v3307_v39  ;;  %v3358_v39 = vld [vmem:[%s4586_s10 + $0xdc] sm:$0xff] }
  0x32   : > { %3777 = vmatprep.subr.bf16.mxu1 %v4460_v55  ;;  %v3359_v40 = vld [vmem:[%s4586_s10 + $0xe4] sm:$0xff] }
  0x34   : > { %3970 = vmatpush3.bf16.msra.mxu0 %v4456_v51  ;;  %v3068_v51 = vld [vmem:[%s4586_s10 + $0xd9] sm:$0xff] }
  0x35   : > { %3971 = vmatprep.subr.bf16.mxu0 %v4458_v58  ;;  %3778 = vmatpush3.bf16.msra.mxu1 %v4460_v55  ;;  %v3069_v55 = vld [vmem:[%s4586_s10 + $0xe1] sm:$0xff]  ;;  %v266_v60 = vpack.c.bf16 %v3068_v51, %v3067_v50 }
  0x36   : > { %3748 = vmatmul.mubr.bf16.gmra.mrb[8].mxu1 %v258_v63  ;;  %3779 = vmatprep.subr.bf16.mxu1 %v4463_v0  ;;  %v267_v62 = vpack.c.bf16 %v3070_v56, %v3069_v55  ;;  %v3339_v50 = vld [vmem:[%s4586_s10 + $0x44] sm:$0xff]  ;;  %v3340_v55 = vld [vmem:[%s4586_s10 + $0x4c] sm:$0xff]  ;;  %v3341_v56 = vld [vmem:[%s4586_s10 + $0x54] sm:$0xff] }
  0x37   : > { %3940 = vmatmul.mubr.bf16.gmra.mrb[8].mxu0 %v1359_v1  ;;  %3751 = vmatprep.mubr.bf16.mxu1 %v259_v2  ;;  %v4474_v1 = vld [vmem:[%s5214_s1 + $0x1a8] sm:$0xff]   ;;  %v3072_v2 = vld [vmem:[%s4586_s10 + $0xf9] sm:$0xff] }
  0x38   : > { %3972 = vmatpush3.bf16.msra.mxu0 %v4458_v58  ;;  %3943 = vmatprep.mubr.bf16.mxu0 %v1360_v3  ;;  %v3290_v58 = vld [vmem:[%s4586_s10 + $0x78] sm:$0xff]  ;;  %v3291_v3 = vld [vmem:[%s4586_s10 + $0x80] sm:$0xff] }
  0x39   : > { %3973 = vmatprep.subr.bf16.mxu0 %v4459_v4  ;;  %3780 = vmatpush3.bf16.msra.mxu1 %v4463_v0  ;;  %v4752_v63 = vpack.c.bf16 %v3290_v58, %v3289_v57  ;;  %v3071_v0 = vld [vmem:[%s4586_s10 + $0xf1] sm:$0xff]  ;;  %v4856_v51 = vld [vmem:[%s5214_s1 + $0xc0] sm:$0xff]  }
  0x3a   : > { %3781 = vmatprep.subr.bf16.mxu1 %v4465_v7  ;;  %v268_v10 = vpack.c.bf16 %v3072_v2, %v3071_v0  ;;  %v3342_v57 = vld [vmem:[%s4586_s10 + $0x5c] sm:$0xff]  ;;  %v3343_v58 = vld [vmem:[%s4586_s10 + $0x64] sm:$0xff]  ;;  %v3345_v0 = vld [vmem:[%s4586_s10 + $0x74] sm:$0xff] }
  0x3b   : > { %v3347_v2 = vld [vmem:[%s4586_s10 + $0x84] sm:$0xff] }
  0x3c   : > { %3974 = vmatpush3.bf16.msra.mxu0 %v4459_v4  ;;  %v3292_v4 = vld [vmem:[%s4586_s10 + $0x88] sm:$0xff] }
  0x3d   : > { %3975 = vmatprep.subr.bf16.mxu0 %v4461_v12  ;;  %3782 = vmatpush3.bf16.msra.mxu1 %v4465_v7  ;;  %v3293_v7 = vld [vmem:[%s4586_s10 + $0x90] sm:$0xff]  ;;  %v4770_v11 = vpack.c.bf16 %v3292_v4, %v3291_v3  ;;  %v4488_v3 = vld [vmem:[%s5214_s1 + $0x1e0] sm:$0xff]  }
  0x3e   : > { %3752 = vmatmul.mubr.bf16.gmra.mrb[12].mxu1 %v260_v15  ;;  %3783 = vmatprep.subr.bf16.mxu1 %v4467_v16  ;;  %v4772_v13 = vpack.c.bf16 %v3294_v8, %v3293_v7  ;;  %v3295_v15 = vld [vmem:[%s4586_s10 + $0xa0] sm:$0xff]  ;;  %v3348_v7 = vld [vmem:[%s4586_s10 + $0x8c] sm:$0xff]  ;;  %v3349_v8 = vld [vmem:[%s4586_s10 + $0x94] sm:$0xff] }
  0x3f   : > { %3944 = vmatmul.mubr.bf16.gmra.mrb[12].mxu0 %v1361_v17  ;;  %3755 = vmatprep.mubr.bf16.mxu1 %v261_v18  ;;  %v3297_v17 = vld [vmem:[%s4586_s10 + $0xb0] sm:$0xff]  ;;  %v3298_v18 = vld [vmem:[%s4586_s10 + $0xb8] sm:$0xff] }
  0x40   : > { %3976 = vmatpush3.bf16.msra.mxu0 %v4461_v12  ;;  %3979 = vmatprep.mubr.bf16.mxu0 %v4684_v19  ;;  %v187_v12 = vpack.c.bf16 %v156_v6, %v155_v5  ;;  %v4790_v22 = vpack.c.bf16 %v3298_v18, %v3297_v17  ;;  %v4490_v6 = vld [vmem:[%s5214_s1 + $0x1e8] sm:$0xff]   ;;  %v4494_v17 = vld [vmem:[%s5214_s1 + $0x1f8] sm:$0xff]  }
  0x41   : > { %3977 = vmatprep.subr.bf16.mxu0 %v4462_v20  ;;  %3784 = vmatpush3.bf16.msra.mxu1 %v4467_v16  ;;  %v3296_v16 = vld [vmem:[%s4586_s10 + $0xa8] sm:$0xff]  ;;  %v3108_v18 = vld [vmem:[%s4586_s10 + $0x12] sm:$0xff] }
  0x42   : > { %3785 = vmatprep.subr.bf16.mxu1 %v4469_v24  ;;  %v4788_v21 = vpack.c.bf16 %v3296_v16, %v3295_v15 }
  0x44   : > { %3978 = vmatpush3.bf16.msra.mxu0 %v4462_v20  ;;  %v4786_v20 = vld [vmem:[%s5214_s1 + $0x1c0] sm:$0xff]  }
  0x45   : > { %4011 = vmatprep.subr.bf16.mxu0 %v4464_v28  ;;  %3786 = vmatpush3.bf16.msra.mxu1 %v4469_v24  ;;  %v3299_v24 = vld [vmem:[%s4586_s10 + $0xc0] sm:$0xff] }
  0x46   : > { %3756 = vmatmul.mubr.bf16.gmra.mrb[16].mxu1 %v262_v31  ;;  %3819 = vmatprep.subr.bf16.mxu1 %v4707_v32  ;;  %v3303_v31 = vld [vmem:[%s4586_s10 + $0xe0] sm:$0xff] }
  0x47   : > { %3980 = vmatmul.mubr.bf16.vlgmr.msra.gmra.mrb[0].mxu0 %v4709_v33  ;;  %3759 = vmatprep.mubr.bf16.mxu1 %v263_v34  ;;  %v3306_v34 = vld [vmem:[%s4586_s10 + $0xf8] sm:$0xff] }
  0x48   : > { %4012 = vmatpush3.bf16.msra.mxu0 %v4464_v28  ;;  %3983 = vmatprep.mubr.bf16.mxu0 %v4711_v35  ;;  %v4808_v28 = vpack.c.bf16 %v3300_v25, %v3299_v24  ;;  %v3111_v24 = vld [vmem:[%s4586_s10 + $0x2a] sm:$0xff]  ;;  %v3354_v25 = vld [vmem:[%s4586_s10 + $0xbc] sm:$0xff] }
  0x49   : > { %4013 = vmatprep.subr.bf16.mxu0 %v4466_v37 }
  0x4c   : > { %4014 = vmatpush3.bf16.msra.mxu0 %v4466_v37 }
  0x4d   : > { %4015 = vmatprep.subr.bf16.mxu0 %v4468_v45 }
  0x4e   : > { %3760 = vmatmul.mubr.bf16.gmra.mrb[20].mxu1 %v264_v46  ;;  %v4485_v46 = vld [vmem:[%s5214_s1 + $0xb8] sm:$0xff]  }
  0x4f   : > { %3984 = vmatmul.mubr.bf16.gmra.mrb[4].mxu0 %v4730_v47  ;;  %3763 = vmatprep.mubr.bf16.mxu1 %v265_v48  ;;  %v3337_v48 = vld [vmem:[%s4586_s10 + $0x34] sm:$0xff] }
  0x50   : > { %3987 = vmatprep.mubr.bf16.mxu0 %v4732_v49  ;;  %4016 = vmatpush3.bf16.msra.mxu0 %v4468_v45  ;;  %v1970_v45 = vpack.c.bf16 %v3335_v42, %v3334_v41 }
  0x51   : > { %4017 = vmatprep.subr.bf16.mxu0 %v4470_v52 }
  0x54   : > { %4018 = vmatpush3.bf16.msra.mxu0 %v4470_v52 }
  0x55   : > { %4019 = vmatprep.subr.bf16.mxu0 %v4472_v59 }
  0x56   : > { %3764 = vmatmul.mubr.bf16.gmra.mrb[24].mxu1 %v266_v60  ;;  %v1973_v60 = vpack.c.bf16 %v3341_v56, %v3340_v55 }
  0x57   : > { %3988 = vmatmul.mubr.bf16.gmra.mrb[8].mxu0 %v4750_v61  ;;  %3767 = vmatprep.mubr.bf16.mxu1 %v267_v62  ;;  %v4486_v62 = vld [vmem:[%s5214_s1 + $0x1d8] sm:$0xff]  }
  0x58   : > { %3991 = vmatprep.mubr.bf16.mxu0 %v4752_v63  ;;  %4020 = vmatpush3.bf16.msra.mxu0 %v4472_v59  ;;  %v4484_v59 = vld [vmem:[%s5214_s1 + $0x1d0] sm:$0xff]  }
  0x59   : > { %4021 = vmatprep.subr.bf16.mxu0 %v4474_v1 }
  0x5c   : > { %4022 = vmatpush3.bf16.msra.mxu0 %v4474_v1  ;;  %v3346_v1 = vld [vmem:[%s4586_s10 + $0x7c] sm:$0xff] }
  0x5d   : > { %4023 = vmatprep.subr.bf16.mxu0 %v4476_v9  ;;  %v1976_v5 = vpack.c.bf16 %v3347_v2, %v3346_v1  ;;  %v3123_v1 = vld [vmem:[%s4586_s10 + $0x8a] sm:$0xff]  ;;  %v3391_v2 = vld [vmem:[%s4586_s10 + $0x1d] sm:$0xff] }
  0x5e   : > { %3768 = vmatmul.mubr.bf16.gmra.mrb[28].mxu1 %v268_v10  ;;  %v3107_v10 = vld [vmem:[%s4586_s10 + $0xa] sm:$0xff] }
  0x5f   : > { %3992 = vmatmul.mubr.bf16.gmra.mrb[12].mxu0 %v4770_v11  ;;  %3787 = vmatprep.mubr.bf16.mxu1 %v187_v12  ;;  %v3351_v12 = vld [vmem:[%s4586_s10 + $0xa4] sm:$0xff] }
  0x60   : > { %3995 = vmatprep.mubr.bf16.mxu0 %v4772_v13  ;;  %4024 = vmatpush3.bf16.msra.mxu0 %v4476_v9  ;;  %v3106_v9 = vld [vmem:[%s4586_s10 + $0x2] sm:$0xff] }
  0x61   : > { %4025 = vmatprep.subr.bf16.mxu0 %v4478_v14  ;;  %v738_v15 = vpack.c.bf16 %v3107_v10, %v3106_v9  ;;  %v4501_v9 = vld [vmem:[%s5214_s1 + $0xf8] sm:$0xff]  }
  0x62   : > { %v3124_v10 = vld [vmem:[%s4586_s10 + $0x92] sm:$0xff] }
  0x64   : > { %4026 = vmatpush3.bf16.msra.mxu0 %v4478_v14  ;;  %v1977_v14 = vpack.c.bf16 %v3349_v8, %v3348_v7 }
  0x65   : > { %4059 = vmatprep.subr.bf16.mxu0 %v4786_v20 }
  0x66   : > { %3788 = vmatmul.mubr.bf16.vlgmr.msra.gmra.mrb[0].mxu1 %v4684_v19  ;;  %v3301_v19 = vld [vmem:[%s4586_s10 + $0xd0] sm:$0xff] }
  0x67   : > { %3996 = vmatmul.mubr.bf16.gmra.mrb[16].mxu0 %v4788_v21  ;;  %3820 = vmatpush3.bf16.msra.mxu1 %v4707_v32  ;;  %v4810_v29 = vpack.c.bf16 %v3302_v27, %v3301_v19  ;;  %v3304_v32 = vld [vmem:[%s4586_s10 + $0xe8] sm:$0xff]  ;;  %v4913_v19 = vld [vmem:[%s5214_s1 + $0x200] sm:$0xff]  }
  0x68   : > { %3791 = vmatprep.mubr.bf16.mxu1 %v4709_v33  ;;  %3999 = vmatprep.mubr.bf16.mxu0 %v4790_v22  ;;  %v3305_v33 = vld [vmem:[%s4586_s10 + $0xf0] sm:$0xff]  ;;  %v4826_v36 = vpack.c.bf16 %v3304_v32, %v3303_v31  ;;  %v4489_v31 = vld [vmem:[%s5214_s1 + $0xc8] sm:$0xff]  }
  0x69   : > { %3821 = vmatprep.subr.bf16.mxu1 %v4473_v23  ;;  %v4828_v37 = vpack.c.bf16 %v3306_v34, %v3305_v33  ;;  %v3112_v32 = vld [vmem:[%s4586_s10 + $0x32] sm:$0xff]  ;;  %v3113_v33 = vld [vmem:[%s4586_s10 + $0x3a] sm:$0xff] }
  0x6a   : > { %v3356_v34 = vld [vmem:[%s4586_s10 + $0xcc] sm:$0xff]  ;;  %v741_v41 = vpack.c.bf16 %v3113_v33, %v3112_v32 }
  0x6b   : > { %3822 = vmatpush3.bf16.msra.mxu1 %v4473_v23  ;;  %v3110_v23 = vld [vmem:[%s4586_s10 + $0x22] sm:$0xff]  ;;  %v4500_v33 = vld [vmem:[%s5214_s1 + $0x210] sm:$0xff]  }
  0x6c   : > { %3823 = vmatprep.subr.bf16.mxu1 %v4475_v26  ;;  %v3400_v32 = vld [vmem:[%s4586_s10 + $0x65] sm:$0xff] }
  0x6e   : > { %3792 = vmatmul.mubr.bf16.gmra.mrb[4].mxu1 %v4711_v35  ;;  %v4479_v35 = vld [vmem:[%s5214_s1 + $0xa0] sm:$0xff]  }
  0x6f   : > { %4000 = vmatmul.mubr.bf16.gmra.mrb[20].mxu0 %v4808_v28  ;;  %3795 = vmatprep.mubr.bf16.mxu1 %v4730_v47  ;;  %v3336_v47 = vld [vmem:[%s4586_s10 + $0x2c] sm:$0xff] }
  0x70   : > { %4003 = vmatprep.mubr.bf16.mxu0 %v4810_v29  ;;  %3824 = vmatpush3.bf16.msra.mxu1 %v4475_v26  ;;  %v1971_v52 = vpack.c.bf16 %v3337_v48, %v3336_v47  ;;  %v3355_v26 = vld [vmem:[%s4586_s10 + $0xc4] sm:$0xff]  ;;  %v3117_v47 = vld [vmem:[%s4586_s10 + $0x5a] sm:$0xff]  ;;  %v3360_v48 = vld [vmem:[%s4586_s10 + $0xec] sm:$0xff] }
  0x71   : > { %3825 = vmatprep.subr.bf16.mxu1 %v4477_v30 }
  0x74   : > { %3826 = vmatpush3.bf16.msra.mxu1 %v4477_v30  ;;  %v1980_v30 = vpack.c.bf16 %v3355_v26, %v3354_v25  ;;  %v3128_v25 = vld [vmem:[%s4586_s10 + $0xb2] sm:$0xff]  ;;  %v3129_v26 = vld [vmem:[%s4586_s10 + $0xba] sm:$0xff] }
  0x75   : > { %3827 = vmatprep.subr.bf16.mxu1 %v4479_v35 }
  0x76   : > { %3796 = vmatmul.mubr.bf16.gmra.mrb[8].mxu1 %v4732_v49  ;;  %v3338_v49 = vld [vmem:[%s4586_s10 + $0x3c] sm:$0xff] }
  0x77   : > { %4004 = vmatmul.mubr.bf16.gmra.mrb[24].mxu0 %v4826_v36  ;;  %3799 = vmatprep.mubr.bf16.mxu1 %v4750_v61  ;;  %v1972_v53 = vpack.c.bf16 %v3339_v50, %v3338_v49  ;;  %v1974_v61 = vpack.c.bf16 %v3343_v58, %v3342_v57  ;;  %v3361_v49 = vld [vmem:[%s4586_s10 + $0xf4] sm:$0xff]  ;;  %v3118_v50 = vld [vmem:[%s4586_s10 + $0x62] sm:$0xff] }
  0x78   : > { %4007 = vmatprep.mubr.bf16.mxu0 %v4828_v37  ;;  %3828 = vmatpush3.bf16.msra.mxu1 %v4479_v35  ;;  %v3357_v35 = vld [vmem:[%s4586_s10 + $0xd4] sm:$0xff]  ;;  %v1983_v56 = vpack.c.bf16 %v3361_v49, %v3360_v48 }
  0x79   : > { %3829 = vmatprep.subr.bf16.mxu1 %v4481_v38  ;;  %v1981_v42 = vpack.c.bf16 %v3357_v35, %v3356_v34  ;;  %v749_v34 = vpack.c.bf16 %v3129_v26, %v3128_v25 }
  0x7c   : > { %3830 = vmatpush3.bf16.msra.mxu1 %v4481_v38  ;;  %v4491_v38 = vld [vmem:[%s5214_s1 + $0xd0] sm:$0xff]  }
  0x7d   : > { %3831 = vmatprep.subr.bf16.mxu1 %v4483_v43 }
  0x7e   : > { %3800 = vmatmul.mubr.bf16.gmra.mrb[12].mxu1 %v4752_v63  ;;  %v3344_v63 = vld [vmem:[%s4586_s10 + $0x6c] sm:$0xff] }
  0x7f   : > { %4008 = vmatmul.mubr.bf16.gmra.mrb[28].mxu0 %v1677_v44  ;;  %3803 = vmatprep.mubr.bf16.mxu1 %v4770_v11  ;;  %v1975_v4 = vpack.c.bf16 %v3345_v0, %v3344_v63  ;;  %v3350_v11 = vld [vmem:[%s4586_s10 + $0x9c] sm:$0xff]  ;;  %v1982_v44 = vpack.c.bf16 %v3359_v40, %v3358_v39  ;;  %v3365_v63 = vld [vmem:[%s4586_s10 + $0x114] sm:$0xff] }
  0x80   : > { %4027 = vmatprep.mubr.bf16.mxu0 %v1970_v45  ;;  %3832 = vmatpush3.bf16.msra.mxu1 %v4483_v43  ;;  %v1978_v16 = vpack.c.bf16 %v3351_v12, %v3350_v11  ;;  %v4493_v45 = vld [vmem:[%s5214_s1 + $0xd8] sm:$0xff]   ;;  %v3122_v0 = vld [vmem:[%s4586_s10 + $0x82] sm:$0xff]  ;;  %v3393_v12 = vld [vmem:[%s4586_s10 + $0x2d] sm:$0xff] }
  0x81   : > { %3833 = vmatprep.subr.bf16.mxu1 %v4485_v46  ;;  %v746_v7 = vpack.c.bf16 %v3123_v1, %v3122_v0  ;;  %v3125_v11 = vld [vmem:[%s4586_s10 + $0x9a] sm:$0xff]  ;;  %v3401_v40 = vld [vmem:[%s4586_s10 + $0x6d] sm:$0xff] }
  0x82   : > { %v3133_v39 = vld [vmem:[%s4586_s10 + $0xda] sm:$0xff] }
  0x83   : > { %v4506_v1 = vld [vmem:[%s5214_s1 + $0x238] sm:$0xff]  }
  0x84   : > { %3834 = vmatpush3.bf16.msra.mxu1 %v4485_v46  ;;  %v3116_v46 = vld [vmem:[%s4586_s10 + $0x52] sm:$0xff] }
  0x85   : > { %3867 = vmatprep.subr.bf16.mxu1 %v4856_v51  ;;  %v743_v55 = vpack.c.bf16 %v3117_v47, %v3116_v46  ;;  %v4503_v46 = vld [vmem:[%s5214_s1 + $0x220] sm:$0xff]  }
  0x86   : > { %3804 = vmatmul.mubr.bf16.gmra.mrb[16].mxu1 %v4772_v13  ;;  %v4492_v13 = vld [vmem:[%s5214_s1 + $0x1f0] sm:$0xff]  }
  0x87   : > { %4028 = vmatmul.mubr.bf16.vlgmr.msra.gmra.mrb[0].mxu0 %v1971_v52  ;;  %3807 = vmatprep.mubr.bf16.mxu1 %v4788_v21  ;;  %v3352_v21 = vld [vmem:[%s4586_s10 + $0xac] sm:$0xff]  ;;  %v3362_v52 = vld [vmem:[%s4586_s10 + $0xfc] sm:$0xff] }
  0x88   : > { %4060 = vmatpush3.bf16.msra.mxu0 %v4786_v20  ;;  %4031 = vmatprep.mubr.bf16.mxu0 %v1972_v53  ;;  %v3109_v20 = vld [vmem:[%s4586_s10 + $0x1a] sm:$0xff]  ;;  %v3363_v53 = vld [vmem:[%s4586_s10 + $0x104] sm:$0xff] }
  0x89   : > { %4061 = vmatprep.subr.bf16.mxu0 %v4482_v54  ;;  %v739_v27 = vpack.c.bf16 %v3109_v20, %v3108_v18  ;;  %v1984_v58 = vpack.c.bf16 %v3363_v53, %v3362_v52  ;;  %v747_v18 = vpack.c.bf16 %v3125_v11, %v3124_v10  ;;  %v3136_v52 = vld [vmem:[%s4586_s10 + $0xf2] sm:$0xff]  ;;  %v3137_v53 = vld [vmem:[%s4586_s10 + $0xfa] sm:$0xff] }
  0x8c   : > { %4062 = vmatpush3.bf16.msra.mxu0 %v4482_v54  ;;  %v4495_v54 = vld [vmem:[%s5214_s1 + $0xe0] sm:$0xff]  }
  0x8d   : > { %4063 = vmatprep.subr.bf16.mxu0 %v4484_v59 }
  0x8e   : > { %3808 = vmatmul.mubr.bf16.gmra.mrb[20].mxu1 %v4790_v22  ;;  %v3353_v22 = vld [vmem:[%s4586_s10 + $0xb4] sm:$0xff] }
  0x8f   : > { %4032 = vmatmul.mubr.bf16.gmra.mrb[4].mxu0 %v1973_v60  ;;  %3811 = vmatprep.mubr.bf16.mxu1 %v4808_v28  ;;  %v1979_v28 = vpack.c.bf16 %v3353_v22, %v3352_v21  ;;  %v3120_v60 = vld [vmem:[%s4586_s10 + $0x72] sm:$0xff] }
  0x90   : > { %4035 = vmatprep.mubr.bf16.mxu0 %v1974_v61  ;;  %4064 = vmatpush3.bf16.msra.mxu0 %v4484_v59  ;;  %v4497_v59 = vld [vmem:[%s5214_s1 + $0xe8] sm:$0xff]   ;;  %v3121_v61 = vld [vmem:[%s4586_s10 + $0x7a] sm:$0xff] }
  0x91   : > { %4065 = vmatprep.subr.bf16.mxu0 %v4486_v62 }
  0x94   : > { %4066 = vmatpush3.bf16.msra.mxu0 %v4486_v62  ;;  %v3364_v62 = vld [vmem:[%s4586_s10 + $0x10c] sm:$0xff] }
  0x95   : > { %4067 = vmatprep.subr.bf16.mxu0 %v4488_v3 }
  0x96   : > { %3812 = vmatmul.mubr.bf16.gmra.mrb[24].mxu1 %v4810_v29  ;;  %v740_v29 = vpack.c.bf16 %v3111_v24, %v3110_v23  ;;  %v4498_v23 = vld [vmem:[%s5214_s1 + $0x208] sm:$0xff]   ;;  %v4976_v24 = vld [vmem:[%s5214_s1 + $0x100] sm:$0xff]  }
  0x97   : > { %4036 = vmatmul.mubr.bf16.gmra.mrb[8].mxu0 %v1975_v4  ;;  %3815 = vmatprep.mubr.bf16.mxu1 %v4826_v36  ;;  %v3114_v36 = vld [vmem:[%s4586_s10 + $0x42] sm:$0xff]  ;;  %v4499_v4 = vld [vmem:[%s5214_s1 + $0xf0] sm:$0xff]  }
  0x98   : > { %4039 = vmatprep.mubr.bf16.mxu0 %v1976_v5  ;;  %4068 = vmatpush3.bf16.msra.mxu0 %v4488_v3  ;;  %v3392_v3 = vld [vmem:[%s4586_s10 + $0x25] sm:$0xff]  ;;  %v745_v5 = vpack.c.bf16 %v3121_v61, %v3120_v60  ;;  %v4505_v60 = vld [vmem:[%s5214_s1 + $0x230] sm:$0xff]   ;;  %v753_v61 = vpack.c.bf16 %v3137_v53, %v3136_v52 }
  0x99   : > { %4069 = vmatprep.subr.bf16.mxu0 %v4490_v6  ;;  %v2278_v8 = vpack.c.bf16 %v3392_v3, %v3391_v2  ;;  %v3165_v2 = vld [vmem:[%s4586_s10 + $0x1e] sm:$0xff]  ;;  %v3166_v3 = vld [vmem:[%s4586_s10 + $0x26] sm:$0xff]  ;;  %v4513_v52 = vld [vmem:[%s5214_s1 + $0x130] sm:$0xff]  }
  0x9a   : > { %v5030_v10 = vpack.c.bf16 %v3166_v3, %v3165_v2  ;;  %v3181_v53 = vld [vmem:[%s4586_s10 + $0x9e] sm:$0xff]  ;;  %v3190_v3 = vld [vmem:[%s4586_s10 + $0xe6] sm:$0xff] }
  0x9b   : > { %v3189_v2 = vld [vmem:[%s4586_s10 + $0xde] sm:$0xff] }
  0x9c   : > { %4070 = vmatpush3.bf16.msra.mxu0 %v4490_v6  ;;  %v1985_v6 = vpack.c.bf16 %v3365_v63, %v3364_v62 }
  0x9d   : > { %4071 = vmatprep.subr.bf16.mxu0 %v4492_v13 }
  0x9e   : > { %3816 = vmatmul.mubr.bf16.gmra.mrb[28].mxu1 %v4828_v37  ;;  %v3115_v37 = vld [vmem:[%s4586_s10 + $0x4a] sm:$0xff] }
  0x9f   : > { %4040 = vmatmul.mubr.bf16.gmra.mrb[12].mxu0 %v1977_v14  ;;  %3835 = vmatprep.mubr.bf16.mxu1 %v738_v15  ;;  %v742_v43 = vpack.c.bf16 %v3115_v37, %v3114_v36  ;;  %v3126_v14 = vld [vmem:[%s4586_s10 + $0xa2] sm:$0xff]  ;;  %v3127_v15 = vld [vmem:[%s4586_s10 + $0xaa] sm:$0xff]  ;;  %v4502_v37 = vld [vmem:[%s5214_s1 + $0x218] sm:$0xff]  }
  0xa0   : > { %4043 = vmatprep.mubr.bf16.mxu0 %v1978_v16  ;;  %4072 = vmatpush3.bf16.msra.mxu0 %v4492_v13  ;;  %v3394_v13 = vld [vmem:[%s4586_s10 + $0x35] sm:$0xff]  ;;  %v3395_v16 = vld [vmem:[%s4586_s10 + $0x3d] sm:$0xff]  ;;  %v748_v21 = vpack.c.bf16 %v3127_v15, %v3126_v14  ;;  %v3170_v15 = vld [vmem:[%s4586_s10 + $0x46] sm:$0xff] }
  0xa1   : > { %4073 = vmatprep.subr.bf16.mxu0 %v4494_v17  ;;  %v2279_v20 = vpack.c.bf16 %v3394_v13, %v3393_v12  ;;  %v3169_v14 = vld [vmem:[%s4586_s10 + $0x3e] sm:$0xff] }
  0xa4   : > { %4074 = vmatpush3.bf16.msra.mxu0 %v4494_v17  ;;  %v3396_v17 = vld [vmem:[%s4586_s10 + $0x45] sm:$0xff] }
  0xa5   : > { %4107 = vmatprep.subr.bf16.mxu0 %v4913_v19  ;;  %v2280_v22 = vpack.c.bf16 %v3396_v17, %v3395_v16  ;;  %v3413_v16 = vld [vmem:[%s4586_s10 + $0xcd] sm:$0xff]  ;;  %v3414_v17 = vld [vmem:[%s4586_s10 + $0xd5] sm:$0xff] }
  0xa6   : > { %3836 = vmatmul.mubr.bf16.vlgmr.msra.gmra.mrb[0].mxu1 %v739_v27  ;;  %v3397_v27 = vld [vmem:[%s4586_s10 + $0x4d] sm:$0xff]  ;;  %v2289_v25 = vpack.c.bf16 %v3414_v17, %v3413_v16  ;;  %v3241_v17 = vld [vmem:[%s4586_s10 + $0xb7] sm:$0xff] }
  0xa7   : > { %4044 = vmatmul.mubr.bf16.gmra.mrb[16].mxu0 %v1979_v28  ;;  %3868 = vmatpush3.bf16.msra.mxu1 %v4856_v51  ;;  %v3119_v51 = vld [vmem:[%s4586_s10 + $0x6a] sm:$0xff]  ;;  %v3398_v28 = vld [vmem:[%s4586_s10 + $0x55] sm:$0xff] }
  0xa8   : > { %3839 = vmatprep.mubr.bf16.mxu1 %v740_v29  ;;  %4047 = vmatprep.mubr.bf16.mxu0 %v1980_v30  ;;  %v744_v57 = vpack.c.bf16 %v3119_v51, %v3118_v50  ;;  %v3130_v29 = vld [vmem:[%s4586_s10 + $0xc2] sm:$0xff]  ;;  %v3131_v30 = vld [vmem:[%s4586_s10 + $0xca] sm:$0xff]  ;;  %v2281_v35 = vpack.c.bf16 %v3398_v28, %v3397_v27 }
  0xa9   : > { %3869 = vmatprep.subr.bf16.mxu1 %v4489_v31  ;;  %v4504_v51 = vld [vmem:[%s5214_s1 + $0x228] sm:$0xff]   ;;  %v4509_v28 = vld [vmem:[%s5214_s1 + $0x110] sm:$0xff]  }
  0xaa   : > { %v3240_v16 = vld [vmem:[%s4586_s10 + $0xaf] sm:$0xff] }
  0xab   : > { %3870 = vmatpush3.bf16.msra.mxu1 %v4489_v31  ;;  %v3399_v31 = vld [vmem:[%s4586_s10 + $0x5d] sm:$0xff] }
  0xac   : > { %3871 = vmatprep.subr.bf16.mxu1 %v4491_v38  ;;  %v2282_v36 = vpack.c.bf16 %v3400_v32, %v3399_v31  ;;  %v3417_v31 = vld [vmem:[%s4586_s10 + $0xed] sm:$0xff]  ;;  %v3418_v32 = vld [vmem:[%s4586_s10 + $0xf5] sm:$0xff] }
  0xae   : > { %3840 = vmatmul.mubr.bf16.gmra.mrb[4].mxu1 %v741_v41  ;;  %v3402_v41 = vld [vmem:[%s4586_s10 + $0x75] sm:$0xff] }
  0xaf   : > { %4048 = vmatmul.mubr.bf16.gmra.mrb[20].mxu0 %v1981_v42  ;;  %3843 = vmatprep.mubr.bf16.mxu1 %v742_v43  ;;  %v3134_v42 = vld [vmem:[%s4586_s10 + $0xe2] sm:$0xff]  ;;  %v3135_v43 = vld [vmem:[%s4586_s10 + $0xea] sm:$0xff]  ;;  %v2283_v48 = vpack.c.bf16 %v3402_v41, %v3401_v40 }
  0xb0   : > { %4051 = vmatprep.mubr.bf16.mxu0 %v1982_v44  ;;  %3872 = vmatpush3.bf16.msra.mxu1 %v4491_v38  ;;  %v3132_v38 = vld [vmem:[%s4586_s10 + $0xd2] sm:$0xff]  ;;  %v3403_v44 = vld [vmem:[%s4586_s10 + $0x7d] sm:$0xff]  ;;  %v752_v49 = vpack.c.bf16 %v3135_v43, %v3134_v42  ;;  %v3178_v43 = vld [vmem:[%s4586_s10 + $0x86] sm:$0xff] }
  0xb1   : > { %3873 = vmatprep.subr.bf16.mxu1 %v4493_v45  ;;  %v751_v47 = vpack.c.bf16 %v3133_v39, %v3132_v38  ;;  %v2291_v38 = vpack.c.bf16 %v3418_v32, %v3417_v31  ;;  %v4511_v41 = vld [vmem:[%s5214_s1 + $0x120] sm:$0xff]  }
  0xb2   : > { %v3177_v42 = vld [vmem:[%s4586_s10 + $0x7e] sm:$0xff] }
  0xb4   : > { %3874 = vmatpush3.bf16.msra.mxu1 %v4493_v45  ;;  %v3404_v45 = vld [vmem:[%s4586_s10 + $0x85] sm:$0xff] }
  0xb5   : > { %3875 = vmatprep.subr.bf16.mxu1 %v4495_v54  ;;  %v2284_v50 = vpack.c.bf16 %v3404_v45, %v3403_v44  ;;  %v3421_v44 = vld [vmem:[%s4586_s10 + $0x10d] sm:$0xff]  ;;  %v3422_v45 = vld [vmem:[%s4586_s10 + $0x115] sm:$0xff] }
  0xb6   : > { %3844 = vmatmul.mubr.bf16.gmra.mrb[8].mxu1 %v743_v55  ;;  %v3406_v55 = vld [vmem:[%s4586_s10 + $0x95] sm:$0xff] }
  0xb7   : > { %4052 = vmatmul.mubr.bf16.gmra.mrb[24].mxu0 %v1983_v56  ;;  %3847 = vmatprep.mubr.bf16.mxu1 %v744_v57  ;;  %v3163_v56 = vld [vmem:[%s4586_s10 + $0xe] sm:$0xff]  ;;  %v3164_v57 = vld [vmem:[%s4586_s10 + $0x16] sm:$0xff] }
  0xb8   : > { %4055 = vmatprep.mubr.bf16.mxu0 %v1984_v58  ;;  %3876 = vmatpush3.bf16.msra.mxu1 %v4495_v54  ;;  %v3405_v54 = vld [vmem:[%s4586_s10 + $0x8d] sm:$0xff]  ;;  %v3407_v58 = vld [vmem:[%s4586_s10 + $0x9d] sm:$0xff]  ;;  %v1046_v63 = vpack.c.bf16 %v3164_v57, %v3163_v56 }
  0xb9   : > { %3877 = vmatprep.subr.bf16.mxu1 %v4497_v59  ;;  %v2285_v62 = vpack.c.bf16 %v3406_v55, %v3405_v54  ;;  %v3182_v54 = vld [vmem:[%s4586_s10 + $0xa6] sm:$0xff]  ;;  %v3183_v55 = vld [vmem:[%s4586_s10 + $0xae] sm:$0xff]  ;;  %v3184_v56 = vld [vmem:[%s4586_s10 + $0xb6] sm:$0xff] }
  0xba   : > { %v4514_v57 = vld [vmem:[%s5214_s1 + $0x138] sm:$0xff]  }
  0xbc   : > { %3878 = vmatpush3.bf16.msra.mxu1 %v4497_v59  ;;  %v3408_v59 = vld [vmem:[%s4586_s10 + $0xa5] sm:$0xff] }
  0xbd   : > { %3879 = vmatprep.subr.bf16.mxu1 %v4499_v4  ;;  %v2286_v0 = vpack.c.bf16 %v3408_v59, %v3407_v58  ;;  %v1055_v58 = vpack.c.bf16 %v3182_v54, %v3181_v53  ;;  %v1056_v59 = vpack.c.bf16 %v3184_v56, %v3183_v55  ;;  %v5135_v55 = vld [vmem:[%s5215_s2] ss:$0 sm:$0xff] }
  0xbe   : > { %3848 = vmatmul.mubr.bf16.gmra.mrb[12].mxu1 %v745_v5  ;;  %v3410_v5 = vld [vmem:[%s4586_s10 + $0xb5] sm:$0xff] }
  0xbf   : > { %4056 = vmatmul.mubr.bf16.gmra.mrb[28].mxu0 %v1985_v6  ;;  %3851 = vmatprep.mubr.bf16.mxu1 %v746_v7  ;;  %v3167_v6 = vld [vmem:[%s4586_s10 + $0x2e] sm:$0xff]  ;;  %v3168_v7 = vld [vmem:[%s4586_s10 + $0x36] sm:$0xff] }
  0xc0   : > { %4075 = vmatprep.mubr.bf16.mxu0 %v2278_v8  ;;  %3880 = vmatpush3.bf16.msra.mxu1 %v4499_v4  ;;  %v3409_v4 = vld [vmem:[%s4586_s10 + $0xad] sm:$0xff]  ;;  %v3411_v8 = vld [vmem:[%s4586_s10 + $0xbd] sm:$0xff]  ;;  %v5032_v12 = vpack.c.bf16 %v3168_v7, %v3167_v6  ;;  %v1059_v6 = vpack.c.bf16 %v3190_v3, %v3189_v2 }
  0xc1   : > { %3881 = vmatprep.subr.bf16.mxu1 %v4501_v9  ;;  %v2287_v11 = vpack.c.bf16 %v3410_v5, %v3409_v4  ;;  %v3191_v4 = vld [vmem:[%s4586_s10 + $0xee] sm:$0xff]  ;;  %v3192_v5 = vld [vmem:[%s4586_s10 + $0xf6] sm:$0xff] }
  0xc2   : > { %v1060_v7 = vpack.c.bf16 %v3192_v5, %v3191_v4 }
  0xc4   : > { %3882 = vmatpush3.bf16.msra.mxu1 %v4501_v9  ;;  %v3412_v9 = vld [vmem:[%s4586_s10 + $0xc5] sm:$0xff] }
  0xc5   : > { %4155 = vmatprep.subr.bf16.mxu1 %v4976_v24  ;;  %v2288_v13 = vpack.c.bf16 %v3412_v9, %v3411_v8  ;;  %v3193_v8 = vld [vmem:[%s4586_s10 + $0xfe] sm:$0xff]  ;;  %v3194_v9 = vld [vmem:[%s4586_s10 + $0x106] sm:$0xff] }
  0xc6   : > { %3852 = vmatmul.mubr.bf16.gmra.mrb[16].mxu1 %v747_v18  ;;  %v3171_v18 = vld [vmem:[%s4586_s10 + $0x4e] sm:$0xff] }
  0xc7   : > { %4076 = vmatmul.mubr.bf16.vlgmr.msra.gmra.mrb[0].mxu0 %v2279_v20  ;;  %3855 = vmatprep.mubr.bf16.mxu1 %v748_v21  ;;  %v3172_v20 = vld [vmem:[%s4586_s10 + $0x56] sm:$0xff]  ;;  %v4508_v21 = vld [vmem:[%s5214_s1 + $0x108] sm:$0xff]  }
  0xc8   : > { %4108 = vmatpush3.bf16.msra.mxu0 %v4913_v19  ;;  %4079 = vmatprep.mubr.bf16.mxu0 %v2280_v22  ;;  %v750_v19 = vpack.c.bf16 %v3131_v30, %v3130_v29  ;;  %v3415_v22 = vld [vmem:[%s4586_s10 + $0xdd] sm:$0xff]  ;;  %v5050_v26 = vpack.c.bf16 %v3172_v20, %v3171_v18  ;;  %v3174_v30 = vld [vmem:[%s4586_s10 + $0x66] sm:$0xff]  ;;  %v1364_v20 = vpack.c.bf16 %v3241_v17, %v3240_v16 }
  0xc9   : > { %4109 = vmatprep.subr.bf16.mxu0 %v4498_v23  ;;  %v3173_v29 = vld [vmem:[%s4586_s10 + $0x5e] sm:$0xff] }
  0xcc   : > { %4110 = vmatpush3.bf16.msra.mxu0 %v4498_v23  ;;  %v3416_v23 = vld [vmem:[%s4586_s10 + $0xe5] sm:$0xff] }
  0xcd   : > { %4111 = vmatprep.subr.bf16.mxu0 %v4500_v33  ;;  %v2290_v27 = vpack.c.bf16 %v3416_v23, %v3415_v22  ;;  %v3243_v22 = vld [vmem:[%s4586_s10 + $0xc7] sm:$0xff]  ;;  %v3244_v23 = vld [vmem:[%s4586_s10 + $0xcf] sm:$0xff] }
  0xce   : > { %3856 = vmatmul.mubr.bf16.gmra.mrb[20].mxu1 %v749_v34  ;;  %v3176_v34 = vld [vmem:[%s4586_s10 + $0x76] sm:$0xff] }
  0xcf   : > { %4080 = vmatmul.mubr.bf16.gmra.mrb[4].mxu0 %v2281_v35  ;;  %3859 = vmatprep.mubr.bf16.mxu1 %v750_v19  ;;  %v3419_v35 = vld [vmem:[%s4586_s10 + $0xfd] sm:$0xff]  ;;  %v3420_v19 = vld [vmem:[%s4586_s10 + $0x105] sm:$0xff] }
  0xd0   : > { %4083 = vmatprep.mubr.bf16.mxu0 %v2282_v36  ;;  %4112 = vmatpush3.bf16.msra.mxu0 %v4500_v33  ;;  %v3175_v33 = vld [vmem:[%s4586_s10 + $0x6e] sm:$0xff]  ;;  %v4510_v36 = vld [vmem:[%s5214_s1 + $0x118] sm:$0xff]   ;;  %v2292_v40 = vpack.c.bf16 %v3420_v19, %v3419_v35 }
  0xd1   : > { %4113 = vmatprep.subr.bf16.mxu0 %v4502_v37  ;;  %v1052_v39 = vpack.c.bf16 %v3176_v34, %v3175_v33  ;;  %v3250_v33 = vld [vmem:[%s4586_s10 + $0xff] sm:$0xff]  ;;  %v3251_v34 = vld [vmem:[%s4586_s10 + $0x107] sm:$0xff]  ;;  %v3479_v19 = vld [vmem:[%s4586_s10 + $0x116] sm:$0xff] }
  0xd2   : > { %v3478_v35 = vld [vmem:[%s4586_s10 + $0x10e] sm:$0xff] }
  0xd4   : > { %4114 = vmatpush3.bf16.msra.mxu0 %v4502_v37  ;;  %v1051_v37 = vpack.c.bf16 %v3174_v30, %v3173_v29  ;;  %v3248_v29 = vld [vmem:[%s4586_s10 + $0xef] sm:$0xff]  ;;  %v3249_v30 = vld [vmem:[%s4586_s10 + $0xf7] sm:$0xff] }
  0xd5   : > { %4115 = vmatprep.subr.bf16.mxu0 %v4503_v46  ;;  %v1368_v32 = vpack.c.bf16 %v3249_v30, %v3248_v29 }
  0xd6   : > { %3860 = vmatmul.mubr.bf16.gmra.mrb[24].mxu1 %v751_v47  ;;  %v3180_v47 = vld [vmem:[%s4586_s10 + $0x96] sm:$0xff] }
  0xd7   : > { %4084 = vmatmul.mubr.bf16.gmra.mrb[8].mxu0 %v2283_v48  ;;  %3863 = vmatprep.mubr.bf16.mxu1 %v752_v49  ;;  %v4512_v48 = vld [vmem:[%s5214_s1 + $0x128] sm:$0xff]   ;;  %v1053_v49 = vpack.c.bf16 %v3178_v43, %v3177_v42 }
  0xd8   : > { %4087 = vmatprep.mubr.bf16.mxu0 %v2284_v50  ;;  %4116 = vmatpush3.bf16.msra.mxu0 %v4503_v46  ;;  %v3179_v46 = vld [vmem:[%s4586_s10 + $0x8e] sm:$0xff]  ;;  %v2293_v50 = vpack.c.bf16 %v3422_v45, %v3421_v44 }
  0xd9   : > { %4117 = vmatprep.subr.bf16.mxu0 %v4504_v51 }
  0xdc   : > { %4118 = vmatpush3.bf16.msra.mxu0 %v4504_v51  ;;  %v1054_v51 = vpack.c.bf16 %v3180_v47, %v3179_v46 }
  0xdd   : > { %4119 = vmatprep.subr.bf16.mxu0 %v4505_v60 }
  0xde   : > { %3864 = vmatmul.mubr.bf16.gmra.mrb[28].mxu1 %v753_v61  ;;  %v3186_v61 = vld [vmem:[%s4586_s10 + $0xc6] sm:$0xff] }
  0xdf   : > { %4088 = vmatmul.mubr.bf16.gmra.mrb[12].mxu0 %v2285_v62  ;;  %3883 = vmatprep.mubr.bf16.mxu1 %v1046_v63  ;;  %v3187_v62 = vld [vmem:[%s4586_s10 + $0xce] sm:$0xff]  ;;  %v3188_v63 = vld [vmem:[%s4586_s10 + $0xd6] sm:$0xff] }
  0xe0   : > { %4091 = vmatprep.mubr.bf16.mxu0 %v2286_v0  ;;  %4120 = vmatpush3.bf16.msra.mxu0 %v4505_v60  ;;  %v3185_v60 = vld [vmem:[%s4586_s10 + $0xbe] sm:$0xff] }
  0xe1   : > { %4121 = vmatprep.subr.bf16.mxu0 %v4506_v1  ;;  %v1057_v0 = vpack.c.bf16 %v3186_v61, %v3185_v60 }
  0xe4   : > { %4122 = vmatpush3.bf16.msra.mxu0 %v4506_v1  ;;  %v1058_v1 = vpack.c.bf16 %v3188_v63, %v3187_v62 }
  0xe6   : > { %3884 = vmatmul.mubr.bf16.vlgmr.msra.gmra.mrb[0].mxu1 %v5030_v10 }
  0xe7   : > { %4092 = vmatmul.mubr.bf16.gmra.mrb[16].mxu0 %v2287_v11  ;;  %4163 = vmatpush3.bf16.msra.mxu1 %v4976_v24  ;;  %v5048_v24 = vpack.c.bf16 %v3170_v15, %v3169_v14  ;;  %v3237_v11 = vld [vmem:[%s4586_s10 + $0x97] sm:$0xff]  ;;  %v3238_v14 = vld [vmem:[%s4586_s10 + $0x9f] sm:$0xff]  ;;  %v3239_v15 = vld [vmem:[%s4586_s10 + $0xa7] sm:$0xff] }
  0xe8   : > { %3887 = vmatprep.mubr.bf16.mxu1 %v5032_v12  ;;  %4095 = vmatprep.mubr.bf16.mxu0 %v2288_v13  ;;  %v1363_v18 = vpack.c.bf16 %v3239_v15, %v3238_v14 }
  0xe9   : > { %4156 = vmatprep.subr.bf16.mxu1 %v4508_v21 }
  0xeb   : > { %4164 = vmatpush3.bf16.msra.mxu1 %v4508_v21  ;;  %v3242_v21 = vld [vmem:[%s4586_s10 + $0xbf] sm:$0xff] }
  0xec   : > { %4157 = vmatprep.subr.bf16.mxu1 %v4509_v28 }
  0xee   : > { %3888 = vmatmul.mubr.bf16.gmra.mrb[4].mxu1 %v5048_v24 }
  0xef   : > { %4096 = vmatmul.mubr.bf16.gmra.mrb[20].mxu0 %v2289_v25  ;;  %3891 = vmatprep.mubr.bf16.mxu1 %v5050_v26  ;;  %v1365_v25 = vpack.c.bf16 %v3243_v22, %v3242_v21 }
  0xf0   : > { %4099 = vmatprep.mubr.bf16.mxu0 %v2290_v27  ;;  %4165 = vmatpush3.bf16.msra.mxu1 %v4509_v28  ;;  %v3246_v27 = vld [vmem:[%s4586_s10 + $0xdf] sm:$0xff]  ;;  %v3247_v28 = vld [vmem:[%s4586_s10 + $0xe7] sm:$0xff] }
  0xf1   : > { %4158 = vmatprep.subr.bf16.mxu1 %v4510_v36  ;;  %v1367_v31 = vpack.c.bf16 %v3247_v28, %v3246_v27 }
  0xf4   : > { %4166 = vmatpush3.bf16.msra.mxu1 %v4510_v36  ;;  %v1369_v36 = vpack.c.bf16 %v3251_v34, %v3250_v33 }
  0xf5   : > { %4159 = vmatprep.subr.bf16.mxu1 %v4511_v41 }
  0xf6   : > { %3892 = vmatmul.mubr.bf16.gmra.mrb[8].mxu1 %v1051_v37 }
  0xf7   : > { %4100 = vmatmul.mubr.bf16.gmra.mrb[24].mxu0 %v2291_v38  ;;  %3895 = vmatprep.mubr.bf16.mxu1 %v1052_v39 }
  0xf8   : > { %4103 = vmatprep.mubr.bf16.mxu0 %v2292_v40  ;;  %4167 = vmatpush3.bf16.msra.mxu1 %v4511_v41 }
  0xf9   : > { %4160 = vmatprep.subr.bf16.mxu1 %v4512_v48 }
  0xfc   : > { %4168 = vmatpush3.bf16.msra.mxu1 %v4512_v48 }
  0xfd   : > { %4161 = vmatprep.subr.bf16.mxu1 %v4513_v52 }
  0xfe   : > { %3896 = vmatmul.mubr.bf16.gmra.mrb[12].mxu1 %v1053_v49 }
  0xff   : > { %4104 = vmatmul.mubr.bf16.gmra.mrb[28].mxu0 %v2293_v50  ;;  %3899 = vmatprep.mubr.bf16.mxu1 %v1054_v51 }
 0x100   : > { %4123 = vmatprep.mubr.bf16.mxu0 %v5030_v10  ;;  %4169 = vmatpush3.bf16.msra.mxu1 %v4513_v52  ;;  %v3236_v10 = vld [vmem:[%s4586_s10 + $0x8f] sm:$0xff] }
 0x101   : > { %4162 = vmatprep.subr.bf16.mxu1 %v4514_v57  ;;  %v1362_v13 = vpack.c.bf16 %v3237_v11, %v3236_v10 }
 0x104   : > { %4170 = vmatpush3.bf16.msra.mxu1 %v4514_v57 }
 0x106   : > { %3900 = vmatmul.mubr.bf16.gmra.mrb[16].mxu1 %v1055_v58 }
 0x107   : > { %4124 = vmatmul.mubr.bf16.vlgmr.msra.gmra.mrb[0].mxu0 %v5032_v12  ;;  %3903 = vmatprep.mubr.bf16.mxu1 %v1056_v59  ;;  %v1061_v12 = vpack.c.bf16 %v3194_v9, %v3193_v8 }
 0x108   : > { %4127 = vmatprep.mubr.bf16.mxu0 %v5048_v24  ;;  %v3245_v24 = vld [vmem:[%s4586_s10 + $0xd7] sm:$0xff] }
 0x10e   : > { %3904 = vmatmul.mubr.bf16.gmra.mrb[20].mxu1 %v1057_v0 }
 0x10f   : > { %4128 = vmatmul.mubr.bf16.gmra.mrb[4].mxu0 %v5050_v26  ;;  %3907 = vmatprep.mubr.bf16.mxu1 %v1058_v1  ;;  %v1366_v26 = vpack.c.bf16 %v3245_v24, %v3244_v23 }
 0x110   : > { %4131 = vmatprep.mubr.bf16.mxu0 %v1051_v37  ;;  %v2601_v37 = vpack.c.bf16 %v3479_v19, %v3478_v35 }
 0x116   : > { %3908 = vmatmul.mubr.bf16.gmra.mrb[24].mxu1 %v1059_v6 }
 0x117   : > { %4132 = vmatmul.mubr.bf16.gmra.mrb[8].mxu0 %v1052_v39  ;;  %3911 = vmatprep.mubr.bf16.mxu1 %v1060_v7 }
 0x118   : > { %4135 = vmatprep.mubr.bf16.mxu0 %v1053_v49 }
 0x11e   : > { %3912 = vmatmul.mubr.bf16.gmra.mrb[28].mxu1 %v1061_v12 }
 0x11f   : > { %4136 = vmatmul.mubr.bf16.gmra.mrb[12].mxu0 %v1054_v51  ;;  %3947 = vmatprep.mubr.bf16.mxu1 %v1362_v13 }
 0x120   : > { %4139 = vmatprep.mubr.bf16.mxu0 %v1055_v58 }
 0x126   : > { %3948 = vmatmul.mubr.bf16.vlgmr.msra.gmra.mrb[16].mxu1 %v1363_v18 }
 0x127   : > { %4140 = vmatmul.mubr.bf16.gmra.mrb[16].mxu0 %v1056_v59  ;;  %3951 = vmatprep.mubr.bf16.mxu1 %v1364_v20 }
 0x128   : > { %4143 = vmatprep.mubr.bf16.mxu0 %v1057_v0 }
 0x12e   : > { %3952 = vmatmul.mubr.bf16.gmra.mrb[20].mxu1 %v1365_v25 }
 0x12f   : > { %4144 = vmatmul.mubr.bf16.gmra.mrb[20].mxu0 %v1058_v1  ;;  %3955 = vmatprep.mubr.bf16.mxu1 %v1366_v26 }
 0x130   : > { %4147 = vmatprep.mubr.bf16.mxu0 %v1059_v6 }
 0x136   : > { %3956 = vmatmul.mubr.bf16.gmra.mrb[24].mxu1 %v1367_v31 }
 0x137   : > { %4148 = vmatmul.mubr.bf16.gmra.mrb[24].mxu0 %v1060_v7  ;;  %3959 = vmatprep.mubr.bf16.mxu1 %v1368_v32 }
 0x138   : > { %4151 = vmatprep.mubr.bf16.mxu0 %v1061_v12 }
 0x13e   : > { %3960 = vmatmul.mubr.bf16.gmra.mrb[28].mxu1 %v1369_v36 }
 0x13f   : > { %4152 = vmatmul.mubr.bf16.gmra.mrb[28].mxu0 %v2601_v37 }
 0x1b9   : > { %v3885_v38 = vpop.f32.mrb[0].mxu1 }
 0x1ba   : > { %v1161_v39 = vpop.f32.mrb[1].mxu1 }
 0x1bb   : > { %v3886_v40 = vpop.f32.mrb[2].mxu1 }
 0x1bc   : > { %v1164_v41 = vpop.f32.mrb[3].mxu1 }
 0x1c1   : > { %v3889_v42 = vpop.f32.mrb[4].mxu1 }
 0x1c2   : > { %v1177_v43 = vpop.f32.mrb[5].mxu1 }
 0x1c3   : > { %v3890_v44 = vpop.f32.mrb[6].mxu1 }
 0x1c4   : > { %v1180_v45 = vpop.f32.mrb[7].mxu1 }
 0x1c9   : > { %v3893_v46 = vpop.f32.mrb[8].mxu1 }
 0x1ca   : > { %v1193_v47 = vpop.f32.mrb[9].mxu1 }
 0x1cb   : > { %v3894_v48 = vpop.f32.mrb[10].mxu1 }
 0x1cc   : > { %v1196_v49 = vpop.f32.mrb[11].mxu1 }
 0x1d1   : > { %v5124_v50 = vpop.f32.mrb[12].mxu1 }
 0x1d2   : > { %v5126_v51 = vpop.f32.mrb[13].mxu1 }
 0x1d3   : > { %v5128_v52 = vpop.f32.mrb[14].mxu1 }
 0x1d4   : > { %v5130_v53 = vpop.f32.mrb[15].mxu1 }
 0x1da   : > { %v4125_v54 = vpop.f32.mrb[0].mxu0 }
 0x1db   : > { %v4171_v56 = vadd.f32 %v4125_v54, %v3885_v38  ;;  %v2701_v57 = vpop.f32.mrb[1].mxu0 }
 0x1dc   : > { %v4172_v58 = vadd.f32 %v2701_v57, %v1161_v39  ;;  %v4126_v59 = vpop.f32.mrb[2].mxu0 }
 0x1dd   : > { %v2869_v60 = vadd.f32 %v4171_v56, %v5135_v55  ;;  %v4173_v61 = vadd.f32 %v4126_v59, %v3886_v40  ;;  %v2704_v62 = vpop.f32.mrb[3].mxu0 }
 0x1de   : > { %v2867_v63 = vadd.f32 %v4172_v58, %v5135_v55  ;;  %v4174_v0 = vadd.f32 %v2704_v62, %v1164_v41 }
 0x1df   : > { %v2901_v1 = vmax.f32 %v2869_v60, 0.0  ;;  %v2870_v2 = vadd.f32 %v4173_v61, %v5135_v55 }
 0x1e0   : > { %v2899_v3 = vmax.f32 %v2867_v63, 0.0  ;;  %v2868_v4 = vadd.f32 %v4174_v0, %v5135_v55 }
 0x1e1   : > { %2933 = vst [vmem:[%s5141_s11 + $0x10] sm:$0xff] %v2901_v1  ;;  %v2902_v5 = vmax.f32 %v2870_v2, 0.0 }
 0x1e2   : > { %2931 = vst [vmem:[%s5141_s11] sm:$0xff] %v2899_v3  ;;  %v2900_v6 = vmax.f32 %v2868_v4, 0.0  ;;  %v4129_v7 = vpop.f32.mrb[4].mxu0 }
 0x1e3   : > { %2934 = vst [vmem:[%s5141_s11 + $0x18] sm:$0xff] %v2902_v5  ;;  %v4175_v8 = vadd.f32 %v4129_v7, %v3889_v42  ;;  %v2717_v9 = vpop.f32.mrb[5].mxu0 }
 0x1e4   : > { %2932 = vst [vmem:[%s5141_s11 + $0x8] sm:$0xff] %v2900_v6  ;;  %v4176_v10 = vadd.f32 %v2717_v9, %v1177_v43  ;;  %v4130_v11 = vpop.f32.mrb[6].mxu0 }
 0x1e5   : > { %v2873_v12 = vadd.f32 %v4175_v8, %v5135_v55  ;;  %v4177_v13 = vadd.f32 %v4130_v11, %v3890_v44  ;;  %v2720_v14 = vpop.f32.mrb[7].mxu0 }
 0x1e6   : > { %v2871_v15 = vadd.f32 %v4176_v10, %v5135_v55  ;;  %v4178_v16 = vadd.f32 %v2720_v14, %v1180_v45 }
 0x1e7   : > { %v2905_v17 = vmax.f32 %v2873_v12, 0.0  ;;  %v2874_v18 = vadd.f32 %v4177_v13, %v5135_v55 }
 0x1e8   : > { %v2903_v20 = vmax.f32 %v2871_v15, 0.0  ;;  %v2872_v21 = vadd.f32 %v4178_v16, %v5135_v55 }
 0x1e9   : > { %2937 = vst [vmem:[%s5141_s11 + $0x30] sm:$0xff] %v2905_v17  ;;  %v2906_v22 = vmax.f32 %v2874_v18, 0.0 }
 0x1ea   : > { %2935 = vst [vmem:[%s5141_s11 + $0x20] sm:$0xff] %v2903_v20  ;;  %v2904_v23 = vmax.f32 %v2872_v21, 0.0  ;;  %v4133_v24 = vpop.f32.mrb[8].mxu0 }
 0x1eb   : > { %2938 = vst [vmem:[%s5141_s11 + $0x38] sm:$0xff] %v2906_v22  ;;  %v4179_v25 = vadd.f32 %v4133_v24, %v3893_v46  ;;  %v2733_v26 = vpop.f32.mrb[9].mxu0 }
 0x1ec   : > { %2936 = vst [vmem:[%s5141_s11 + $0x28] sm:$0xff] %v2904_v23  ;;  %v4180_v27 = vadd.f32 %v2733_v26, %v1193_v47  ;;  %v4134_v28 = vpop.f32.mrb[10].mxu0 }
 0x1ed   : > { %v2877_v29 = vadd.f32 %v4179_v25, %v5135_v55  ;;  %v4181_v30 = vadd.f32 %v4134_v28, %v3894_v48  ;;  %v2736_v31 = vpop.f32.mrb[11].mxu0 }
 0x1ee   : > { %v2875_v32 = vadd.f32 %v4180_v27, %v5135_v55  ;;  %v4182_v33 = vadd.f32 %v2736_v31, %v1196_v49 }
 0x1ef   : > { %v2909_v34 = vmax.f32 %v2877_v29, 0.0  ;;  %v2878_v35 = vadd.f32 %v4181_v30, %v5135_v55 }
 0x1f0   : > { %v2907_v19 = vmax.f32 %v2875_v32, 0.0  ;;  %v2876_v36 = vadd.f32 %v4182_v33, %v5135_v55 }
 0x1f1   : > { %2941 = vst [vmem:[%s5141_s11 + $0x50] sm:$0xff] %v2909_v34  ;;  %v2910_v37 = vmax.f32 %v2878_v35, 0.0 }
 0x1f2   : > { %2939 = vst [vmem:[%s5141_s11 + $0x40] sm:$0xff] %v2907_v19  ;;  %v2908_v38 = vmax.f32 %v2876_v36, 0.0  ;;  %v4137_v39 = vpop.f32.mrb[12].mxu0 }
 0x1f3   : > { %2942 = vst [vmem:[%s5141_s11 + $0x58] sm:$0xff] %v2910_v37  ;;  %v4183_v40 = vadd.f32 %v4137_v39, %v5124_v50  ;;  %v2749_v41 = vpop.f32.mrb[13].mxu0 }
 0x1f4   : > { %2940 = vst [vmem:[%s5141_s11 + $0x48] sm:$0xff] %v2908_v38  ;;  %v4184_v42 = vadd.f32 %v2749_v41, %v5126_v51  ;;  %v4138_v43 = vpop.f32.mrb[14].mxu0 }
 0x1f5   : > { %v2881_v44 = vadd.f32 %v4183_v40, %v5135_v55  ;;  %v4185_v45 = vadd.f32 %v4138_v43, %v5128_v52  ;;  %v2752_v46 = vpop.f32.mrb[15].mxu0 }
 0x1f6   : > { %v2879_v47 = vadd.f32 %v4184_v42, %v5135_v55  ;;  %v4186_v48 = vadd.f32 %v2752_v46, %v5130_v53 }
 0x1f7   : > { %v2913_v49 = vmax.f32 %v2881_v44, 0.0  ;;  %v2882_v50 = vadd.f32 %v4185_v45, %v5135_v55 }
 0x1f8   : > { %v2911_v54 = vmax.f32 %v2879_v47, 0.0  ;;  %v2880_v56 = vadd.f32 %v4186_v48, %v5135_v55 }
 0x1f9   : > { %2945 = vst [vmem:[%s5141_s11 + $0x70] sm:$0xff] %v2913_v49  ;;  %v2914_v51 = vmax.f32 %v2882_v50, 0.0  ;;  %v3949_v57 = vpop.f32.mrb[16].mxu1 }
 0x1fa   : > { %2943 = vst [vmem:[%s5141_s11 + $0x60] sm:$0xff] %v2911_v54  ;;  %v2912_v58 = vmax.f32 %v2880_v56, 0.0  ;;  %v4141_v59 = vpop.f32.mrb[16].mxu0  ;;  %v1533_v60 = vpop.f32.mrb[17].mxu1 }
 0x1fb   : > { %2946 = vst [vmem:[%s5141_s11 + $0x78] sm:$0xff] %v2914_v51  ;;  %v4187_v52 = vadd.f32 %v4141_v59, %v3949_v57  ;;  %v2765_v61 = vpop.f32.mrb[17].mxu0  ;;  %v3950_v62 = vpop.f32.mrb[18].mxu1 }
 0x1fc   : > { %2944 = vst [vmem:[%s5141_s11 + $0x68] sm:$0xff] %v2912_v58  ;;  %v4188_v53 = vadd.f32 %v2765_v61, %v1533_v60  ;;  %v4142_v63 = vpop.f32.mrb[18].mxu0  ;;  %v1536_v0 = vpop.f32.mrb[19].mxu1 }
 0x1fd   : > { %v2885_v1 = vadd.f32 %v4187_v52, %v5135_v55  ;;  %v4189_v2 = vadd.f32 %v4142_v63, %v3950_v62  ;;  %v2768_v3 = vpop.f32.mrb[19].mxu0 }
 0x1fe   : > { %v2883_v4 = vadd.f32 %v4188_v53, %v5135_v55  ;;  %v4190_v5 = vadd.f32 %v2768_v3, %v1536_v0 }
 0x1ff   : > { %v2917_v6 = vmax.f32 %v2885_v1, 0.0  ;;  %v2886_v7 = vadd.f32 %v4189_v2, %v5135_v55 }
 0x200   : > { %v2915_v8 = vmax.f32 %v2883_v4, 0.0  ;;  %v2884_v9 = vadd.f32 %v4190_v5, %v5135_v55 }
 0x201   : > { %2949 = vst [vmem:[%s5141_s11 + $0x90] sm:$0xff] %v2917_v6  ;;  %v2918_v10 = vmax.f32 %v2886_v7, 0.0  ;;  %v3953_v11 = vpop.f32.mrb[20].mxu1 }
 0x202   : > { %2947 = vst [vmem:[%s5141_s11 + $0x80] sm:$0xff] %v2915_v8  ;;  %v2916_v12 = vmax.f32 %v2884_v9, 0.0  ;;  %v4145_v13 = vpop.f32.mrb[20].mxu0  ;;  %v1549_v14 = vpop.f32.mrb[21].mxu1 }
 0x203   : > { %2950 = vst [vmem:[%s5141_s11 + $0x98] sm:$0xff] %v2918_v10  ;;  %v4191_v15 = vadd.f32 %v4145_v13, %v3953_v11  ;;  %v2781_v16 = vpop.f32.mrb[21].mxu0  ;;  %v3954_v17 = vpop.f32.mrb[22].mxu1 }
 0x204   : > { %2948 = vst [vmem:[%s5141_s11 + $0x88] sm:$0xff] %v2916_v12  ;;  %v4192_v18 = vadd.f32 %v2781_v16, %v1549_v14  ;;  %v4146_v20 = vpop.f32.mrb[22].mxu0  ;;  %v1552_v21 = vpop.f32.mrb[23].mxu1 }
 0x205   : > { %v2889_v22 = vadd.f32 %v4191_v15, %v5135_v55  ;;  %v4193_v23 = vadd.f32 %v4146_v20, %v3954_v17  ;;  %v2784_v24 = vpop.f32.mrb[23].mxu0 }
 0x206   : > { %v2887_v25 = vadd.f32 %v4192_v18, %v5135_v55  ;;  %v4194_v26 = vadd.f32 %v2784_v24, %v1552_v21 }
 0x207   : > { %v2921_v27 = vmax.f32 %v2889_v22, 0.0  ;;  %v2890_v28 = vadd.f32 %v4193_v23, %v5135_v55 }
 0x208   : > { %v2919_v29 = vmax.f32 %v2887_v25, 0.0  ;;  %v2888_v30 = vadd.f32 %v4194_v26, %v5135_v55 }
 0x209   : > { %2953 = vst [vmem:[%s5141_s11 + $0xb0] sm:$0xff] %v2921_v27  ;;  %v2922_v31 = vmax.f32 %v2890_v28, 0.0  ;;  %v3957_v32 = vpop.f32.mrb[24].mxu1 }
 0x20a   : > { %2951 = vst [vmem:[%s5141_s11 + $0xa0] sm:$0xff] %v2919_v29  ;;  %v2920_v33 = vmax.f32 %v2888_v30, 0.0  ;;  %v4149_v34 = vpop.f32.mrb[24].mxu0  ;;  %v1565_v35 = vpop.f32.mrb[25].mxu1 }
 0x20b   : > { %2954 = vst [vmem:[%s5141_s11 + $0xb8] sm:$0xff] %v2922_v31  ;;  %v4195_v19 = vadd.f32 %v4149_v34, %v3957_v32  ;;  %v2797_v36 = vpop.f32.mrb[25].mxu0  ;;  %v3958_v37 = vpop.f32.mrb[26].mxu1 }
 0x20c   : > { %2952 = vst [vmem:[%s5141_s11 + $0xa8] sm:$0xff] %v2920_v33  ;;  %v4196_v38 = vadd.f32 %v2797_v36, %v1565_v35  ;;  %v4150_v39 = vpop.f32.mrb[26].mxu0  ;;  %v1568_v40 = vpop.f32.mrb[27].mxu1 }
 0x20d   : > { %v2893_v41 = vadd.f32 %v4195_v19, %v5135_v55  ;;  %v4197_v42 = vadd.f32 %v4150_v39, %v3958_v37  ;;  %v2800_v43 = vpop.f32.mrb[27].mxu0 }
 0x20e   : > { %v2891_v44 = vadd.f32 %v4196_v38, %v5135_v55  ;;  %v4198_v45 = vadd.f32 %v2800_v43, %v1568_v40 }
 0x20f   : > { %v2925_v46 = vmax.f32 %v2893_v41, 0.0  ;;  %v2894_v47 = vadd.f32 %v4197_v42, %v5135_v55 }
 0x210   : > { %v2923_v48 = vmax.f32 %v2891_v44, 0.0  ;;  %v2892_v49 = vadd.f32 %v4198_v45, %v5135_v55 }
 0x211   : > { %2957 = vst [vmem:[%s5141_s11 + $0xd0] sm:$0xff] %v2925_v46  ;;  %v2926_v50 = vmax.f32 %v2894_v47, 0.0  ;;  %v3961_v54 = vpop.f32.mrb[28].mxu1 }
 0x212   : > { %2955 = vst [vmem:[%s5141_s11 + $0xc0] sm:$0xff] %v2923_v48  ;;  %v2924_v56 = vmax.f32 %v2892_v49, 0.0  ;;  %v4153_v51 = vpop.f32.mrb[28].mxu0  ;;  %v1581_v57 = vpop.f32.mrb[29].mxu1 }
 0x213   : > { %2958 = vst [vmem:[%s5141_s11 + $0xd8] sm:$0xff] %v2926_v50  ;;  %v4199_v58 = vadd.f32 %v4153_v51, %v3961_v54  ;;  %v2813_v59 = vpop.f32.mrb[29].mxu0  ;;  %v3962_v60 = vpop.f32.mrb[30].mxu1 }
 0x214   : > { %2956 = vst [vmem:[%s5141_s11 + $0xc8] sm:$0xff] %v2924_v56  ;;  %v4200_v52 = vadd.f32 %v2813_v59, %v1581_v57  ;;  %v4154_v61 = vpop.f32.mrb[30].mxu0  ;;  %v1584_v62 = vpop.f32.mrb[31].mxu1 }
 0x215   : > { %v2897_v53 = vadd.f32 %v4199_v58, %v5135_v55  ;;  %v4201_v63 = vadd.f32 %v4154_v61, %v3962_v60  ;;  %v2816_v0 = vpop.f32.mrb[31].mxu0 }
 0x216   : > { %v2895_v1 = vadd.f32 %v4200_v52, %v5135_v55  ;;  %v4202_v2 = vadd.f32 %v2816_v0, %v1584_v62 }
 0x217   : > { %v2929_v3 = vmax.f32 %v2897_v53, 0.0  ;;  %v2898_v4 = vadd.f32 %v4201_v63, %v5135_v55 }
 0x218   : > { %v2927_v5 = vmax.f32 %v2895_v1, 0.0  ;;  %v2896_v6 = vadd.f32 %v4202_v2, %v5135_v55 }
 0x219   : > { %2961 = vst [vmem:[%s5141_s11 + $0xf0] sm:$0xff] %v2929_v3  ;;  %v2930_v7 = vmax.f32 %v2898_v4, 0.0 }
 0x21a   : > { %2959 = vst [vmem:[%s5141_s11 + $0xe0] sm:$0xff] %v2927_v5  ;;  %v2928_v8 = vmax.f32 %v2896_v6, 0.0 }
 0x21b   : > { %2962 = vst [vmem:[%s5141_s11 + $0xf8] sm:$0xff] %v2930_v7 }
 0x21c   : > { %2960 = vst [vmem:[%s5141_s11 + $0xe8] sm:$0xff] %v2928_v8 }
 0x21d PF: > { %s13_s12 = sadd.s32 1, %s4521_s12  }
 0x21e   : > { %p10_p4 = scmp.ge.s32.totalorder %s13_s12, 4  }
 0x220   :  { %12 = sbr.rel (!%p10_p4) target bundleno = 1 (0x1), region = 76 }

// kernel: simple_forward.9
= control target key start
LH: loop header
LB: loop body
LE: loop exit
PB: predicated region body
PF: predicated region fallthrough
CT: control target
= control target key end

     0   :  { %vm165_vm0 = vcmask 424960   ;;  %vm168_vm1 = vcmask 1043456   ;;  %vm465_vm2 = vcmask 949248   ;;  %vm662_vm3 = vcmask 1041408   ;;  %s2249_s1 = inlined_call_operand.vmem [shape: f32[180,500], index: 1, kind: input, shape index: {}]   ;;  %s2250_s0 = inlined_call_operand.vmem [shape: f32[2,180], index: 0, kind: input, shape index: {}]   ;;  %s2251_s3 = inlined_call_operand.vmem [shape: f32[500,250], index: 3, kind: input, shape index: {}]   ;;  %s2252_s5 = inlined_call_operand.vmem [shape: f32[250,100], index: 5, kind: input, shape index: {}]   ;;  %s2253_s2 = inlined_call_operand.vmem [shape: f32[1,500], index: 2, kind: input, shape index: {}]   ;;  %s2254_s4 = inlined_call_operand.vmem [shape: f32[1,250], index: 4, kind: input, shape index: {}]   ;;  %s2255_s7 = inlined_call_operand.vmem [shape: f32[100,25], index: 7, kind: input, shape index: {}]   ;;  %s2256_s9 = inlined_call_operand.vmem [shape: f32[25,1], index: 9, kind: input, shape index: {}]   ;;  %s2257_s6 = inlined_call_operand.vmem [shape: f32[1,100], index: 6, kind: input, shape index: {}]   ;;  %s2258_s10 = inlined_call_operand.<no memory space> [shape: f32[1,1], index: 10, kind: input, shape index: {}]   ;;  %s2259_s8 = inlined_call_operand.vmem [shape: f32[1,25], index: 8, kind: input, shape index: {}]   ;;  %s2260_s11 = inlined_call_operand.vmem [shape: f32[2,1], index: 11, kind: output, shape index: {}]  }
   0x1   :  { %v42_v0 = vld [vmem:[%s2249_s1 + $0x8] sm:$0xff]  ;;  %v41_v2 = vld [vmem:[%s2249_s1] sm:$0xff]  ;;  %v330_v60 = vld [vmem:[%s2251_s3 + $0x18] sm:$0xff]  ;;  %vm1322_vm4 = vmmov 1   ;;  %vm658_vm6 = vcmask 998400   ;;  %vm1325_vm7 = vmmov 0  }
   0x2   :  { %v46_v1 = vld [vmem:[%s2249_s1 + $0x28] sm:$0xff]  ;;  %v45_v4 = vld [vmem:[%s2249_s1 + $0x20] sm:$0xff]  ;;  %vm1285_vm5 = vmpackc.low %vm662_vm3, %vm1322_vm4  ;;  %vm757_vm8 = vcmask 818176   ;;  %vm850_vm9 = vcmask 1040384   ;;  %vm846_vm11 = vcmask 203776   ;;  %vm925_vm12 = vcmask 1024  }
   0x3   :  { %v1044_v3 = vpack.c.bf16 %v46_v1, %v42_v0  ;;  %v50_v5 = vld [vmem:[%s2249_s1 + $0x48] sm:$0xff]  ;;  %v1046_v7 = vpack.c.bf16 %v45_v4, %v41_v2  ;;  %v49_v9 = vld [vmem:[%s2249_s1 + $0x40] sm:$0xff]  ;;  %v329_v1 = vld [vmem:[%s2251_s3 + $0x10] sm:$0xff] }
   0x4   :  { %v54_v6 = vld [vmem:[%s2249_s1 + $0x68] sm:$0xff]  ;;  %v53_v10 = vld [vmem:[%s2249_s1 + $0x60] sm:$0xff]  ;;  %vm1312_vm10 = vmpackc.low %vm850_vm9, %vm1322_vm4 }
   0x5   :  { %v1048_v8 = vpack.c.bf16 %v54_v6, %v50_v5  ;;  %v58_v11 = vld [vmem:[%s2249_s1 + $0x88] sm:$0xff]  ;;  %1045 = vmatprep.subr.bf16.mxu1 %v1044_v3  ;;  %v1050_v13 = vpack.c.bf16 %v53_v10, %v49_v9  ;;  %v57_v15 = vld [vmem:[%s2249_s1 + $0x80] sm:$0xff]  ;;  %v334_v5 = vld [vmem:[%s2251_s3 + $0x38] sm:$0xff] }
   0x6   :  { %v62_v12 = vld [vmem:[%s2249_s1 + $0xa8] sm:$0xff]  ;;  %1047 = vmatpush1.bf16.msra.mxu1 %v1046_v7  ;;  %v61_v16 = vld [vmem:[%s2249_s1 + $0xa0] sm:$0xff]  ;;  %v333_v7 = vld [vmem:[%s2251_s3 + $0x30] sm:$0xff] }
   0x7   :  { %1049 = vmatprep.subr.bf16.mxu1 %v1048_v8  ;;  %v1052_v14 = vpack.c.bf16 %v62_v12, %v58_v11  ;;  %v66_v17 = vld [vmem:[%s2249_s1 + $0xc8] sm:$0xff]  ;;  %v1054_v19 = vpack.c.bf16 %v61_v16, %v57_v15  ;;  %v65_v21 = vld [vmem:[%s2249_s1 + $0xc0] sm:$0xff]  ;;  %v338_v11 = vld [vmem:[%s2251_s3 + $0x58] sm:$0xff] }
   0x8   :  { %v70_v18 = vld [vmem:[%s2249_s1 + $0xe8] sm:$0xff]  ;;  %v69_v22 = vld [vmem:[%s2249_s1 + $0xe0] sm:$0xff] }
   0x9   :  { %v1056_v20 = vpack.c.bf16 %v70_v18, %v66_v17  ;;  %v74_v23 = vld [vmem:[%s2249_s1 + $0x108] sm:$0xff]  ;;  %v1058_v25 = vpack.c.bf16 %v69_v22, %v65_v21  ;;  %v73_v27 = vld [vmem:[%s2249_s1 + $0x100] sm:$0xff]  ;;  %v337_v17 = vld [vmem:[%s2251_s3 + $0x50] sm:$0xff] }
   0xa   :  { %1051 = vmatpush1.bf16.msra.mxu1 %v1050_v13  ;;  %v78_v24 = vld [vmem:[%s2249_s1 + $0x128] sm:$0xff]  ;;  %v77_v28 = vld [vmem:[%s2249_s1 + $0x120] sm:$0xff]  ;;  %v342_v21 = vld [vmem:[%s2251_s3 + $0x78] sm:$0xff] }
   0xb   :  { %1053 = vmatprep.subr.bf16.mxu1 %v1052_v14  ;;  %v1060_v26 = vpack.c.bf16 %v78_v24, %v74_v23  ;;  %v82_v29 = vld [vmem:[%s2249_s1 + $0x148] sm:$0xff]  ;;  %v1455_v31 = vld.sshfl [vmem:[%s2250_s0] sm:$0x33 pattern:$0x76325410]  ;;  %v1062_v32 = vpack.c.bf16 %v77_v28, %v73_v27  ;;  %v346_v28 = vld [vmem:[%s2251_s3 + $0x98] sm:$0xff] }
   0xc   :  { %v86_v30 = vld [vmem:[%s2249_s1 + $0x168] sm:$0xff]  ;;  %v1459_v33 = vcombine.high %v1455_v31, %v1455_v31  ;;  %v81_v35 = vld [vmem:[%s2249_s1 + $0x140] sm:$0xff] }
   0xd   :  { %v1064_v34 = vpack.c.bf16 %v86_v30, %v82_v29  ;;  %v85_v36 = vld [vmem:[%s2249_s1 + $0x160] sm:$0xff]  ;;  %v90_v37 = vld [vmem:[%s2249_s1 + $0x188] sm:$0xff]  ;;  %v44_v30 = vld [vmem:[%s2249_s1 + $0x18] sm:$0xff] }
   0xe   :  { %1055 = vmatpush1.bf16.msra.mxu1 %v1054_v19  ;;  %v94_v38 = vld [vmem:[%s2249_s1 + $0x1a8] sm:$0xff]  ;;  %934 = vmatprep.mubr.msk.f32.mxu1 %vm165_vm0, %v1459_v33  ;;  %v1066_v39 = vpack.c.bf16 %v85_v36, %v81_v35  ;;  %v89_v41 = vld [vmem:[%s2249_s1 + $0x180] sm:$0xff]  ;;  %v47_v35 = vld [vmem:[%s2249_s1 + $0x30] sm:$0xff] }
   0xf   :  { %1057 = vmatprep.subr.bf16.mxu1 %v1056_v20  ;;  %v1068_v40 = vpack.c.bf16 %v94_v38, %v90_v37  ;;  %v93_v42 = vld [vmem:[%s2249_s1 + $0x1a0] sm:$0xff]  ;;  %v98_v43 = vld [vmem:[%s2249_s1 + $0x1c8] sm:$0xff]  ;;  %v52_v36 = vld [vmem:[%s2249_s1 + $0x58] sm:$0xff] }
  0x10   :  { %v102_v44 = vld [vmem:[%s2249_s1 + $0x1e8] sm:$0xff]  ;;  %v1070_v45 = vpack.c.bf16 %v93_v42, %v89_v41  ;;  %v97_v47 = vld [vmem:[%s2249_s1 + $0x1c0] sm:$0xff]  ;;  %v56_v38 = vld [vmem:[%s2249_s1 + $0x78] sm:$0xff] }
  0x11   :  { %v1072_v46 = vpack.c.bf16 %v102_v44, %v98_v43  ;;  %v101_v48 = vld [vmem:[%s2249_s1 + $0x1e0] sm:$0xff]  ;;  %v106_v49 = vld [vmem:[%s2249_s1 + $0x208] sm:$0xff]  ;;  %v345_v41 = vld [vmem:[%s2251_s3 + $0x90] sm:$0xff] }
  0x12   :  { %1059 = vmatpush1.bf16.msra.mxu1 %v1058_v25  ;;  %v110_v50 = vld [vmem:[%s2249_s1 + $0x228] sm:$0xff]  ;;  %v1074_v51 = vpack.c.bf16 %v101_v48, %v97_v47  ;;  %v105_v53 = vld [vmem:[%s2249_s1 + $0x200] sm:$0xff]  ;;  %v1092_v47 = vpack.c.bf16 %v56_v38, %v52_v36  ;;  %v51_v48 = vld [vmem:[%s2249_s1 + $0x50] sm:$0xff] }
  0x13   :  { %1061 = vmatprep.subr.bf16.mxu1 %v1060_v26  ;;  %v1076_v52 = vpack.c.bf16 %v110_v50, %v106_v49  ;;  %v109_v54 = vld [vmem:[%s2249_s1 + $0x220] sm:$0xff]  ;;  %v114_v55 = vld [vmem:[%s2249_s1 + $0x248] sm:$0xff]  ;;  %v341_v26 = vld [vmem:[%s2251_s3 + $0x70] sm:$0xff] }
  0x14   :  { %v118_v56 = vld [vmem:[%s2249_s1 + $0x268] sm:$0xff]  ;;  %v113_v57 = vld [vmem:[%s2249_s1 + $0x240] sm:$0xff]  ;;  %v1078_v61 = vpack.c.bf16 %v109_v54, %v105_v53  ;;  %v55_v49 = vld [vmem:[%s2249_s1 + $0x70] sm:$0xff] }
  0x15   :  { %v117_v58 = vld [vmem:[%s2249_s1 + $0x260] sm:$0xff]  ;;  %v328_v59 = vld [vmem:[%s2251_s3 + $0x8] sm:$0xff]  ;;  %v1080_v3 = vpack.c.bf16 %v118_v56, %v114_v55  ;;  %v60_v50 = vld [vmem:[%s2249_s1 + $0x98] sm:$0xff] }
  0x16   :  { %1063 = vmatpush1.bf16.msra.mxu1 %v1062_v32  ;;  %v122_v62 = vld [vmem:[%s2249_s1 + $0x288] sm:$0xff]  ;;  %v1132_v63 = vpack.c.bf16 %v330_v60, %v328_v59  ;;  %v327_v0 = vld [vmem:[%s2251_s3] sm:$0xff]  ;;  %v1082_v13 = vpack.c.bf16 %v117_v58, %v113_v57  ;;  %v48_v32 = vld [vmem:[%s2249_s1 + $0x38] sm:$0xff]  ;;  %v1094_v58 = vpack.c.bf16 %v55_v49, %v51_v48 }
  0x17   :  { %1065 = vmatprep.subr.bf16.mxu1 %v1064_v34  ;;  %v332_v2 = vld [vmem:[%s2251_s3 + $0x28] sm:$0xff]  ;;  %v1134_v4 = vpack.c.bf16 %v329_v1, %v327_v0  ;;  %v331_v6 = vld [vmem:[%s2251_s3 + $0x20] sm:$0xff]  ;;  %v43_v34 = vld [vmem:[%s2249_s1 + $0x10] sm:$0xff]  ;;  %v1088_v43 = vpack.c.bf16 %v48_v32, %v44_v30 }
  0x18   :  { %v126_v8 = vld [vmem:[%s2249_s1 + $0x2a8] sm:$0xff]  ;;  %1133 = vmatprep.subr.bf16.mxu0 %v1132_v63  ;;  %v1136_v9 = vpack.c.bf16 %v334_v5, %v332_v2  ;;  %v1138_v12 = vpack.c.bf16 %v333_v7, %v331_v6  ;;  %v121_v14 = vld [vmem:[%s2249_s1 + $0x280] sm:$0xff]  ;;  %v349_v55 = vld [vmem:[%s2251_s3 + $0xb0] sm:$0xff] }
  0x19   :  { %v336_v10 = vld [vmem:[%s2251_s3 + $0x48] sm:$0xff]  ;;  %1135 = vmatpush1.bf16.msra.mxu0 %v1134_v4  ;;  %v335_v16 = vld [vmem:[%s2251_s3 + $0x40] sm:$0xff]  ;;  %v1084_v18 = vpack.c.bf16 %v126_v8, %v122_v62  ;;  %v354_v57 = vld [vmem:[%s2251_s3 + $0xd8] sm:$0xff] }
  0x1a   :  { %1067 = vmatpush1.bf16.msra.mxu1 %v1066_v39  ;;  %1137 = vmatprep.subr.bf16.mxu0 %v1136_v9  ;;  %v1140_v15 = vpack.c.bf16 %v338_v11, %v336_v10  ;;  %v125_v19 = vld [vmem:[%s2249_s1 + $0x2a0] sm:$0xff]  ;;  %v340_v20 = vld [vmem:[%s2251_s3 + $0x68] sm:$0xff]  ;;  %v1142_v22 = vpack.c.bf16 %v337_v17, %v335_v16  ;;  %v59_v60 = vld [vmem:[%s2249_s1 + $0x90] sm:$0xff] }
  0x1b   :  { %1069 = vmatprep.subr.bf16.mxu1 %v1068_v40  ;;  %v1086_v23 = vpack.c.bf16 %v125_v19, %v121_v14  ;;  %v1144_v24 = vpack.c.bf16 %v342_v21, %v340_v20  ;;  %v339_v25 = vld [vmem:[%s2251_s3 + $0x60] sm:$0xff]  ;;  %v344_v27 = vld [vmem:[%s2251_s3 + $0x88] sm:$0xff]  ;;  %v68_v62 = vld [vmem:[%s2249_s1 + $0xd8] sm:$0xff] }
  0x1c   :  { %v130_v29 = vld [vmem:[%s2249_s1 + $0x2c8] sm:$0xf]  ;;  %v1146_v37 = vpack.c.bf16 %v341_v26, %v339_v25  ;;  %v1148_v39 = vpack.c.bf16 %v346_v28, %v344_v27  ;;  %v343_v40 = vld [vmem:[%s2251_s3 + $0x80] sm:$0xff]  ;;  %v353_v2 = vld [vmem:[%s2251_s3 + $0xd0] sm:$0xff] }
  0x1d   :  { %1139 = vmatpush1.bf16.msra.mxu0 %v1138_v12  ;;  %v129_v42 = vld [vmem:[%s2249_s1 + $0x2c0] sm:$0xf]  ;;  %v348_v44 = vld [vmem:[%s2251_s3 + $0xa8] sm:$0xff]  ;;  %v358_v4 = vld [vmem:[%s2251_s3 + $0xf8] sm:$0xff] }
  0x1e   :  { %1071 = vmatpush1.bf16.msra.mxu1 %v1070_v45  ;;  %1141 = vmatprep.subr.bf16.mxu0 %v1140_v15  ;;  %v350_v45 = vld [vmem:[%s2251_s3 + $0xb8] sm:$0xff]  ;;  %v347_v54 = vld [vmem:[%s2251_s3 + $0xa0] sm:$0xff]  ;;  %v352_v56 = vld [vmem:[%s2251_s3 + $0xc8] sm:$0xff] }
  0x1f   :  { %1073 = vmatprep.subr.bf16.mxu1 %v1072_v46  ;;  %v1090_v46 = vpack.c.bf16 %v47_v35, %v43_v34  ;;  %v1152_v53 = vpack.c.bf16 %v350_v45, %v348_v44  ;;  %v1154_v63 = vpack.c.bf16 %v349_v55, %v347_v54  ;;  %v1156_v0 = vpack.c.bf16 %v354_v57, %v352_v56  ;;  %v351_v1 = vld [vmem:[%s2251_s3 + $0xc0] sm:$0xff]  ;;  %v67_v7 = vld [vmem:[%s2249_s1 + $0xd0] sm:$0xff]  ;;  %v76_v9 = vld [vmem:[%s2249_s1 + $0x118] sm:$0xff] }
  0x20   :  { %v71_v8 = vld [vmem:[%s2249_s1 + $0xf0] sm:$0xff]  ;;  %v1158_v10 = vpack.c.bf16 %v353_v2, %v351_v1  ;;  %v80_v11 = vld [vmem:[%s2249_s1 + $0x138] sm:$0xff]  ;;  %v360_v15 = vld [vmem:[%s2251_s3 + $0x108] sm:$0xff] }
  0x21   :  { %1143 = vmatpush1.bf16.msra.mxu0 %v1142_v22  ;;  %v357_v14 = vld [vmem:[%s2251_s3 + $0xf0] sm:$0xff]  ;;  %v362_v16 = vld [vmem:[%s2251_s3 + $0x118] sm:$0xff]  ;;  %v1102_v17 = vpack.c.bf16 %v71_v8, %v67_v7  ;;  %v359_v25 = vld [vmem:[%s2251_s3 + $0x100] sm:$0xff] }
  0x22   :  { %1075 = vmatpush1.bf16.msra.mxu1 %v1074_v51  ;;  %1145 = vmatprep.subr.bf16.mxu0 %v1144_v24  ;;  %v1150_v51 = vpack.c.bf16 %v345_v41, %v343_v40  ;;  %v75_v19 = vld [vmem:[%s2249_s1 + $0x110] sm:$0xff]  ;;  %v84_v21 = vld [vmem:[%s2249_s1 + $0x158] sm:$0xff]  ;;  %v1164_v24 = vpack.c.bf16 %v362_v16, %v360_v15  ;;  %v364_v27 = vld [vmem:[%s2251_s3 + $0x128] sm:$0xff] }
  0x23   :  { %1077 = vmatprep.subr.bf16.mxu1 %v1076_v52  ;;  %v64_v52 = vld [vmem:[%s2249_s1 + $0xb8] sm:$0xff]  ;;  %v79_v20 = vld [vmem:[%s2249_s1 + $0x130] sm:$0xff]  ;;  %v368_v41 = vld [vmem:[%s2251_s3 + $0x148] sm:$0xff] }
  0x24   :  { %v1096_v59 = vpack.c.bf16 %v64_v52, %v60_v50  ;;  %v361_v26 = vld [vmem:[%s2251_s3 + $0x110] sm:$0xff]  ;;  %v366_v28 = vld [vmem:[%s2251_s3 + $0x138] sm:$0xff] }
  0x25   :  { %1147 = vmatpush1.bf16.msra.mxu0 %v1146_v37  ;;  %v83_v32 = vld [vmem:[%s2249_s1 + $0x150] sm:$0xff]  ;;  %v92_v35 = vld [vmem:[%s2249_s1 + $0x198] sm:$0xff]  ;;  %v1166_v36 = vpack.c.bf16 %v361_v26, %v359_v25  ;;  %v1168_v38 = vpack.c.bf16 %v366_v28, %v364_v27 }
  0x26   :  { %1079 = vmatpush1.bf16.msra.mxu1 %v1078_v61  ;;  %1149 = vmatprep.subr.bf16.mxu0 %v1148_v39  ;;  %v63_v61 = vld [vmem:[%s2249_s1 + $0xb0] sm:$0xff]  ;;  %v96_v37 = vld [vmem:[%s2249_s1 + $0x1b8] sm:$0xff]  ;;  %v363_v39 = vld [vmem:[%s2251_s3 + $0x120] sm:$0xff] }
  0x27   :  { %1081 = vmatprep.subr.bf16.mxu1 %v1080_v3  ;;  %v356_v3 = vld [vmem:[%s2251_s3 + $0xe8] sm:$0xff]  ;;  %v1098_v5 = vpack.c.bf16 %v63_v61, %v59_v60  ;;  %v87_v34 = vld [vmem:[%s2249_s1 + $0x170] sm:$0xff]  ;;  %v1112_v44 = vpack.c.bf16 %v96_v37, %v92_v35  ;;  %v104_v49 = vld [vmem:[%s2249_s1 + $0x1f8] sm:$0xff] }
  0x28   :  { %v1160_v12 = vpack.c.bf16 %v358_v4, %v356_v3  ;;  %v365_v40 = vld [vmem:[%s2251_s3 + $0x130] sm:$0xff]  ;;  %v374_v54 = vld [vmem:[%s2251_s3 + $0x178] sm:$0xff] }
  0x29   :  { %1151 = vmatpush1.bf16.msra.mxu0 %v1150_v51  ;;  %v91_v45 = vld [vmem:[%s2249_s1 + $0x190] sm:$0xff]  ;;  %v1170_v48 = vpack.c.bf16 %v365_v40, %v363_v39  ;;  %v367_v51 = vld [vmem:[%s2251_s3 + $0x140] sm:$0xff]  ;;  %v112_v61 = vld [vmem:[%s2249_s1 + $0x238] sm:$0xff] }
  0x2a   :  { %1083 = vmatpush1.bf16.msra.mxu1 %v1082_v13  ;;  %1153 = vmatprep.subr.bf16.mxu0 %v1152_v53  ;;  %v355_v13 = vld [vmem:[%s2251_s3 + $0xe0] sm:$0xff]  ;;  %v369_v52 = vld [vmem:[%s2251_s3 + $0x150] sm:$0xff]  ;;  %v372_v53 = vld [vmem:[%s2251_s3 + $0x168] sm:$0xff] }
  0x2b   :  { %1085 = vmatprep.subr.bf16.mxu1 %v1084_v18  ;;  %v1104_v18 = vpack.c.bf16 %v80_v11, %v76_v9  ;;  %v1162_v22 = vpack.c.bf16 %v357_v14, %v355_v13  ;;  %v99_v57 = vld [vmem:[%s2249_s1 + $0x1d0] sm:$0xff]  ;;  %v1174_v60 = vpack.c.bf16 %v369_v52, %v367_v51  ;;  %v378_v1 = vld [vmem:[%s2251_s3 + $0x198] sm:$0xff]  ;;  %v388_v40 = vld [vmem:[%s2251_s3 + $0x1e8] sm:$0xff] }
  0x2c   :  { %v107_v4 = vld [vmem:[%s2249_s1 + $0x210] sm:$0xff]  ;;  %v120_v8 = vld [vmem:[%s2249_s1 + $0x278] sm:$0xff]  ;;  %v620_v52 = vld [vmem:[%s2252_s5 + $0x8] sm:$0xff] }
  0x2d   :  { %1155 = vmatpush1.bf16.msra.mxu0 %v1154_v63  ;;  %v371_v63 = vld [vmem:[%s2251_s3 + $0x160] sm:$0xff]  ;;  %v377_v11 = vld [vmem:[%s2251_s3 + $0x190] sm:$0xff]  ;;  %v382_v13 = vld [vmem:[%s2251_s3 + $0x1b8] sm:$0xff] }
  0x2e   :  { %1087 = vmatpush1.bf16.msra.mxu1 %v1086_v23  ;;  %1157 = vmatprep.subr.bf16.mxu0 %v1156_v0  ;;  %v88_v23 = vld [vmem:[%s2249_s1 + $0x178] sm:$0xff]  ;;  %v376_v0 = vld [vmem:[%s2251_s3 + $0x188] sm:$0xff]  ;;  %v115_v16 = vld [vmem:[%s2249_s1 + $0x250] sm:$0xff] }
  0x2f   :  { %932 = vmatprep.subr.msk.mxu1 %vm168_vm1, %v130_v29  ;;  %v1106_v29 = vpack.c.bf16 %v79_v20, %v75_v19  ;;  %v1108_v30 = vpack.c.bf16 %v88_v23, %v84_v21  ;;  %v1180_v9 = vpack.c.bf16 %v378_v1, %v376_v0  ;;  %v128_v20 = vld [vmem:[%s2249_s1 + $0x2b8] sm:$0xff]  ;;  %v381_v23 = vld [vmem:[%s2251_s3 + $0x1b0] sm:$0xff] }
  0x30   :  { %v386_v25 = vld [vmem:[%s2251_s3 + $0x1d8] sm:$0xff]  ;;  %v123_v28 = vld [vmem:[%s2249_s1 + $0x290] sm:$0xff] }
  0x31   :  { %1159 = vmatpush1.bf16.msra.mxu0 %v1158_v10  ;;  %v375_v10 = vld [vmem:[%s2251_s3 + $0x180] sm:$0xff]  ;;  %v385_v35 = vld [vmem:[%s2251_s3 + $0x1d0] sm:$0xff]  ;;  %v642_v1 = vld [vmem:[%s2252_s5 + $0xb8] sm:$0xff] }
  0x32   :  { %933 = vmatpush1.msk.msra.mxu1 %vm168_vm1, %v129_v42  ;;  %1161 = vmatprep.subr.bf16.mxu0 %v1160_v12  ;;  %v370_v42 = vld [vmem:[%s2251_s3 + $0x158] sm:$0xff]  ;;  %v380_v12 = vld [vmem:[%s2251_s3 + $0x1a8] sm:$0xff]  ;;  %v1182_v19 = vpack.c.bf16 %v377_v11, %v375_v10  ;;  %v131_v39 = vld [vmem:[%s2249_s1 + $0x2d0] sm:$0xf] }
  0x33   :  { %246 = vmatmul.mubr.f32.vlgmr.msra.gmra.mrb[0].mxu1 %v1455_v31  ;;  %1089 = vmatprep.subr.bf16.mxu1 %v1088_v43  ;;  %v1110_v43 = vpack.c.bf16 %v87_v34, %v83_v32  ;;  %v1172_v50 = vpack.c.bf16 %v370_v42, %v368_v41  ;;  %v1184_v21 = vpack.c.bf16 %v382_v13, %v380_v12  ;;  %v383_v34 = vld [vmem:[%s2251_s3 + $0x1c0] sm:$0xff]  ;;  %v390_v41 = vld [vmem:[%s2251_s3 + $0x1f8] sm:$0xff]  ;;  %v641_v0 = vld [vmem:[%s2252_s5 + $0xb0] sm:$0xff] }
  0x34   :  { %1091 = vmatpush1.bf16.msra.mxu1 %v1090_v46  ;;  %937 = vmatprep.mubr.msk.f32.mxu1 %vm165_vm0, %v1459_v33  ;;  %v72_v33 = vld [vmem:[%s2249_s1 + $0xf8] sm:$0xff]  ;;  %v95_v46 = vld [vmem:[%s2249_s1 + $0x1b0] sm:$0xff]  ;;  %v1190_v37 = vpack.c.bf16 %v385_v35, %v383_v34  ;;  %v1192_v42 = vpack.c.bf16 %v390_v41, %v388_v40  ;;  %v627_v10 = vld [vmem:[%s2252_s5 + $0x40] sm:$0xff] }
  0x35   :  { %1093 = vmatprep.subr.bf16.mxu1 %v1092_v47  ;;  %v1100_v6 = vpack.c.bf16 %v72_v33, %v68_v62  ;;  %1163 = vmatpush1.bf16.msra.mxu0 %v1162_v22  ;;  %v100_v47 = vld [vmem:[%s2249_s1 + $0x1d8] sm:$0xff]  ;;  %v1114_v55 = vpack.c.bf16 %v95_v46, %v91_v45  ;;  %v1176_v62 = vpack.c.bf16 %v374_v54, %v372_v53  ;;  %v373_v33 = vld [vmem:[%s2251_s3 + $0x170] sm:$0xff]  ;;  %v379_v22 = vld [vmem:[%s2251_s3 + $0x1a0] sm:$0xff] }
  0x36   :  { %1165 = vmatprep.subr.bf16.mxu0 %v1164_v24  ;;  %v1116_v56 = vpack.c.bf16 %v104_v49, %v100_v47  ;;  %v1178_v7 = vpack.c.bf16 %v373_v33, %v371_v63  ;;  %v384_v24 = vld [vmem:[%s2251_s3 + $0x1c8] sm:$0xff]  ;;  %v394_v46 = vld [vmem:[%s2251_s3 + $0x218] sm:$0xff]  ;;  %v637_v53 = vld [vmem:[%s2252_s5 + $0x90] sm:$0xff] }
  0x37   :  { %v1188_v32 = vpack.c.bf16 %v386_v25, %v384_v24  ;;  %v636_v49 = vld [vmem:[%s2252_s5 + $0x88] sm:$0xff]  ;;  %v638_v54 = vld [vmem:[%s2252_s5 + $0x98] sm:$0xff]  ;;  %v623_v63 = vld [vmem:[%s2252_s5 + $0x20] sm:$0xff] }
  0x38   :  { %1095 = vmatpush1.bf16.msra.mxu1 %v1094_v58  ;;  %v103_v58 = vld [vmem:[%s2249_s1 + $0x1f0] sm:$0xff]  ;;  %v624_v33 = vld [vmem:[%s2252_s5 + $0x28] sm:$0xff]  ;;  %v646_v13 = vld [vmem:[%s2252_s5 + $0xd8] sm:$0xff] }
  0x39   :  { %1097 = vmatprep.subr.bf16.mxu1 %v1096_v59  ;;  %1167 = vmatpush1.bf16.msra.mxu0 %v1166_v36  ;;  %v108_v59 = vld [vmem:[%s2249_s1 + $0x218] sm:$0xff]  ;;  %v1118_v2 = vpack.c.bf16 %v103_v58, %v99_v57  ;;  %v621_v57 = vld [vmem:[%s2252_s5 + $0x10] sm:$0xff]  ;;  %v628_v11 = vld [vmem:[%s2252_s5 + $0x48] sm:$0xff] }
  0x3a   :  { %1169 = vmatprep.subr.bf16.mxu0 %v1168_v38  ;;  %v1120_v3 = vpack.c.bf16 %v112_v61, %v108_v59  ;;  %v132_v38 = vld [vmem:[%s2249_s1 + $0x2d8] sm:$0xf]  ;;  %v639_v59 = vld [vmem:[%s2252_s5 + $0xa0] sm:$0xff]  ;;  %v645_v12 = vld [vmem:[%s2252_s5 + $0xd0] sm:$0xff] }
  0x3b   :  { %v622_v58 = vld [vmem:[%s2252_s5 + $0x18] sm:$0xff]  ;;  %v1963_v25 = vld [vmem:[%s2253_s2] sm:$0xf]  ;;  %v393_v35 = vld [vmem:[%s2251_s3 + $0x210] sm:$0xff] }
  0x3c   :  { %1099 = vmatpush1.bf16.msra.mxu1 %v1098_v5  ;;  %v111_v5 = vld [vmem:[%s2249_s1 + $0x230] sm:$0xff]  ;;  %v1262_v61 = vpack.c.bf16 %v622_v58, %v621_v57  ;;  %v391_v34 = vld [vmem:[%s2251_s3 + $0x200] sm:$0xff]  ;;  %v410_v57 = vld [vmem:[%s2251_s3 + $0x298] sm:$0xff] }
  0x3d   :  { %1101 = vmatprep.subr.bf16.mxu1 %v1100_v6  ;;  %1171 = vmatpush1.bf16.msra.mxu0 %v1170_v48  ;;  %v116_v6 = vld [vmem:[%s2249_s1 + $0x258] sm:$0xff]  ;;  %v1122_v14 = vpack.c.bf16 %v111_v5, %v107_v4  ;;  %v635_v48 = vld [vmem:[%s2252_s5 + $0x80] sm:$0xff]  ;;  %v625_v4 = vld [vmem:[%s2252_s5 + $0x30] sm:$0xff]  ;;  %v1198_v40 = vpack.c.bf16 %v393_v35, %v391_v34 }
  0x3e   :  { %1173 = vmatprep.subr.bf16.mxu0 %v1172_v50  ;;  %v1124_v15 = vpack.c.bf16 %v120_v8, %v116_v6  ;;  %v619_v50 = vld [vmem:[%s2252_s5] sm:$0xff]  ;;  %v1256_v51 = vpack.c.bf16 %v636_v49, %v635_v48  ;;  %v626_v5 = vld [vmem:[%s2252_s5 + $0x38] sm:$0xff]  ;;  %v401_v49 = vld [vmem:[%s2251_s3 + $0x250] sm:$0xff] }
  0x3f   :  { %v643_v6 = vld [vmem:[%s2252_s5 + $0xc0] sm:$0xff]  ;;  %v1270_v8 = vpack.c.bf16 %v626_v5, %v625_v4  ;;  %v418_v4 = vld [vmem:[%s2251_s3 + $0x2d8] sm:$0xff] }
  0x40   :  { %1103 = vmatpush1.bf16.msra.mxu1 %v1102_v17  ;;  %v119_v17 = vld [vmem:[%s2249_s1 + $0x270] sm:$0xff]  ;;  %v399_v48 = vld [vmem:[%s2251_s3 + $0x240] sm:$0xff]  ;;  %v434_v34 = vld [vmem:[%s2251_s3 + $0x358] sm:$0xff] }
  0x41   :  { %1105 = vmatprep.subr.bf16.mxu1 %v1104_v18  ;;  %1175 = vmatpush1.bf16.msra.mxu0 %v1174_v60  ;;  %v124_v18 = vld [vmem:[%s2249_s1 + $0x298] sm:$0xff]  ;;  %v1126_v26 = vpack.c.bf16 %v119_v17, %v115_v16  ;;  %v640_v60 = vld [vmem:[%s2252_s5 + $0xa8] sm:$0xff]  ;;  %v629_v16 = vld [vmem:[%s2252_s5 + $0x50] sm:$0xff] }
  0x42   :  { %1177 = vmatprep.subr.bf16.mxu0 %v1176_v62  ;;  %v1128_v27 = vpack.c.bf16 %v128_v20, %v124_v18  ;;  %v1264_v62 = vpack.c.bf16 %v640_v60, %v639_v59  ;;  %v630_v17 = vld [vmem:[%s2252_s5 + $0x58] sm:$0xff]  ;;  %v647_v18 = vld [vmem:[%s2252_s5 + $0xe0] sm:$0xff] }
  0x43   :  { %v1278_v20 = vpack.c.bf16 %v630_v17, %v629_v16  ;;  %v407_v60 = vld [vmem:[%s2251_s3 + $0x280] sm:$0xff]  ;;  %v426_v16 = vld [vmem:[%s2251_s3 + $0x318] sm:$0xff] }
  0x44   :  { %1107 = vmatpush1.bf16.msra.mxu1 %v1106_v29  ;;  %v127_v29 = vld [vmem:[%s2249_s1 + $0x2b0] sm:$0xff] }
  0x45   :  { %1109 = vmatprep.subr.bf16.mxu1 %v1108_v30  ;;  %1179 = vmatpush1.bf16.msra.mxu0 %v1178_v7  ;;  %v1186_v30 = vpack.c.bf16 %v381_v23, %v379_v22  ;;  %v1130_v36 = vpack.c.bf16 %v127_v29, %v123_v28  ;;  %v644_v7 = vld [vmem:[%s2252_s5 + $0xc8] sm:$0xff]  ;;  %v135_v22 = vlaneseq }
  0x46   :  { %1181 = vmatprep.subr.bf16.mxu0 %v1180_v9  ;;  %v1272_v9 = vpack.c.bf16 %v644_v7, %v643_v6  ;;  %v415_v7 = vld [vmem:[%s2251_s3 + $0x2c0] sm:$0xff] }
  0x47   :  { %v1957_v23 = vshrl.u32 %v135_v22, 7  ;;  %v430_v22 = vld [vmem:[%s2251_s3 + $0x338] sm:$0xff] }
  0x48   :  { %1111 = vmatpush1.bf16.msra.mxu1 %v1110_v43  ;;  %v387_v43 = vld [vmem:[%s2251_s3 + $0x1e0] sm:$0xff] }
  0x49   :  { %1113 = vmatprep.subr.bf16.mxu1 %v1112_v44  ;;  %1183 = vmatpush1.bf16.msra.mxu0 %v1182_v19  ;;  %v389_v44 = vld [vmem:[%s2251_s3 + $0x1f0] sm:$0xff]  ;;  %v648_v19 = vld [vmem:[%s2252_s5 + $0xe8] sm:$0xff]  ;;  %v137_v24 = vsub.s32 0, %v1957_v23  ;;  %v145_v35 = vsub.s32 2, %v1957_v23 }
  0x4a   :  { %1185 = vmatprep.subr.bf16.mxu0 %v1184_v21  ;;  %v1194_v45 = vpack.c.bf16 %v389_v44, %v387_v43  ;;  %v1280_v21 = vpack.c.bf16 %v648_v19, %v647_v18  ;;  %v395_v43 = vld [vmem:[%s2251_s3 + $0x220] sm:$0xff]  ;;  %v397_v44 = vld [vmem:[%s2251_s3 + $0x230] sm:$0xff] }
  0x4b   :  { %v423_v19 = vld [vmem:[%s2251_s3 + $0x300] sm:$0xff] }
  0x4c   :  { %1115 = vmatpush1.bf16.msra.mxu1 %v1114_v55  ;;  %v1258_v55 = vpack.c.bf16 %v620_v52, %v619_v50  ;;  %v404_v50 = vld [vmem:[%s2251_s3 + $0x268] sm:$0xff]  ;;  %v1206_v52 = vpack.c.bf16 %v401_v49, %v399_v48  ;;  %v442_v49 = vld [vmem:[%s2251_s3 + $0x398] sm:$0xff] }
  0x4d   :  { %1117 = vmatprep.subr.bf16.mxu1 %v1116_v56  ;;  %1187 = vmatpush1.bf16.msra.mxu0 %v1186_v30  ;;  %v1260_v56 = vpack.c.bf16 %v638_v54, %v637_v53  ;;  %v403_v54 = vld [vmem:[%s2251_s3 + $0x260] sm:$0xff]  ;;  %v440_v48 = vld [vmem:[%s2251_s3 + $0x388] sm:$0xff] }
  0x4e   :  { %1189 = vmatprep.subr.bf16.mxu0 %v1188_v32 }
  0x50   :  { %1119 = vmatpush1.bf16.msra.mxu1 %v1118_v2  ;;  %v1266_v2 = vpack.c.bf16 %v624_v33, %v623_v63  ;;  %v414_v63 = vld [vmem:[%s2251_s3 + $0x2b8] sm:$0xff] }
  0x51   :  { %1121 = vmatprep.subr.bf16.mxu1 %v1120_v3  ;;  %1191 = vmatpush1.bf16.msra.mxu0 %v1190_v37  ;;  %v1268_v3 = vpack.c.bf16 %v642_v1, %v641_v0  ;;  %v396_v37 = vld [vmem:[%s2251_s3 + $0x228] sm:$0xff]  ;;  %v411_v1 = vld [vmem:[%s2251_s3 + $0x2a0] sm:$0xff] }
  0x52   :  { %1193 = vmatprep.subr.bf16.mxu0 %v1192_v42 }
  0x54   :  { %1123 = vmatpush1.bf16.msra.mxu1 %v1122_v14  ;;  %v1274_v14 = vpack.c.bf16 %v628_v11, %v627_v10  ;;  %v422_v10 = vld [vmem:[%s2251_s3 + $0x2f8] sm:$0xff] }
  0x55   :  { %1125 = vmatprep.subr.bf16.mxu1 %v1124_v15  ;;  %1195 = vmatpush1.bf16.msra.mxu0 %v1194_v45  ;;  %v1276_v15 = vpack.c.bf16 %v646_v13, %v645_v12  ;;  %v400_v45 = vld [vmem:[%s2251_s3 + $0x248] sm:$0xff]  ;;  %v419_v13 = vld [vmem:[%s2251_s3 + $0x2e0] sm:$0xff] }
  0x58   :  { %1127 = vmatpush1.bf16.msra.mxu1 %v1126_v26  ;;  %v141_v26 = vsub.s32 1, %v1957_v23 }
  0x59   :  { %1129 = vmatprep.subr.bf16.mxu1 %v1128_v27  ;;  %v138_v27 = vrot.slane %v1963_v25, %v137_v24 }
  0x5a   :  { %v142_v28 = vrot.slane %v1963_v25, %v141_v26 }
  0x5c   :  { %1131 = vmatpush1.bf16.msra.mxu1 %v1130_v36 }
  0x5d   :  { %935 = vmatprep.subr.msk.mxu1 %vm168_vm1, %v132_v38  ;;  %v398_v38 = vld [vmem:[%s2251_s3 + $0x238] sm:$0xff] }
  0x5e   :  { %v1200_v42 = vpack.c.bf16 %v398_v38, %v396_v37  ;;  %v149_v37 = vsub.s32 3, %v1957_v23  ;;  %v739_v23 = vld [vmem:[%s2255_s7 + $0x10] sm:$0xff] }
  0x60   :  { %936 = vmatpush1.msk.msra.mxu1 %vm168_vm1, %v131_v39 }
  0x61   :  { %317 = vmatmul.mubr.f32.vlgmr.msra.gmra.mrb[2].mxu1 %v1455_v31  ;;  %v392_v31 = vld [vmem:[%s2251_s3 + $0x208] sm:$0xff]  ;;  %1257 = vmatprep.subr.bf16.mxu1 %v1256_v51  ;;  %v406_v51 = vld [vmem:[%s2251_s3 + $0x278] sm:$0xff] }
  0x62   :  { %v1196_v47 = vpack.c.bf16 %v394_v46, %v392_v31  ;;  %1259 = vmatpush3.bf16.msra.mxu1 %v1258_v55  ;;  %v402_v31 = vld [vmem:[%s2251_s3 + $0x258] sm:$0xff]  ;;  %v1202_v46 = vpack.c.bf16 %v397_v44, %v395_v43  ;;  %v1208_v53 = vpack.c.bf16 %v406_v51, %v404_v50  ;;  %v405_v55 = vld [vmem:[%s2251_s3 + $0x270] sm:$0xff]  ;;  %v146_v43 = vrot.slane %v1963_v25, %v145_v35 }
  0x63   :  { %1261 = vmatprep.subr.bf16.mxu1 %v1260_v56  ;;  %v408_v56 = vld [vmem:[%s2251_s3 + $0x288] sm:$0xff]  ;;  %v1210_v58 = vpack.c.bf16 %v405_v55, %v403_v54  ;;  %v1244_v54 = vpack.c.bf16 %v442_v49, %v440_v48  ;;  %v439_v55 = vld [vmem:[%s2251_s3 + $0x380] sm:$0xff]  ;;  %v1324_v48 = vmov 0.0  }
  0x64   :  { %1197 = vmatprep.subr.bf16.mxu0 %v1196_v47  ;;  %v1204_v47 = vpack.c.bf16 %v402_v31, %v400_v45  ;;  %v1212_v59 = vpack.c.bf16 %v410_v57, %v408_v56  ;;  %v150_v45 = vrot.slane %v1963_v25, %v149_v37  ;;  %v441_v56 = vld [vmem:[%s2251_s3 + $0x390] sm:$0xff]  ;;  %v444_v57 = vld [vmem:[%s2251_s3 + $0x3a8] sm:$0xff]  ;;  %v741_v37 = vld [vmem:[%s2255_s7 + $0x20] sm:$0xff] }
  0x65   :  { %v749_v49 = vld [vmem:[%s2255_s7 + $0x60] sm:$0xf] }
  0x66   :  { %1263 = vmatpush3.bf16.msra.mxu1 %v1262_v61  ;;  %v409_v61 = vld [vmem:[%s2251_s3 + $0x290] sm:$0xff] }
  0x67   :  { %1265 = vmatprep.subr.bf16.mxu1 %v1264_v62  ;;  %v412_v62 = vld [vmem:[%s2251_s3 + $0x2a8] sm:$0xff]  ;;  %v1214_v33 = vpack.c.bf16 %v409_v61, %v407_v60  ;;  %v1246_v60 = vpack.c.bf16 %v441_v56, %v439_v55 }
  0x68   :  { %v1216_v0 = vpack.c.bf16 %v414_v63, %v412_v62  ;;  %v443_v62 = vld [vmem:[%s2251_s3 + $0x3a0] sm:$0xff]  ;;  %v445_v63 = vld [vmem:[%s2251_s3 + $0x3b0] sm:$0xff] }
  0x6a   :  { %1267 = vmatpush3.bf16.msra.mxu1 %v1266_v2  ;;  %v413_v2 = vld [vmem:[%s2251_s3 + $0x2b0] sm:$0xff] }
  0x6b   :  { %1269 = vmatprep.subr.bf16.mxu1 %v1268_v3  ;;  %v416_v3 = vld [vmem:[%s2251_s3 + $0x2c8] sm:$0xff]  ;;  %v1218_v5 = vpack.c.bf16 %v413_v2, %v411_v1  ;;  %v1250_v1 = vpack.c.bf16 %v445_v63, %v443_v62  ;;  %v944_v62 = vld [vmem:[%s2259_s8] ss:$0 sm:$0xff] }
  0x6c   :  { %v1220_v6 = vpack.c.bf16 %v418_v4, %v416_v3  ;;  %v447_v3 = vld [vmem:[%s2251_s3 + $0x3c0] sm:$0xff]  ;;  %v449_v4 = vld [vmem:[%s2251_s3 + $0x3d0] sm:$0xff] }
  0x6e   :  { %1271 = vmatpush3.bf16.msra.mxu1 %v1270_v8  ;;  %v417_v8 = vld [vmem:[%s2251_s3 + $0x2d0] sm:$0xff] }
  0x6f   :  { %1273 = vmatprep.subr.bf16.mxu1 %v1272_v9  ;;  %v420_v9 = vld [vmem:[%s2251_s3 + $0x2e8] sm:$0xff]  ;;  %v1222_v11 = vpack.c.bf16 %v417_v8, %v415_v7  ;;  %v451_v7 = vld [vmem:[%s2251_s3 + $0x3e0] sm:$0xf] }
  0x70   :  { %v1224_v12 = vpack.c.bf16 %v422_v10, %v420_v9  ;;  %v631_v9 = vld [vmem:[%s2252_s5 + $0x60] sm:$0xff]  ;;  %v632_v10 = vld [vmem:[%s2252_s5 + $0x68] sm:$0xff] }
  0x72   :  { %1275 = vmatpush3.bf16.msra.mxu1 %v1274_v14  ;;  %v421_v14 = vld [vmem:[%s2251_s3 + $0x2f0] sm:$0xff] }
  0x73   :  { %1277 = vmatprep.subr.bf16.mxu1 %v1276_v15  ;;  %v424_v15 = vld [vmem:[%s2251_s3 + $0x308] sm:$0xff]  ;;  %v1226_v17 = vpack.c.bf16 %v421_v14, %v419_v13  ;;  %v650_v13 = vld [vmem:[%s2252_s5 + $0xf8] sm:$0x3] }
  0x74   :  { %v1228_v18 = vpack.c.bf16 %v426_v16, %v424_v15  ;;  %v633_v15 = vld [vmem:[%s2252_s5 + $0x70] sm:$0xff]  ;;  %v634_v16 = vld [vmem:[%s2252_s5 + $0x78] sm:$0xff] }
  0x76   :  { %1279 = vmatpush3.bf16.msra.mxu1 %v1278_v20  ;;  %v425_v20 = vld [vmem:[%s2251_s3 + $0x310] sm:$0xff] }
  0x77   :  { %1281 = vmatprep.subr.bf16.mxu1 %v1280_v21  ;;  %v428_v21 = vld [vmem:[%s2251_s3 + $0x328] sm:$0xff] }
 0x106   :  { %v247_v29 = vpop.f32.mrb[0].mxu1 }
 0x107   :  { %v248_v30 = vadd.f32 %v247_v29, %v138_v27  ;;  %v249_v32 = vpop.f32.mrb[1].mxu1  ;;  %v1230_v27 = vpack.c.bf16 %v425_v20, %v423_v19  ;;  %v427_v29 = vld [vmem:[%s2251_s3 + $0x320] sm:$0xff] }
 0x108   :  { %v250_v36 = vadd.f32 %v249_v32, %v142_v28  ;;  %v1232_v28 = vpack.c.bf16 %v430_v22, %v428_v21  ;;  %v432_v32 = vld [vmem:[%s2251_s3 + $0x348] sm:$0xff]  ;;  %v453_v19 = vld [vmem:[%s2254_s4] sm:$0x3] }
 0x109   :  { %v323_v41 = vmax.f32 %v248_v30, 0.0  ;;  %v429_v30 = vld [vmem:[%s2251_s3 + $0x330] sm:$0xff]  ;;  %v1236_v38 = vpack.c.bf16 %v434_v34, %v432_v32  ;;  %v458_v20 = vrot.slane %v453_v19, %v137_v24  ;;  %v462_v21 = vrot.slane %v453_v19, %v141_v26  ;;  %v740_v24 = vld [vmem:[%s2255_s7 + $0x18] sm:$0xff] }
 0x10a   :  { %v324_v39 = vmax.f32 %v250_v36, 0.0  ;;  %v1234_v36 = vpack.c.bf16 %v429_v30, %v427_v29  ;;  %v737_v29 = vld [vmem:[%s2255_s7] sm:$0xff]  ;;  %v738_v30 = vld [vmem:[%s2255_s7 + $0x8] sm:$0xff]  ;;  %v1293_v26 = vpack.c.bf16 %v740_v24, %v739_v23 }
 0x10b   :  { %v1290_v35 = vpack.c.bf16 %v738_v30, %v737_v29 }
 0x10c   :  { %539 = vmatprep.mubr.f32.mxu0 %v324_v39  ;;  %v431_v39 = vld [vmem:[%s2251_s3 + $0x340] sm:$0xff] }
 0x10d   :  { %540 = vmatmul.mubr.f32.vlgmr.msra.gmra.mrb[0].mxu0 %v323_v41  ;;  %v436_v41 = vld [vmem:[%s2251_s3 + $0x368] sm:$0xff] }
 0x10e   :  { %1199 = vmatpush1.bf16.msra.mxu0 %v1198_v40  ;;  %v433_v40 = vld [vmem:[%s2251_s3 + $0x350] sm:$0xff] }
 0x10f   :  { %1201 = vmatprep.subr.bf16.mxu0 %v1200_v42  ;;  %v438_v42 = vld [vmem:[%s2251_s3 + $0x378] sm:$0xff]  ;;  %v1238_v44 = vpack.c.bf16 %v433_v40, %v431_v39  ;;  %v743_v40 = vld [vmem:[%s2255_s7 + $0x30] sm:$0xff] }
 0x110   :  { %v1240_v31 = vpack.c.bf16 %v438_v42, %v436_v41  ;;  %v744_v41 = vld [vmem:[%s2255_s7 + $0x38] sm:$0xff] }
 0x111   :  { %v1299_v42 = vpack.c.bf16 %v744_v41, %v743_v40 }
 0x112   :  { %1203 = vmatpush1.bf16.msra.mxu0 %v1202_v46  ;;  %v435_v46 = vld [vmem:[%s2251_s3 + $0x360] sm:$0xff] }
 0x113   :  { %1205 = vmatprep.subr.bf16.mxu0 %v1204_v47  ;;  %v437_v47 = vld [vmem:[%s2251_s3 + $0x370] sm:$0xff] }
 0x116   :  { %1207 = vmatpush1.bf16.msra.mxu0 %v1206_v52  ;;  %v1242_v52 = vpack.c.bf16 %v437_v47, %v435_v46  ;;  %v748_v46 = vld [vmem:[%s2255_s7 + $0x58] sm:$0xff] }
 0x117   :  { %1209 = vmatprep.subr.bf16.mxu0 %v1208_v53 }
 0x11a   :  { %1211 = vmatpush1.bf16.msra.mxu0 %v1210_v58  ;;  %v446_v58 = vld [vmem:[%s2251_s3 + $0x3b8] sm:$0xff] }
 0x11b   :  { %1213 = vmatprep.subr.bf16.mxu0 %v1212_v59  ;;  %v1248_v61 = vpack.c.bf16 %v446_v58, %v444_v57  ;;  %v837_v58 = vld [vmem:[%s2256_s9 + $0x10] sm:$0xff] }
 0x11e   :  { %1215 = vmatpush1.bf16.msra.mxu0 %v1214_v33  ;;  %v448_v33 = vld [vmem:[%s2251_s3 + $0x3c8] sm:$0xff] }
 0x11f   :  { %1217 = vmatprep.subr.bf16.mxu0 %v1216_v0  ;;  %v450_v0 = vld [vmem:[%s2251_s3 + $0x3d8] sm:$0xff] }
 0x120   :  { %v1252_v2 = vpack.c.bf16 %v450_v0, %v448_v33 }
 0x122   :  { %1219 = vmatpush1.bf16.msra.mxu0 %v1218_v5  ;;  %v1254_v5 = vpack.c.bf16 %v449_v4, %v447_v3 }
 0x123   :  { %1221 = vmatprep.subr.bf16.mxu0 %v1220_v6  ;;  %v452_v6 = vld [vmem:[%s2251_s3 + $0x3e8] sm:$0xf] }
 0x126   :  { %1223 = vmatpush1.bf16.msra.mxu0 %v1222_v11  ;;  %v1282_v11 = vpack.c.bf16 %v632_v10, %v631_v9 }
 0x127   :  { %1225 = vmatprep.subr.bf16.mxu0 %v1224_v12  ;;  %v649_v12 = vld [vmem:[%s2252_s5 + $0xf0] sm:$0xff] }
 0x128   :  { %1283 = vmatpush3.bf16.msra.mxu1 %v1282_v11  ;;  %v1284_v14 = vpack.c.bf16 %v650_v13, %v649_v12 }
 0x12a   :  { %1227 = vmatpush1.bf16.msra.mxu0 %v1226_v17  ;;  %v1287_v17 = vpack.c.bf16 %v634_v16, %v633_v15  ;;  %1286 = vmatprep.subr.msk.bf16.mxu1 %vm1285_vm5, %v1284_v14 }
 0x12b   :  { %1229 = vmatprep.subr.bf16.mxu0 %v1228_v18  ;;  %v1323_v18 = vmov 0.0|0.0  }
 0x12c   :  { %1288 = vmatpush3.bf16.msra.mxu1 %v1287_v17 }
 0x12d   :  { %1289 = vmatprep.subr.bf16.mxu1 %v1323_v18 }
 0x12e   :  { %1231 = vmatpush1.bf16.msra.mxu0 %v1230_v27 }
 0x12f   :  { %1233 = vmatprep.subr.bf16.mxu0 %v1232_v28 }
 0x132   :  { %1235 = vmatpush1.bf16.msra.mxu0 %v1234_v36 }
 0x133   :  { %1237 = vmatprep.subr.bf16.mxu0 %v1236_v38  ;;  %v742_v38 = vld [vmem:[%s2255_s7 + $0x28] sm:$0xff] }
 0x134   :  { %v318_v50 = vpop.f32.mrb[2].mxu1  ;;  %v1296_v39 = vpack.c.bf16 %v742_v38, %v741_v37 }
 0x135   :  { %v319_v25 = vadd.f32 %v318_v50, %v146_v43  ;;  %v320_v51 = vpop.f32.mrb[3].mxu1  ;;  %v745_v43 = vld [vmem:[%s2255_s7 + $0x40] sm:$0xff] }
 0x136   :  { %1239 = vmatpush1.bf16.msra.mxu0 %v1238_v44  ;;  %v321_v53 = vadd.f32 %v320_v51, %v150_v45  ;;  %v746_v44 = vld [vmem:[%s2255_s7 + $0x48] sm:$0xff]  ;;  %v835_v50 = vld [vmem:[%s2256_s9] sm:$0xff] }
 0x137   :  { %1241 = vmatprep.subr.bf16.mxu0 %v1240_v31  ;;  %v325_v8 = vmax.f32 %v319_v25, 0.0  ;;  %v1302_v45 = vpack.c.bf16 %v746_v44, %v745_v43  ;;  %v747_v31 = vld [vmem:[%s2255_s7 + $0x50] sm:$0xff]  ;;  %v836_v25 = vld [vmem:[%s2256_s9 + $0x8] sm:$0xff] }
 0x138   :  { %v326_v59 = vmax.f32 %v321_v53, 0.0  ;;  %v1305_v47 = vpack.c.bf16 %v748_v46, %v747_v31  ;;  %v1308_v51 = vpack.c.bf16 %v836_v25, %v835_v50  ;;  %v941_v53 = vld [vmem:[%s2257_s6] ss:$0 sm:$0xff] }
 0x13a   :  { %1243 = vmatpush1.bf16.msra.mxu0 %v1242_v52  ;;  %940 = vmatprep.mubr.msk.f32.mxu0 %vm465_vm2, %v326_v59  ;;  %v838_v59 = vld [vmem:[%s2256_s9 + $0x18] sm:$0x1] }
 0x13b   :  { %1245 = vmatprep.subr.bf16.mxu0 %v1244_v54 }
 0x13e   :  { %1247 = vmatpush1.bf16.msra.mxu0 %v1246_v60  ;;  %v1311_v60 = vpack.c.bf16 %v838_v59, %v837_v58 }
 0x13f   :  { %1249 = vmatprep.subr.bf16.mxu0 %v1248_v61  ;;  %v16_v61 = vstv %s2258_s10 }
 0x140   :  { %17 = vst [vmem:[#allocation2] sm:$0x1] %v16_v61 }
 0x142   :  { %1251 = vmatpush1.bf16.msra.mxu0 %v1250_v1 }
 0x143   :  { %1253 = vmatprep.subr.bf16.mxu0 %v1252_v2 }
 0x146   :  { %1255 = vmatpush1.bf16.msra.mxu0 %v1254_v5 }
 0x147   :  { %938 = vmatprep.subr.msk.mxu0 %vm168_vm1, %v452_v6  ;;  %v947_v2 = vld [vmem:[#allocation2] ss:$0 sm:$0xff] }
 0x14a   :  { %939 = vmatpush1.msk.msra.mxu0 %vm168_vm1, %v451_v7 }
 0x14b   :  { %611 = vmatmul.mubr.f32.vlgmr.msra.gmra.mrb[0].mxu0 %v325_v8  ;;  %1307 = vmatprep.subr.bf16.mxu0 %v1323_v18 }
 0x14c   :  { %1041 = vmatprep.mubr.msk.f32.mxu0 %vm1325_vm7, %v1324_v48  ;;  %1309 = vmatpush3.bf16.msra.mxu0 %v1308_v51 }
 0x14d   :  { %1310 = vmatprep.subr.bf16.mxu0 %v1323_v18 }
 0x150   :  { %1313 = vmatpush3.bf16.msk.msra.mxu0 %vm1312_vm10, %v1311_v60 }
 0x21e   :  { %v612_v22 = vpop.f32.mrb[0].mxu0 }
 0x21f   :  { %v1314_v27 = vadd.f32 %v612_v22, %v458_v20  ;;  %v614_v28 = vpop.f32.mrb[1].mxu0 }
 0x220   :  { %v1315_v32 = vadd.f32 %v614_v28, %v462_v21 }
 0x221   :  { %v617_v36 = vmax.f32 %v1314_v27, 0.0 }
 0x222   :  { %v618_v34 = vmax.f32 %v1315_v32, 0.0 }
 0x224   :  { %943 = vmatprep.mubr.msk.f32.mxu1 %vm658_vm6, %v618_v34 }
 0x225   :  { %731 = vmatmul.mubr.f32.vlgmr.msra.gmra.mrb[4].mxu1 %v617_v36 }
 0x226   :  { %1291 = vmatpush3.bf16.msra.mxu1 %v1290_v35  ;;  %1030 = vmatprep.mubr.msk.f32.mxu1 %vm1325_vm7, %v1324_v48 }
 0x227   :  { %1292 = vmatprep.subr.bf16.mxu1 %v1323_v18 }
 0x22a   :  { %1294 = vmatpush3.bf16.msra.mxu1 %v1293_v26 }
 0x22b   :  { %1295 = vmatprep.subr.bf16.mxu1 %v1323_v18 }
 0x22e   :  { %1297 = vmatpush3.bf16.msra.mxu1 %v1296_v39 }
 0x22f   :  { %1298 = vmatprep.subr.bf16.mxu1 %v1323_v18 }
 0x232   :  { %1300 = vmatpush3.bf16.msra.mxu1 %v1299_v42 }
 0x233   :  { %1301 = vmatprep.subr.bf16.mxu1 %v1323_v18 }
 0x236   :  { %1303 = vmatpush3.bf16.msra.mxu1 %v1302_v45 }
 0x237   :  { %1304 = vmatprep.subr.bf16.mxu1 %v1323_v18 }
 0x23a   :  { %1306 = vmatpush3.bf16.msra.mxu1 %v1305_v47 }
 0x23b   :  { %1028 = vmatprep.subr.mxu1 %v1324_v48 }
 0x23e   :  { %1029 = vmatpush3.msk.msra.mxu1 %vm168_vm1, %v749_v49 }
 0x2f8   :  { %v982_v52 = vpop.f32.mrb[4].mxu1 }
 0x2f9   :  { %v983_v54 = vpop.f32.mrb[5].mxu1 }
 0x2fa   :  { %v984_v55 = vadd.f32 %v983_v54, %v982_v52 }
 0x2fc   :  { %v733_v56 = vadd.f32 %v984_v55, %v941_v53 }
 0x2fe   :  { %v736_v57 = vmax.f32 %v733_v56, 0.0 }
 0x300   :  { %1031 = vmatmul.mubr.msk.f32.vlgmr.msra.gmra.mrb[6].mxu1 %vm757_vm8, %v736_v57 }
 0x3d3   :  { %v830_v63 = vpop.f32.mrb[6].mxu1 }
 0x3d4   :  { %v831_v33 = vadd.f32 %v944_v62, %v830_v63  ;;  %v1032_v0 = vpop.f32.mrb[7].mxu1 }
 0x3d6   :  { %v834_v1 = vmax.f32 %v831_v33, 0.0 }
 0x3d8   :  { %1042 = vmatmul.mubr.msk.f32.vlgmr.msra.gmra.mrb[2].mxu0 %vm846_vm11, %v834_v1 }
 0x4ab   :  { %v920_v3 = vpop.f32.mrb[2].mxu0 }
 0x4ac   :  { %v921_v4 = vadd.f32 %v947_v2, %v920_v3  ;;  %v1043_v5 = vpop.f32.mrb[3].mxu0 }
 0x4ae   :  { %v924_v6 = vmax.f32 %v921_v4, 0.0 }
 0x4b0   :  { %926 = vst.msk [vmem:[%s2260_s11] sm:$0x3] %vm925_vm12, %v924_v6 }

</bundles_post_ra>
